<compile_context>
chip_gen: v5e
topology: v5e:2x2
jax: 0.10.0
libtpu: 0.0.40
codegen_flags: <defaults>
</compile_context>

<pallas_src>
import functools
import math

import jax
import jax.numpy as jnp
from jax.experimental import pallas as pl
from jax.experimental.pallas import tpu as pltpu


def _round_up(x, m):
    return (x + m - 1) // m * m


# ----------------------------- Pallas kernels ------------------------------ #

def _conv_relu_pool_kernel(xq_ref, w_ref, bias_ref, o_ref, *, nb, pr, kb):
    """Fused 5x5 conv (pad 2) + bias + ReLU + 2x2 max-pool for `nb` images.

    xq_ref  : [nb, 2, 2, pr+2, kb]   kw-unfolded parity planes:
              xq[b, a, pw, i, (j*5+kw)*cin + c] == xpad[b, 2i+a, 2j+pw+kw, c]
              (lane axis zero-padded up to kb, a multiple of 128).
    w_ref   : [5*kb, wh_p*cout]      block-diagonal tap weights, kh-major on K.
    bias_ref: [1, wh_p*cout]         bias tiled over the (padded) W positions.
    o_ref   : [nb, pr, wh_p*cout]    pooled output (padded rows / lanes kept).
    """
    m = nb * pr
    # Build the K-folded LHS:  M = (phase, image, row),  K = (kh, j, kw, c).
    # Every slice is full lane width at a sublane-only offset; every concat /
    # reshape lands on sublane-tile / 128-lane boundaries (no lane shuffles).
    phase_blocks = []
    for ph in range(2):
        for pw in range(2):
            kh_parts = []
            for kh in range(5):
                s = ph + kh
                a, roff = s % 2, s // 2
                chunk = xq_ref[:, a, pw, roff:roff + pr, :]        # [nb, pr, kb]
                kh_parts.append(chunk.reshape(m, kb))
            phase_blocks.append(jnp.concatenate(kh_parts, axis=1))  # [m, 5*kb]
    lhs = jnp.concatenate(phase_blocks, axis=0)                     # [4*m, 5*kb]
    # One MXU dot per grid step; the 25-tap reduction stays inside the MXU.
    acc = jnp.dot(lhs, w_ref[...], preferred_element_type=jnp.float32)
    # 2x2 max pool == elementwise max over the four phase row-blocks.
    pooled = jnp.maximum(
        jnp.maximum(acc[0 * m:1 * m], acc[1 * m:2 * m]),
        jnp.maximum(acc[2 * m:3 * m], acc[3 * m:4 * m]))            # [m, wc_out]
    # Bias + ReLU (exact: bias is constant over each pool window, ReLU monotone).
    y = jnp.maximum(pooled + bias_ref[...].astype(jnp.float32), 0.0)
    o_ref[...] = y.reshape(nb, pr, -1).astype(o_ref.dtype)


def _linear_kernel(x_ref, w_ref, bias_ref, o_ref):
    acc = jnp.dot(x_ref[...], w_ref[...], preferred_element_type=jnp.float32)
    o_ref[...] = (acc + bias_ref[...].astype(jnp.float32)).astype(o_ref.dtype)


# ------------------------------ host wrappers ------------------------------ #

def _prep_conv_input(x_nhwc, pr, wh_p, kb, dtype):
    """Pad + parity/pool-phase decompose + kw-unfold -> [N, 2, 2, pr+2, kb].

    plane[n, a, pw, i, (j*5+kw)*cin + c] == xpad[n, 2i+a, 2j+pw+kw, c]
    """
    n, h, w, cin = x_nhwc.shape
    rows = pr + 2
    hpad = 2 * rows
    wpad = 2 * wh_p + 4
    xp = jnp.pad(x_nhwc.astype(dtype),
                 ((0, 0), (2, hpad - 2 - h), (2, wpad - 2 - w), (0, 0)))
    per_a = []
    for a in range(2):
        xa = xp[:, a::2]                                        # [n, rows, wpad, cin]
        per_pw = []
        for pw in range(2):
            taps = [xa[:, :, pw + kw:pw + kw + 2 * wh_p:2, :]   # [n, rows, wh_p, cin]
                    for kw in range(5)]
            p = jnp.stack(taps, axis=3)                         # [n, rows, wh_p, 5, cin]
            p = p.reshape(n, rows, wh_p * 5 * cin)
            per_pw.append(jnp.pad(p, ((0, 0), (0, 0), (0, kb - wh_p * 5 * cin))))
        per_a.append(jnp.stack(per_pw, axis=1))                 # [n, 2, rows, kb]
    return jnp.stack(per_a, axis=1)                             # [n, 2, 2, rows, kb]


def _expand_conv_weight(w_kkio, wh_p, kb, dtype):
    """[5,5,Cin,Cout] -> [5*kb, wh_p*Cout] block-diagonal, K order (kh, j, kw, c)."""
    kh, kw, cin, cout = w_kkio.shape
    eye = jnp.eye(wh_p, dtype=jnp.float32)
    w_exp = jnp.einsum("jJ,hwco->hjwcJo", eye, w_kkio.astype(jnp.float32))
    w_exp = w_exp.reshape(kh, wh_p * kw * cin, wh_p * cout)
    w_exp = jnp.pad(w_exp, ((0, 0), (0, kb - wh_p * kw * cin), (0, 0)))
    return w_exp.reshape(kh * kb, wh_p * cout).astype(dtype)


def conv5x5_relu_pool(x_nhwc, w_kkio, bias, *, block_batch, dtype=jnp.float32):
    """Fused Conv2d(5,1,2) + ReLU + MaxPool2d(2).  Returns [N, H/2, W/2, Cout]."""
    n, h, w, cin = x_nhwc.shape
    assert h % 2 == 0 and w % 2 == 0 and w_kkio.shape[:2] == (5, 5)
    cout = w_kkio.shape[-1]
    hh, wh = h // 2, w // 2
    itemsize = jnp.dtype(dtype).itemsize
    sub = 8 * max(1, 4 // itemsize)                 # sublane tile: 8 (f32) / 16 (bf16)
    pr = _round_up(hh, sub)                         # pooled rows, sublane-padded
    wh_p = _round_up(wh, 128 // math.gcd(cout, 128))  # pooled cols: wc_out % 128 == 0
    wc_out = wh_p * cout
    kb = _round_up(wh_p * 5 * cin, 128)             # per-kh K block, 128-lane aligned
    rows = pr + 2

    # Batch blocking: M per grid step = 4 * nb * pr (~256 on v6e/v7x defaults;
    # pass block_batch/2 to target 128-row tiles on v5e).  Batches >= 2*nb give
    # >= 2 grid steps so dimension_semantics=("parallel",) feeds both v7x cores.
    nb = max(1, min(block_batch, n))
    n_pad = _round_up(n, nb)
    if n_pad != n:
        x_nhwc = jnp.pad(x_nhwc, ((0, n_pad - n), (0, 0), (0, 0), (0, 0)))

    xq = _prep_conv_input(x_nhwc, pr, wh_p, kb, dtype)       # [n_pad,2,2,rows,kb]
    w_exp = _expand_conv_weight(w_kkio, wh_p, kb, dtype)     # [5*kb, wc_out]
    b_exp = jnp.tile(bias.astype(jnp.float32), wh_p).reshape(1, wc_out)

    kern = functools.partial(_conv_relu_pool_kernel, nb=nb, pr=pr, kb=kb)
    flops = 2 * n_pad * (4 * pr) * (5 * kb) * wc_out         # MXU flops (block-diag incl.)
    bytes_accessed = (xq.size * xq.dtype.itemsize
                      + w_exp.size * w_exp.dtype.itemsize
                      + b_exp.size * 4
                      + n_pad * pr * wc_out * itemsize)
    out = pl.pallas_call(
        kern,
        out_shape=jax.ShapeDtypeStruct((n_pad, pr, wc_out), dtype),
        grid=(n_pad // nb,),
        in_specs=[
            pl.BlockSpec((nb, 2, 2, rows, kb), lambda i: (i, 0, 0, 0, 0)),
            # NOTE: constant-index weight/bias blocks are double-buffered by
            # default; if VMEM-tight, pipeline_mode=pl.Buffered(1) halves that.
            pl.BlockSpec((5 * kb, wc_out), lambda i: (0, 0)),
            pl.BlockSpec((1, wc_out), lambda i: (0, 0)),
        ],
        out_specs=pl.BlockSpec((nb, pr, wc_out), lambda i: (i, 0, 0)),
        compiler_params=pltpu.CompilerParams(
            dimension_semantics=("parallel",),
            vmem_limit_bytes=32 * 1024 * 1024),
        cost_estimate=pl.CostEstimate(flops=flops, transcendentals=0,
                                      bytes_accessed=bytes_accessed),
    )(xq, w_exp, b_exp)
    # Strip row / lane padding back to the exact NHWC activation.
    out = out[:n, :hh].reshape(n, hh, wh_p, cout)[:, :, :wh, :]
    return out


def linear(x, w, bias, *, tm_max=256):
    """x:[M,K] @ w:[K,N] + bias; M-tiled grid, N zero-padded to a 128-lane tile."""
    m, k = x.shape
    n_out = w.shape[1]
    n_pad = _round_up(n_out, 128)
    w_p = jnp.pad(w, ((0, 0), (0, n_pad - n_out))).astype(x.dtype)
    b_p = jnp.pad(bias.astype(jnp.float32), (0, n_pad - n_out)).reshape(1, n_pad)
    tm = tm_max if m >= tm_max else _round_up(m, 8)
    mp = _round_up(m, tm)
    xp = jnp.pad(x, ((0, mp - m), (0, 0))) if mp != m else x
    out = pl.pallas_call(
        _linear_kernel,
        out_shape=jax.ShapeDtypeStruct((mp, n_pad), jnp.float32),
        grid=(mp // tm,),
        in_specs=[
            pl.BlockSpec((tm, k), lambda i: (i, 0)),
            pl.BlockSpec((k, n_pad), lambda i: (0, 0)),
            pl.BlockSpec((1, n_pad), lambda i: (0, 0)),
        ],
        out_specs=pl.BlockSpec((tm, n_pad), lambda i: (i, 0)),
        compiler_params=pltpu.CompilerParams(
            dimension_semantics=("parallel",)),
        cost_estimate=pl.CostEstimate(
            flops=2 * mp * k * n_pad, transcendentals=0,
            bytes_accessed=(xp.size * xp.dtype.itemsize
                            + w_p.size * w_p.dtype.itemsize + 4 * mp * n_pad)),
    )(xp, w_p, b_p)
    return out[:m, :n_out]


# --------------------------------- model ----------------------------------- #

def init_params(key):
    k1, k2, k3, k4, k5, k6 = jax.random.split(key, 6)
    return dict(
        w1=jax.random.normal(k1, (5, 5, 1, 16), jnp.float32) * 0.1,
        b1=jax.random.normal(k2, (16,), jnp.float32) * 0.1,
        w2=jax.random.normal(k3, (5, 5, 16, 32), jnp.float32) * 0.05,
        b2=jax.random.normal(k4, (32,), jnp.float32) * 0.05,
        # Linear weight stored as [in_features, out_features] = [32*7*7, 10]
        # (transpose of torch's [10, 32*7*7]); row order follows (C, H, W).
        w3=jax.random.normal(k5, (32 * 7 * 7, 10), jnp.float32) * 0.02,
        b3=jax.random.normal(k6, (10,), jnp.float32) * 0.02,
    )


def cnn_forward(params, x_nchw, *, dtype=jnp.float32):
    """Returns (logits [N,10], flattened_features [N, 32*7*7]) like the torch CNN."""
    n = x_nchw.shape[0]
    x = jnp.transpose(x_nchw, (0, 2, 3, 1)).astype(dtype)         # NCHW -> NHWC
    # block_batch chosen so M = 4 * block_batch * (H/2 rounded up) ~= 256, a
    # full MXU pass on v6e/v7x (halve them to target 128-row tiles on v5e).
    x = conv5x5_relu_pool(x, params["w1"], params["b1"],
                          block_batch=4, dtype=dtype)             # [N,14,14,16]
    x = conv5x5_relu_pool(x, params["w2"], params["b2"],
                          block_batch=8, dtype=dtype)             # [N,7,7,32]
    # PyTorch flattens NCHW: (C, H, W) minor order — this tensor is returned.
    feat = jnp.transpose(x, (0, 3, 1, 2)).reshape(n, -1)          # [N, 1568]
    out = linear(feat, params["w3"], params["b3"])                # [N, 10]
    return out, feat


# Pure-JAX reference for a correctness sanity check.
def cnn_reference(params, x_nchw):
    x = jnp.transpose(x_nchw, (0, 2, 3, 1))

    def conv(x, w, b):
        y = jax.lax.conv_general_dilated(
            x, w, window_strides=(1, 1), padding=((2, 2), (2, 2)),
            dimension_numbers=("NHWC", "HWIO", "NHWC"), precision="highest")
        return jax.nn.relu(y + b)

    def pool(x):
        n, h, w, c = x.shape
        return jnp.max(x.reshape(n, h // 2, 2, w // 2, 2, c), axis=(2, 4))

    x = pool(conv(x, params["w1"], params["b1"]))
    x = pool(conv(x, params["w2"], params["b2"]))
    feat = jnp.transpose(x, (0, 3, 1, 2)).reshape(x.shape[0], -1)
    out = feat @ params["w3"] + params["b3"]
    return out, feat


if __name__ == "__main__":
    key = jax.random.PRNGKey(0)
    pkey, xkey = jax.random.split(key)
    params = init_params(pkey)
    # Input shape implied by Linear(32*7*7, 10): 1x28x28 images, batch=2.
    x = jax.random.normal(xkey, (2, 1, 28, 28), jnp.float32)

    out, feat = jax.jit(cnn_forward)(params, x)
    jax.block_until_ready((out, feat))

    ref_out, ref_feat = jax.jit(cnn_reference)(params, x)
    assert out.shape == (2, 10) and feat.shape == (2, 32 * 7 * 7)
    assert jnp.allclose(feat, ref_feat, rtol=1e-2, atol=1e-2)
    assert jnp.allclose(out, ref_out, rtol=1e-2, atol=1e-2)

    # bf16 activations/weights (f32 MXU accumulation) — the v6e/v7x fast path.
    out_bf, feat_bf = jax.jit(
        functools.partial(cnn_forward, dtype=jnp.bfloat16))(params, x)
    jax.block_until_ready((out_bf, feat_bf))
    assert jnp.allclose(out_bf, ref_out, rtol=1e-1, atol=1e-1)

    print("KERNEL_OK")
</pallas_src>

<mosaic_0001>
module attributes {stable_mosaic.version = 11 : i64} {
  func.func @_conv_relu_pool_kernel(%arg0: i32, %arg1: memref<2x2x2x18x128xf32, #tpu.memory_space<vmem>>, %arg2: memref<640x256xf32, #tpu.memory_space<vmem>>, %arg3: memref<1x256xf32, #tpu.memory_space<vmem>>, %arg4: memref<2x16x256xf32, #tpu.memory_space<vmem>>) attributes {dimension_semantics = [#tpu.dimension_semantics<parallel>], iteration_bounds = array<i64: 1>, scalar_prefetch = 0 : i64, scratch_operands = 0 : i64, tpu.core_type = #tpu.core_type<tc>, window_params = [{transform_indices = @transform_0, window_bounds = array<i64: 2, 2, 2, 18, 128>}, {pipeline_mode = #tpu.pipeline_mode<synchronous>, transform_indices = @transform_1, window_bounds = array<i64: 640, 256>}, {pipeline_mode = #tpu.pipeline_mode<synchronous>, transform_indices = @transform_2, window_bounds = array<i64: 1, 256>}, {transform_indices = @transform_3, window_bounds = array<i64: 2, 16, 256>}]} {
    %c0 = arith.constant 0 : index
    %c0_0 = arith.constant 0 : index
    %c0_1 = arith.constant 0 : index
    %c0_2 = arith.constant 0 : index
    %c0_3 = arith.constant 0 : index
    %0 = vector.load %arg1[%c0, %c0_0, %c0_1, %c0_2, %c0_3] : memref<2x2x2x18x128xf32, #tpu.memory_space<vmem>>, vector<2x1x1x16x128xf32>
    %1 = vector.shape_cast %0 : vector<2x1x1x16x128xf32> to vector<2x16x128xf32>
    %2 = vector.shape_cast %1 : vector<2x16x128xf32> to vector<32x128xf32>
    %c0_4 = arith.constant 0 : index
    %c1 = arith.constant 1 : index
    %c0_5 = arith.constant 0 : index
    %c0_6 = arith.constant 0 : index
    %c0_7 = arith.constant 0 : index
    %3 = vector.load %arg1[%c0_4, %c1, %c0_5, %c0_6, %c0_7] : memref<2x2x2x18x128xf32, #tpu.memory_space<vmem>>, vector<2x1x1x16x128xf32>
    %4 = vector.shape_cast %3 : vector<2x1x1x16x128xf32> to vector<2x16x128xf32>
    %5 = vector.shape_cast %4 : vector<2x16x128xf32> to vector<32x128xf32>
    %c0_8 = arith.constant 0 : index
    %c0_9 = arith.constant 0 : index
    %c0_10 = arith.constant 0 : index
    %c1_11 = arith.constant 1 : index
    %c0_12 = arith.constant 0 : index
    %6 = vector.load %arg1[%c0_8, %c0_9, %c0_10, %c1_11, %c0_12] : memref<2x2x2x18x128xf32, #tpu.memory_space<vmem>>, vector<2x1x1x16x128xf32>
    %7 = vector.shape_cast %6 : vector<2x1x1x16x128xf32> to vector<2x16x128xf32>
    %8 = vector.shape_cast %7 : vector<2x16x128xf32> to vector<32x128xf32>
    %c0_13 = arith.constant 0 : index
    %c1_14 = arith.constant 1 : index
    %c0_15 = arith.constant 0 : index
    %c1_16 = arith.constant 1 : index
    %c0_17 = arith.constant 0 : index
    %9 = vector.load %arg1[%c0_13, %c1_14, %c0_15, %c1_16, %c0_17] : memref<2x2x2x18x128xf32, #tpu.memory_space<vmem>>, vector<2x1x1x16x128xf32>
    %10 = vector.shape_cast %9 : vector<2x1x1x16x128xf32> to vector<2x16x128xf32>
    %11 = vector.shape_cast %10 : vector<2x16x128xf32> to vector<32x128xf32>
    %c0_18 = arith.constant 0 : index
    %c0_19 = arith.constant 0 : index
    %c0_20 = arith.constant 0 : index
    %c2 = arith.constant 2 : index
    %c0_21 = arith.constant 0 : index
    %12 = vector.load %arg1[%c0_18, %c0_19, %c0_20, %c2, %c0_21] : memref<2x2x2x18x128xf32, #tpu.memory_space<vmem>>, vector<2x1x1x16x128xf32>
    %13 = vector.shape_cast %12 : vector<2x1x1x16x128xf32> to vector<2x16x128xf32>
    %14 = vector.shape_cast %13 : vector<2x16x128xf32> to vector<32x128xf32>
    %15 = tpu.concatenate %2, %5, %8, %11, %14 in 1 : vector<32x128xf32>, vector<32x128xf32>, vector<32x128xf32>, vector<32x128xf32>, vector<32x128xf32> -> vector<32x640xf32>
    %c0_22 = arith.constant 0 : index
    %c0_23 = arith.constant 0 : index
    %c1_24 = arith.constant 1 : index
    %c0_25 = arith.constant 0 : index
    %c0_26 = arith.constant 0 : index
    %16 = vector.load %arg1[%c0_22, %c0_23, %c1_24, %c0_25, %c0_26] : memref<2x2x2x18x128xf32, #tpu.memory_space<vmem>>, vector<2x1x1x16x128xf32>
    %17 = vector.shape_cast %16 : vector<2x1x1x16x128xf32> to vector<2x16x128xf32>
    %18 = vector.shape_cast %17 : vector<2x16x128xf32> to vector<32x128xf32>
    %c0_27 = arith.constant 0 : index
    %c1_28 = arith.constant 1 : index
    %c1_29 = arith.constant 1 : index
    %c0_30 = arith.constant 0 : index
    %c0_31 = arith.constant 0 : index
    %19 = vector.load %arg1[%c0_27, %c1_28, %c1_29, %c0_30, %c0_31] : memref<2x2x2x18x128xf32, #tpu.memory_space<vmem>>, vector<2x1x1x16x128xf32>
    %20 = vector.shape_cast %19 : vector<2x1x1x16x128xf32> to vector<2x16x128xf32>
    %21 = vector.shape_cast %20 : vector<2x16x128xf32> to vector<32x128xf32>
    %c0_32 = arith.constant 0 : index
    %c0_33 = arith.constant 0 : index
    %c1_34 = arith.constant 1 : index
    %c1_35 = arith.constant 1 : index
    %c0_36 = arith.constant 0 : index
    %22 = vector.load %arg1[%c0_32, %c0_33, %c1_34, %c1_35, %c0_36] : memref<2x2x2x18x128xf32, #tpu.memory_space<vmem>>, vector<2x1x1x16x128xf32>
    %23 = vector.shape_cast %22 : vector<2x1x1x16x128xf32> to vector<2x16x128xf32>
    %24 = vector.shape_cast %23 : vector<2x16x128xf32> to vector<32x128xf32>
    %c0_37 = arith.constant 0 : index
    %c1_38 = arith.constant 1 : index
    %c1_39 = arith.constant 1 : index
    %c1_40 = arith.constant 1 : index
    %c0_41 = arith.constant 0 : index
    %25 = vector.load %arg1[%c0_37, %c1_38, %c1_39, %c1_40, %c0_41] : memref<2x2x2x18x128xf32, #tpu.memory_space<vmem>>, vector<2x1x1x16x128xf32>
    %26 = vector.shape_cast %25 : vector<2x1x1x16x128xf32> to vector<2x16x128xf32>
    %27 = vector.shape_cast %26 : vector<2x16x128xf32> to vector<32x128xf32>
    %c0_42 = arith.constant 0 : index
    %c0_43 = arith.constant 0 : index
    %c1_44 = arith.constant 1 : index
    %c2_45 = arith.constant 2 : index
    %c0_46 = arith.constant 0 : index
    %28 = vector.load %arg1[%c0_42, %c0_43, %c1_44, %c2_45, %c0_46] : memref<2x2x2x18x128xf32, #tpu.memory_space<vmem>>, vector<2x1x1x16x128xf32>
    %29 = vector.shape_cast %28 : vector<2x1x1x16x128xf32> to vector<2x16x128xf32>
    %30 = vector.shape_cast %29 : vector<2x16x128xf32> to vector<32x128xf32>
    %31 = tpu.concatenate %18, %21, %24, %27, %30 in 1 : vector<32x128xf32>, vector<32x128xf32>, vector<32x128xf32>, vector<32x128xf32>, vector<32x128xf32> -> vector<32x640xf32>
    %c0_47 = arith.constant 0 : index
    %c1_48 = arith.constant 1 : index
    %c0_49 = arith.constant 0 : index
    %c0_50 = arith.constant 0 : index
    %c0_51 = arith.constant 0 : index
    %32 = vector.load %arg1[%c0_47, %c1_48, %c0_49, %c0_50, %c0_51] : memref<2x2x2x18x128xf32, #tpu.memory_space<vmem>>, vector<2x1x1x16x128xf32>
    %33 = vector.shape_cast %32 : vector<2x1x1x16x128xf32> to vector<2x16x128xf32>
    %34 = vector.shape_cast %33 : vector<2x16x128xf32> to vector<32x128xf32>
    %c0_52 = arith.constant 0 : index
    %c0_53 = arith.constant 0 : index
    %c0_54 = arith.constant 0 : index
    %c1_55 = arith.constant 1 : index
    %c0_56 = arith.constant 0 : index
    %35 = vector.load %arg1[%c0_52, %c0_53, %c0_54, %c1_55, %c0_56] : memref<2x2x2x18x128xf32, #tpu.memory_space<vmem>>, vector<2x1x1x16x128xf32>
    %36 = vector.shape_cast %35 : vector<2x1x1x16x128xf32> to vector<2x16x128xf32>
    %37 = vector.shape_cast %36 : vector<2x16x128xf32> to vector<32x128xf32>
    %c0_57 = arith.constant 0 : index
    %c1_58 = arith.constant 1 : index
    %c0_59 = arith.constant 0 : index
    %c1_60 = arith.constant 1 : index
    %c0_61 = arith.constant 0 : index
    %38 = vector.load %arg1[%c0_57, %c1_58, %c0_59, %c1_60, %c0_61] : memref<2x2x2x18x128xf32, #tpu.memory_space<vmem>>, vector<2x1x1x16x128xf32>
    %39 = vector.shape_cast %38 : vector<2x1x1x16x128xf32> to vector<2x16x128xf32>
    %40 = vector.shape_cast %39 : vector<2x16x128xf32> to vector<32x128xf32>
    %c0_62 = arith.constant 0 : index
    %c0_63 = arith.constant 0 : index
    %c0_64 = arith.constant 0 : index
    %c2_65 = arith.constant 2 : index
    %c0_66 = arith.constant 0 : index
    %41 = vector.load %arg1[%c0_62, %c0_63, %c0_64, %c2_65, %c0_66] : memref<2x2x2x18x128xf32, #tpu.memory_space<vmem>>, vector<2x1x1x16x128xf32>
    %42 = vector.shape_cast %41 : vector<2x1x1x16x128xf32> to vector<2x16x128xf32>
    %43 = vector.shape_cast %42 : vector<2x16x128xf32> to vector<32x128xf32>
    %c0_67 = arith.constant 0 : index
    %c1_68 = arith.constant 1 : index
    %c0_69 = arith.constant 0 : index
    %c2_70 = arith.constant 2 : index
    %c0_71 = arith.constant 0 : index
    %44 = vector.load %arg1[%c0_67, %c1_68, %c0_69, %c2_70, %c0_71] : memref<2x2x2x18x128xf32, #tpu.memory_space<vmem>>, vector<2x1x1x16x128xf32>
    %45 = vector.shape_cast %44 : vector<2x1x1x16x128xf32> to vector<2x16x128xf32>
    %46 = vector.shape_cast %45 : vector<2x16x128xf32> to vector<32x128xf32>
    %47 = tpu.concatenate %34, %37, %40, %43, %46 in 1 : vector<32x128xf32>, vector<32x128xf32>, vector<32x128xf32>, vector<32x128xf32>, vector<32x128xf32> -> vector<32x640xf32>
    %c0_72 = arith.constant 0 : index
    %c1_73 = arith.constant 1 : index
    %c1_74 = arith.constant 1 : index
    %c0_75 = arith.constant 0 : index
    %c0_76 = arith.constant 0 : index
    %48 = vector.load %arg1[%c0_72, %c1_73, %c1_74, %c0_75, %c0_76] : memref<2x2x2x18x128xf32, #tpu.memory_space<vmem>>, vector<2x1x1x16x128xf32>
    %49 = vector.shape_cast %48 : vector<2x1x1x16x128xf32> to vector<2x16x128xf32>
    %50 = vector.shape_cast %49 : vector<2x16x128xf32> to vector<32x128xf32>
    %c0_77 = arith.constant 0 : index
    %c0_78 = arith.constant 0 : index
    %c1_79 = arith.constant 1 : index
    %c1_80 = arith.constant 1 : index
    %c0_81 = arith.constant 0 : index
    %51 = vector.load %arg1[%c0_77, %c0_78, %c1_79, %c1_80, %c0_81] : memref<2x2x2x18x128xf32, #tpu.memory_space<vmem>>, vector<2x1x1x16x128xf32>
    %52 = vector.shape_cast %51 : vector<2x1x1x16x128xf32> to vector<2x16x128xf32>
    %53 = vector.shape_cast %52 : vector<2x16x128xf32> to vector<32x128xf32>
    %c0_82 = arith.constant 0 : index
    %c1_83 = arith.constant 1 : index
    %c1_84 = arith.constant 1 : index
    %c1_85 = arith.constant 1 : index
    %c0_86 = arith.constant 0 : index
    %54 = vector.load %arg1[%c0_82, %c1_83, %c1_84, %c1_85, %c0_86] : memref<2x2x2x18x128xf32, #tpu.memory_space<vmem>>, vector<2x1x1x16x128xf32>
    %55 = vector.shape_cast %54 : vector<2x1x1x16x128xf32> to vector<2x16x128xf32>
    %56 = vector.shape_cast %55 : vector<2x16x128xf32> to vector<32x128xf32>
    %c0_87 = arith.constant 0 : index
    %c0_88 = arith.constant 0 : index
    %c1_89 = arith.constant 1 : index
    %c2_90 = arith.constant 2 : index
    %c0_91 = arith.constant 0 : index
    %57 = vector.load %arg1[%c0_87, %c0_88, %c1_89, %c2_90, %c0_91] : memref<2x2x2x18x128xf32, #tpu.memory_space<vmem>>, vector<2x1x1x16x128xf32>
    %58 = vector.shape_cast %57 : vector<2x1x1x16x128xf32> to vector<2x16x128xf32>
    %59 = vector.shape_cast %58 : vector<2x16x128xf32> to vector<32x128xf32>
    %c0_92 = arith.constant 0 : index
    %c1_93 = arith.constant 1 : index
    %c1_94 = arith.constant 1 : index
    %c2_95 = arith.constant 2 : index
    %c0_96 = arith.constant 0 : index
    %60 = vector.load %arg1[%c0_92, %c1_93, %c1_94, %c2_95, %c0_96] : memref<2x2x2x18x128xf32, #tpu.memory_space<vmem>>, vector<2x1x1x16x128xf32>
    %61 = vector.shape_cast %60 : vector<2x1x1x16x128xf32> to vector<2x16x128xf32>
    %62 = vector.shape_cast %61 : vector<2x16x128xf32> to vector<32x128xf32>
    %63 = tpu.concatenate %50, %53, %56, %59, %62 in 1 : vector<32x128xf32>, vector<32x128xf32>, vector<32x128xf32>, vector<32x128xf32>, vector<32x128xf32> -> vector<32x640xf32>
    %64 = tpu.concatenate %15, %31, %47, %63 in 0 : vector<32x640xf32>, vector<32x640xf32>, vector<32x640xf32>, vector<32x640xf32> -> vector<128x640xf32>
    %c0_97 = arith.constant 0 : index
    %c0_98 = arith.constant 0 : index
    %65 = vector.load %arg2[%c0_97, %c0_98] : memref<640x256xf32, #tpu.memory_space<vmem>>, vector<640x256xf32>
    %cst = arith.constant dense<0.000000e+00> : vector<128x256xf32>
    %66 = tpu.matmul %64, %65, %cst {dimension_numbers = #tpu.dot_dimension_numbers<[1], [0], [0], [1], [0, 0, 1, 1], [], []>} : vector<128x640xf32>, vector<640x256xf32>, vector<128x256xf32> -> vector<128x256xf32>
    %67 = vector.extract_strided_slice %66 {offsets = [0, 0], sizes = [32, 256], strides = [1, 1]} : vector<128x256xf32> to vector<32x256xf32>
    %68 = vector.extract_strided_slice %66 {offsets = [32, 0], sizes = [32, 256], strides = [1, 1]} : vector<128x256xf32> to vector<32x256xf32>
    %69 = arith.maximumf %67, %68 : vector<32x256xf32>
    %70 = vector.extract_strided_slice %66 {offsets = [64, 0], sizes = [32, 256], strides = [1, 1]} : vector<128x256xf32> to vector<32x256xf32>
    %71 = vector.extract_strided_slice %66 {offsets = [96, 0], sizes = [32, 256], strides = [1, 1]} : vector<128x256xf32> to vector<32x256xf32>
    %72 = arith.maximumf %70, %71 : vector<32x256xf32>
    %73 = arith.maximumf %69, %72 : vector<32x256xf32>
    %c0_99 = arith.constant 0 : index
    %c0_100 = arith.constant 0 : index
    %74 = vector.load %arg3[%c0_99, %c0_100] : memref<1x256xf32, #tpu.memory_space<vmem>>, vector<1x256xf32>
    %75 = vector.broadcast %74 : vector<1x256xf32> to vector<32x256xf32>
    %76 = arith.addf %73, %75 : vector<32x256xf32>
    %cst_101 = arith.constant 0.000000e+00 : f32
    %77 = vector.broadcast %cst_101 : f32 to vector<32x256xf32>
    %78 = arith.maximumf %76, %77 : vector<32x256xf32>
    %79 = vector.shape_cast %78 : vector<32x256xf32> to vector<2x16x256xf32>
    %c0_102 = arith.constant 0 : index
    %c0_103 = arith.constant 0 : index
    %c0_104 = arith.constant 0 : index
    %80 = vector.load %arg4[%c0_102, %c0_103, %c0_104] : memref<2x16x256xf32, #tpu.memory_space<vmem>>, vector<2x16x256xf32>
    tpu.vector_store %arg4[%c0_102, %c0_103, %c0_104], %79 {strides = array<i32>} : memref<2x16x256xf32, #tpu.memory_space<vmem>>, vector<2x16x256xf32>,
    return
  }
  func.func @transform_0(%arg0: i32) -> (i32, i32, i32, i32, i32) {
    %c0_i32 = arith.constant 0 : i32
    %c0_i32_0 = arith.constant 0 : i32
    %c0_i32_1 = arith.constant 0 : i32
    %c0_i32_2 = arith.constant 0 : i32
    %c0_i32_3 = arith.constant 0 : i32
    return %arg0, %c0_i32, %c0_i32_0, %c0_i32_1, %c0_i32_2 : i32, i32, i32, i32, i32
  }
  func.func @transform_1(%arg0: i32) -> (i32, i32) {
    %c0_i32 = arith.constant 0 : i32
    %c0_i32_0 = arith.constant 0 : i32
    %c0_i32_1 = arith.constant 0 : i32
    return %c0_i32, %c0_i32_0 : i32, i32
  }
  func.func @transform_2(%arg0: i32) -> (i32, i32) {
    %c0_i32 = arith.constant 0 : i32
    %c0_i32_0 = arith.constant 0 : i32
    %c0_i32_1 = arith.constant 0 : i32
    return %c0_i32, %c0_i32_0 : i32, i32
  }
  func.func @transform_3(%arg0: i32) -> (i32, i32, i32) {
    %c0_i32 = arith.constant 0 : i32
    %c0_i32_0 = arith.constant 0 : i32
    %c0_i32_1 = arith.constant 0 : i32
    return %arg0, %c0_i32, %c0_i32_0 : i32, i32, i32
  }
}

module attributes {stable_mosaic.version = 11 : i64} {
  func.func @_conv_relu_pool_kernel(%arg0: i32, %arg1: memref<2x2x2x10x640xf32, #tpu.memory_space<vmem>>, %arg2: memref<3200x256xf32, #tpu.memory_space<vmem>>, %arg3: memref<1x256xf32, #tpu.memory_space<vmem>>, %arg4: memref<2x8x256xf32, #tpu.memory_space<vmem>>) attributes {dimension_semantics = [#tpu.dimension_semantics<parallel>], iteration_bounds = array<i64: 1>, scalar_prefetch = 0 : i64, scratch_operands = 0 : i64, tpu.core_type = #tpu.core_type<tc>, window_params = [{transform_indices = @transform_0, window_bounds = array<i64: 2, 2, 2, 10, 640>}, {pipeline_mode = #tpu.pipeline_mode<synchronous>, transform_indices = @transform_1, window_bounds = array<i64: 3200, 256>}, {pipeline_mode = #tpu.pipeline_mode<synchronous>, transform_indices = @transform_2, window_bounds = array<i64: 1, 256>}, {transform_indices = @transform_3, window_bounds = array<i64: 2, 8, 256>}]} {
    %c0 = arith.constant 0 : index
    %c0_0 = arith.constant 0 : index
    %c0_1 = arith.constant 0 : index
    %c0_2 = arith.constant 0 : index
    %c0_3 = arith.constant 0 : index
    %0 = vector.load %arg1[%c0, %c0_0, %c0_1, %c0_2, %c0_3] : memref<2x2x2x10x640xf32, #tpu.memory_space<vmem>>, vector<2x1x1x8x640xf32>
    %1 = vector.shape_cast %0 : vector<2x1x1x8x640xf32> to vector<2x8x640xf32>
    %2 = vector.shape_cast %1 : vector<2x8x640xf32> to vector<16x640xf32>
    %c0_4 = arith.constant 0 : index
    %c1 = arith.constant 1 : index
    %c0_5 = arith.constant 0 : index
    %c0_6 = arith.constant 0 : index
    %c0_7 = arith.constant 0 : index
    %3 = vector.load %arg1[%c0_4, %c1, %c0_5, %c0_6, %c0_7] : memref<2x2x2x10x640xf32, #tpu.memory_space<vmem>>, vector<2x1x1x8x640xf32>
    %4 = vector.shape_cast %3 : vector<2x1x1x8x640xf32> to vector<2x8x640xf32>
    %5 = vector.shape_cast %4 : vector<2x8x640xf32> to vector<16x640xf32>
    %c0_8 = arith.constant 0 : index
    %c0_9 = arith.constant 0 : index
    %c0_10 = arith.constant 0 : index
    %c1_11 = arith.constant 1 : index
    %c0_12 = arith.constant 0 : index
    %6 = vector.load %arg1[%c0_8, %c0_9, %c0_10, %c1_11, %c0_12] : memref<2x2x2x10x640xf32, #tpu.memory_space<vmem>>, vector<2x1x1x8x640xf32>
    %7 = vector.shape_cast %6 : vector<2x1x1x8x640xf32> to vector<2x8x640xf32>
    %8 = vector.shape_cast %7 : vector<2x8x640xf32> to vector<16x640xf32>
    %c0_13 = arith.constant 0 : index
    %c1_14 = arith.constant 1 : index
    %c0_15 = arith.constant 0 : index
    %c1_16 = arith.constant 1 : index
    %c0_17 = arith.constant 0 : index
    %9 = vector.load %arg1[%c0_13, %c1_14, %c0_15, %c1_16, %c0_17] : memref<2x2x2x10x640xf32, #tpu.memory_space<vmem>>, vector<2x1x1x8x640xf32>
    %10 = vector.shape_cast %9 : vector<2x1x1x8x640xf32> to vector<2x8x640xf32>
    %11 = vector.shape_cast %10 : vector<2x8x640xf32> to vector<16x640xf32>
    %c0_18 = arith.constant 0 : index
    %c0_19 = arith.constant 0 : index
    %c0_20 = arith.constant 0 : index
    %c2 = arith.constant 2 : index
    %c0_21 = arith.constant 0 : index
    %12 = vector.load %arg1[%c0_18, %c0_19, %c0_20, %c2, %c0_21] : memref<2x2x2x10x640xf32, #tpu.memory_space<vmem>>, vector<2x1x1x8x640xf32>
    %13 = vector.shape_cast %12 : vector<2x1x1x8x640xf32> to vector<2x8x640xf32>
    %14 = vector.shape_cast %13 : vector<2x8x640xf32> to vector<16x640xf32>
    %15 = tpu.concatenate %2, %5, %8, %11, %14 in 1 : vector<16x640xf32>, vector<16x640xf32>, vector<16x640xf32>, vector<16x640xf32>, vector<16x640xf32> -> vector<16x3200xf32>
    %c0_22 = arith.constant 0 : index
    %c0_23 = arith.constant 0 : index
    %c1_24 = arith.constant 1 : index
    %c0_25 = arith.constant 0 : index
    %c0_26 = arith.constant 0 : index
    %16 = vector.load %arg1[%c0_22, %c0_23, %c1_24, %c0_25, %c0_26] : memref<2x2x2x10x640xf32, #tpu.memory_space<vmem>>, vector<2x1x1x8x640xf32>
    %17 = vector.shape_cast %16 : vector<2x1x1x8x640xf32> to vector<2x8x640xf32>
    %18 = vector.shape_cast %17 : vector<2x8x640xf32> to vector<16x640xf32>
    %c0_27 = arith.constant 0 : index
    %c1_28 = arith.constant 1 : index
    %c1_29 = arith.constant 1 : index
    %c0_30 = arith.constant 0 : index
    %c0_31 = arith.constant 0 : index
    %19 = vector.load %arg1[%c0_27, %c1_28, %c1_29, %c0_30, %c0_31] : memref<2x2x2x10x640xf32, #tpu.memory_space<vmem>>, vector<2x1x1x8x640xf32>
    %20 = vector.shape_cast %19 : vector<2x1x1x8x640xf32> to vector<2x8x640xf32>
    %21 = vector.shape_cast %20 : vector<2x8x640xf32> to vector<16x640xf32>
    %c0_32 = arith.constant 0 : index
    %c0_33 = arith.constant 0 : index
    %c1_34 = arith.constant 1 : index
    %c1_35 = arith.constant 1 : index
    %c0_36 = arith.constant 0 : index
    %22 = vector.load %arg1[%c0_32, %c0_33, %c1_34, %c1_35, %c0_36] : memref<2x2x2x10x640xf32, #tpu.memory_space<vmem>>, vector<2x1x1x8x640xf32>
    %23 = vector.shape_cast %22 : vector<2x1x1x8x640xf32> to vector<2x8x640xf32>
    %24 = vector.shape_cast %23 : vector<2x8x640xf32> to vector<16x640xf32>
    %c0_37 = arith.constant 0 : index
    %c1_38 = arith.constant 1 : index
    %c1_39 = arith.constant 1 : index
    %c1_40 = arith.constant 1 : index
    %c0_41 = arith.constant 0 : index
    %25 = vector.load %arg1[%c0_37, %c1_38, %c1_39, %c1_40, %c0_41] : memref<2x2x2x10x640xf32, #tpu.memory_space<vmem>>, vector<2x1x1x8x640xf32>
    %26 = vector.shape_cast %25 : vector<2x1x1x8x640xf32> to vector<2x8x640xf32>
    %27 = vector.shape_cast %26 : vector<2x8x640xf32> to vector<16x640xf32>
    %c0_42 = arith.constant 0 : index
    %c0_43 = arith.constant 0 : index
    %c1_44 = arith.constant 1 : index
    %c2_45 = arith.constant 2 : index
    %c0_46 = arith.constant 0 : index
    %28 = vector.load %arg1[%c0_42, %c0_43, %c1_44, %c2_45, %c0_46] : memref<2x2x2x10x640xf32, #tpu.memory_space<vmem>>, vector<2x1x1x8x640xf32>
    %29 = vector.shape_cast %28 : vector<2x1x1x8x640xf32> to vector<2x8x640xf32>
    %30 = vector.shape_cast %29 : vector<2x8x640xf32> to vector<16x640xf32>
    %31 = tpu.concatenate %18, %21, %24, %27, %30 in 1 : vector<16x640xf32>, vector<16x640xf32>, vector<16x640xf32>, vector<16x640xf32>, vector<16x640xf32> -> vector<16x3200xf32>
    %c0_47 = arith.constant 0 : index
    %c1_48 = arith.constant 1 : index
    %c0_49 = arith.constant 0 : index
    %c0_50 = arith.constant 0 : index
    %c0_51 = arith.constant 0 : index
    %32 = vector.load %arg1[%c0_47, %c1_48, %c0_49, %c0_50, %c0_51] : memref<2x2x2x10x640xf32, #tpu.memory_space<vmem>>, vector<2x1x1x8x640xf32>
    %33 = vector.shape_cast %32 : vector<2x1x1x8x640xf32> to vector<2x8x640xf32>
    %34 = vector.shape_cast %33 : vector<2x8x640xf32> to vector<16x640xf32>
    %c0_52 = arith.constant 0 : index
    %c0_53 = arith.constant 0 : index
    %c0_54 = arith.constant 0 : index
    %c1_55 = arith.constant 1 : index
    %c0_56 = arith.constant 0 : index
    %35 = vector.load %arg1[%c0_52, %c0_53, %c0_54, %c1_55, %c0_56] : memref<2x2x2x10x640xf32, #tpu.memory_space<vmem>>, vector<2x1x1x8x640xf32>
    %36 = vector.shape_cast %35 : vector<2x1x1x8x640xf32> to vector<2x8x640xf32>
    %37 = vector.shape_cast %36 : vector<2x8x640xf32> to vector<16x640xf32>
    %c0_57 = arith.constant 0 : index
    %c1_58 = arith.constant 1 : index
    %c0_59 = arith.constant 0 : index
    %c1_60 = arith.constant 1 : index
    %c0_61 = arith.constant 0 : index
    %38 = vector.load %arg1[%c0_57, %c1_58, %c0_59, %c1_60, %c0_61] : memref<2x2x2x10x640xf32, #tpu.memory_space<vmem>>, vector<2x1x1x8x640xf32>
    %39 = vector.shape_cast %38 : vector<2x1x1x8x640xf32> to vector<2x8x640xf32>
    %40 = vector.shape_cast %39 : vector<2x8x640xf32> to vector<16x640xf32>
    %c0_62 = arith.constant 0 : index
    %c0_63 = arith.constant 0 : index
    %c0_64 = arith.constant 0 : index
    %c2_65 = arith.constant 2 : index
    %c0_66 = arith.constant 0 : index
    %41 = vector.load %arg1[%c0_62, %c0_63, %c0_64, %c2_65, %c0_66] : memref<2x2x2x10x640xf32, #tpu.memory_space<vmem>>, vector<2x1x1x8x640xf32>
    %42 = vector.shape_cast %41 : vector<2x1x1x8x640xf32> to vector<2x8x640xf32>
    %43 = vector.shape_cast %42 : vector<2x8x640xf32> to vector<16x640xf32>
    %c0_67 = arith.constant 0 : index
    %c1_68 = arith.constant 1 : index
    %c0_69 = arith.constant 0 : index
    %c2_70 = arith.constant 2 : index
    %c0_71 = arith.constant 0 : index
    %44 = vector.load %arg1[%c0_67, %c1_68, %c0_69, %c2_70, %c0_71] : memref<2x2x2x10x640xf32, #tpu.memory_space<vmem>>, vector<2x1x1x8x640xf32>
    %45 = vector.shape_cast %44 : vector<2x1x1x8x640xf32> to vector<2x8x640xf32>
    %46 = vector.shape_cast %45 : vector<2x8x640xf32> to vector<16x640xf32>
    %47 = tpu.concatenate %34, %37, %40, %43, %46 in 1 : vector<16x640xf32>, vector<16x640xf32>, vector<16x640xf32>, vector<16x640xf32>, vector<16x640xf32> -> vector<16x3200xf32>
    %c0_72 = arith.constant 0 : index
    %c1_73 = arith.constant 1 : index
    %c1_74 = arith.constant 1 : index
    %c0_75 = arith.constant 0 : index
    %c0_76 = arith.constant 0 : index
    %48 = vector.load %arg1[%c0_72, %c1_73, %c1_74, %c0_75, %c0_76] : memref<2x2x2x10x640xf32, #tpu.memory_space<vmem>>, vector<2x1x1x8x640xf32>
    %49 = vector.shape_cast %48 : vector<2x1x1x8x640xf32> to vector<2x8x640xf32>
    %50 = vector.shape_cast %49 : vector<2x8x640xf32> to vector<16x640xf32>
    %c0_77 = arith.constant 0 : index
    %c0_78 = arith.constant 0 : index
    %c1_79 = arith.constant 1 : index
    %c1_80 = arith.constant 1 : index
    %c0_81 = arith.constant 0 : index
    %51 = vector.load %arg1[%c0_77, %c0_78, %c1_79, %c1_80, %c0_81] : memref<2x2x2x10x640xf32, #tpu.memory_space<vmem>>, vector<2x1x1x8x640xf32>
    %52 = vector.shape_cast %51 : vector<2x1x1x8x640xf32> to vector<2x8x640xf32>
    %53 = vector.shape_cast %52 : vector<2x8x640xf32> to vector<16x640xf32>
    %c0_82 = arith.constant 0 : index
    %c1_83 = arith.constant 1 : index
    %c1_84 = arith.constant 1 : index
    %c1_85 = arith.constant 1 : index
    %c0_86 = arith.constant 0 : index
    %54 = vector.load %arg1[%c0_82, %c1_83, %c1_84, %c1_85, %c0_86] : memref<2x2x2x10x640xf32, #tpu.memory_space<vmem>>, vector<2x1x1x8x640xf32>
    %55 = vector.shape_cast %54 : vector<2x1x1x8x640xf32> to vector<2x8x640xf32>
    %56 = vector.shape_cast %55 : vector<2x8x640xf32> to vector<16x640xf32>
    %c0_87 = arith.constant 0 : index
    %c0_88 = arith.constant 0 : index
    %c1_89 = arith.constant 1 : index
    %c2_90 = arith.constant 2 : index
    %c0_91 = arith.constant 0 : index
    %57 = vector.load %arg1[%c0_87, %c0_88, %c1_89, %c2_90, %c0_91] : memref<2x2x2x10x640xf32, #tpu.memory_space<vmem>>, vector<2x1x1x8x640xf32>
    %58 = vector.shape_cast %57 : vector<2x1x1x8x640xf32> to vector<2x8x640xf32>
    %59 = vector.shape_cast %58 : vector<2x8x640xf32> to vector<16x640xf32>
    %c0_92 = arith.constant 0 : index
    %c1_93 = arith.constant 1 : index
    %c1_94 = arith.constant 1 : index
    %c2_95 = arith.constant 2 : index
    %c0_96 = arith.constant 0 : index
    %60 = vector.load %arg1[%c0_92, %c1_93, %c1_94, %c2_95, %c0_96] : memref<2x2x2x10x640xf32, #tpu.memory_space<vmem>>, vector<2x1x1x8x640xf32>
    %61 = vector.shape_cast %60 : vector<2x1x1x8x640xf32> to vector<2x8x640xf32>
    %62 = vector.shape_cast %61 : vector<2x8x640xf32> to vector<16x640xf32>
    %63 = tpu.concatenate %50, %53, %56, %59, %62 in 1 : vector<16x640xf32>, vector<16x640xf32>, vector<16x640xf32>, vector<16x640xf32>, vector<16x640xf32> -> vector<16x3200xf32>
    %64 = tpu.concatenate %15, %31, %47, %63 in 0 : vector<16x3200xf32>, vector<16x3200xf32>, vector<16x3200xf32>, vector<16x3200xf32> -> vector<64x3200xf32>
    %c0_97 = arith.constant 0 : index
    %c0_98 = arith.constant 0 : index
    %65 = vector.load %arg2[%c0_97, %c0_98] : memref<3200x256xf32, #tpu.memory_space<vmem>>, vector<3200x256xf32>
    %cst = arith.constant dense<0.000000e+00> : vector<64x256xf32>
    %66 = tpu.matmul %64, %65, %cst {dimension_numbers = #tpu.dot_dimension_numbers<[1], [0], [0], [1], [0, 0, 1, 1], [], []>} : vector<64x3200xf32>, vector<3200x256xf32>, vector<64x256xf32> -> vector<64x256xf32>
    %67 = vector.extract_strided_slice %66 {offsets = [0, 0], sizes = [16, 256], strides = [1, 1]} : vector<64x256xf32> to vector<16x256xf32>
    %68 = vector.extract_strided_slice %66 {offsets = [16, 0], sizes = [16, 256], strides = [1, 1]} : vector<64x256xf32> to vector<16x256xf32>
    %69 = arith.maximumf %67, %68 : vector<16x256xf32>
    %70 = vector.extract_strided_slice %66 {offsets = [32, 0], sizes = [16, 256], strides = [1, 1]} : vector<64x256xf32> to vector<16x256xf32>
    %71 = vector.extract_strided_slice %66 {offsets = [48, 0], sizes = [16, 256], strides = [1, 1]} : vector<64x256xf32> to vector<16x256xf32>
    %72 = arith.maximumf %70, %71 : vector<16x256xf32>
    %73 = arith.maximumf %69, %72 : vector<16x256xf32>
    %c0_99 = arith.constant 0 : index
    %c0_100 = arith.constant 0 : index
    %74 = vector.load %arg3[%c0_99, %c0_100] : memref<1x256xf32, #tpu.memory_space<vmem>>, vector<1x256xf32>
    %75 = vector.broadcast %74 : vector<1x256xf32> to vector<16x256xf32>
    %76 = arith.addf %73, %75 : vector<16x256xf32>
    %cst_101 = arith.constant 0.000000e+00 : f32
    %77 = vector.broadcast %cst_101 : f32 to vector<16x256xf32>
    %78 = arith.maximumf %76, %77 : vector<16x256xf32>
    %79 = vector.shape_cast %78 : vector<16x256xf32> to vector<2x8x256xf32>
    %c0_102 = arith.constant 0 : index
    %c0_103 = arith.constant 0 : index
    %c0_104 = arith.constant 0 : index
    %80 = vector.load %arg4[%c0_102, %c0_103, %c0_104] : memref<2x8x256xf32, #tpu.memory_space<vmem>>, vector<2x8x256xf32>
    tpu.vector_store %arg4[%c0_102, %c0_103, %c0_104], %79 {strides = array<i32>} : memref<2x8x256xf32, #tpu.memory_space<vmem>>, vector<2x8x256xf32>,
    return
  }
  func.func @transform_0(%arg0: i32) -> (i32, i32, i32, i32, i32) {
    %c0_i32 = arith.constant 0 : i32
    %c0_i32_0 = arith.constant 0 : i32
    %c0_i32_1 = arith.constant 0 : i32
    %c0_i32_2 = arith.constant 0 : i32
    %c0_i32_3 = arith.constant 0 : i32
    return %arg0, %c0_i32, %c0_i32_0, %c0_i32_1, %c0_i32_2 : i32, i32, i32, i32, i32
  }
  func.func @transform_1(%arg0: i32) -> (i32, i32) {
    %c0_i32 = arith.constant 0 : i32
    %c0_i32_0 = arith.constant 0 : i32
    %c0_i32_1 = arith.constant 0 : i32
    return %c0_i32, %c0_i32_0 : i32, i32
  }
  func.func @transform_2(%arg0: i32) -> (i32, i32) {
    %c0_i32 = arith.constant 0 : i32
    %c0_i32_0 = arith.constant 0 : i32
    %c0_i32_1 = arith.constant 0 : i32
    return %c0_i32, %c0_i32_0 : i32, i32
  }
  func.func @transform_3(%arg0: i32) -> (i32, i32, i32) {
    %c0_i32 = arith.constant 0 : i32
    %c0_i32_0 = arith.constant 0 : i32
    %c0_i32_1 = arith.constant 0 : i32
    return %arg0, %c0_i32, %c0_i32_0 : i32, i32, i32
  }
}

module attributes {stable_mosaic.version = 11 : i64} {
  func.func @_linear_kernel(%arg0: i32, %arg1: memref<8x1568xf32, #tpu.memory_space<vmem>>, %arg2: memref<1568x128xf32, #tpu.memory_space<vmem>>, %arg3: memref<1x128xf32, #tpu.memory_space<vmem>>, %arg4: memref<8x128xf32, #tpu.memory_space<vmem>>) attributes {dimension_semantics = [#tpu.dimension_semantics<parallel>], iteration_bounds = array<i64: 1>, scalar_prefetch = 0 : i64, scratch_operands = 0 : i64, tpu.core_type = #tpu.core_type<tc>, window_params = [{transform_indices = @transform_0, window_bounds = array<i64: 8, 1568>}, {pipeline_mode = #tpu.pipeline_mode<synchronous>, transform_indices = @transform_1, window_bounds = array<i64: 1568, 128>}, {pipeline_mode = #tpu.pipeline_mode<synchronous>, transform_indices = @transform_2, window_bounds = array<i64: 1, 128>}, {transform_indices = @transform_3, window_bounds = array<i64: 8, 128>}]} {
    %c0 = arith.constant 0 : index
    %c0_0 = arith.constant 0 : index
    %0 = vector.load %arg1[%c0, %c0_0] : memref<8x1568xf32, #tpu.memory_space<vmem>>, vector<8x1568xf32>
    %c0_1 = arith.constant 0 : index
    %c0_2 = arith.constant 0 : index
    %1 = vector.load %arg2[%c0_1, %c0_2] : memref<1568x128xf32, #tpu.memory_space<vmem>>, vector<1568x128xf32>
    %cst = arith.constant dense<0.000000e+00> : vector<8x128xf32>
    %2 = tpu.matmul %0, %1, %cst {dimension_numbers = #tpu.dot_dimension_numbers<[1], [0], [0], [1], [0, 0, 1, 1], [], []>} : vector<8x1568xf32>, vector<1568x128xf32>, vector<8x128xf32> -> vector<8x128xf32>
    %c0_3 = arith.constant 0 : index
    %c0_4 = arith.constant 0 : index
    %3 = vector.load %arg3[%c0_3, %c0_4] : memref<1x128xf32, #tpu.memory_space<vmem>>, vector<1x128xf32>
    %4 = vector.broadcast %3 : vector<1x128xf32> to vector<8x128xf32>
    %5 = arith.addf %2, %4 : vector<8x128xf32>
    %c0_5 = arith.constant 0 : index
    %c0_6 = arith.constant 0 : index
    %6 = vector.load %arg4[%c0_5, %c0_6] : memref<8x128xf32, #tpu.memory_space<vmem>>, vector<8x128xf32>
    tpu.vector_store %arg4[%c0_5, %c0_6], %5 {strides = array<i32>} : memref<8x128xf32, #tpu.memory_space<vmem>>, vector<8x128xf32>,
    return
  }
  func.func @transform_0(%arg0: i32) -> (i32, i32) {
    %c0_i32 = arith.constant 0 : i32
    %c0_i32_0 = arith.constant 0 : i32
    return %arg0, %c0_i32 : i32, i32
  }
  func.func @transform_1(%arg0: i32) -> (i32, i32) {
    %c0_i32 = arith.constant 0 : i32
    %c0_i32_0 = arith.constant 0 : i32
    %c0_i32_1 = arith.constant 0 : i32
    return %c0_i32, %c0_i32_0 : i32, i32
  }
  func.func @transform_2(%arg0: i32) -> (i32, i32) {
    %c0_i32 = arith.constant 0 : i32
    %c0_i32_0 = arith.constant 0 : i32
    %c0_i32_1 = arith.constant 0 : i32
    return %c0_i32, %c0_i32_0 : i32, i32
  }
  func.func @transform_3(%arg0: i32) -> (i32, i32) {
    %c0_i32 = arith.constant 0 : i32
    %c0_i32_0 = arith.constant 0 : i32
    return %arg0, %c0_i32 : i32, i32
  }
}

</mosaic_0001>

<bundles_post_ra>
// kernel: tile.13
= control target key start
LH: loop header
LB: loop body
LE: loop exit
PB: predicated region body
PF: predicated region fallthrough
CT: control target
= control target key end

     0   :  { %s28_s0 = inlined_call_operand.vmem [shape: f32[16], index: 0, kind: input, shape index: {}]   ;;  %s29_s1 = inlined_call_operand.vmem [shape: f32[16,16], index: 1, kind: output, shape index: {}]  }
   0x1   :  { %v4_v0 = vld [vmem:[%s28_s0] ss:$0 sm:$0xff] }
   0x2   :  { %5 = vst [vmem:[%s29_s1] sm:$0xff] %v4_v0 }
   0x3   :  { %8 = vst [vmem:[%s29_s1 + $0x8] sm:$0xff] %v4_v0 }

// kernel: tile.14
= control target key start
LH: loop header
LB: loop body
LE: loop exit
PB: predicated region body
PF: predicated region fallthrough
CT: control target
= control target key end

     0   :  { %s7_s6 = smov 3  ;;  %s21_s9 = smov 3  ;;  %vm4_vm0 = vcmask 130048   ;;  %vm11_vm1 = vcmask 1048448   ;;  %vm18_vm2 = vcmask 917248   ;;  %vm25_vm3 = vcmask 786048   ;;  %s129_s0 = inlined_call_operand.vmem [shape: f32[16,16], index: 0, kind: input, shape index: {}]   ;;  %s130_s1 = inlined_call_operand.vmem [shape: f32[1,256], index: 1, kind: output, shape index: {}]  }
   0x1   :  { %v67_v0 = vld [vmem:[%s129_s0 + $0x7] ss:$8 sm:%s7_s6]   ;;  %s82_s10 = smov 112   ;;  %v69_v1 = vld [vmem:[%s129_s0 + $0x5] ss:$8 sm:%s21_s9]   ;;  %s83_s13 = smov 80  }
   0x2   :  { %9 = vrot.lane.b32.xlu0 %v67_v0, %s82_s10  ;;  %23 = vrot.lane.b32.xlu1 %v69_v1, %s83_s13  ;;  %s14_s14 = smov 3  ;;  %s28_s15 = smov 3  ;;  %vm32_vm4 = vcmask 654848   ;;  %vm39_vm5 = vcmask 523648   ;;  %vm46_vm6 = vcmask 392448   ;;  %vm53_vm7 = vcmask 261248  }
   0x3   :  { %s35_s16 = smov 3  ;;  %v68_v3 = vld [vmem:[%s129_s0 + $0x6] ss:$8 sm:%s14_s14]   ;;  %s84_s21 = smov 48   ;;  %v70_v4 = vld [vmem:[%s129_s0 + $0x4] ss:$8 sm:%s28_s15]  }
   0x4   :  { %v71_v2 = vld [vmem:[%s129_s0 + $0x3] ss:$8 sm:%s35_s16]   ;;  %s42_s24 = smov 3  ;;  %s85_s25 = smov 96  }
   0x5   :  { %37 = vrot.lane.b32.xlu2 %v71_v2, %s84_s21  ;;  %s86_s26 = smov 64   ;;  %s49_s27 = smov 3  ;;  %v72_v5 = vld [vmem:[%s129_s0 + $0x2] ss:$8 sm:%s42_s24]  }
   0x6   :  { %v73_v6 = vld [vmem:[%s129_s0 + $0x1] ss:$8 sm:%s49_s27]   ;;  %s87_s3 = smov 32   ;;  %s88_s4 = smov 16  }
   0x7   :  { %s2_s5 = smov 3 }
   0x8   :  { %v3_v7 = vld [vmem:[%s129_s0] ss:$8 sm:%s2_s5]  }
   0x9   :  { %5 = vst.msk [vmem:[#allocation0] ss:$8 sm:$0x3] %vm4_vm0, %v3_v7  }
   0xa   :  { %16 = vrot.lane.b32.xlu0 %v68_v3, %s85_s25  ;;  %30 = vrot.lane.b32.xlu1 %v70_v4, %s86_s26 }
   0xd   :  { %44 = vrot.lane.b32.xlu2 %v72_v5, %s87_s3 }
  0x12   :  { %51 = vrot.lane.b32.xlu0 %v73_v6, %s88_s4 }
  0x5f   :  { %v38_v8 = vpop.permute.xlu2 %37  }
  0x67   :  { %v45_v9 = vpop.permute.xlu2 %44  }
  0x74   :  { %v10_v10 = vpop.permute.xlu0 %9   ;;  %v24_v11 = vpop.permute.xlu1 %23  }
  0x75   :  { %12 = vst.msk [vmem:[#allocation0] ss:$8 sm:$0x3] %vm11_vm1, %v10_v10  }
  0x7c   :  { %v17_v12 = vpop.permute.xlu0 %16   ;;  %v31_v13 = vpop.permute.xlu1 %30  }
  0x7d   :  { %19 = vst.msk [vmem:[#allocation0] ss:$8 sm:$0x3] %vm18_vm2, %v17_v12  }
  0x7e   :  { %26 = vst.msk [vmem:[#allocation0] ss:$8 sm:$0x3] %vm25_vm3, %v24_v11  }
  0x7f   :  { %33 = vst.msk [vmem:[#allocation0] ss:$8 sm:$0x3] %vm32_vm4, %v31_v13  }
  0x80   :  { %40 = vst.msk [vmem:[#allocation0] ss:$8 sm:$0x3] %vm39_vm5, %v38_v8  }
  0x81   :  { %47 = vst.msk [vmem:[#allocation0] ss:$8 sm:$0x3] %vm46_vm6, %v45_v9  }
  0x84   :  { %v52_v14 = vpop.permute.xlu0 %51  }
  0x85   :  { %54 = vst.msk [vmem:[#allocation0] ss:$8 sm:$0x3] %vm53_vm7, %v52_v14  }
  0x8c   :  { %v57_v15 = vld [vmem:[#allocation0] sm:$0x1]  ;;  %v62_v16 = vld [vmem:[#allocation0 + $0x8] sm:$0x1] }
  0x8d   :  { %60 = vst [vmem:[%s130_s1] sm:$0x1] %v57_v15 }
  0x8e   :  { %74 = vst [vmem:[%s130_s1 + $0x1] sm:$0x1] %v62_v16 }

// kernel: cnn_forward.3
= control target key start
LH: loop header
LB: loop body
LE: loop exit
PB: predicated region body
PF: predicated region fallthrough
CT: control target
= control target key end

     0   :  { %s2142_s1 = inlined_call_operand.vmem [shape: f32[640,256], index: 1, kind: input, shape index: {}]   ;;  %s2143_s0 = inlined_call_operand.vmem [shape: f32[2,2,2,18,128], index: 0, kind: input, shape index: {}]   ;;  %s2144_s2 = inlined_call_operand.vmem [shape: f32[1,256], index: 2, kind: input, shape index: {}]   ;;  %s2145_s3 = inlined_call_operand.vmem [shape: f32[2,16,256], index: 3, kind: output, shape index: {}]  }
   0x1   :  { %v95_v0 = vld [vmem:[%s2142_s1 + $0xf0] sm:$0xff]  ;;  %v93_v2 = vld [vmem:[%s2142_s1 + $0xe0] sm:$0xff]  ;;  %v96_v42 = vld [vmem:[%s2142_s1 + $0xf8] sm:$0xff] }
   0x2   :  { %v127_v1 = vld [vmem:[%s2142_s1 + $0x1f0] sm:$0xff]  ;;  %969 = vmatpush.msra.mxu2 %v95_v0  ;;  %v125_v3 = vld [vmem:[%s2142_s1 + $0x1e0] sm:$0xff]  ;;  %225 = vmatpush.msra.mxu0 %v95_v0  ;;  %v1171_v45 = vld [vmem:[%s2143_s0 + $0x38] sm:$0xff] }
   0x3   :  { %985 = vmatpush.msra.mxu3 %v127_v1  ;;  %v91_v4 = vld [vmem:[%s2142_s1 + $0xd0] sm:$0xff]  ;;  %290 = vmatpush.msra.mxu1 %v127_v1  ;;  %v89_v6 = vld [vmem:[%s2142_s1 + $0xc0] sm:$0xff]  ;;  %v94_v49 = vld [vmem:[%s2142_s1 + $0xe8] sm:$0xff] }
   0x4   :  { %v123_v5 = vld [vmem:[%s2142_s1 + $0x1d0] sm:$0xff]  ;;  %970 = vmatpush.msra.mxu2 %v93_v2  ;;  %v121_v7 = vld [vmem:[%s2142_s1 + $0x1c0] sm:$0xff]  ;;  %226 = vmatpush.msra.mxu0 %v93_v2  ;;  %v1201_v53 = vld [vmem:[%s2143_s0 + $0x8] sm:$0xff] }
   0x5   :  { %986 = vmatpush.msra.mxu3 %v125_v3  ;;  %291 = vmatpush.msra.mxu1 %v125_v3  ;;  %v87_v8 = vld [vmem:[%s2142_s1 + $0xb0] sm:$0xff]  ;;  %v85_v10 = vld [vmem:[%s2142_s1 + $0xa0] sm:$0xff]  ;;  %v92_v54 = vld [vmem:[%s2142_s1 + $0xd8] sm:$0xff] }
   0x6   :  { %971 = vmatpush.msra.mxu2 %v91_v4  ;;  %v119_v9 = vld [vmem:[%s2142_s1 + $0x1b0] sm:$0xff]  ;;  %227 = vmatpush.msra.mxu0 %v91_v4  ;;  %v117_v11 = vld [vmem:[%s2142_s1 + $0x1a0] sm:$0xff]  ;;  %v90_v58 = vld [vmem:[%s2142_s1 + $0xc8] sm:$0xff] }
   0x7   :  { %987 = vmatpush.msra.mxu3 %v123_v5  ;;  %292 = vmatpush.msra.mxu1 %v123_v5  ;;  %v83_v12 = vld [vmem:[%s2142_s1 + $0x90] sm:$0xff]  ;;  %v81_v14 = vld [vmem:[%s2142_s1 + $0x80] sm:$0xff]  ;;  %v88_v0 = vld [vmem:[%s2142_s1 + $0xb8] sm:$0xff] }
   0x8   :  { %972 = vmatpush.msra.mxu2 %v89_v6  ;;  %228 = vmatpush.msra.mxu0 %v89_v6  ;;  %v115_v13 = vld [vmem:[%s2142_s1 + $0x190] sm:$0xff]  ;;  %v113_v15 = vld [vmem:[%s2142_s1 + $0x180] sm:$0xff]  ;;  %v86_v5 = vld [vmem:[%s2142_s1 + $0xa8] sm:$0xff] }
   0x9   :  { %988 = vmatpush.msra.mxu3 %v121_v7  ;;  %293 = vmatpush.msra.mxu1 %v121_v7  ;;  %v79_v16 = vld [vmem:[%s2142_s1 + $0x70] sm:$0xff]  ;;  %v77_v18 = vld [vmem:[%s2142_s1 + $0x60] sm:$0xff] }
   0xa   :  { %973 = vmatpush.msra.mxu2 %v87_v8  ;;  %229 = vmatpush.msra.mxu0 %v87_v8  ;;  %v111_v17 = vld [vmem:[%s2142_s1 + $0x170] sm:$0xff]  ;;  %v109_v19 = vld [vmem:[%s2142_s1 + $0x160] sm:$0xff] }
   0xb   :  { %989 = vmatpush.msra.mxu3 %v119_v9  ;;  %294 = vmatpush.msra.mxu1 %v119_v9  ;;  %v75_v20 = vld [vmem:[%s2142_s1 + $0x50] sm:$0xff]  ;;  %v73_v22 = vld [vmem:[%s2142_s1 + $0x40] sm:$0xff]  ;;  %v84_v9 = vld [vmem:[%s2142_s1 + $0x98] sm:$0xff] }
   0xc   :  { %974 = vmatpush.msra.mxu2 %v85_v10  ;;  %230 = vmatpush.msra.mxu0 %v85_v10  ;;  %v107_v21 = vld [vmem:[%s2142_s1 + $0x150] sm:$0xff]  ;;  %v105_v23 = vld [vmem:[%s2142_s1 + $0x140] sm:$0xff] }
   0xd   :  { %990 = vmatpush.msra.mxu3 %v117_v11  ;;  %295 = vmatpush.msra.mxu1 %v117_v11  ;;  %v71_v24 = vld [vmem:[%s2142_s1 + $0x30] sm:$0xff]  ;;  %v69_v26 = vld [vmem:[%s2142_s1 + $0x20] sm:$0xff]  ;;  %v1281_v11 = vld [vmem:[%s2143_s0 + $0x98] sm:$0xff] }
   0xe   :  { %975 = vmatpush.msra.mxu2 %v83_v12  ;;  %231 = vmatpush.msra.mxu0 %v83_v12  ;;  %v103_v25 = vld [vmem:[%s2142_s1 + $0x130] sm:$0xff]  ;;  %v101_v27 = vld [vmem:[%s2142_s1 + $0x120] sm:$0xff] }
   0xf   :  { %991 = vmatpush.msra.mxu3 %v115_v13  ;;  %296 = vmatpush.msra.mxu1 %v115_v13  ;;  %v67_v28 = vld [vmem:[%s2142_s1 + $0x10] sm:$0xff]  ;;  %v65_v30 = vld [vmem:[%s2142_s1] sm:$0xff] }
  0x10   :  { %976 = vmatpush.msra.mxu2 %v81_v14  ;;  %232 = vmatpush.msra.mxu0 %v81_v14  ;;  %v99_v29 = vld [vmem:[%s2142_s1 + $0x110] sm:$0xff]  ;;  %v97_v31 = vld [vmem:[%s2142_s1 + $0x100] sm:$0xff] }
  0x11   :  { %992 = vmatpush.msra.mxu3 %v113_v15  ;;  %297 = vmatpush.msra.mxu1 %v113_v15  ;;  %v1122_v32 = vld [vmem:[%s2143_s0 + $0x30] sm:$0xff]  ;;  %v1127_v33 = vld [vmem:[%s2143_s0 + $0x1] sm:$0xff] }
  0x12   :  { %977 = vmatpush.msra.mxu2 %v79_v16  ;;  %233 = vmatpush.msra.mxu0 %v79_v16  ;;  %v159_v34 = vld [vmem:[%s2142_s1 + $0x2f0] sm:$0xff]  ;;  %v157_v36 = vld [vmem:[%s2142_s1 + $0x2e0] sm:$0xff]  ;;  %v82_v15 = vld [vmem:[%s2142_s1 + $0x88] sm:$0xff] }
  0x13   :  { %993 = vmatpush.msra.mxu3 %v111_v17  ;;  %298 = vmatpush.msra.mxu1 %v111_v17  ;;  %v191_v35 = vld [vmem:[%s2142_s1 + $0x3f0] sm:$0xff]  ;;  %v189_v37 = vld [vmem:[%s2142_s1 + $0x3e0] sm:$0xff] }
  0x14   :  { %978 = vmatpush.msra.mxu2 %v77_v18  ;;  %234 = vmatpush.msra.mxu0 %v77_v18  ;;  %v1146_v38 = vld [vmem:[%s2143_s0] sm:$0xff]  ;;  %v155_v39 = vld [vmem:[%s2142_s1 + $0x2d0] sm:$0xff] }
  0x15   :  { %994 = vmatpush.msra.mxu3 %v109_v19  ;;  %299 = vmatpush.msra.mxu1 %v109_v19  ;;  %v187_v40 = vld [vmem:[%s2142_s1 + $0x3d0] sm:$0xff]  ;;  %v153_v43 = vld [vmem:[%s2142_s1 + $0x2c0] sm:$0xff]  ;;  %v1311_v19 = vld [vmem:[%s2143_s0 + $0x68] sm:$0xff] }
  0x16   :  { %979 = vmatpush.msra.mxu2 %v75_v20  ;;  %235 = vmatpush.msra.mxu0 %v75_v20  ;;  %v223_v41 = vld [vmem:[%s2142_s1 + $0x4f0] sm:$0xff]  ;;  %v185_v44 = vld [vmem:[%s2142_s1 + $0x3c0] sm:$0xff]  ;;  %v80_v20 = vld [vmem:[%s2142_s1 + $0x78] sm:$0xff] }
  0x17   :  { %995 = vmatpush.msra.mxu3 %v107_v21  ;;  %300 = vmatpush.msra.mxu1 %v107_v21  ;;  %v1176_v46 = vld [vmem:[%s2143_s0 + $0x9] sm:$0xff]  ;;  %v221_v47 = vld [vmem:[%s2142_s1 + $0x4e0] sm:$0xff] }
  0x18   :  { %980 = vmatpush.msra.mxu2 %v73_v22  ;;  %236 = vmatpush.msra.mxu0 %v73_v22  ;;  %v151_v48 = vld [vmem:[%s2142_s1 + $0x2b0] sm:$0xff]  ;;  %v149_v52 = vld [vmem:[%s2142_s1 + $0x2a0] sm:$0xff] }
  0x19   :  { %996 = vmatpush.msra.mxu3 %v105_v23  ;;  %301 = vmatpush.msra.mxu1 %v105_v23  ;;  %v183_v50 = vld [vmem:[%s2142_s1 + $0x3b0] sm:$0xff]  ;;  %v181_v55 = vld [vmem:[%s2142_s1 + $0x3a0] sm:$0xff] }
  0x1a   :  { %981 = vmatpush.msra.mxu2 %v71_v24  ;;  %237 = vmatpush.msra.mxu0 %v71_v24  ;;  %v219_v51 = vld [vmem:[%s2142_s1 + $0x4d0] sm:$0xff]  ;;  %v217_v56 = vld [vmem:[%s2142_s1 + $0x4c0] sm:$0xff]  ;;  %v78_v24 = vld [vmem:[%s2142_s1 + $0x68] sm:$0xff] }
  0x1b   :  { %997 = vmatpush.msra.mxu3 %v103_v25  ;;  %302 = vmatpush.msra.mxu1 %v103_v25  ;;  %v147_v57 = vld [vmem:[%s2142_s1 + $0x290] sm:$0xff]  ;;  %v1231_v61 = vld [vmem:[%s2143_s0 + $0x61] sm:$0xff] }
  0x1c   :  { %982 = vmatpush.msra.mxu2 %v69_v26  ;;  %238 = vmatpush.msra.mxu0 %v69_v26  ;;  %v179_v59 = vld [vmem:[%s2142_s1 + $0x390] sm:$0xff]  ;;  %v145_v63 = vld [vmem:[%s2142_s1 + $0x280] sm:$0xff]  ;;  %v1336_v26 = vld [vmem:[%s2143_s0 + $0x48] sm:$0xff] }
  0x1d   :  { %998 = vmatpush.msra.mxu3 %v101_v27  ;;  %303 = vmatpush.msra.mxu1 %v101_v27  ;;  %v1226_v60 = vld [vmem:[%s2143_s0 + $0x90] sm:$0xff]  ;;  %v177_v1 = vld [vmem:[%s2142_s1 + $0x380] sm:$0xff] }
  0x1e   :  { %983 = vmatpush.msra.mxu2 %v67_v28  ;;  %239 = vmatpush.msra.mxu0 %v67_v28  ;;  %v215_v62 = vld [vmem:[%s2142_s1 + $0x4b0] sm:$0xff]  ;;  %v213_v2 = vld [vmem:[%s2142_s1 + $0x4a0] sm:$0xff] }
  0x1f   :  { %999 = vmatpush.msra.mxu3 %v99_v29  ;;  %304 = vmatpush.msra.mxu1 %v99_v29  ;;  %v143_v3 = vld [vmem:[%s2142_s1 + $0x270] sm:$0xff]  ;;  %v1256_v4 = vld [vmem:[%s2143_s0 + $0x60] sm:$0xff] }
  0x20   :  { %984 = vmatpush.msra.mxu2 %v65_v30  ;;  %240 = vmatpush.msra.mxu0 %v65_v30  ;;  %v175_v6 = vld [vmem:[%s2142_s1 + $0x370] sm:$0xff]  ;;  %v141_v8 = vld [vmem:[%s2142_s1 + $0x260] sm:$0xff]  ;;  %v76_v30 = vld [vmem:[%s2142_s1 + $0x58] sm:$0xff] }
  0x21   :  { %1000 = vmatpush.msra.mxu3 %v97_v31  ;;  %265 = vmatmul.f32.vlgmr.msra.gmra.mxu2 %v1122_v32  ;;  %v211_v7 = vld [vmem:[%s2142_s1 + $0x490] sm:$0xff]  ;;  %v173_v10 = vld [vmem:[%s2142_s1 + $0x360] sm:$0xff] }
  0x22   :  { %330 = vmatmul.f32.vlgmr.msra.gmra.mxu3 %v1127_v33  ;;  %355 = vmatpush.msrb.mxu2 %v159_v34  ;;  %v1286_v12 = vld [vmem:[%s2143_s0 + $0x69] sm:$0xff]  ;;  %v209_v13 = vld [vmem:[%s2142_s1 + $0x480] sm:$0xff] }
  0x23   :  { %420 = vmatpush.msrb.mxu3 %v191_v35  ;;  %305 = vmatpush.msra.mxu1 %v97_v31  ;;  %v139_v14 = vld [vmem:[%s2142_s1 + $0x250] sm:$0xff]  ;;  %v137_v18 = vld [vmem:[%s2142_s1 + $0x240] sm:$0xff] }
  0x24   :  { %356 = vmatpush.msrb.mxu2 %v157_v36  ;;  %241 = vmatmul.f32.vlgmr.msra.gmra.mxu0 %v1146_v38  ;;  %v171_v16 = vld [vmem:[%s2142_s1 + $0x350] sm:$0xff]  ;;  %v169_v21 = vld [vmem:[%s2142_s1 + $0x340] sm:$0xff]  ;;  %v1366_v36 = vld [vmem:[%s2143_s0 + $0x18] sm:$0xff] }
  0x25   :  { %421 = vmatpush.msrb.mxu3 %v189_v37  ;;  %306 = vmatmul.f32.vlgmr.msra.gmra.mxu1 %v1122_v32  ;;  %v207_v17 = vld [vmem:[%s2142_s1 + $0x470] sm:$0xff]  ;;  %v205_v22 = vld [vmem:[%s2142_s1 + $0x460] sm:$0xff]  ;;  %v74_v37 = vld [vmem:[%s2142_s1 + $0x48] sm:$0xff] }
  0x26   :  { %357 = vmatpush.msrb.mxu2 %v155_v39  ;;  %485 = vmatpush.msrb.mxu0 %v223_v41  ;;  %v135_v23 = vld [vmem:[%s2142_s1 + $0x230] sm:$0xff]  ;;  %v1341_v27 = vld [vmem:[%s2143_s0 + $0x19] sm:$0xff] }
  0x27   :  { %422 = vmatpush.msrb.mxu3 %v187_v40  ;;  %550 = vmatpush.msrb.mxu1 %v96_v42  ;;  %v167_v25 = vld [vmem:[%s2142_s1 + $0x330] sm:$0xff]  ;;  %v133_v29 = vld [vmem:[%s2142_s1 + $0x220] sm:$0xff]  ;;  %v72_v42 = vld [vmem:[%s2142_s1 + $0x38] sm:$0xff] }
  0x28   :  { %358 = vmatpush.msrb.mxu2 %v153_v43  ;;  %486 = vmatpush.msrb.mxu0 %v221_v47  ;;  %v203_v28 = vld [vmem:[%s2142_s1 + $0x450] sm:$0xff]  ;;  %v165_v31 = vld [vmem:[%s2142_s1 + $0x320] sm:$0xff] }
  0x29   :  { %423 = vmatpush.msrb.mxu3 %v185_v44  ;;  %268 = vmatmul.f32.gmra.mxu2 %v1171_v45  ;;  %v201_v34 = vld [vmem:[%s2142_s1 + $0x440] sm:$0xff]  ;;  %v131_v35 = vld [vmem:[%s2142_s1 + $0x210] sm:$0xff] }
  0x2a   :  { %333 = vmatmul.f32.gmra.mxu3 %v1176_v46  ;;  %359 = vmatpush.msrb.mxu2 %v151_v48  ;;  %v163_v39 = vld [vmem:[%s2142_s1 + $0x310] sm:$0xff]  ;;  %v129_v41 = vld [vmem:[%s2142_s1 + $0x200] sm:$0xff] }
  0x2b   :  { %551 = vmatpush.msrb.mxu1 %v94_v49  ;;  %424 = vmatpush.msrb.mxu3 %v183_v50  ;;  %v199_v40 = vld [vmem:[%s2142_s1 + $0x430] sm:$0xff]  ;;  %v161_v43 = vld [vmem:[%s2142_s1 + $0x300] sm:$0xff]  ;;  %v70_v49 = vld [vmem:[%s2142_s1 + $0x28] sm:$0xff] }
  0x2c   :  { %487 = vmatpush.msrb.mxu0 %v219_v51  ;;  %360 = vmatpush.msrb.mxu2 %v149_v52  ;;  %v1391_v44 = vld [vmem:[%s2143_s0 + $0x50] sm:$0xff]  ;;  %v1396_v47 = vld [vmem:[%s2143_s0 + $0x21] sm:$0xff]  ;;  %v128_v50 = vld [vmem:[%s2142_s1 + $0x1f8] sm:$0xff] }
  0x2d   :  { %244 = vmatmul.f32.gmra.mxu0 %v1201_v53  ;;  %309 = vmatmul.f32.gmra.mxu1 %v1171_v45  ;;  %v197_v48 = vld [vmem:[%s2142_s1 + $0x420] sm:$0xff]  ;;  %v160_v51 = vld [vmem:[%s2142_s1 + $0x2f8] sm:$0xff]  ;;  %v195_v52 = vld [vmem:[%s2142_s1 + $0x410] sm:$0xff] }
  0x2e   :  { %552 = vmatpush.msrb.mxu1 %v92_v54  ;;  %425 = vmatpush.msrb.mxu3 %v181_v55  ;;  %v68_v54 = vld [vmem:[%s2142_s1 + $0x18] sm:$0xff]  ;;  %v1421_v55 = vld [vmem:[%s2143_s0 + $0x20] sm:$0xff] }
  0x2f   :  { %488 = vmatpush.msrb.mxu0 %v217_v56  ;;  %361 = vmatpush.msrb.mxu2 %v147_v57  ;;  %v193_v56 = vld [vmem:[%s2142_s1 + $0x400] sm:$0xff]  ;;  %v66_v57 = vld [vmem:[%s2142_s1 + $0x8] sm:$0xff] }
  0x30   :  { %553 = vmatpush.msrb.mxu1 %v90_v58  ;;  %426 = vmatpush.msrb.mxu3 %v179_v59  ;;  %v126_v58 = vld [vmem:[%s2142_s1 + $0x1e8] sm:$0xff] }
  0x31   :  { %271 = vmatmul.f32.gmra.mxu2 %v1226_v60  ;;  %489 = vmatpush.msrb.mxu0 %v215_v62  ;;  %v158_v59 = vld [vmem:[%s2142_s1 + $0x2e8] sm:$0xff]  ;;  %v192_v62 = vld [vmem:[%s2142_s1 + $0x3f8] sm:$0xff] }
  0x32   :  { %336 = vmatmul.f32.gmra.mxu3 %v1231_v61  ;;  %362 = vmatpush.msrb.mxu2 %v145_v63  ;;  %v224_v63 = vld [vmem:[%s2142_s1 + $0x4f8] sm:$0xff] }
  0x33   :  { %554 = vmatpush.msrb.mxu1 %v88_v0  ;;  %427 = vmatpush.msrb.mxu3 %v177_v1  ;;  %v1446_v0 = vld [vmem:[%s2143_s0 + $0xa8] sm:$0xff]  ;;  %v1451_v1 = vld [vmem:[%s2143_s0 + $0x79] sm:$0xff] }
  0x34   :  { %490 = vmatpush.msrb.mxu0 %v213_v2  ;;  %363 = vmatpush.msrb.mxu2 %v143_v3  ;;  %v1458_v2 = vld [vmem:[%s2143_s0 + $0x78] sm:$0xff] }
  0x35   :  { %247 = vmatmul.f32.gmra.mxu0 %v1256_v4  ;;  %312 = vmatmul.f32.gmra.mxu1 %v1226_v60  ;;  %v124_v3 = vld [vmem:[%s2142_s1 + $0x1d8] sm:$0xff] }
  0x36   :  { %555 = vmatpush.msrb.mxu1 %v86_v5  ;;  %428 = vmatpush.msrb.mxu3 %v175_v6  ;;  %v156_v5 = vld [vmem:[%s2142_s1 + $0x2d8] sm:$0xff]  ;;  %v190_v6 = vld [vmem:[%s2142_s1 + $0x3e8] sm:$0xff] }
  0x37   :  { %491 = vmatpush.msrb.mxu0 %v211_v7  ;;  %364 = vmatpush.msrb.mxu2 %v141_v8  ;;  %v222_v7 = vld [vmem:[%s2142_s1 + $0x4e8] sm:$0xff]  ;;  %v1477_v8 = vld [vmem:[%s2143_s0 + $0xb0] sm:$0xff] }
  0x38   :  { %556 = vmatpush.msrb.mxu1 %v84_v9  ;;  %429 = vmatpush.msrb.mxu3 %v173_v10  ;;  %v1482_v9 = vld [vmem:[%s2143_s0 + $0x81] sm:$0xff] }
  0x39   :  { %274 = vmatmul.f32.gmra.mxu2 %v1281_v11  ;;  %492 = vmatpush.msrb.mxu0 %v209_v13  ;;  %v1489_v10 = vld [vmem:[%s2143_s0 + $0x80] sm:$0xff]  ;;  %v122_v13 = vld [vmem:[%s2142_s1 + $0x1c8] sm:$0xff] }
  0x3a   :  { %339 = vmatmul.f32.gmra.mxu3 %v1286_v12  ;;  %365 = vmatpush.msrb.mxu2 %v139_v14  ;;  %v154_v14 = vld [vmem:[%s2142_s1 + $0x2c8] sm:$0xff] }
  0x3b   :  { %557 = vmatpush.msrb.mxu1 %v82_v15  ;;  %430 = vmatpush.msrb.mxu3 %v171_v16  ;;  %v188_v15 = vld [vmem:[%s2142_s1 + $0x3d8] sm:$0xff] }
  0x3c   :  { %493 = vmatpush.msrb.mxu0 %v207_v17  ;;  %366 = vmatpush.msrb.mxu2 %v137_v18  ;;  %v220_v16 = vld [vmem:[%s2142_s1 + $0x4d8] sm:$0xff]  ;;  %v1515_v18 = vld [vmem:[%s2143_s0 + $0x2] sm:$0xff] }
  0x3d   :  { %250 = vmatmul.f32.gmra.mxu0 %v1311_v19  ;;  %315 = vmatmul.f32.gmra.mxu1 %v1281_v11  ;;  %v1508_v17 = vld [vmem:[%s2143_s0 + $0x31] sm:$0xff] }
  0x3e   :  { %558 = vmatpush.msrb.mxu1 %v80_v20  ;;  %431 = vmatpush.msrb.mxu3 %v169_v21  ;;  %v120_v20 = vld [vmem:[%s2142_s1 + $0x1b8] sm:$0xff] }
  0x3f   :  { %494 = vmatpush.msrb.mxu0 %v205_v22  ;;  %367 = vmatpush.msrb.mxu2 %v135_v23  ;;  %v152_v21 = vld [vmem:[%s2142_s1 + $0x2b8] sm:$0xff]  ;;  %v186_v22 = vld [vmem:[%s2142_s1 + $0x3c8] sm:$0xff] }
  0x40   :  { %559 = vmatpush.msrb.mxu1 %v78_v24  ;;  %432 = vmatpush.msrb.mxu3 %v167_v25  ;;  %v218_v23 = vld [vmem:[%s2142_s1 + $0x4c8] sm:$0xff]  ;;  %v1534_v24 = vld [vmem:[%s2143_s0 + $0x39] sm:$0xff] }
  0x41   :  { %277 = vmatmul.f32.gmra.mxu2 %v1336_v26  ;;  %495 = vmatpush.msrb.mxu0 %v203_v28  ;;  %v1541_v25 = vld [vmem:[%s2143_s0 + $0xa] sm:$0xff] }
  0x42   :  { %342 = vmatmul.f32.gmra.mxu3 %v1341_v27  ;;  %368 = vmatpush.msrb.mxu2 %v133_v29  ;;  %v118_v28 = vld [vmem:[%s2142_s1 + $0x1a8] sm:$0xff]  ;;  %v184_v29 = vld [vmem:[%s2142_s1 + $0x3b8] sm:$0xff] }
  0x43   :  { %560 = vmatpush.msrb.mxu1 %v76_v30  ;;  %433 = vmatpush.msrb.mxu3 %v165_v31  ;;  %v216_v30 = vld [vmem:[%s2142_s1 + $0x4b8] sm:$0xff] }
  0x44   :  { %496 = vmatpush.msrb.mxu0 %v201_v34  ;;  %369 = vmatpush.msrb.mxu2 %v131_v35  ;;  %v1560_v31 = vld [vmem:[%s2143_s0 + $0x91] sm:$0xff]  ;;  %v1567_v34 = vld [vmem:[%s2143_s0 + $0x62] sm:$0xff] }
  0x45   :  { %253 = vmatmul.f32.gmra.mxu0 %v1366_v36  ;;  %318 = vmatmul.f32.gmra.mxu1 %v1336_v26  ;;  %v116_v35 = vld [vmem:[%s2142_s1 + $0x198] sm:$0xff] }
  0x46   :  { %561 = vmatpush.msrb.mxu1 %v74_v37  ;;  %434 = vmatpush.msrb.mxu3 %v163_v39  ;;  %v182_v37 = vld [vmem:[%s2142_s1 + $0x3a8] sm:$0xff] }
  0x47   :  { %497 = vmatpush.msrb.mxu0 %v199_v40  ;;  %370 = vmatpush.msrb.mxu2 %v129_v41  ;;  %v214_v39 = vld [vmem:[%s2142_s1 + $0x4a8] sm:$0xff]  ;;  %v1586_v40 = vld [vmem:[%s2143_s0 + $0x99] sm:$0xff] }
  0x48   :  { %562 = vmatpush.msrb.mxu1 %v72_v42  ;;  %435 = vmatpush.msrb.mxu3 %v161_v43  ;;  %v1593_v41 = vld [vmem:[%s2143_s0 + $0x6a] sm:$0xff]  ;;  %v180_v43 = vld [vmem:[%s2142_s1 + $0x398] sm:$0xff] }
  0x49   :  { %280 = vmatmul.f32.gmra.mxu2 %v1391_v44  ;;  %498 = vmatpush.msrb.mxu0 %v197_v48  ;;  %v114_v42 = vld [vmem:[%s2142_s1 + $0x188] sm:$0xff]  ;;  %v212_v48 = vld [vmem:[%s2142_s1 + $0x498] sm:$0xff] }
  0x4a   :  { %345 = vmatmul.f32.gmra.mxu3 %v1396_v47  ;;  %563 = vmatpush.msrb.mxu1 %v70_v49  ;;  %v1612_v49 = vld [vmem:[%s2143_s0 + $0x49] sm:$0xff] }
  0x4b   :  { %615 = vmatpush.msra.mxu2 %v128_v50  ;;  %680 = vmatpush.msra.mxu3 %v160_v51  ;;  %v112_v50 = vld [vmem:[%s2142_s1 + $0x178] sm:$0xff] }
  0x4c   :  { %499 = vmatpush.msrb.mxu0 %v195_v52  ;;  %564 = vmatpush.msrb.mxu1 %v68_v54  ;;  %v144_v51 = vld [vmem:[%s2142_s1 + $0x278] sm:$0xff]  ;;  %v178_v52 = vld [vmem:[%s2142_s1 + $0x388] sm:$0xff] }
  0x4d   :  { %256 = vmatmul.f32.gmra.mxu0 %v1421_v55  ;;  %321 = vmatmul.f32.gmra.mxu1 %v1391_v44  ;;  %v210_v54 = vld [vmem:[%s2142_s1 + $0x488] sm:$0xff] }
  0x4e   :  { %500 = vmatpush.msrb.mxu0 %v193_v56  ;;  %565 = vmatpush.msrb.mxu1 %v66_v57  ;;  %v1638_v56 = vld [vmem:[%s2143_s0 + $0x51] sm:$0xff]  ;;  %v110_v57 = vld [vmem:[%s2142_s1 + $0x168] sm:$0xff] }
  0x4f   :  { %616 = vmatpush.msra.mxu2 %v126_v58  ;;  %681 = vmatpush.msra.mxu3 %v158_v59  ;;  %v1651_v58 = vld [vmem:[%s2143_s0 + $0x22] sm:$0xff]  ;;  %v176_v59 = vld [vmem:[%s2142_s1 + $0x378] sm:$0xff] }
  0x50   :  { %745 = vmatpush.msra.mxu0 %v192_v62  ;;  %810 = vmatpush.msra.mxu1 %v224_v63  ;;  %v208_v62 = vld [vmem:[%s2142_s1 + $0x478] sm:$0xff]  ;;  %v1664_v63 = vld [vmem:[%s2143_s0 + $0xa9] sm:$0xff] }
  0x51   :  { %283 = vmatmul.f32.gmra.mxu2 %v1446_v0  ;;  %682 = vmatpush.msra.mxu3 %v156_v5  ;;  %v1677_v5 = vld [vmem:[%s2143_s0 + $0x7a] sm:$0xff] }
  0x52   :  { %348 = vmatmul.f32.gmra.mxu3 %v1451_v1  ;;  %617 = vmatpush.msra.mxu2 %v124_v3  ;;  %v108_v3 = vld [vmem:[%s2142_s1 + $0x158] sm:$0xff] }
  0x53   :  { %746 = vmatpush.msra.mxu0 %v190_v6  ;;  %811 = vmatpush.msra.mxu1 %v222_v7  ;;  %v174_v6 = vld [vmem:[%s2142_s1 + $0x368] sm:$0xff] }
  0x54   :  { %618 = vmatpush.msra.mxu2 %v122_v13  ;;  %683 = vmatpush.msra.mxu3 %v154_v14  ;;  %v206_v7 = vld [vmem:[%s2142_s1 + $0x468] sm:$0xff]  ;;  %v1690_v13 = vld [vmem:[%s2143_s0 + $0xb1] sm:$0xff] }
  0x55   :  { %259 = vmatmul.f32.gmra.mxu0 %v1458_v2  ;;  %324 = vmatmul.f32.gmra.mxu1 %v1446_v0  ;;  %v106_v14 = vld [vmem:[%s2142_s1 + $0x148] sm:$0xff] }
  0x56   :  { %747 = vmatpush.msra.mxu0 %v188_v15  ;;  %812 = vmatpush.msra.mxu1 %v220_v16  ;;  %v1703_v15 = vld [vmem:[%s2143_s0 + $0x82] sm:$0xff]  ;;  %v172_v16 = vld [vmem:[%s2142_s1 + $0x358] sm:$0xff] }
  0x57   :  { %619 = vmatpush.msra.mxu2 %v120_v20  ;;  %684 = vmatpush.msra.mxu3 %v152_v21  ;;  %v204_v20 = vld [vmem:[%s2142_s1 + $0x458] sm:$0xff] }
  0x58   :  { %748 = vmatpush.msra.mxu0 %v186_v22  ;;  %813 = vmatpush.msra.mxu1 %v218_v23  ;;  %v104_v21 = vld [vmem:[%s2142_s1 + $0x138] sm:$0xff] }
  0x59   :  { %286 = vmatmul.f32.gmra.mxu2 %v1477_v8  ;;  %v136_v22 = vld [vmem:[%s2142_s1 + $0x238] sm:$0xff] }
  0x5a   :  { %351 = vmatmul.f32.gmra.mxu3 %v1482_v9  ;;  %620 = vmatpush.msra.mxu2 %v118_v28  ;;  %v1728_v28 = vld [vmem:[%s2143_s0 + $0x32] sm:$0xff] }
  0x5b   :  { %749 = vmatpush.msra.mxu0 %v184_v29  ;;  %814 = vmatpush.msra.mxu1 %v216_v30 }
  0x5c   :  { %621 = vmatpush.msra.mxu2 %v116_v35 }
  0x5d   :  { %262 = vmatmul.f32.gmra.mxu0 %v1489_v10  ;;  %327 = vmatmul.f32.gmra.mxu1 %v1477_v8 }
  0x5e   :  { %750 = vmatpush.msra.mxu0 %v182_v37  ;;  %815 = vmatpush.msra.mxu1 %v214_v39  ;;  %v102_v37 = vld [vmem:[%s2142_s1 + $0x128] sm:$0xff] }
  0x5f   :  { %622 = vmatpush.msra.mxu2 %v114_v42  ;;  %v134_v39 = vld [vmem:[%s2142_s1 + $0x228] sm:$0xff] }
  0x60   :  { %751 = vmatpush.msra.mxu0 %v180_v43  ;;  %816 = vmatpush.msra.mxu1 %v212_v48  ;;  %v1755_v43 = vld [vmem:[%s2143_s0 + $0x3a] sm:$0xff] }
  0x61   :  { %371 = vmatmul.f32.vlgmr.msrb.gmra.mxu2 %v1127_v33  ;;  %v168_v48 = vld [vmem:[%s2142_s1 + $0x338] sm:$0xff] }
  0x62   :  { %436 = vmatmul.f32.vlgmr.msrb.gmra.mxu3 %v1508_v17  ;;  %623 = vmatpush.msra.mxu2 %v112_v50 }
  0x63   :  { %752 = vmatpush.msra.mxu0 %v178_v52  ;;  %817 = vmatpush.msra.mxu1 %v210_v54  ;;  %v200_v54 = vld [vmem:[%s2142_s1 + $0x438] sm:$0xff] }
  0x64   :  { %624 = vmatpush.msra.mxu2 %v110_v57  ;;  %v100_v57 = vld [vmem:[%s2142_s1 + $0x118] sm:$0xff] }
  0x65   :  { %501 = vmatmul.f32.vlgmr.msrb.gmra.mxu0 %v1515_v18  ;;  %566 = vmatmul.f32.vlgmr.msrb.gmra.mxu1 %v1146_v38  ;;  %v150_v38 = vld [vmem:[%s2142_s1 + $0x2a8] sm:$0xff] }
  0x66   :  { %685 = vmatpush.msra.mxu3 %v150_v38  ;;  %753 = vmatpush.msra.mxu0 %v176_v59  ;;  %v170_v38 = vld [vmem:[%s2142_s1 + $0x348] sm:$0xff] }
  0x67   :  { %818 = vmatpush.msra.mxu1 %v208_v62  ;;  %625 = vmatpush.msra.mxu2 %v108_v3  ;;  %v1782_v3 = vld [vmem:[%s2143_s0 + $0x92] sm:$0xff] }
  0x68   :  { %754 = vmatpush.msra.mxu0 %v174_v6 }
  0x69   :  { %374 = vmatmul.f32.gmra.mxu2 %v1176_v46  ;;  %819 = vmatpush.msra.mxu1 %v206_v7 }
  0x6a   :  { %439 = vmatmul.f32.gmra.mxu3 %v1534_v24  ;;  %626 = vmatpush.msra.mxu2 %v106_v14 }
  0x6b   :  { %755 = vmatpush.msra.mxu0 %v172_v16  ;;  %820 = vmatpush.msra.mxu1 %v204_v20  ;;  %v98_v16 = vld [vmem:[%s2142_s1 + $0x108] sm:$0xff] }
  0x6c   :  { %627 = vmatpush.msra.mxu2 %v104_v21  ;;  %v130_v20 = vld [vmem:[%s2142_s1 + $0x208] sm:$0xff] }
  0x6d   :  { %504 = vmatmul.f32.gmra.mxu0 %v1541_v25  ;;  %569 = vmatmul.f32.gmra.mxu1 %v1201_v53  ;;  %v148_v53 = vld [vmem:[%s2142_s1 + $0x298] sm:$0xff] }
  0x6e   :  { %686 = vmatpush.msra.mxu3 %v148_v53  ;;  %756 = vmatpush.msra.mxu0 %v170_v38  ;;  %v202_v53 = vld [vmem:[%s2142_s1 + $0x448] sm:$0xff]  ;;  %v1809_v38 = vld [vmem:[%s2143_s0 + $0x9a] sm:$0xff] }
  0x6f   :  { %821 = vmatpush.msra.mxu1 %v202_v53  ;;  %628 = vmatpush.msra.mxu2 %v102_v37 }
  0x70   :  { %757 = vmatpush.msra.mxu0 %v168_v48  ;;  %v162_v48 = vld [vmem:[%s2142_s1 + $0x308] sm:$0xff] }
  0x71   :  { %377 = vmatmul.f32.gmra.mxu2 %v1231_v61  ;;  %822 = vmatpush.msra.mxu1 %v200_v54  ;;  %v1833_v54 = vld [vmem:[%s2143_s0 + $0x4a] sm:$0xff] }
  0x72   :  { %442 = vmatmul.f32.gmra.mxu3 %v1560_v31  ;;  %629 = vmatpush.msra.mxu2 %v100_v57  ;;  %2152 = vst [vmem:[#allocation5_spill] sm:$0xff] %v1833_v54 }
  0x74   :  { %630 = vmatpush.msra.mxu2 %v98_v16  ;;  %v1851_v16 = vld [vmem:[%s2143_s0 + $0x52] sm:$0xff] }
  0x75   :  { %507 = vmatmul.f32.gmra.mxu0 %v1567_v34  ;;  %572 = vmatmul.f32.gmra.mxu1 %v1256_v4  ;;  %v146_v4 = vld [vmem:[%s2142_s1 + $0x288] sm:$0xff]  ;;  %2153 = vst [vmem:[#allocation6_spill] sm:$0xff] %v1851_v16 }
  0x76   :  { %687 = vmatpush.msra.mxu3 %v146_v4 }
  0x78   :  { %688 = vmatpush.msra.mxu3 %v144_v51 }
  0x79   :  { %380 = vmatmul.f32.gmra.mxu2 %v1286_v12 }
  0x7a   :  { %445 = vmatmul.f32.gmra.mxu3 %v1586_v40 }
  0x7d   :  { %510 = vmatmul.f32.gmra.mxu0 %v1593_v41  ;;  %575 = vmatmul.f32.gmra.mxu1 %v1311_v19  ;;  %v1625_v19 = vld [vmem:[%s2143_s0 + $0x1a] sm:$0xff] }
  0x81   :  { %383 = vmatmul.f32.gmra.mxu2 %v1341_v27 }
  0x82   :  { %448 = vmatmul.f32.gmra.mxu3 %v1612_v49 }
  0x85   :  { %513 = vmatmul.f32.gmra.mxu0 %v1625_v19  ;;  %578 = vmatmul.f32.gmra.mxu1 %v1366_v36  ;;  %v142_v36 = vld [vmem:[%s2142_s1 + $0x268] sm:$0xff] }
  0x86   :  { %689 = vmatpush.msra.mxu3 %v142_v36  ;;  %v132_v36 = vld [vmem:[%s2142_s1 + $0x218] sm:$0xff] }
  0x89   :  { %386 = vmatmul.f32.gmra.mxu2 %v1396_v47 }
  0x8a   :  { %451 = vmatmul.f32.gmra.mxu3 %v1638_v56 }
  0x8d   :  { %516 = vmatmul.f32.gmra.mxu0 %v1651_v58  ;;  %581 = vmatmul.f32.gmra.mxu1 %v1421_v55  ;;  %v140_v55 = vld [vmem:[%s2142_s1 + $0x258] sm:$0xff] }
  0x8e   :  { %690 = vmatpush.msra.mxu3 %v140_v55  ;;  %v166_v55 = vld [vmem:[%s2142_s1 + $0x328] sm:$0xff] }
  0x8f   :  { %758 = vmatpush.msra.mxu0 %v166_v55 }
  0x91   :  { %389 = vmatmul.f32.gmra.mxu2 %v1451_v1 }
  0x92   :  { %454 = vmatmul.f32.gmra.mxu3 %v1664_v63 }
  0x95   :  { %519 = vmatmul.f32.gmra.mxu0 %v1677_v5  ;;  %584 = vmatmul.f32.gmra.mxu1 %v1458_v2  ;;  %v138_v2 = vld [vmem:[%s2142_s1 + $0x248] sm:$0xff] }
  0x96   :  { %691 = vmatpush.msra.mxu3 %v138_v2  ;;  %v198_v2 = vld [vmem:[%s2142_s1 + $0x428] sm:$0xff] }
  0x97   :  { %823 = vmatpush.msra.mxu1 %v198_v2 }
  0x98   :  { %692 = vmatpush.msra.mxu3 %v136_v22 }
  0x99   :  { %392 = vmatmul.f32.gmra.mxu2 %v1482_v9 }
  0x9a   :  { %457 = vmatmul.f32.gmra.mxu3 %v1690_v13 }
  0x9b   :  { %693 = vmatpush.msra.mxu3 %v134_v39  ;;  %v196_v39 = vld [vmem:[%s2142_s1 + $0x418] sm:$0xff] }
  0x9c   :  { %824 = vmatpush.msra.mxu1 %v196_v39 }
  0x9d   :  { %522 = vmatmul.f32.gmra.mxu0 %v1703_v15  ;;  %587 = vmatmul.f32.gmra.mxu1 %v1489_v10 }
  0x9e   :  { %694 = vmatpush.msra.mxu3 %v132_v36 }
  0xa0   :  { %695 = vmatpush.msra.mxu3 %v130_v20 }
  0xa1   :  { %395 = vmatmul.f32.gmra.mxu2 %v1508_v17  ;;  %v1721_v23 = vpop.f32.mrf.mxu0 }
  0xa2   :  { %460 = vmatmul.f32.gmra.mxu3 %v1515_v18  ;;  %v1723_v10 = vpop.f32.mrf.mxu1 }
  0xa4   :  { %v266_v29 = vpop.f32.mrf.mxu2 }
  0xa5   :  { %v331_v30 = vpop.f32.mrf.mxu3  ;;  %525 = vmatmul.f32.gmra.mxu0 %v1728_v28  ;;  %590 = vmatmul.f32.gmra.mxu1 %v1122_v32 }
  0xa6   :  { %v1733_v35 = vadd.f32 %v331_v30, %v266_v29  ;;  %v164_v29 = vld [vmem:[%s2142_s1 + $0x318] sm:$0xff] }
  0xa7   :  { %759 = vmatpush.msra.mxu0 %v164_v29 }
  0xa9   :  { %398 = vmatmul.f32.gmra.mxu2 %v1534_v24  ;;  %760 = vmatpush.msra.mxu0 %v162_v48  ;;  %v1866_v48 = vld [vmem:[%s2143_s0 + $0xaa] sm:$0xff] }
  0xaa   :  { %463 = vmatmul.f32.gmra.mxu3 %v1541_v25  ;;  %v1748_v42 = vpop.f32.mrf.mxu0  ;;  %v1750_v4 = vpop.f32.mrf.mxu1  ;;  %2155 = vst [vmem:[#allocation8_spill] sm:$0xff] %v1866_v48 }
  0xac   :  { %v269_v50 = vpop.f32.mrf.mxu2 }
  0xad   :  { %v334_v51 = vpop.f32.mrf.mxu3  ;;  %528 = vmatmul.f32.gmra.mxu0 %v1755_v43  ;;  %593 = vmatmul.f32.gmra.mxu1 %v1171_v45 }
  0xae   :  { %v1760_v52 = vadd.f32 %v334_v51, %v269_v50 }
  0xb0   :  { %2149 = vst [vmem:[#allocation2_spill] sm:$0xff] %v1760_v52 }
  0xb1   :  { %401 = vmatmul.f32.gmra.mxu2 %v1560_v31 }
  0xb2   :  { %466 = vmatmul.f32.gmra.mxu3 %v1567_v34  ;;  %v1775_v59 = vpop.f32.mrf.mxu0  ;;  %v1777_v62 = vpop.f32.mrf.mxu1 }
  0xb4   :  { %v272_v6 = vpop.f32.mrf.mxu2 }
  0xb5   :  { %v337_v7 = vpop.f32.mrf.mxu3  ;;  %531 = vmatmul.f32.gmra.mxu0 %v1782_v3  ;;  %596 = vmatmul.f32.gmra.mxu1 %v1226_v60 }
  0xb6   :  { %v1787_v14 = vadd.f32 %v337_v7, %v272_v6  ;;  %v194_v6 = vld [vmem:[%s2142_s1 + $0x408] sm:$0xff] }
  0xb7   :  { %825 = vmatpush.msra.mxu1 %v194_v6 }
  0xb8   :  { %2150 = vst [vmem:[#allocation3_spill] sm:$0xff] %v1787_v14 }
  0xb9   :  { %404 = vmatmul.f32.gmra.mxu2 %v1586_v40 }
  0xba   :  { %469 = vmatmul.f32.gmra.mxu3 %v1593_v41  ;;  %v1802_v21 = vpop.f32.mrf.mxu0  ;;  %v1804_v22 = vpop.f32.mrf.mxu1 }
  0xbc   :  { %v275_v30 = vpop.f32.mrf.mxu2 }
  0xbd   :  { %v340_v53 = vpop.f32.mrf.mxu3  ;;  %534 = vmatmul.f32.gmra.mxu0 %v1809_v38  ;;  %599 = vmatmul.f32.gmra.mxu1 %v1281_v11 }
  0xbe   :  { %v1814_v37 = vadd.f32 %v340_v53, %v275_v30 }
  0xc0   :  { %2151 = vst [vmem:[#allocation4_spill] sm:$0xff] %v1814_v37  ;;  %v1881_v37 = vld [vmem:[%s2143_s0 + $0xb2] sm:$0xff] }
  0xc1   :  { %407 = vmatmul.f32.gmra.mxu2 %v1612_v49 }
  0xc2   :  { %472 = vmatmul.f32.gmra.mxu3 %v1625_v19  ;;  %v1826_v50 = vpop.f32.mrf.mxu0  ;;  %v1828_v51 = vpop.f32.mrf.mxu1 }
  0xc4   :  { %v278_v57 = vpop.f32.mrf.mxu2 }
  0xc5   :  { %v343_v36 = vpop.f32.mrf.mxu3  ;;  %537 = vmatmul.f32.gmra.mxu0 %v1833_v54  ;;  %602 = vmatmul.f32.gmra.mxu1 %v1336_v26 }
  0xc6   :  { %v1835_v55 = vadd.f32 %v343_v36, %v278_v57 }
  0xc9   :  { %410 = vmatmul.f32.gmra.mxu2 %v1638_v56 }
  0xca   :  { %475 = vmatmul.f32.gmra.mxu3 %v1651_v58  ;;  %v1844_v7 = vpop.f32.mrf.mxu0  ;;  %v1846_v2 = vpop.f32.mrf.mxu1 }
  0xcc   :  { %v281_v20 = vpop.f32.mrf.mxu2 }
  0xcd   :  { %v346_v29 = vpop.f32.mrf.mxu3  ;;  %540 = vmatmul.f32.gmra.mxu0 %v1851_v16  ;;  %605 = vmatmul.f32.gmra.mxu1 %v1391_v44  ;;  %v308_v16 = vadd.f32 %v1723_v10, %v1721_v23  ;;  %v311_v23 = vadd.f32 %v1750_v4, %v1748_v42  ;;  %v314_v42 = vadd.f32 %v1777_v62, %v1775_v59 }
  0xce   :  { %v1853_v30 = vadd.f32 %v346_v29, %v281_v20  ;;  %v317_v59 = vadd.f32 %v1804_v22, %v1802_v21  ;;  %v320_v21 = vadd.f32 %v1828_v51, %v1826_v50  ;;  %v323_v50 = vadd.f32 %v1846_v2, %v1844_v7 }
  0xd0   :  { %2154 = vst [vmem:[#allocation7_spill] sm:$0xff] %v1853_v30 }
  0xd1   :  { %413 = vmatmul.f32.gmra.mxu2 %v1664_v63 }
  0xd2   :  { %478 = vmatmul.f32.gmra.mxu3 %v1677_v5  ;;  %v1859_v53 = vpop.f32.mrf.mxu0  ;;  %v1861_v39 = vpop.f32.mrf.mxu1 }
  0xd3   :  { %v326_v7 = vadd.f32 %v1861_v39, %v1859_v53 }
  0xd4   :  { %v284_v57 = vpop.f32.mrf.mxu2 }
  0xd5   :  { %v349_v36 = vpop.f32.mrf.mxu3  ;;  %543 = vmatmul.f32.gmra.mxu0 %v1866_v48  ;;  %608 = vmatmul.f32.gmra.mxu1 %v1446_v0 }
  0xd6   :  { %v1868_v6 = vadd.f32 %v349_v36, %v284_v57 }
  0xd8   :  { %2156 = vst [vmem:[#allocation9_spill] sm:$0xff] %v1868_v6 }
  0xd9   :  { %416 = vmatmul.f32.gmra.mxu2 %v1690_v13 }
  0xda   :  { %481 = vmatmul.f32.gmra.mxu3 %v1703_v15  ;;  %v1874_v20 = vpop.f32.mrf.mxu0  ;;  %v1876_v29 = vpop.f32.mrf.mxu1 }
  0xdb   :  { %v329_v53 = vadd.f32 %v1876_v29, %v1874_v20 }
  0xdc   :  { %v287_v14 = vpop.f32.mrf.mxu2 }
  0xdd   :  { %v352_v57 = vpop.f32.mrf.mxu3  ;;  %546 = vmatmul.f32.gmra.mxu0 %v1881_v37  ;;  %611 = vmatmul.f32.gmra.mxu1 %v1477_v8 }
  0xde   :  { %v1883_v36 = vadd.f32 %v352_v57, %v287_v14 }
  0xe1   :  { %631 = vmatmul.f32.vlgmr.msra.gmra.mxu2 %v1122_v32 }
  0xe2   :  { %696 = vmatmul.f32.vlgmr.msra.gmra.mxu3 %v1127_v33  ;;  %v502_v48 = vpop.f32.mrf.mxu0  ;;  %v1889_v6 = vpop.f32.mrf.mxu1 }
  0xe3   :  { %2157 = vst [vmem:[#allocation10_spill] sm:$0xff] %v1889_v6 }
  0xe4   :  { %v372_v30 = vpop.f32.mrf.mxu2 }
  0xe5   :  { %v437_v52 = vpop.f32.mrf.mxu3  ;;  %v373_v54 = vadd.f32 %v372_v30, %v308_v16  ;;  %761 = vmatmul.f32.vlgmr.msra.gmra.mxu0 %v1508_v17  ;;  %826 = vmatmul.f32.vlgmr.msra.gmra.mxu1 %v1515_v18 }
  0xe7   :  { %v438_v14 = vadd.f32 %v437_v52, %v373_v54 }
  0xe9   :  { %v1895_v57 = vadd.f32 %v502_v48, %v438_v14  ;;  %634 = vmatmul.f32.gmra.mxu2 %v1171_v45 }
  0xea   :  { %699 = vmatmul.f32.gmra.mxu3 %v1176_v46  ;;  %v505_v32 = vpop.f32.mrf.mxu0  ;;  %v1899_v33 = vpop.f32.mrf.mxu1 }
  0xec   :  { %v375_v10 = vpop.f32.mrf.mxu2 }
  0xed   :  { %v440_v6 = vpop.f32.mrf.mxu3  ;;  %v376_v16 = vadd.f32 %v375_v10, %v311_v23  ;;  %764 = vmatmul.f32.gmra.mxu0 %v1534_v24  ;;  %829 = vmatmul.f32.gmra.mxu1 %v1541_v25 }
  0xef   :  { %v441_v52 = vadd.f32 %v440_v6, %v376_v16 }
  0xf1   :  { %v1905_v54 = vadd.f32 %v505_v32, %v441_v52  ;;  %637 = vmatmul.f32.gmra.mxu2 %v1226_v60 }
  0xf2   :  { %702 = vmatmul.f32.gmra.mxu3 %v1231_v61  ;;  %v508_v45 = vpop.f32.mrf.mxu0  ;;  %v1909_v46 = vpop.f32.mrf.mxu1 }
  0xf4   :  { %v378_v4 = vpop.f32.mrf.mxu2 }
  0xf5   :  { %v443_v30 = vpop.f32.mrf.mxu3  ;;  %v379_v48 = vadd.f32 %v378_v4, %v314_v42  ;;  %767 = vmatmul.f32.gmra.mxu0 %v1560_v31  ;;  %832 = vmatmul.f32.gmra.mxu1 %v1567_v34 }
  0xf7   :  { %v444_v6 = vadd.f32 %v443_v30, %v379_v48 }
  0xf9   :  { %v1915_v14 = vadd.f32 %v508_v45, %v444_v6  ;;  %640 = vmatmul.f32.gmra.mxu2 %v1281_v11 }
  0xfa   :  { %705 = vmatmul.f32.gmra.mxu3 %v1286_v12  ;;  %v511_v60 = vpop.f32.mrf.mxu0  ;;  %v1919_v32 = vpop.f32.mrf.mxu1 }
  0xfc   :  { %v381_v62 = vpop.f32.mrf.mxu2 }
  0xfd   :  { %v446_v23 = vpop.f32.mrf.mxu3  ;;  %v382_v10 = vadd.f32 %v381_v62, %v317_v59  ;;  %770 = vmatmul.f32.gmra.mxu0 %v1586_v40  ;;  %835 = vmatmul.f32.gmra.mxu1 %v1593_v41 }
  0xff   :  { %v447_v16 = vadd.f32 %v446_v23, %v382_v10 }
 0x101   :  { %v1925_v52 = vadd.f32 %v511_v60, %v447_v16  ;;  %643 = vmatmul.f32.gmra.mxu2 %v1336_v26 }
 0x102   :  { %708 = vmatmul.f32.gmra.mxu3 %v1341_v27  ;;  %v514_v11 = vpop.f32.mrf.mxu0  ;;  %v1929_v45 = vpop.f32.mrf.mxu1 }
 0x104   :  { %v384_v22 = vpop.f32.mrf.mxu2 }
 0x105   :  { %v449_v42 = vpop.f32.mrf.mxu3  ;;  %v385_v4 = vadd.f32 %v384_v22, %v320_v21  ;;  %773 = vmatmul.f32.gmra.mxu0 %v1612_v49  ;;  %838 = vmatmul.f32.gmra.mxu1 %v1625_v19 }
 0x107   :  { %v450_v30 = vadd.f32 %v449_v42, %v385_v4 }
 0x109   :  { %v1935_v48 = vadd.f32 %v514_v11, %v450_v30  ;;  %646 = vmatmul.f32.gmra.mxu2 %v1391_v44 }
 0x10a   :  { %711 = vmatmul.f32.gmra.mxu3 %v1396_v47  ;;  %v517_v26 = vpop.f32.mrf.mxu0  ;;  %v1939_v6 = vpop.f32.mrf.mxu1 }
 0x10b   :  { %v875_v51 = vmax.f32 %v1895_v57, %v1935_v48 }
 0x10c   :  { %v387_v60 = vpop.f32.mrf.mxu2 }
 0x10d   :  { %v452_v59 = vpop.f32.mrf.mxu3  ;;  %v388_v62 = vadd.f32 %v387_v60, %v323_v50  ;;  %776 = vmatmul.f32.gmra.mxu0 %v1638_v56  ;;  %841 = vmatmul.f32.gmra.mxu1 %v1651_v58 }
 0x10f   :  { %v453_v23 = vadd.f32 %v452_v59, %v388_v62  ;;  %v1001_v62 = vld [vmem:[%s2143_s0 + $0x1] sm:$0xff] }
 0x111   :  { %v1947_v44 = vadd.f32 %v517_v26, %v453_v23  ;;  %649 = vmatmul.f32.gmra.mxu2 %v1446_v0 }
 0x112   :  { %714 = vmatmul.f32.gmra.mxu3 %v1451_v1  ;;  %v520_v10 = vpop.f32.mrf.mxu0  ;;  %v1951_v16 = vpop.f32.mrf.mxu1 }
 0x113   :  { %v877_v2 = vmax.f32 %v1905_v54, %v1947_v44 }
 0x114   :  { %v390_v11 = vpop.f32.mrf.mxu2 }
 0x115   :  { %v455_v21 = vpop.f32.mrf.mxu3  ;;  %v391_v22 = vadd.f32 %v390_v11, %v326_v7  ;;  %779 = vmatmul.f32.gmra.mxu0 %v1664_v63  ;;  %844 = vmatmul.f32.gmra.mxu1 %v1677_v5  ;;  %v1002_v11 = vld [vmem:[%s2143_s0 + $0x9] sm:$0xff] }
 0x117   :  { %v456_v42 = vadd.f32 %v455_v21, %v391_v22 }
 0x119   :  { %v1959_v0 = vadd.f32 %v520_v10, %v456_v42  ;;  %652 = vmatmul.f32.gmra.mxu2 %v1477_v8 }
 0x11a   :  { %717 = vmatmul.f32.gmra.mxu3 %v1482_v9  ;;  %v523_v4 = vpop.f32.mrf.mxu0  ;;  %v1963_v30 = vpop.f32.mrf.mxu1 }
 0x11b   :  { %v879_v39 = vmax.f32 %v1915_v14, %v1959_v0 }
 0x11c   :  { %v393_v26 = vpop.f32.mrf.mxu2 }
 0x11d   :  { %v458_v50 = vpop.f32.mrf.mxu3  ;;  %v394_v60 = vadd.f32 %v393_v26, %v329_v53  ;;  %782 = vmatmul.f32.gmra.mxu0 %v1690_v13  ;;  %847 = vmatmul.f32.gmra.mxu1 %v1703_v15 }
 0x11f   :  { %v459_v59 = vadd.f32 %v458_v50, %v394_v60  ;;  %v2158_v60 = vld [vmem:[#allocation5_spill] sm:$0xff] }
 0x121   :  { %v1971_v8 = vadd.f32 %v523_v4, %v459_v59  ;;  %655 = vmatmul.f32.gmra.mxu2 %v1001_v62 }
 0x122   :  { %720 = vmatmul.f32.gmra.mxu3 %v1508_v17  ;;  %v526_v20 = vpop.f32.mrf.mxu0  ;;  %v1977_v29 = vpop.f32.mrf.mxu1 }
 0x123   :  { %v881_v23 = vmax.f32 %v1925_v52, %v1971_v8 }
 0x124   :  { %v396_v10 = vpop.f32.mrf.mxu2 }
 0x125   :  { %v461_v7 = vpop.f32.mrf.mxu3  ;;  %785 = vmatmul.f32.gmra.mxu0 %v1515_v18  ;;  %850 = vmatmul.f32.gmra.mxu1 %v1728_v28 }
 0x129   :  { %658 = vmatmul.f32.gmra.mxu2 %v1002_v11 }
 0x12a   :  { %723 = vmatmul.f32.gmra.mxu3 %v1534_v24  ;;  %v529_v17 = vpop.f32.mrf.mxu0  ;;  %v1987_v21 = vpop.f32.mrf.mxu1 }
 0x12c   :  { %v399_v22 = vpop.f32.mrf.mxu2 }
 0x12d   :  { %v464_v42 = vpop.f32.mrf.mxu3  ;;  %788 = vmatmul.f32.gmra.mxu0 %v1541_v25  ;;  %853 = vmatmul.f32.gmra.mxu1 %v1755_v43  ;;  %v397_v43 = vadd.f32 %v396_v10, %v1733_v35  ;;  %v2020_v35 = vld [vmem:[%s2144_s2] sm:$0x3] }
 0x12e   :  { %v901_v10 = vperm.slane %v2020_v35, 0 }
 0x12f   :  { %v462_v26 = vadd.f32 %v461_v7, %v397_v43 }
 0x131   :  { %661 = vmatmul.f32.gmra.mxu2 %v1231_v61 }
 0x132   :  { %726 = vmatmul.f32.gmra.mxu3 %v1560_v31  ;;  %v1993_v18 = vpop.f32.mrf.mxu0  ;;  %v1995_v28 = vpop.f32.mrf.mxu1 }
 0x134   :  { %v402_v4 = vpop.f32.mrf.mxu2 }
 0x135   :  { %v467_v53 = vpop.f32.mrf.mxu3  ;;  %791 = vmatmul.f32.gmra.mxu0 %v1567_v34  ;;  %856 = vmatmul.f32.gmra.mxu1 %v1782_v3 }
 0x139   :  { %664 = vmatmul.f32.gmra.mxu2 %v1286_v12 }
 0x13a   :  { %729 = vmatmul.f32.gmra.mxu3 %v1586_v40  ;;  %v2001_v24 = vpop.f32.mrf.mxu0  ;;  %v2003_v25 = vpop.f32.mrf.mxu1 }
 0x13c   :  { %v405_v61 = vpop.f32.mrf.mxu2 }
 0x13d   :  { %v2005_v31 = vpop.f32.mrf.mxu3  ;;  %794 = vmatmul.f32.gmra.mxu0 %v1593_v41  ;;  %859 = vmatmul.f32.gmra.mxu1 %v1809_v38 }
 0x141   :  { %667 = vmatmul.f32.gmra.mxu2 %v1341_v27  ;;  %v527_v27 = vadd.f32 %v526_v20, %v462_v26  ;;  %v2162_v26 = vld [vmem:[#allocation3_spill] sm:$0xff] }
 0x142   :  { %732 = vmatmul.f32.gmra.mxu3 %v1612_v49  ;;  %v538_v12 = vpop.f32.mrf.mxu0  ;;  %v2012_v34 = vpop.f32.mrf.mxu1  ;;  %v2159_v49 = vld [vmem:[#allocation2_spill] sm:$0xff] }
 0x143   :  { %v400_v38 = vadd.f32 %v399_v22, %v2159_v49 }
 0x144   :  { %v408_v40 = vpop.f32.mrf.mxu2 }
 0x145   :  { %v473_v3 = vpop.f32.mrf.mxu3  ;;  %v409_v50 = vadd.f32 %v408_v40, %v1835_v55  ;;  %797 = vmatmul.f32.gmra.mxu0 %v1625_v19  ;;  %862 = vmatmul.f32.gmra.mxu1 %v2158_v60  ;;  %v465_v43 = vadd.f32 %v464_v42, %v400_v38  ;;  %v2160_v40 = vld [vmem:[#allocation7_spill] sm:$0xff] }
 0x147   :  { %v474_v41 = vadd.f32 %v473_v3, %v409_v50  ;;  %v530_v3 = vadd.f32 %v529_v17, %v465_v43  ;;  %v403_v50 = vadd.f32 %v402_v4, %v2162_v26  ;;  %v2163_v4 = vld [vmem:[#allocation9_spill] sm:$0xff] }
 0x149   :  { %v539_v59 = vadd.f32 %v538_v12, %v474_v41  ;;  %670 = vmatmul.f32.gmra.mxu2 %v1396_v47  ;;  %v2161_v47 = vld [vmem:[#allocation6_spill] sm:$0xff] }
 0x14a   :  { %735 = vmatmul.f32.gmra.mxu3 %v1638_v56  ;;  %v541_v62 = vpop.f32.mrf.mxu0  ;;  %v2025_v55 = vpop.f32.mrf.mxu1 }
 0x14b   :  { %v883_v19 = vmax.f32 %v527_v27, %v539_v59  ;;  %v468_v27 = vadd.f32 %v467_v53, %v403_v50 }
 0x14c   :  { %v411_v7 = vpop.f32.mrf.mxu2 }
 0x14d   :  { %v476_v11 = vpop.f32.mrf.mxu3  ;;  %v891_v20 = vmax.f32 %v875_v51, %v883_v19  ;;  %v412_v22 = vadd.f32 %v411_v7, %v2160_v40  ;;  %800 = vmatmul.f32.gmra.mxu0 %v1651_v58  ;;  %865 = vmatmul.f32.gmra.mxu1 %v2161_v47  ;;  %v533_v59 = vadd.f32 %v1993_v18, %v468_v27 }
 0x14f   :  { %v905_v56 = vadd.f32 %v901_v10, %v891_v20  ;;  %v477_v12 = vadd.f32 %v476_v11, %v412_v22 }
 0x151   :  { %v913_v60 = vmax.f32 %v905_v56, 0.0  ;;  %v542_v41 = vadd.f32 %v541_v62, %v477_v12  ;;  %673 = vmatmul.f32.gmra.mxu2 %v1451_v1  ;;  %v2164_v1 = vld [vmem:[#allocation8_spill] sm:$0xff] }
 0x152   :  { %738 = vmatmul.f32.gmra.mxu3 %v1664_v63  ;;  %v544_v42 = vpop.f32.mrf.mxu0  ;;  %v2037_v57 = vpop.f32.mrf.mxu1  ;;  %v2165_v62 = vld [vmem:[#allocation4_spill] sm:$0xff] }
 0x153   :  { %921 = vst [vmem:[%s2145_s3] sm:$0xff] %v913_v60  ;;  %v885_v58 = vmax.f32 %v530_v3, %v542_v41  ;;  %v406_v19 = vadd.f32 %v405_v61, %v2165_v62 }
 0x154   :  { %v414_v48 = vpop.f32.mrf.mxu2 }
 0x155   :  { %v479_v51 = vpop.f32.mrf.mxu3  ;;  %v893_v17 = vmax.f32 %v877_v2, %v885_v58  ;;  %v415_v49 = vadd.f32 %v414_v48, %v2163_v4  ;;  %803 = vmatmul.f32.gmra.mxu0 %v1677_v5  ;;  %868 = vmatmul.f32.gmra.mxu1 %v2164_v1  ;;  %v471_v18 = vadd.f32 %v2005_v31, %v406_v19 }
 0x157   :  { %v907_v63 = vadd.f32 %v901_v10, %v893_v17  ;;  %v480_v38 = vadd.f32 %v479_v51, %v415_v49  ;;  %v536_v20 = vadd.f32 %v2001_v24, %v471_v18 }
 0x159   :  { %v915_v7 = vmax.f32 %v907_v63, 0.0  ;;  %v545_v11 = vadd.f32 %v544_v42, %v480_v38  ;;  %676 = vmatmul.f32.gmra.mxu2 %v1482_v9 }
 0x15a   :  { %741 = vmatmul.f32.gmra.mxu3 %v1690_v13  ;;  %v547_v54 = vpop.f32.mrf.mxu0  ;;  %v2052_v44 = vpop.f32.mrf.mxu1 }
 0x15b   :  { %923 = vst [vmem:[%s2145_s3 + $0x10] sm:$0xff] %v915_v7  ;;  %v887_v5 = vmax.f32 %v533_v59, %v545_v11 }
 0x15c   :  { %v417_v2 = vpop.f32.mrf.mxu2 }
 0x15d   :  { %v482_v53 = vpop.f32.mrf.mxu3  ;;  %v895_v61 = vmax.f32 %v879_v39, %v887_v5  ;;  %v418_v9 = vadd.f32 %v417_v2, %v1883_v36  ;;  %806 = vmatmul.f32.gmra.mxu0 %v1703_v15  ;;  %871 = vmatmul.f32.gmra.mxu1 %v1881_v37  ;;  %v2166_v37 = vld [vmem:[#allocation10_spill] sm:$0xff] }
 0x15f   :  { %v909_v13 = vadd.f32 %v901_v10, %v895_v61  ;;  %v483_v43 = vadd.f32 %v482_v53, %v418_v9 }
 0x161   :  { %v917_v40 = vmax.f32 %v909_v13, 0.0  ;;  %v548_v22 = vadd.f32 %v547_v54, %v483_v43 }
 0x162   :  { %v762_v47 = vpop.f32.mrf.mxu0  ;;  %v827_v56 = vpop.f32.mrf.mxu1 }
 0x163   :  { %925 = vst [vmem:[%s2145_s3 + $0x20] sm:$0xff] %v917_v40  ;;  %v889_v14 = vmax.f32 %v536_v20, %v548_v22 }
 0x164   :  { %v632_v0 = vpop.f32.mrf.mxu2 }
 0x165   :  { %v697_v39 = vpop.f32.mrf.mxu3  ;;  %v897_v15 = vmax.f32 %v881_v23, %v889_v14  ;;  %v633_v36 = vadd.f32 %v632_v0, %v2166_v37 }
 0x167   :  { %v911_v31 = vadd.f32 %v901_v10, %v897_v15  ;;  %v698_v12 = vadd.f32 %v697_v39, %v633_v36 }
 0x169   :  { %v919_v24 = vmax.f32 %v911_v31, 0.0  ;;  %v763_v3 = vadd.f32 %v762_v47, %v698_v12 }
 0x16a   :  { %v765_v26 = vpop.f32.mrf.mxu0  ;;  %v830_v50 = vpop.f32.mrf.mxu1 }
 0x16b   :  { %927 = vst [vmem:[%s2145_s3 + $0x30] sm:$0xff] %v919_v24  ;;  %v2075_v60 = vadd.f32 %v827_v56, %v763_v3 }
 0x16c   :  { %v635_v41 = vpop.f32.mrf.mxu2 }
 0x16d   :  { %v700_v42 = vpop.f32.mrf.mxu3  ;;  %v636_v58 = vadd.f32 %v635_v41, %v1899_v33 }
 0x16f   :  { %v701_v52 = vadd.f32 %v700_v42, %v636_v58 }
 0x171   :  { %v766_v8 = vadd.f32 %v765_v26, %v701_v52 }
 0x172   :  { %v768_v23 = vpop.f32.mrf.mxu0  ;;  %v833_v48 = vpop.f32.mrf.mxu1 }
 0x173   :  { %v2078_v10 = vadd.f32 %v830_v50, %v766_v8 }
 0x174   :  { %v638_v51 = vpop.f32.mrf.mxu2 }
 0x175   :  { %v703_v27 = vpop.f32.mrf.mxu3  ;;  %v639_v17 = vadd.f32 %v638_v51, %v1909_v46 }
 0x177   :  { %v704_v4 = vadd.f32 %v703_v27, %v639_v17 }
 0x179   :  { %v769_v49 = vadd.f32 %v768_v23, %v704_v4 }
 0x17a   :  { %v771_v1 = vpop.f32.mrf.mxu0  ;;  %v836_v63 = vpop.f32.mrf.mxu1 }
 0x17b   :  { %v2081_v38 = vadd.f32 %v833_v48, %v769_v49 }
 0x17c   :  { %v641_v59 = vpop.f32.mrf.mxu2 }
 0x17d   :  { %v706_v62 = vpop.f32.mrf.mxu3  ;;  %v642_v33 = vadd.f32 %v641_v59, %v1919_v32 }
 0x17f   :  { %v707_v19 = vadd.f32 %v706_v62, %v642_v33 }
 0x181   :  { %v772_v7 = vadd.f32 %v771_v1, %v707_v19 }
 0x182   :  { %v774_v11 = vpop.f32.mrf.mxu0  ;;  %v839_v54 = vpop.f32.mrf.mxu1 }
 0x183   :  { %v2084_v5 = vadd.f32 %v836_v63, %v772_v7 }
 0x184   :  { %v644_v2 = vpop.f32.mrf.mxu2 }
 0x185   :  { %v709_v53 = vpop.f32.mrf.mxu3  ;;  %v645_v46 = vadd.f32 %v644_v2, %v1929_v45 }
 0x187   :  { %v710_v18 = vadd.f32 %v709_v53, %v645_v46 }
 0x189   :  { %v775_v61 = vadd.f32 %v774_v11, %v710_v18 }
 0x18a   :  { %v777_v9 = vpop.f32.mrf.mxu0  ;;  %v842_v13 = vpop.f32.mrf.mxu1 }
 0x18b   :  { %v2087_v43 = vadd.f32 %v839_v54, %v775_v61 }
 0x18c   :  { %v647_v20 = vpop.f32.mrf.mxu2 }
 0x18d   :  { %v712_v40 = vpop.f32.mrf.mxu3  ;;  %v876_v32 = vmax.f32 %v2075_v60, %v2087_v43  ;;  %v648_v22 = vadd.f32 %v647_v20, %v1939_v6 }
 0x18f   :  { %v713_v47 = vadd.f32 %v712_v40, %v648_v22 }
 0x191   :  { %v778_v56 = vadd.f32 %v777_v9, %v713_v47 }
 0x192   :  { %v780_v14 = vpop.f32.mrf.mxu0  ;;  %v845_v0 = vpop.f32.mrf.mxu1 }
 0x193   :  { %v2092_v39 = vadd.f32 %v842_v13, %v778_v56 }
 0x194   :  { %v650_v45 = vpop.f32.mrf.mxu2 }
 0x195   :  { %v715_v15 = vpop.f32.mrf.mxu3  ;;  %v878_v37 = vmax.f32 %v2078_v10, %v2092_v39  ;;  %v651_v36 = vadd.f32 %v650_v45, %v1951_v16 }
 0x197   :  { %v716_v31 = vadd.f32 %v715_v15, %v651_v36 }
 0x199   :  { %v781_v12 = vadd.f32 %v780_v14, %v716_v31  ;;  %v902_v31 = vperm.slane %v2020_v35, 1 }
 0x19a   :  { %v783_v24 = vpop.f32.mrf.mxu0  ;;  %v848_v3 = vpop.f32.mrf.mxu1 }
 0x19b   :  { %v2097_v26 = vadd.f32 %v845_v0, %v781_v12 }
 0x19c   :  { %v653_v6 = vpop.f32.mrf.mxu2 }
 0x19d   :  { %v718_v50 = vpop.f32.mrf.mxu3  ;;  %v880_v41 = vmax.f32 %v2081_v38, %v2097_v26  ;;  %v654_v42 = vadd.f32 %v653_v6, %v1963_v30 }
 0x19f   :  { %v719_v58 = vadd.f32 %v718_v50, %v654_v42 }
 0x1a1   :  { %v784_v52 = vadd.f32 %v783_v24, %v719_v58 }
 0x1a2   :  { %v786_v8 = vpop.f32.mrf.mxu0  ;;  %v851_v23 = vpop.f32.mrf.mxu1 }
 0x1a3   :  { %v2102_v48 = vadd.f32 %v848_v3, %v784_v52 }
 0x1a4   :  { %v656_v16 = vpop.f32.mrf.mxu2 }
 0x1a5   :  { %v721_v51 = vpop.f32.mrf.mxu3  ;;  %v882_v27 = vmax.f32 %v2084_v5, %v2102_v48  ;;  %v657_v54 = vadd.f32 %v656_v16, %v1977_v29 }
 0x1a7   :  { %v722_v46 = vadd.f32 %v721_v51, %v657_v54 }
 0x1a9   :  { %v787_v13 = vadd.f32 %v786_v8, %v722_v46 }
 0x1aa   :  { %v789_v17 = vpop.f32.mrf.mxu0  ;;  %v854_v4 = vpop.f32.mrf.mxu1 }
 0x1ab   :  { %v852_v56 = vadd.f32 %v851_v23, %v787_v13 }
 0x1ac   :  { %v659_v49 = vpop.f32.mrf.mxu2 }
 0x1ad   :  { %v724_v1 = vpop.f32.mrf.mxu3  ;;  %v660_v20 = vadd.f32 %v659_v49, %v1987_v21 }
 0x1af   :  { %v725_v14 = vadd.f32 %v724_v1, %v660_v20 }
 0x1b1   :  { %v790_v24 = vadd.f32 %v789_v17, %v725_v14 }
 0x1b2   :  { %v792_v63 = vpop.f32.mrf.mxu0  ;;  %v857_v59 = vpop.f32.mrf.mxu1 }
 0x1b3   :  { %v855_v42 = vadd.f32 %v854_v4, %v790_v24 }
 0x1b4   :  { %v662_v62 = vpop.f32.mrf.mxu2 }
 0x1b5   :  { %v727_v33 = vpop.f32.mrf.mxu3 }
 0x1ba   :  { %v795_v30 = vpop.f32.mrf.mxu0  ;;  %v2106_v19 = vpop.f32.mrf.mxu1 }
 0x1bc   :  { %v665_v7 = vpop.f32.mrf.mxu2 }
 0x1bd   :  { %v730_v11 = vpop.f32.mrf.mxu3  ;;  %v666_v43 = vadd.f32 %v665_v7, %v2003_v25 }
 0x1c2   :  { %v798_v2 = vpop.f32.mrf.mxu0  ;;  %v863_v53 = vpop.f32.mrf.mxu1 }
 0x1c4   :  { %v668_v18 = vpop.f32.mrf.mxu2 }
 0x1c5   :  { %v733_v61 = vpop.f32.mrf.mxu3  ;;  %v669_v9 = vadd.f32 %v668_v18, %v2012_v34  ;;  %v663_v34 = vadd.f32 %v662_v62, %v1995_v28  ;;  %v731_v62 = vadd.f32 %v730_v11, %v666_v43 }
 0x1c7   :  { %v734_v40 = vadd.f32 %v733_v61, %v669_v9  ;;  %v728_v58 = vadd.f32 %v727_v33, %v663_v34  ;;  %v796_v7 = vadd.f32 %v795_v30, %v731_v62 }
 0x1c9   :  { %v799_v22 = vadd.f32 %v798_v2, %v734_v40  ;;  %v793_v60 = vadd.f32 %v792_v63, %v728_v58  ;;  %v861_v46 = vadd.f32 %v2106_v19, %v796_v7 }
 0x1ca   :  { %v801_v47 = vpop.f32.mrf.mxu0  ;;  %v866_v45 = vpop.f32.mrf.mxu1 }
 0x1cb   :  { %v864_v0 = vadd.f32 %v863_v53, %v799_v22  ;;  %v858_v1 = vadd.f32 %v857_v59, %v793_v60 }
 0x1cc   :  { %v671_v15 = vpop.f32.mrf.mxu2 }
 0x1cd   :  { %v736_v36 = vpop.f32.mrf.mxu3  ;;  %v884_v29 = vmax.f32 %v852_v56, %v864_v0  ;;  %v672_v12 = vadd.f32 %v671_v15, %v2025_v55 }
 0x1cf   :  { %v892_v21 = vmax.f32 %v876_v32, %v884_v29  ;;  %v737_v3 = vadd.f32 %v736_v36, %v672_v12 }
 0x1d1   :  { %v906_v6 = vadd.f32 %v902_v31, %v892_v21  ;;  %v802_v50 = vadd.f32 %v801_v47, %v737_v3 }
 0x1d2   :  { %v804_v23 = vpop.f32.mrf.mxu0  ;;  %v869_v55 = vpop.f32.mrf.mxu1 }
 0x1d3   :  { %v914_v52 = vmax.f32 %v906_v6, 0.0  ;;  %v867_v8 = vadd.f32 %v866_v45, %v802_v50 }
 0x1d4   :  { %v674_v16 = vpop.f32.mrf.mxu2 }
 0x1d5   :  { %v739_v51 = vpop.f32.mrf.mxu3  ;;  %922 = vst [vmem:[%s2145_s3 + $0x8] sm:$0xff] %v914_v52  ;;  %v886_v35 = vmax.f32 %v855_v42, %v867_v8  ;;  %v675_v28 = vadd.f32 %v674_v16, %v2037_v57 }
 0x1d7   :  { %v894_v32 = vmax.f32 %v878_v37, %v886_v35  ;;  %v740_v17 = vadd.f32 %v739_v51, %v675_v28 }
 0x1d9   :  { %v908_v4 = vadd.f32 %v902_v31, %v894_v32  ;;  %v805_v49 = vadd.f32 %v804_v23, %v740_v17 }
 0x1da   :  { %v807_v63 = vpop.f32.mrf.mxu0  ;;  %v872_v37 = vpop.f32.mrf.mxu1 }
 0x1db   :  { %v916_v33 = vmax.f32 %v908_v4, 0.0  ;;  %v870_v54 = vadd.f32 %v869_v55, %v805_v49 }
 0x1dc   :  { %v677_v2 = vpop.f32.mrf.mxu2 }
 0x1dd   :  { %v742_v53 = vpop.f32.mrf.mxu3  ;;  %924 = vst [vmem:[%s2145_s3 + $0x18] sm:$0xff] %v916_v33  ;;  %v888_v57 = vmax.f32 %v858_v1, %v870_v54  ;;  %v678_v25 = vadd.f32 %v677_v2, %v2052_v44 }
 0x1df   :  { %v896_v10 = vmax.f32 %v880_v41, %v888_v57  ;;  %v743_v39 = vadd.f32 %v742_v53, %v678_v25 }
 0x1e1   :  { %v910_v59 = vadd.f32 %v902_v31, %v896_v10  ;;  %v808_v11 = vadd.f32 %v807_v63, %v743_v39 }
 0x1e3   :  { %v918_v18 = vmax.f32 %v910_v59, 0.0  ;;  %v873_v61 = vadd.f32 %v872_v37, %v808_v11 }
 0x1e5   :  { %926 = vst [vmem:[%s2145_s3 + $0x28] sm:$0xff] %v918_v18  ;;  %v890_v9 = vmax.f32 %v861_v46, %v873_v61 }
 0x1e7   :  { %v898_v44 = vmax.f32 %v882_v27, %v890_v9 }
 0x1e9   :  { %v912_v30 = vadd.f32 %v902_v31, %v898_v44 }
 0x1eb   :  { %v920_v38 = vmax.f32 %v912_v30, 0.0 }
 0x1ed   :  { %928 = vst [vmem:[%s2145_s3 + $0x38] sm:$0xff] %v920_v38 }

// kernel: tile.18
= control target key start
LH: loop header
LB: loop body
LE: loop exit
PB: predicated region body
PF: predicated region fallthrough
CT: control target
= control target key end

     0   :  { %s22_s0 = inlined_call_operand.vmem [shape: f32[32], index: 0, kind: input, shape index: {}]   ;;  %s23_s1 = inlined_call_operand.vmem [shape: f32[8,32], index: 1, kind: output, shape index: {}]  }
   0x1   :  { %v4_v0 = vld [vmem:[%s22_s0] ss:$0 sm:$0xff] }
   0x2   :  { %5 = vst [vmem:[%s23_s1] sm:$0xff] %v4_v0 }

// kernel: tile.19
= control target key start
LH: loop header
LB: loop body
LE: loop exit
PB: predicated region body
PF: predicated region fallthrough
CT: control target
= control target key end

     0   :  { %s7_s6 = smov 3  ;;  %s46_s9 = smov 96   ;;  %vm4_vm0 = vcmask 261120   ;;  %vm11_vm1 = vcmask 1048320   ;;  %vm18_vm2 = vcmask 785920   ;;  %vm25_vm3 = vcmask 523520   ;;  %s77_s0 = inlined_call_operand.vmem [shape: f32[8,32], index: 0, kind: input, shape index: {}]   ;;  %s78_s1 = inlined_call_operand.vmem [shape: f32[1,256], index: 1, kind: output, shape index: {}]  }
   0x1   :  { %v39_v0 = vld [vmem:[%s77_s0 + $0x3] ss:$4 sm:%s7_s6]   ;;  %s21_s10 = smov 3  ;;  %s14_s13 = smov 3 }
   0x2   :  { %9 = vrot.lane.b32.xlu0 %v39_v0, %s46_s9  ;;  %v41_v1 = vld [vmem:[%s77_s0 + $0x1] ss:$4 sm:%s21_s10]   ;;  %s47_s14 = smov 32   ;;  %s48_s17 = smov 64  }
   0x3   :  { %23 = vrot.lane.b32.xlu1 %v41_v1, %s47_s14  ;;  %v40_v2 = vld [vmem:[%s77_s0 + $0x2] ss:$4 sm:%s14_s13]   ;;  %s2_s18 = smov 3 }
   0x4   :  { %v3_v3 = vld [vmem:[%s77_s0] ss:$4 sm:%s2_s18]  }
   0x5   :  { %5 = vst.msk [vmem:[#allocation0] ss:$8 sm:$0x3] %vm4_vm0, %v3_v3  }
   0xa   :  { %16 = vrot.lane.b32.xlu0 %v40_v2, %s48_s17 }
  0x74   :  { %v10_v4 = vpop.permute.xlu0 %9  }
  0x75   :  { %12 = vst.msk [vmem:[#allocation0] ss:$8 sm:$0x3] %vm11_vm1, %v10_v4   ;;  %v24_v5 = vpop.permute.xlu1 %23  }
  0x7c   :  { %v17_v6 = vpop.permute.xlu0 %16  }
  0x7d   :  { %19 = vst.msk [vmem:[#allocation0] ss:$8 sm:$0x3] %vm18_vm2, %v17_v6  }
  0x7e   :  { %26 = vst.msk [vmem:[#allocation0] ss:$8 sm:$0x3] %vm25_vm3, %v24_v5  }
  0x85   :  { %v29_v7 = vld [vmem:[#allocation0] sm:$0x1]  ;;  %v34_v8 = vld [vmem:[#allocation0 + $0x8] sm:$0x1] }
  0x86   :  { %32 = vst [vmem:[%s78_s1] sm:$0x1] %v29_v7 }
  0x87   :  { %42 = vst [vmem:[%s78_s1 + $0x1] sm:$0x1] %v34_v8 }

// kernel: cnn_forward.4
= control target key start
LH: loop header
LB: loop body
LE: loop exit
PB: predicated region body
PF: predicated region fallthrough
CT: control target
= control target key end

     0   :  { %vm75_vm0 = vcmask 1046528   ;;  %vm236_vm1 = vcmask 1045504   ;;  %s8361_s1 = inlined_call_operand.vmem [shape: f32[3200,256], index: 1, kind: input, shape index: {}]   ;;  %s8362_s0 = inlined_call_operand.vmem [shape: f32[2,2,2,10,640], index: 0, kind: input, shape index: {}]   ;;  %s8363_s2 = inlined_call_operand.vmem [shape: f32[1,256], index: 2, kind: input, shape index: {}]   ;;  %s8364_s3 = inlined_call_operand.vmem [shape: f32[2,8,256], index: 3, kind: output, shape index: {}]  }
   0x1   :  { %v729_v0 = vld [vmem:[%s8361_s1 + $0xf0] sm:$0xff]  ;;  %v727_v2 = vld [vmem:[%s8361_s1 + $0xe0] sm:$0xff]  ;;  %v3930_v33 = vld [vmem:[%s8362_s0 + $0xa8] sm:$0xff] }
   0x2   :  { %v761_v1 = vld [vmem:[%s8361_s1 + $0x1f0] sm:$0xff]  ;;  %3733 = vmatpush.msra.mxu2 %v729_v0  ;;  %v759_v3 = vld [vmem:[%s8361_s1 + $0x1e0] sm:$0xff]  ;;  %1499 = vmatpush.msra.mxu0 %v729_v0  ;;  %v15_v39 = vld [vmem:[%s8362_s0 + $0x8] sm:$0xff] }
   0x3   :  { %3749 = vmatpush.msra.mxu3 %v761_v1  ;;  %v725_v4 = vld [vmem:[%s8361_s1 + $0xd0] sm:$0xff]  ;;  %1540 = vmatpush.msra.mxu1 %v761_v1  ;;  %v723_v6 = vld [vmem:[%s8361_s1 + $0xc0] sm:$0xff]  ;;  %v3978_v47 = vld [vmem:[%s8362_s0 + $0x1e8] sm:$0xff] }
   0x4   :  { %v757_v5 = vld [vmem:[%s8361_s1 + $0x1d0] sm:$0xff]  ;;  %3734 = vmatpush.msra.mxu2 %v727_v2  ;;  %v755_v7 = vld [vmem:[%s8361_s1 + $0x1c0] sm:$0xff]  ;;  %1500 = vmatpush.msra.mxu0 %v727_v2  ;;  %v20_v59 = vld [vmem:[%s8362_s0 + $0x148] sm:$0xff] }
   0x5   :  { %3750 = vmatpush.msra.mxu3 %v759_v3  ;;  %1541 = vmatpush.msra.mxu1 %v759_v3  ;;  %v721_v8 = vld [vmem:[%s8361_s1 + $0xb0] sm:$0xff]  ;;  %v719_v10 = vld [vmem:[%s8361_s1 + $0xa0] sm:$0xff]  ;;  %v4032_v63 = vld [vmem:[%s8362_s0 + $0xf8] sm:$0xff] }
   0x6   :  { %3735 = vmatpush.msra.mxu2 %v725_v4  ;;  %v753_v9 = vld [vmem:[%s8361_s1 + $0x1b0] sm:$0xff]  ;;  %1501 = vmatpush.msra.mxu0 %v725_v4  ;;  %v751_v11 = vld [vmem:[%s8361_s1 + $0x1a0] sm:$0xff] }
   0x7   :  { %3751 = vmatpush.msra.mxu3 %v757_v5  ;;  %1542 = vmatpush.msra.mxu1 %v757_v5  ;;  %v717_v12 = vld [vmem:[%s8361_s1 + $0x90] sm:$0xff]  ;;  %v715_v14 = vld [vmem:[%s8361_s1 + $0x80] sm:$0xff] }
   0x8   :  { %3736 = vmatpush.msra.mxu2 %v723_v6  ;;  %1502 = vmatpush.msra.mxu0 %v723_v6  ;;  %v749_v13 = vld [vmem:[%s8361_s1 + $0x190] sm:$0xff]  ;;  %v747_v15 = vld [vmem:[%s8361_s1 + $0x180] sm:$0xff] }
   0x9   :  { %3752 = vmatpush.msra.mxu3 %v755_v7  ;;  %1543 = vmatpush.msra.mxu1 %v755_v7  ;;  %v713_v16 = vld [vmem:[%s8361_s1 + $0x70] sm:$0xff]  ;;  %v711_v18 = vld [vmem:[%s8361_s1 + $0x60] sm:$0xff] }
   0xa   :  { %3737 = vmatpush.msra.mxu2 %v721_v8  ;;  %1503 = vmatpush.msra.mxu0 %v721_v8  ;;  %v745_v17 = vld [vmem:[%s8361_s1 + $0x170] sm:$0xff]  ;;  %v743_v19 = vld [vmem:[%s8361_s1 + $0x160] sm:$0xff] }
   0xb   :  { %3753 = vmatpush.msra.mxu3 %v753_v9  ;;  %1544 = vmatpush.msra.mxu1 %v753_v9  ;;  %v709_v20 = vld [vmem:[%s8361_s1 + $0x50] sm:$0xff]  ;;  %v707_v22 = vld [vmem:[%s8361_s1 + $0x40] sm:$0xff] }
   0xc   :  { %3738 = vmatpush.msra.mxu2 %v719_v10  ;;  %1504 = vmatpush.msra.mxu0 %v719_v10  ;;  %v741_v21 = vld [vmem:[%s8361_s1 + $0x150] sm:$0xff]  ;;  %v739_v23 = vld [vmem:[%s8361_s1 + $0x140] sm:$0xff] }
   0xd   :  { %3754 = vmatpush.msra.mxu3 %v751_v11  ;;  %1545 = vmatpush.msra.mxu1 %v751_v11  ;;  %v705_v24 = vld [vmem:[%s8361_s1 + $0x30] sm:$0xff]  ;;  %v703_v26 = vld [vmem:[%s8361_s1 + $0x20] sm:$0xff] }
   0xe   :  { %3739 = vmatpush.msra.mxu2 %v717_v12  ;;  %1505 = vmatpush.msra.mxu0 %v717_v12  ;;  %v737_v25 = vld [vmem:[%s8361_s1 + $0x130] sm:$0xff]  ;;  %v735_v27 = vld [vmem:[%s8361_s1 + $0x120] sm:$0xff] }
   0xf   :  { %3755 = vmatpush.msra.mxu3 %v749_v13  ;;  %1546 = vmatpush.msra.mxu1 %v749_v13  ;;  %v701_v28 = vld [vmem:[%s8361_s1 + $0x10] sm:$0xff]  ;;  %v699_v30 = vld [vmem:[%s8361_s1] sm:$0xff] }
  0x10   :  { %3740 = vmatpush.msra.mxu2 %v715_v14  ;;  %1506 = vmatpush.msra.mxu0 %v715_v14  ;;  %v733_v29 = vld [vmem:[%s8361_s1 + $0x110] sm:$0xff]  ;;  %v731_v31 = vld [vmem:[%s8361_s1 + $0x100] sm:$0xff] }
  0x11   :  { %3756 = vmatpush.msra.mxu3 %v747_v15  ;;  %1547 = vmatpush.msra.mxu1 %v747_v15  ;;  %v3925_v32 = vld [vmem:[%s8362_s0 + $0xa0] sm:$0xff]  ;;  %v793_v34 = vld [vmem:[%s8361_s1 + $0x2f0] sm:$0xff]  ;;  %v4086_v15 = vld [vmem:[%s8362_s0 + $0x238] sm:$0xff] }
  0x12   :  { %3741 = vmatpush.msra.mxu2 %v713_v16  ;;  %1507 = vmatpush.msra.mxu0 %v713_v16  ;;  %v825_v35 = vld [vmem:[%s8361_s1 + $0x3f0] sm:$0xff]  ;;  %v791_v36 = vld [vmem:[%s8361_s1 + $0x2e0] sm:$0xff] }
  0x13   :  { %3757 = vmatpush.msra.mxu3 %v745_v17  ;;  %1548 = vmatpush.msra.mxu1 %v745_v17  ;;  %v823_v37 = vld [vmem:[%s8361_s1 + $0x3e0] sm:$0xff]  ;;  %v789_v40 = vld [vmem:[%s8361_s1 + $0x2d0] sm:$0xff] }
  0x14   :  { %3742 = vmatpush.msra.mxu2 %v711_v18  ;;  %1508 = vmatpush.msra.mxu0 %v711_v18  ;;  %v14_v38 = vld [vmem:[%s8362_s0] sm:$0xff]  ;;  %v821_v41 = vld [vmem:[%s8361_s1 + $0x3d0] sm:$0xff] }
  0x15   :  { %3758 = vmatpush.msra.mxu3 %v743_v19  ;;  %1549 = vmatpush.msra.mxu1 %v743_v19  ;;  %v857_v42 = vld [vmem:[%s8361_s1 + $0x4f0] sm:$0xff]  ;;  %v787_v44 = vld [vmem:[%s8361_s1 + $0x2c0] sm:$0xff] }
  0x16   :  { %3743 = vmatpush.msra.mxu2 %v709_v20  ;;  %1509 = vmatpush.msra.mxu0 %v709_v20  ;;  %v889_v43 = vld [vmem:[%s8361_s1 + $0x5f0] sm:$0xff]  ;;  %v819_v45 = vld [vmem:[%s8361_s1 + $0x3c0] sm:$0xff] }
  0x17   :  { %3759 = vmatpush.msra.mxu3 %v741_v21  ;;  %1550 = vmatpush.msra.mxu1 %v741_v21  ;;  %v3973_v46 = vld [vmem:[%s8362_s0 + $0x1e0] sm:$0xff]  ;;  %v785_v48 = vld [vmem:[%s8361_s1 + $0x2b0] sm:$0xff]  ;;  %v3614_v21 = vld [vmem:[%s8362_s0 + $0x58] sm:$0xff] }
  0x18   :  { %3744 = vmatpush.msra.mxu2 %v707_v22  ;;  %1510 = vmatpush.msra.mxu0 %v707_v22  ;;  %v817_v49 = vld [vmem:[%s8361_s1 + $0x3b0] sm:$0xff]  ;;  %v855_v50 = vld [vmem:[%s8361_s1 + $0x4e0] sm:$0xff] }
  0x19   :  { %3760 = vmatpush.msra.mxu3 %v739_v23  ;;  %1551 = vmatpush.msra.mxu1 %v739_v23  ;;  %v887_v51 = vld [vmem:[%s8361_s1 + $0x5e0] sm:$0xff]  ;;  %v853_v54 = vld [vmem:[%s8361_s1 + $0x4d0] sm:$0xff] }
  0x1a   :  { %3745 = vmatpush.msra.mxu2 %v705_v24  ;;  %1511 = vmatpush.msra.mxu0 %v705_v24  ;;  %v783_v52 = vld [vmem:[%s8361_s1 + $0x2a0] sm:$0xff]  ;;  %v885_v55 = vld [vmem:[%s8361_s1 + $0x5d0] sm:$0xff] }
  0x1b   :  { %3761 = vmatpush.msra.mxu3 %v737_v25  ;;  %1552 = vmatpush.msra.mxu1 %v737_v25  ;;  %v815_v53 = vld [vmem:[%s8361_s1 + $0x3a0] sm:$0xff]  ;;  %v781_v56 = vld [vmem:[%s8361_s1 + $0x290] sm:$0xff] }
  0x1c   :  { %3746 = vmatpush.msra.mxu2 %v703_v26  ;;  %1512 = vmatpush.msra.mxu0 %v703_v26  ;;  %v813_v57 = vld [vmem:[%s8361_s1 + $0x390] sm:$0xff]  ;;  %v851_v58 = vld [vmem:[%s8361_s1 + $0x4c0] sm:$0xff] }
  0x1d   :  { %3762 = vmatpush.msra.mxu3 %v735_v27  ;;  %1553 = vmatpush.msra.mxu1 %v735_v27  ;;  %v779_v60 = vld [vmem:[%s8361_s1 + $0x280] sm:$0xff]  ;;  %v4027_v62 = vld [vmem:[%s8362_s0 + $0xf0] sm:$0xff] }
  0x1e   :  { %3747 = vmatpush.msra.mxu2 %v701_v28  ;;  %1513 = vmatpush.msra.mxu0 %v701_v28  ;;  %v811_v61 = vld [vmem:[%s8361_s1 + $0x380] sm:$0xff]  ;;  %v777_v0 = vld [vmem:[%s8361_s1 + $0x270] sm:$0xff] }
  0x1f   :  { %3763 = vmatpush.msra.mxu3 %v733_v29  ;;  %1554 = vmatpush.msra.mxu1 %v733_v29  ;;  %v19_v1 = vld [vmem:[%s8362_s0 + $0x140] sm:$0xff]  ;;  %v809_v2 = vld [vmem:[%s8361_s1 + $0x370] sm:$0xff] }
  0x20   :  { %3748 = vmatpush.msra.mxu2 %v699_v30  ;;  %1514 = vmatpush.msra.mxu0 %v699_v30  ;;  %v849_v3 = vld [vmem:[%s8361_s1 + $0x4b0] sm:$0xff]  ;;  %v775_v4 = vld [vmem:[%s8361_s1 + $0x260] sm:$0xff] }
  0x21   :  { %3764 = vmatpush.msra.mxu3 %v731_v31  ;;  %1527 = vmatmul.f32.vlgmr.msra.gmra.mxu2 %v3925_v32  ;;  %v883_v5 = vld [vmem:[%s8361_s1 + $0x5c0] sm:$0xff]  ;;  %v773_v8 = vld [vmem:[%s8361_s1 + $0x250] sm:$0xff] }
  0x22   :  { %1568 = vmatmul.f32.vlgmr.msra.gmra.mxu3 %v3930_v33  ;;  %1581 = vmatpush.msrb.mxu2 %v793_v34  ;;  %v807_v6 = vld [vmem:[%s8361_s1 + $0x360] sm:$0xff]  ;;  %v881_v9 = vld [vmem:[%s8361_s1 + $0x5b0] sm:$0xff] }
  0x23   :  { %1622 = vmatpush.msrb.mxu3 %v825_v35  ;;  %1555 = vmatpush.msra.mxu1 %v731_v31  ;;  %v847_v7 = vld [vmem:[%s8361_s1 + $0x4a0] sm:$0xff]  ;;  %v805_v10 = vld [vmem:[%s8361_s1 + $0x350] sm:$0xff] }
  0x24   :  { %1582 = vmatpush.msrb.mxu2 %v791_v36  ;;  %1515 = vmatmul.f32.vlgmr.msra.gmra.mxu0 %v14_v38  ;;  %v845_v11 = vld [vmem:[%s8361_s1 + $0x490] sm:$0xff]  ;;  %v771_v12 = vld [vmem:[%s8361_s1 + $0x240] sm:$0xff] }
  0x25   :  { %1623 = vmatpush.msrb.mxu3 %v823_v37  ;;  %1556 = vmatmul.f32.vlgmr.msra.gmra.mxu1 %v15_v39  ;;  %v879_v13 = vld [vmem:[%s8361_s1 + $0x5a0] sm:$0xff]  ;;  %v4081_v14 = vld [vmem:[%s8362_s0 + $0x230] sm:$0xff] }
  0x26   :  { %1583 = vmatpush.msrb.mxu2 %v789_v40  ;;  %1663 = vmatpush.msrb.mxu0 %v857_v42  ;;  %v769_v16 = vld [vmem:[%s8361_s1 + $0x230] sm:$0xff]  ;;  %v803_v17 = vld [vmem:[%s8361_s1 + $0x340] sm:$0xff]  ;;  %v3619_v42 = vld [vmem:[%s8362_s0 + $0x198] sm:$0xff] }
  0x27   :  { %1624 = vmatpush.msrb.mxu3 %v821_v41  ;;  %1704 = vmatpush.msrb.mxu1 %v889_v43  ;;  %v843_v18 = vld [vmem:[%s8361_s1 + $0x480] sm:$0xff]  ;;  %v877_v19 = vld [vmem:[%s8361_s1 + $0x590] sm:$0xff]  ;;  %v17_v43 = vld [vmem:[%s8362_s0 + $0x18] sm:$0xff] }
  0x28   :  { %1584 = vmatpush.msrb.mxu2 %v787_v44  ;;  %1664 = vmatpush.msrb.mxu0 %v855_v50  ;;  %v3613_v20 = vld [vmem:[%s8362_s0 + $0x50] sm:$0xff]  ;;  %v767_v22 = vld [vmem:[%s8361_s1 + $0x220] sm:$0xff] }
  0x29   :  { %1625 = vmatpush.msrb.mxu3 %v819_v45  ;;  %1530 = vmatmul.f32.gmra.mxu2 %v3973_v46  ;;  %v801_v23 = vld [vmem:[%s8361_s1 + $0x330] sm:$0xff]  ;;  %v875_v25 = vld [vmem:[%s8361_s1 + $0x580] sm:$0xff] }
  0x2a   :  { %1571 = vmatmul.f32.gmra.mxu3 %v3978_v47  ;;  %1585 = vmatpush.msrb.mxu2 %v785_v48  ;;  %v841_v24 = vld [vmem:[%s8361_s1 + $0x470] sm:$0xff]  ;;  %v799_v27 = vld [vmem:[%s8361_s1 + $0x320] sm:$0xff] }
  0x2b   :  { %1626 = vmatpush.msrb.mxu3 %v817_v49  ;;  %1705 = vmatpush.msrb.mxu1 %v887_v51  ;;  %v765_v26 = vld [vmem:[%s8361_s1 + $0x210] sm:$0xff]  ;;  %v839_v28 = vld [vmem:[%s8361_s1 + $0x460] sm:$0xff] }
  0x2c   :  { %1586 = vmatpush.msrb.mxu2 %v783_v52  ;;  %1665 = vmatpush.msrb.mxu0 %v853_v54  ;;  %v873_v29 = vld [vmem:[%s8361_s1 + $0x570] sm:$0xff]  ;;  %v763_v30 = vld [vmem:[%s8361_s1 + $0x200] sm:$0xff] }
  0x2d   :  { %1627 = vmatpush.msrb.mxu3 %v815_v53  ;;  %1706 = vmatpush.msrb.mxu1 %v885_v55  ;;  %v797_v31 = vld [vmem:[%s8361_s1 + $0x310] sm:$0xff]  ;;  %v871_v35 = vld [vmem:[%s8361_s1 + $0x560] sm:$0xff] }
  0x2e   :  { %1587 = vmatpush.msrb.mxu2 %v781_v56  ;;  %1666 = vmatpush.msrb.mxu0 %v851_v58  ;;  %v837_v34 = vld [vmem:[%s8361_s1 + $0x450] sm:$0xff]  ;;  %v795_v37 = vld [vmem:[%s8361_s1 + $0x300] sm:$0xff] }
  0x2f   :  { %1628 = vmatpush.msrb.mxu3 %v813_v57  ;;  %1559 = vmatmul.f32.gmra.mxu1 %v20_v59  ;;  %v16_v36 = vld [vmem:[%s8362_s0 + $0x10] sm:$0xff]  ;;  %v835_v38 = vld [vmem:[%s8361_s1 + $0x440] sm:$0xff] }
  0x30   :  { %1588 = vmatpush.msrb.mxu2 %v779_v60  ;;  %1518 = vmatmul.f32.gmra.mxu0 %v19_v1  ;;  %v869_v39 = vld [vmem:[%s8361_s1 + $0x550] sm:$0xff]  ;;  %v867_v45 = vld [vmem:[%s8361_s1 + $0x540] sm:$0xff]  ;;  %v22_v60 = vld [vmem:[%s8362_s0 + $0x158] sm:$0xff] }
  0x31   :  { %1629 = vmatpush.msrb.mxu3 %v811_v61  ;;  %1533 = vmatmul.f32.gmra.mxu2 %v4027_v62  ;;  %v921_v40 = vld [vmem:[%s8361_s1 + $0x6f0] sm:$0xff]  ;;  %v919_v49 = vld [vmem:[%s8361_s1 + $0x6e0] sm:$0xff] }
  0x32   :  { %1574 = vmatmul.f32.gmra.mxu3 %v4032_v63  ;;  %1589 = vmatpush.msrb.mxu2 %v777_v0  ;;  %v3618_v41 = vld [vmem:[%s8362_s0 + $0x190] sm:$0xff]  ;;  %v831_v50 = vld [vmem:[%s8361_s1 + $0x420] sm:$0xff] }
  0x33   :  { %1630 = vmatpush.msrb.mxu3 %v809_v2  ;;  %1667 = vmatpush.msrb.mxu0 %v849_v3  ;;  %v833_v44 = vld [vmem:[%s8361_s1 + $0x430] sm:$0xff]  ;;  %v951_v52 = vld [vmem:[%s8361_s1 + $0x7e0] sm:$0xff] }
  0x34   :  { %1590 = vmatpush.msrb.mxu2 %v775_v4  ;;  %1707 = vmatpush.msrb.mxu1 %v883_v5  ;;  %v953_v48 = vld [vmem:[%s8361_s1 + $0x7f0] sm:$0xff]  ;;  %v863_v55 = vld [vmem:[%s8361_s1 + $0x520] sm:$0xff] }
  0x35   :  { %1631 = vmatpush.msrb.mxu3 %v807_v6  ;;  %1668 = vmatpush.msrb.mxu0 %v847_v7  ;;  %v865_v51 = vld [vmem:[%s8361_s1 + $0x530] sm:$0xff]  ;;  %v827_v58 = vld [vmem:[%s8361_s1 + $0x400] sm:$0xff] }
  0x36   :  { %1591 = vmatpush.msrb.mxu2 %v773_v8  ;;  %1708 = vmatpush.msrb.mxu1 %v881_v9  ;;  %v917_v53 = vld [vmem:[%s8361_s1 + $0x6d0] sm:$0xff]  ;;  %v18_v61 = vld [vmem:[%s8362_s0 + $0x20] sm:$0xff] }
  0x37   :  { %1632 = vmatpush.msrb.mxu3 %v805_v10  ;;  %1669 = vmatpush.msrb.mxu0 %v845_v11  ;;  %v829_v54 = vld [vmem:[%s8361_s1 + $0x410] sm:$0xff]  ;;  %v859_v0 = vld [vmem:[%s8361_s1 + $0x500] sm:$0xff] }
  0x38   :  { %1592 = vmatpush.msrb.mxu2 %v771_v12  ;;  %1709 = vmatpush.msrb.mxu1 %v879_v13  ;;  %v21_v56 = vld [vmem:[%s8362_s0 + $0x150] sm:$0xff]  ;;  %v915_v2 = vld [vmem:[%s8361_s1 + $0x6c0] sm:$0xff]  ;;  %v3616_v12 = vld [vmem:[%s8362_s0 + $0x68] sm:$0xff] }
  0x39   :  { %1536 = vmatmul.f32.gmra.mxu2 %v4081_v14  ;;  %1633 = vmatpush.msrb.mxu3 %v803_v17  ;;  %v949_v57 = vld [vmem:[%s8361_s1 + $0x7d0] sm:$0xff]  ;;  %v947_v4 = vld [vmem:[%s8361_s1 + $0x7c0] sm:$0xff] }
  0x3a   :  { %1577 = vmatmul.f32.gmra.mxu3 %v4086_v15  ;;  %1593 = vmatpush.msrb.mxu2 %v769_v16  ;;  %v861_v59 = vld [vmem:[%s8361_s1 + $0x510] sm:$0xff]  ;;  %v983_v5 = vld [vmem:[%s8361_s1 + $0x8e0] sm:$0xff] }
  0x3b   :  { %1670 = vmatpush.msrb.mxu0 %v843_v18  ;;  %1710 = vmatpush.msrb.mxu1 %v877_v19  ;;  %v985_v1 = vld [vmem:[%s8361_s1 + $0x8f0] sm:$0xff]  ;;  %v1015_v7 = vld [vmem:[%s8361_s1 + $0x9e0] sm:$0xff] }
  0x3c   :  { %1521 = vmatmul.f32.gmra.mxu0 %v3613_v20  ;;  %1562 = vmatmul.f32.gmra.mxu1 %v3614_v21  ;;  %v1017_v3 = vld [vmem:[%s8361_s1 + $0x9f0] sm:$0xff]  ;;  %v3615_v9 = vld [vmem:[%s8362_s0 + $0x60] sm:$0xff] }
  0x3d   :  { %1594 = vmatpush.msrb.mxu2 %v767_v22  ;;  %1634 = vmatpush.msrb.mxu3 %v801_v23  ;;  %v913_v6 = vld [vmem:[%s8361_s1 + $0x6b0] sm:$0xff]  ;;  %v23_v13 = vld [vmem:[%s8362_s0 + $0x160] sm:$0xff] }
  0x3e   :  { %1671 = vmatpush.msrb.mxu0 %v841_v24  ;;  %1711 = vmatpush.msrb.mxu1 %v875_v25  ;;  %v945_v8 = vld [vmem:[%s8361_s1 + $0x7b0] sm:$0xff]  ;;  %v943_v16 = vld [vmem:[%s8361_s1 + $0x7a0] sm:$0xff] }
  0x3f   :  { %1595 = vmatpush.msrb.mxu2 %v765_v26  ;;  %1635 = vmatpush.msrb.mxu3 %v799_v27  ;;  %v981_v10 = vld [vmem:[%s8361_s1 + $0x8d0] sm:$0xff]  ;;  %v979_v17 = vld [vmem:[%s8361_s1 + $0x8c0] sm:$0xff] }
  0x40   :  { %1672 = vmatpush.msrb.mxu0 %v839_v28  ;;  %1712 = vmatpush.msrb.mxu1 %v873_v29  ;;  %v1013_v11 = vld [vmem:[%s8361_s1 + $0x9d0] sm:$0xff]  ;;  %v1011_v19 = vld [vmem:[%s8361_s1 + $0x9c0] sm:$0xff]  ;;  %v3621_v28 = vld [vmem:[%s8362_s0 + $0x1a8] sm:$0xff] }
  0x41   :  { %1596 = vmatpush.msrb.mxu2 %v763_v30  ;;  %1636 = vmatpush.msrb.mxu3 %v797_v31  ;;  %v909_v18 = vld [vmem:[%s8361_s1 + $0x690] sm:$0xff]  ;;  %v907_v22 = vld [vmem:[%s8361_s1 + $0x680] sm:$0xff] }
  0x42   :  { %1673 = vmatpush.msrb.mxu0 %v837_v34  ;;  %1713 = vmatpush.msrb.mxu1 %v871_v35  ;;  %v941_v20 = vld [vmem:[%s8361_s1 + $0x790] sm:$0xff]  ;;  %v939_v24 = vld [vmem:[%s8361_s1 + $0x780] sm:$0xff] }
  0x43   :  { %1597 = vmatmul.f32.vlgmr.msrb.gmra.mxu2 %v16_v36  ;;  %1637 = vmatpush.msrb.mxu3 %v795_v37  ;;  %v977_v21 = vld [vmem:[%s8361_s1 + $0x8b0] sm:$0xff]  ;;  %v3620_v25 = vld [vmem:[%s8362_s0 + $0x1a0] sm:$0xff] }
  0x44   :  { %1674 = vmatpush.msrb.mxu0 %v835_v38  ;;  %1714 = vmatpush.msrb.mxu1 %v869_v39  ;;  %v1009_v23 = vld [vmem:[%s8361_s1 + $0x9b0] sm:$0xff]  ;;  %v975_v26 = vld [vmem:[%s8361_s1 + $0x8a0] sm:$0xff] }
  0x45   :  { %1745 = vmatpush.msra.mxu2 %v921_v40  ;;  %1524 = vmatmul.f32.gmra.mxu0 %v3618_v41  ;;  %v1007_v27 = vld [vmem:[%s8361_s1 + $0x9a0] sm:$0xff]  ;;  %v3617_v29 = vld [vmem:[%s8362_s0 + $0x70] sm:$0xff] }
  0x46   :  { %1565 = vmatmul.f32.gmra.mxu1 %v3619_v42  ;;  %1638 = vmatmul.f32.vlgmr.msrb.gmra.mxu3 %v17_v43  ;;  %v937_v30 = vld [vmem:[%s8361_s1 + $0x770] sm:$0xff]  ;;  %v903_v34 = vld [vmem:[%s8361_s1 + $0x660] sm:$0xff] }
  0x47   :  { %1675 = vmatpush.msrb.mxu0 %v833_v44  ;;  %1715 = vmatpush.msrb.mxu1 %v867_v45  ;;  %v973_v31 = vld [vmem:[%s8361_s1 + $0x890] sm:$0xff]  ;;  %v935_v36 = vld [vmem:[%s8361_s1 + $0x760] sm:$0xff]  ;;  %v4353_v44 = vld [vmem:[%s8362_s0 + $0xb8] sm:$0xff] }
  0x48   :  { %1786 = vmatpush.msra.mxu3 %v953_v48  ;;  %1746 = vmatpush.msra.mxu2 %v919_v49  ;;  %v1005_v35 = vld [vmem:[%s8361_s1 + $0x990] sm:$0xff]  ;;  %v971_v37 = vld [vmem:[%s8361_s1 + $0x880] sm:$0xff] }
  0x49   :  { %1676 = vmatpush.msrb.mxu0 %v831_v50  ;;  %1716 = vmatpush.msrb.mxu1 %v865_v51  ;;  %v901_v38 = vld [vmem:[%s8361_s1 + $0x650] sm:$0xff]  ;;  %v1003_v39 = vld [vmem:[%s8361_s1 + $0x980] sm:$0xff] }
  0x4a   :  { %1787 = vmatpush.msra.mxu3 %v951_v52  ;;  %1747 = vmatpush.msra.mxu2 %v917_v53  ;;  %v933_v40 = vld [vmem:[%s8361_s1 + $0x750] sm:$0xff]  ;;  %v899_v42 = vld [vmem:[%s8361_s1 + $0x640] sm:$0xff]  ;;  %v40_v52 = vld [vmem:[%s8362_s0 + $0x28] sm:$0x1] }
  0x4b   :  { %1677 = vmatpush.msrb.mxu0 %v829_v54  ;;  %1717 = vmatpush.msrb.mxu1 %v863_v55  ;;  %v4339_v41 = vld [vmem:[%s8362_s0 + $0xb0] sm:$0xff]  ;;  %v931_v48 = vld [vmem:[%s8361_s1 + $0x740] sm:$0xff] }
  0x4c   :  { %1600 = vmatmul.f32.gmra.mxu2 %v21_v56  ;;  %1788 = vmatpush.msra.mxu3 %v949_v57  ;;  %v1001_v43 = vld [vmem:[%s8361_s1 + $0x970] sm:$0xff]  ;;  %v967_v49 = vld [vmem:[%s8361_s1 + $0x860] sm:$0xff] }
  0x4d   :  { %1678 = vmatpush.msrb.mxu0 %v827_v58  ;;  %1718 = vmatpush.msrb.mxu1 %v861_v59  ;;  %v3622_v45 = vld [vmem:[%s8362_s0 + $0x1b0] sm:$0xff]  ;;  %v35_v50 = vld [vmem:[%s8362_s0] sm:$0xfe] }
  0x4e   :  { %1641 = vmatmul.f32.gmra.mxu3 %v22_v60  ;;  %1679 = vmatmul.f32.vlgmr.msrb.gmra.mxu0 %v18_v61  ;;  %v897_v51 = vld [vmem:[%s8361_s1 + $0x630] sm:$0xff]  ;;  %v999_v53 = vld [vmem:[%s8361_s1 + $0x960] sm:$0xff]  ;;  %v76_v60 = vrot.slane %v35_v50, 1  ;;  %v77_v61 = vrot.slane %v40_v52, 1 }
  0x4f   :  { %1719 = vmatpush.msrb.mxu1 %v859_v0  ;;  %1827 = vmatpush.msra.mxu0 %v985_v1  ;;  %v929_v54 = vld [vmem:[%s8361_s1 + $0x730] sm:$0xff]  ;;  %v895_v56 = vld [vmem:[%s8361_s1 + $0x620] sm:$0xff] }
  0x50   :  { %1720 = vmatmul.f32.vlgmr.msrb.gmra.mxu1 %v3925_v32  ;;  %1748 = vmatpush.msra.mxu2 %v915_v2  ;;  %v911_v32 = vld [vmem:[%s8361_s1 + $0x6a0] sm:$0xff]  ;;  %v965_v55 = vld [vmem:[%s8361_s1 + $0x850] sm:$0xff]  ;;  %v4411_v2 = vld [vmem:[%s8362_s0 + $0x1f8] sm:$0xff] }
  0x51   :  { %1868 = vmatpush.msra.mxu1 %v1017_v3  ;;  %1789 = vmatpush.msra.mxu3 %v947_v4  ;;  %v997_v57 = vld [vmem:[%s8361_s1 + $0x950] sm:$0xff]  ;;  %v927_v58 = vld [vmem:[%s8361_s1 + $0x720] sm:$0xff] }
  0x52   :  { %1828 = vmatpush.msra.mxu0 %v983_v5  ;;  %1749 = vmatpush.msra.mxu2 %v913_v6  ;;  %v4397_v59 = vld [vmem:[%s8362_s0 + $0x1f0] sm:$0xff]  ;;  %v995_v1 = vld [vmem:[%s8361_s1 + $0x940] sm:$0xff]  ;;  %v4426_v6 = vsel %vm75_vm0, %v76_v60, %v77_v61 }
  0x53   :  { %1869 = vmatpush.msra.mxu1 %v1015_v7  ;;  %1790 = vmatpush.msra.mxu3 %v945_v8  ;;  %v893_v0 = vld [vmem:[%s8361_s1 + $0x610] sm:$0xff]  ;;  %v4416_v3 = vld [vmem:[%s8362_s0 + $0xc0] sm:$0xff] }
  0x54   :  { %1603 = vmatmul.f32.gmra.mxu2 %v3615_v9  ;;  %1829 = vmatpush.msra.mxu0 %v981_v10  ;;  %v925_v4 = vld [vmem:[%s8361_s1 + $0x710] sm:$0xff]  ;;  %v45_v7 = vld [vmem:[%s8362_s0 + $0x140] sm:$0xfe]  ;;  %v50_v9 = vld [vmem:[%s8362_s0 + $0x168] sm:$0x1] }
  0x55   :  { %1750 = vmatpush.msra.mxu2 %v911_v32  ;;  %1870 = vmatpush.msra.mxu1 %v1013_v11  ;;  %v961_v5 = vld [vmem:[%s8361_s1 + $0x830] sm:$0xff]  ;;  %v891_v8 = vld [vmem:[%s8361_s1 + $0x600] sm:$0xff] }
  0x56   :  { %1644 = vmatmul.f32.gmra.mxu3 %v3616_v12  ;;  %1682 = vmatmul.f32.gmra.mxu0 %v23_v13  ;;  %v993_v10 = vld [vmem:[%s8361_s1 + $0x930] sm:$0xff]  ;;  %v923_v32 = vld [vmem:[%s8361_s1 + $0x700] sm:$0xff] }
  0x57   :  { %1791 = vmatpush.msra.mxu3 %v943_v16  ;;  %1830 = vmatpush.msra.mxu0 %v979_v17  ;;  %v959_v11 = vld [vmem:[%s8361_s1 + $0x820] sm:$0xff]  ;;  %v1049_v12 = vld [vmem:[%s8361_s1 + $0xaf0] sm:$0xff] }
  0x58   :  { %1723 = vmatmul.f32.gmra.mxu1 %v3973_v46  ;;  %1751 = vmatpush.msra.mxu2 %v909_v18  ;;  %v905_v46 = vld [vmem:[%s8361_s1 + $0x670] sm:$0xff]  ;;  %v991_v13 = vld [vmem:[%s8361_s1 + $0x920] sm:$0xff]  ;;  %v91_v18 = vrot.slane %v45_v7, 1 }
  0x59   :  { %1871 = vmatpush.msra.mxu1 %v1011_v19  ;;  %1792 = vmatpush.msra.mxu3 %v941_v20  ;;  %v1081_v16 = vld [vmem:[%s8361_s1 + $0xbf0] sm:$0xff]  ;;  %v4461_v17 = vld [vmem:[%s8362_s0 + $0x100] sm:$0xff]  ;;  %v92_v19 = vrot.slane %v50_v9, 1 }
  0x5a   :  { %1831 = vmatpush.msra.mxu0 %v977_v21  ;;  %1752 = vmatpush.msra.mxu2 %v907_v22  ;;  %v957_v20 = vld [vmem:[%s8361_s1 + $0x810] sm:$0xff]  ;;  %v1047_v22 = vld [vmem:[%s8361_s1 + $0xae0] sm:$0xff] }
  0x5b   :  { %1872 = vmatpush.msra.mxu1 %v1009_v23  ;;  %1793 = vmatpush.msra.mxu3 %v939_v24  ;;  %v989_v21 = vld [vmem:[%s8361_s1 + $0x910] sm:$0xff]  ;;  %v4475_v23 = vld [vmem:[%s8362_s0 + $0x108] sm:$0xff]  ;;  %v4480_v24 = vld [vmem:[%s8362_s0 + $0x200] sm:$0xff] }
  0x5c   :  { %1606 = vmatmul.f32.gmra.mxu2 %v3620_v25  ;;  %1832 = vmatpush.msra.mxu0 %v975_v26  ;;  %v955_v25 = vld [vmem:[%s8361_s1 + $0x800] sm:$0xff]  ;;  %v1109_v50 = vld [vmem:[%s8361_s1 + $0xcd0] sm:$0xff] }
  0x5d   :  { %1753 = vmatpush.msra.mxu2 %v905_v46  ;;  %1873 = vmatpush.msra.mxu1 %v1007_v27  ;;  %v1079_v26 = vld [vmem:[%s8361_s1 + $0xbe0] sm:$0xff]  ;;  %v4490_v46 = vsel %vm75_vm0, %v91_v18, %v92_v19  ;;  %v3633_v27 = vld [vmem:[%s8362_s0 + $0x50] sm:$0xfe] }
  0x5e   :  { %1647 = vmatmul.f32.gmra.mxu3 %v3621_v28  ;;  %1685 = vmatmul.f32.gmra.mxu0 %v3617_v29  ;;  %v1045_v28 = vld [vmem:[%s8361_s1 + $0xad0] sm:$0xff]  ;;  %v3638_v29 = vld [vmem:[%s8362_s0 + $0x78] sm:$0x1]  ;;  %v1139_v60 = vld [vmem:[%s8361_s1 + $0xdc0] sm:$0xff] }
  0x5f   :  { %1794 = vmatpush.msra.mxu3 %v937_v30  ;;  %1833 = vmatpush.msra.mxu0 %v973_v31  ;;  %v987_v30 = vld [vmem:[%s8361_s1 + $0x900] sm:$0xff]  ;;  %v1077_v31 = vld [vmem:[%s8361_s1 + $0xbd0] sm:$0xff] }
  0x60   :  { %1726 = vmatmul.f32.gmra.mxu1 %v4027_v62  ;;  %1754 = vmatpush.msra.mxu2 %v903_v34  ;;  %v969_v62 = vld [vmem:[%s8361_s1 + $0x870] sm:$0xff]  ;;  %v1103_v9 = vld [vmem:[%s8361_s1 + $0xca0] sm:$0xff] }
  0x61   :  { %1874 = vmatpush.msra.mxu1 %v1005_v35  ;;  %1795 = vmatpush.msra.mxu3 %v935_v36  ;;  %v1113_v34 = vld [vmem:[%s8361_s1 + $0xcf0] sm:$0xff]  ;;  %v1043_v35 = vld [vmem:[%s8361_s1 + $0xac0] sm:$0xff] }
  0x62   :  { %1834 = vmatpush.msra.mxu0 %v971_v37  ;;  %1755 = vmatpush.msra.mxu2 %v901_v38  ;;  %v1145_v36 = vld [vmem:[%s8361_s1 + $0xdf0] sm:$0xff]  ;;  %v1075_v37 = vld [vmem:[%s8361_s1 + $0xbc0] sm:$0xff] }
  0x63   :  { %1875 = vmatpush.msra.mxu1 %v1003_v39  ;;  %1796 = vmatpush.msra.mxu3 %v933_v40  ;;  %v4525_v38 = vld [vmem:[%s8362_s0 + $0x240] sm:$0xff]  ;;  %v339_v39 = vrot.slane %v3633_v27, 1  ;;  %v340_v40 = vrot.slane %v3638_v29, 1  ;;  %v3643_v52 = vld [vmem:[%s8362_s0 + $0x190] sm:$0xfe] }
  0x64   :  { %1609 = vmatmul.f32.gmra.mxu2 %v4339_v41  ;;  %1835 = vmatpush.msra.mxu0 %v969_v62  ;;  %v1111_v62 = vld [vmem:[%s8361_s1 + $0xce0] sm:$0xff]  ;;  %v1069_v61 = vld [vmem:[%s8361_s1 + $0xb90] sm:$0xff] }
  0x65   :  { %1756 = vmatpush.msra.mxu2 %v899_v42  ;;  %1876 = vmatpush.msra.mxu1 %v1001_v43  ;;  %v1041_v42 = vld [vmem:[%s8361_s1 + $0xab0] sm:$0xff]  ;;  %v1143_v43 = vld [vmem:[%s8361_s1 + $0xde0] sm:$0xff] }
  0x66   :  { %1650 = vmatmul.f32.gmra.mxu3 %v4353_v44  ;;  %1688 = vmatmul.f32.gmra.mxu0 %v3622_v45  ;;  %v4539_v45 = vld [vmem:[%s8362_s0 + $0x248] sm:$0xff]  ;;  %v4598_v7 = vld [vmem:[%s8362_s0 + $0x250] sm:$0xff]  ;;  %v1099_v18 = vld [vmem:[%s8361_s1 + $0xc80] sm:$0xff] }
  0x67   :  { %1797 = vmatpush.msra.mxu3 %v931_v48  ;;  %1836 = vmatpush.msra.mxu0 %v967_v49  ;;  %v4544_v48 = vld [vmem:[%s8362_s0 + $0x110] sm:$0xff]  ;;  %v1091_v29 = vld [vmem:[%s8361_s1 + $0xc40] sm:$0xff] }
  0x68   :  { %1729 = vmatmul.f32.gmra.mxu1 %v4081_v14  ;;  %1757 = vmatpush.msra.mxu2 %v897_v51  ;;  %v963_v14 = vld [vmem:[%s8361_s1 + $0x840] sm:$0xff]  ;;  %v1073_v49 = vld [vmem:[%s8361_s1 + $0xbb0] sm:$0xff]  ;;  %v4554_v51 = vsel %vm75_vm0, %v339_v39, %v340_v40 }
  0x69   :  { %1877 = vmatpush.msra.mxu1 %v999_v53  ;;  %1798 = vmatpush.msra.mxu3 %v929_v54  ;;  %v1039_v53 = vld [vmem:[%s8361_s1 + $0xaa0] sm:$0xff]  ;;  %v3648_v54 = vld [vmem:[%s8362_s0 + $0x1b8] sm:$0x1]  ;;  %v1029_v19 = vld [vmem:[%s8361_s1 + $0xa50] sm:$0xff] }
  0x6a   :  { %1837 = vmatpush.msra.mxu0 %v965_v55  ;;  %1758 = vmatpush.msra.mxu2 %v895_v56  ;;  %v1141_v55 = vld [vmem:[%s8361_s1 + $0xdd0] sm:$0xff]  ;;  %v1071_v56 = vld [vmem:[%s8361_s1 + $0xba0] sm:$0xff] }
  0x6b   :  { %1878 = vmatpush.msra.mxu1 %v997_v57  ;;  %1799 = vmatpush.msra.mxu3 %v927_v58  ;;  %v1107_v57 = vld [vmem:[%s8361_s1 + $0xcc0] sm:$0xff]  ;;  %v1037_v58 = vld [vmem:[%s8361_s1 + $0xa90] sm:$0xff] }
  0x6c   :  { %1612 = vmatmul.f32.gmra.mxu2 %v4397_v59  ;;  %1838 = vmatpush.msra.mxu0 %v963_v14  ;;  %v354_v14 = vrot.slane %v3643_v52, 1  ;;  %v1057_v27 = vld [vmem:[%s8361_s1 + $0xb30] sm:$0xff] }
  0x6d   :  { %1759 = vmatpush.msra.mxu2 %v893_v0  ;;  %1879 = vmatpush.msra.mxu1 %v995_v1  ;;  %v355_v0 = vrot.slane %v3648_v54, 1  ;;  %v1105_v1 = vld [vmem:[%s8361_s1 + $0xcb0] sm:$0xff] }
  0x6e   :  { %1653 = vmatmul.f32.gmra.mxu3 %v4411_v2  ;;  %1691 = vmatmul.f32.gmra.mxu0 %v4416_v3  ;;  %v1089_v40 = vld [vmem:[%s8361_s1 + $0xc30] sm:$0xff] }
  0x6f   :  { %1800 = vmatpush.msra.mxu3 %v925_v4  ;;  %1839 = vmatpush.msra.mxu0 %v961_v5  ;;  %v1035_v4 = vld [vmem:[%s8361_s1 + $0xa80] sm:$0xff]  ;;  %v1137_v5 = vld [vmem:[%s8361_s1 + $0xdb0] sm:$0xff] }
  0x70   :  { %1732 = vmatmul.f32.gmra.mxu1 %v4426_v6  ;;  %1760 = vmatpush.msra.mxu2 %v891_v8  ;;  %v1067_v8 = vld [vmem:[%s8361_s1 + $0xb80] sm:$0xff]  ;;  %v51_v52 = vld [vmem:[%s8362_s0 + $0x170] sm:$0x1]  ;;  %v47_v54 = vld [vmem:[%s8362_s0 + $0x150] sm:$0xfe] }
  0x71   :  { %1880 = vmatpush.msra.mxu1 %v993_v10  ;;  %1801 = vmatpush.msra.mxu3 %v923_v32  ;;  %v4608_v10 = vsel %vm75_vm0, %v354_v14, %v355_v0  ;;  %v1033_v32 = vld [vmem:[%s8361_s1 + $0xa70] sm:$0xff] }
  0x72   :  { %1840 = vmatpush.msra.mxu0 %v959_v11  ;;  %1909 = vmatpush.msrb.mxu2 %v1049_v12  ;;  %8492 = vst [vmem:[#allocation2_spill] sm:$0xff] %v4608_v10  ;;  %v1065_v11 = vld [vmem:[%s8361_s1 + $0xb70] sm:$0xff] }
  0x73   :  { %1881 = vmatpush.msra.mxu1 %v991_v13  ;;  %1950 = vmatpush.msrb.mxu3 %v1081_v16  ;;  %v1101_v12 = vld [vmem:[%s8361_s1 + $0xc90] sm:$0xff]  ;;  %v1063_v16 = vld [vmem:[%s8361_s1 + $0xb60] sm:$0xff] }
  0x74   :  { %1615 = vmatmul.f32.gmra.mxu2 %v4461_v17  ;;  %1841 = vmatpush.msra.mxu0 %v957_v20  ;;  %v1133_v13 = vld [vmem:[%s8361_s1 + $0xd90] sm:$0xff]  ;;  %v1131_v20 = vld [vmem:[%s8361_s1 + $0xd80] sm:$0xff] }
  0x75   :  { %1882 = vmatpush.msra.mxu1 %v989_v21  ;;  %1910 = vmatpush.msrb.mxu2 %v1047_v22  ;;  %v1061_v21 = vld [vmem:[%s8361_s1 + $0xb50] sm:$0xff]  ;;  %v1027_v22 = vld [vmem:[%s8361_s1 + $0xa40] sm:$0xff] }
  0x76   :  { %1656 = vmatmul.f32.gmra.mxu3 %v4475_v23  ;;  %1694 = vmatmul.f32.gmra.mxu0 %v4480_v24  ;;  %v1177_v14 = vld [vmem:[%s8361_s1 + $0xef0] sm:$0xff] }
  0x77   :  { %1842 = vmatpush.msra.mxu0 %v955_v25  ;;  %1951 = vmatpush.msrb.mxu3 %v1079_v26  ;;  %v1095_v25 = vld [vmem:[%s8361_s1 + $0xc60] sm:$0xff] }
  0x78   :  { %1735 = vmatmul.f32.gmra.mxu1 %v4490_v46  ;;  %1911 = vmatpush.msrb.mxu2 %v1045_v28  ;;  %v1127_v26 = vld [vmem:[%s8361_s1 + $0xd60] sm:$0xff] }
  0x79   :  { %1883 = vmatpush.msra.mxu1 %v987_v30  ;;  %1952 = vmatpush.msrb.mxu3 %v1077_v31  ;;  %v1023_v28 = vld [vmem:[%s8361_s1 + $0xa20] sm:$0xff]  ;;  %v41_v30 = vld [vmem:[%s8362_s0 + $0x30] sm:$0x1]  ;;  %v37_v31 = vld [vmem:[%s8362_s0 + $0x10] sm:$0xfe] }
  0x7a   :  { %1991 = vmatpush.msrb.mxu0 %v1113_v34  ;;  %1912 = vmatpush.msrb.mxu2 %v1043_v35  ;;  %v42_v34 = vld [vmem:[%s8362_s0 + $0x38] sm:$0x1]  ;;  %v1021_v35 = vld [vmem:[%s8361_s1 + $0xa10] sm:$0xff]  ;;  %v80_v39 = vrot.slane %v41_v30, 1 }
  0x7b   :  { %2032 = vmatpush.msrb.mxu1 %v1145_v36  ;;  %1953 = vmatpush.msrb.mxu3 %v1075_v37  ;;  %v1123_v36 = vld [vmem:[%s8361_s1 + $0xd40] sm:$0xff] }
  0x7c   :  { %1618 = vmatmul.f32.gmra.mxu2 %v4525_v38  ;;  %1992 = vmatpush.msrb.mxu0 %v1111_v62  ;;  %v82_v62 = vrot.slane %v37_v31, 1  ;;  %v49_v31 = vld [vmem:[%s8362_s0 + $0x160] sm:$0xfe] }
  0x7d   :  { %1913 = vmatpush.msrb.mxu2 %v1041_v42  ;;  %2033 = vmatpush.msrb.mxu1 %v1143_v43  ;;  %v83_v42 = vrot.slane %v42_v34, 1  ;;  %v1051_v43 = vld [vmem:[%s8361_s1 + $0xb00] sm:$0xff]  ;;  %v54_v34 = vld [vmem:[%s8362_s0 + $0x188] sm:$0x1] }
  0x7e   :  { %1659 = vmatmul.f32.gmra.mxu3 %v4539_v45  ;;  %1697 = vmatmul.f32.gmra.mxu0 %v4544_v48 }
  0x7f   :  { %1954 = vmatpush.msrb.mxu3 %v1073_v49  ;;  %1993 = vmatpush.msrb.mxu0 %v1109_v50  ;;  %v46_v50 = vld [vmem:[%s8362_s0 + $0x148] sm:$0xfe] }
  0x80   :  { %1738 = vmatmul.f32.gmra.mxu1 %v4554_v51  ;;  %1914 = vmatpush.msrb.mxu2 %v1039_v53  ;;  %v4743_v53 = vsel %vm75_vm0, %v82_v62, %v83_v42  ;;  %v1171_v42 = vld [vmem:[%s8361_s1 + $0xec0] sm:$0xff] }
  0x81   :  { %2034 = vmatpush.msrb.mxu1 %v1141_v55  ;;  %1955 = vmatpush.msrb.mxu3 %v1071_v56  ;;  %v52_v55 = vld [vmem:[%s8362_s0 + $0x178] sm:$0x1]  ;;  %v38_v56 = vld [vmem:[%s8362_s0 + $0x18] sm:$0xfe] }
  0x82   :  { %1994 = vmatpush.msrb.mxu0 %v1107_v57  ;;  %1915 = vmatpush.msrb.mxu2 %v1037_v58 }
  0x83   :  { %2035 = vmatpush.msrb.mxu1 %v1139_v60  ;;  %1956 = vmatpush.msrb.mxu3 %v1069_v61  ;;  %v43_v60 = vld [vmem:[%s8362_s0 + $0x40] sm:$0x1] }
  0x84   :  { %1761 = vmatmul.f32.vlgmr.msra.gmra.mxu2 %v3930_v33  ;;  %1995 = vmatpush.msrb.mxu0 %v1105_v1  ;;  %v1135_v33 = vld [vmem:[%s8361_s1 + $0xda0] sm:$0xff]  ;;  %v94_v1 = vrot.slane %v46_v50, 1  ;;  %v104_v50 = vrot.slane %v54_v34, 1 }
  0x85   :  { %1916 = vmatpush.msrb.mxu2 %v1035_v4  ;;  %2036 = vmatpush.msrb.mxu1 %v1137_v5  ;;  %v1119_v61 = vld [vmem:[%s8361_s1 + $0xd20] sm:$0xff]  ;;  %v95_v4 = vrot.slane %v51_v52, 1  ;;  %v3644_v52 = vld [vmem:[%s8362_s0 + $0x198] sm:$0xfe] }
  0x86   :  { %1700 = vmatmul.f32.gmra.mxu0 %v4598_v7  ;;  %1802 = vmatmul.f32.vlgmr.msra.gmra.mxu3 %v4339_v41  ;;  %v1031_v41 = vld [vmem:[%s8361_s1 + $0xa60] sm:$0xff] }
  0x87   :  { %1957 = vmatpush.msrb.mxu3 %v1067_v8  ;;  %1996 = vmatpush.msrb.mxu0 %v1103_v9  ;;  %v39_v5 = vld [vmem:[%s8362_s0 + $0x20] sm:$0xfe]  ;;  %v44_v8 = vld [vmem:[%s8362_s0 + $0x48] sm:$0x1]  ;;  %v1085_v9 = vld [vmem:[%s8361_s1 + $0xc10] sm:$0xff] }
  0x88   :  { %1741 = vmatmul.f32.gmra.mxu1 %v4608_v10  ;;  %1917 = vmatpush.msrb.mxu2 %v1033_v32  ;;  %v1209_v32 = vld [vmem:[%s8361_s1 + $0xff0] sm:$0xff] }
  0x89   :  { %2037 = vmatpush.msrb.mxu1 %v1135_v33  ;;  %1958 = vmatpush.msrb.mxu3 %v1065_v11  ;;  %v97_v11 = vrot.slane %v47_v54, 1  ;;  %v3649_v54 = vld [vmem:[%s8362_s0 + $0x1c0] sm:$0x1] }
  0x8a   :  { %1997 = vmatpush.msrb.mxu0 %v1101_v12  ;;  %1918 = vmatpush.msrb.mxu2 %v1031_v41  ;;  %v98_v12 = vrot.slane %v52_v55, 1  ;;  %v85_v41 = vrot.slane %v38_v56, 1  ;;  %v1203_v55 = vld [vmem:[%s8361_s1 + $0xfc0] sm:$0xff] }
  0x8b   :  { %2038 = vmatpush.msrb.mxu1 %v1133_v13  ;;  %1959 = vmatpush.msrb.mxu3 %v1063_v16  ;;  %v86_v13 = vrot.slane %v43_v60, 1  ;;  %v1175_v16 = vld [vmem:[%s8361_s1 + $0xee0] sm:$0xff] }
  0x8c   :  { %1764 = vmatmul.f32.gmra.mxu2 %v3978_v47  ;;  %1998 = vmatpush.msrb.mxu0 %v1099_v18  ;;  %v1097_v47 = vld [vmem:[%s8361_s1 + $0xc70] sm:$0xff]  ;;  %v4794_v18 = vsel %vm75_vm0, %v94_v1, %v95_v4  ;;  %v1239_v56 = vld [vmem:[%s8361_s1 + $0x10e0] sm:$0xff]  ;;  %v3650_v1 = vld [vmem:[%s8362_s0 + $0x1c8] sm:$0x1] }
  0x8d   :  { %1919 = vmatpush.msrb.mxu2 %v1029_v19  ;;  %2039 = vmatpush.msrb.mxu1 %v1131_v20  ;;  %v88_v19 = vrot.slane %v39_v5, 1  ;;  %v89_v20 = vrot.slane %v44_v8, 1  ;;  %v3636_v4 = vld [vmem:[%s8362_s0 + $0x68] sm:$0xfe]  ;;  %v3641_v8 = vld [vmem:[%s8362_s0 + $0x90] sm:$0x1] }
  0x8e   :  { %1805 = vmatmul.f32.gmra.mxu3 %v4397_v59  ;;  %1843 = vmatmul.f32.vlgmr.msra.gmra.mxu0 %v4353_v44  ;;  %v1129_v44 = vld [vmem:[%s8361_s1 + $0xd70] sm:$0xff]  ;;  %v1059_v59 = vld [vmem:[%s8361_s1 + $0xb40] sm:$0xff] }
  0x8f   :  { %1960 = vmatpush.msrb.mxu3 %v1061_v21  ;;  %1999 = vmatpush.msrb.mxu0 %v1097_v47  ;;  %v3634_v21 = vld [vmem:[%s8362_s0 + $0x58] sm:$0xfe]  ;;  %v1083_v47 = vld [vmem:[%s8361_s1 + $0xc00] sm:$0xff] }
  0x90   :  { %1884 = vmatmul.f32.vlgmr.msra.gmra.mxu1 %v4416_v3  ;;  %1920 = vmatpush.msrb.mxu2 %v1027_v22  ;;  %v1025_v3 = vld [vmem:[%s8361_s1 + $0xa30] sm:$0xff]  ;;  %v1207_v22 = vld [vmem:[%s8361_s1 + $0xfe0] sm:$0xff] }
  0x91   :  { %2040 = vmatpush.msrb.mxu1 %v1129_v44  ;;  %1961 = vmatpush.msrb.mxu3 %v1059_v59  ;;  %v4809_v44 = vsel %vm75_vm0, %v97_v11, %v98_v12  ;;  %v4812_v59 = vsel %vm75_vm0, %v85_v41, %v86_v13  ;;  %v357_v12 = vrot.slane %v3644_v52, 1  ;;  %v358_v41 = vrot.slane %v3649_v54, 1  ;;  %v3637_v13 = vld [vmem:[%s8362_s0 + $0x70] sm:$0xfe] }
  0x92   :  { %2000 = vmatpush.msrb.mxu0 %v1095_v25  ;;  %1921 = vmatpush.msrb.mxu2 %v1025_v3  ;;  %8493 = vst [vmem:[#allocation3_spill] sm:$0xff] %v4809_v44  ;;  %v3635_v25 = vld [vmem:[%s8362_s0 + $0x60] sm:$0xfe]  ;;  %v3640_v3 = vld [vmem:[%s8362_s0 + $0x88] sm:$0x1]  ;;  %v1233_v52 = vld [vmem:[%s8361_s1 + $0x10b0] sm:$0xff] }
  0x93   :  { %2041 = vmatpush.msrb.mxu1 %v1127_v26  ;;  %1962 = vmatpush.msrb.mxu3 %v1057_v27  ;;  %v48_v26 = vld [vmem:[%s8362_s0 + $0x158] sm:$0xfe] }
  0x94   :  { %1767 = vmatmul.f32.gmra.mxu2 %v4032_v63  ;;  %v1093_v63 = vld [vmem:[%s8361_s1 + $0xc50] sm:$0xff] }
  0x95   :  { %2001 = vmatpush.msrb.mxu0 %v1093_v63  ;;  %1922 = vmatpush.msrb.mxu2 %v1023_v28  ;;  %v53_v63 = vld [vmem:[%s8362_s0 + $0x180] sm:$0x1] }
  0x96   :  { %1808 = vmatmul.f32.gmra.mxu3 %v4461_v17  ;;  %1846 = vmatmul.f32.gmra.mxu0 %v4411_v2  ;;  %v1125_v2 = vld [vmem:[%s8361_s1 + $0xd50] sm:$0xff]  ;;  %v1055_v17 = vld [vmem:[%s8361_s1 + $0xb20] sm:$0xff]  ;;  %v101_v62 = vrot.slane %v53_v63, 1  ;;  %v4936_v63 = vsel %vm75_vm0, %v357_v12, %v358_v41 }
  0x97   :  { %2042 = vmatpush.msrb.mxu1 %v1125_v2  ;;  %1963 = vmatpush.msrb.mxu3 %v1055_v17  ;;  %v1115_v28 = vld [vmem:[%s8361_s1 + $0xd00] sm:$0xff]  ;;  %v1173_v2 = vld [vmem:[%s8361_s1 + $0xed0] sm:$0xff]  ;;  %8498 = vst [vmem:[#allocation8_spill] sm:$0xff] %v4936_v63 }
  0x98   :  { %1887 = vmatmul.f32.gmra.mxu1 %v4480_v24  ;;  %v36_v24 = vld [vmem:[%s8362_s0 + $0x8] sm:$0xfe]  ;;  %2002 = vmatpush.msrb.mxu0 %v1091_v29  ;;  %v4838_v29 = vsel %vm75_vm0, %v88_v19, %v89_v20  ;;  %v1237_v19 = vld [vmem:[%s8361_s1 + $0x10d0] sm:$0xff]  ;;  %v1231_v12 = vld [vmem:[%s8361_s1 + $0x10a0] sm:$0xff] }
  0x99   :  { %v79_v37 = vrot.slane %v36_v24, 1  ;;  %1923 = vmatpush.msrb.mxu2 %v1021_v35  ;;  %2043 = vmatpush.msrb.mxu1 %v1123_v36  ;;  %8494 = vst [vmem:[#allocation4_spill] sm:$0xff] %v4838_v29  ;;  %v342_v24 = vrot.slane %v3634_v21, 1  ;;  %v1205_v35 = vld [vmem:[%s8361_s1 + $0xfd0] sm:$0xff] }
  0x9a   :  { %2003 = vmatpush.msrb.mxu0 %v1089_v40  ;;  %v1241_v36 = vld [vmem:[%s8361_s1 + $0x10f0] sm:$0xff]  ;;  %v100_v40 = vrot.slane %v48_v26, 1 }
  0x9b   :  { %v4731_v49 = vsel %vm75_vm0, %v79_v37, %v80_v39  ;;  %v345_v39 = vrot.slane %v3635_v25, 1  ;;  %v1167_v25 = vld [vmem:[%s8361_s1 + $0xea0] sm:$0xff] }
  0x9c   :  { %1770 = vmatmul.f32.gmra.mxu2 %v4086_v15  ;;  %v1053_v15 = vld [vmem:[%s8361_s1 + $0xb10] sm:$0xff] }
  0x9d   :  { %1964 = vmatpush.msrb.mxu3 %v1053_v15  ;;  %v346_v15 = vrot.slane %v3640_v3, 1  ;;  %v1269_v3 = vld [vmem:[%s8361_s1 + $0x11d0] sm:$0xff] }
  0x9e   :  { %1811 = vmatmul.f32.gmra.mxu3 %v4525_v38  ;;  %1849 = vmatmul.f32.gmra.mxu0 %v4475_v23  ;;  %v1019_v38 = vld [vmem:[%s8361_s1 + $0xa00] sm:$0xff]  ;;  %v1121_v23 = vld [vmem:[%s8361_s1 + $0xd30] sm:$0xff] }
  0x9f   :  { %1924 = vmatpush.msrb.mxu2 %v1019_v38  ;;  %2044 = vmatpush.msrb.mxu1 %v1121_v23  ;;  %v1273_v38 = vld [vmem:[%s8361_s1 + $0x11f0] sm:$0xff]  ;;  %v4881_v60 = vsel %vm75_vm0, %v345_v39, %v346_v15 }
  0xa0   :  { %1890 = vmatmul.f32.gmra.mxu1 %v4544_v48  ;;  %v1087_v48 = vld [vmem:[%s8361_s1 + $0xc20] sm:$0xff]  ;;  %1965 = vmatpush.msrb.mxu3 %v1051_v43  ;;  %8495 = vst [vmem:[#allocation5_spill] sm:$0xff] %v4881_v60  ;;  %v3651_v15 = vld [vmem:[%s8362_s0 + $0x1d0] sm:$0x1] }
  0xa1   :  { %2004 = vmatpush.msrb.mxu0 %v1087_v48  ;;  %v4768_v0 = vpop.f32.mrf.mxu0  ;;  %2045 = vmatpush.msrb.mxu1 %v1119_v61  ;;  %v103_v48 = vrot.slane %v49_v31, 1  ;;  %v4884_v61 = vsel %vm75_vm0, %v100_v40, %v101_v62  ;;  %v1165_v40 = vld [vmem:[%s8361_s1 + $0xe90] sm:$0xff]  ;;  %v1267_v62 = vld [vmem:[%s8361_s1 + $0x11c0] sm:$0xff] }
  0xa2   :  { %2073 = vmatpush.msra.mxu2 %v1177_v14  ;;  %v4784_v33 = vpop.f32.mrf.mxu1  ;;  %2114 = vmatpush.msra.mxu3 %v1209_v32  ;;  %8496 = vst [vmem:[#allocation6_spill] sm:$0xff] %v4884_v61  ;;  %v3645_v14 = vld [vmem:[%s8362_s0 + $0x1a0] sm:$0xfe] }
  0xa3   :  { %2005 = vmatpush.msrb.mxu0 %v1085_v9  ;;  %v1169_v9 = vld [vmem:[%s8361_s1 + $0xeb0] sm:$0xff]  ;;  %v1271_v32 = vld [vmem:[%s8361_s1 + $0x11e0] sm:$0xff]  ;;  %v4908_v11 = vsel %vm75_vm0, %v103_v48, %v104_v50  ;;  %v360_v21 = vrot.slane %v3645_v14, 1  ;;  %v3652_v48 = vld [vmem:[%s8362_s0 + $0x1d8] sm:$0x1] }
  0xa4   :  { %1773 = vmatmul.f32.gmra.mxu2 %v4731_v49  ;;  %v4755_v57 = vpop.f32.mrf.mxu2  ;;  %2115 = vmatpush.msra.mxu3 %v1207_v22  ;;  %8497 = vst [vmem:[#allocation7_spill] sm:$0xff] %v4908_v11  ;;  %v349_v22 = vrot.slane %v3641_v8, 1  ;;  %v1197_v50 = vld [vmem:[%s8361_s1 + $0xf90] sm:$0xff]  ;;  %v367_v8 = vrot.slane %v3652_v48, 1 }
  0xa5   :  { %v4757_v58 = vpop.f32.mrf.mxu3  ;;  %2074 = vmatpush.msra.mxu2 %v1175_v16  ;;  %2006 = vmatpush.msrb.mxu0 %v1083_v47  ;;  %v1201_v16 = vld [vmem:[%s8361_s1 + $0xfb0] sm:$0xff]  ;;  %v348_v47 = vrot.slane %v3636_v4, 1 }
  0xa6   :  { %1814 = vmatmul.f32.gmra.mxu3 %v4743_v53  ;;  %1852 = vmatmul.f32.gmra.mxu0 %v4539_v45  ;;  %v1117_v45 = vld [vmem:[%s8361_s1 + $0xd10] sm:$0xff] }
  0xa7   :  { %2046 = vmatpush.msrb.mxu1 %v1117_v45  ;;  %2075 = vmatpush.msra.mxu2 %v1173_v2  ;;  %v3642_v45 = vld [vmem:[%s8362_s0 + $0x98] sm:$0x1]  ;;  %v1265_v14 = vld [vmem:[%s8361_s1 + $0x11b0] sm:$0xff] }
  0xa8   :  { %1893 = vmatmul.f32.gmra.mxu1 %v4598_v7  ;;  %v3639_v7 = vld [vmem:[%s8362_s0 + $0x80] sm:$0x1]  ;;  %2116 = vmatpush.msra.mxu3 %v1205_v35  ;;  %v352_v2 = vrot.slane %v3642_v45, 1  ;;  %v4950_v35 = vsel %vm75_vm0, %v348_v47, %v349_v22  ;;  %v1193_v47 = vld [vmem:[%s8361_s1 + $0xf70] sm:$0xff] }
  0xa9   :  { %v343_v30 = vrot.slane %v3639_v7, 1  ;;  %2047 = vmatpush.msrb.mxu1 %v1115_v28  ;;  %2155 = vmatpush.msra.mxu0 %v1241_v36  ;;  %v361_v7 = vrot.slane %v3650_v1, 1  ;;  %v351_v28 = vrot.slane %v3637_v13, 1  ;;  %8500 = vst [vmem:[#allocation10_spill] sm:$0xff] %v4950_v35  ;;  %v3646_v36 = vld [vmem:[%s8362_s0 + $0x1a8] sm:$0xfe] }
  0xaa   :  { %2076 = vmatpush.msra.mxu2 %v1171_v42  ;;  %2117 = vmatpush.msra.mxu3 %v1203_v55  ;;  %v363_v54 = vrot.slane %v3646_v36, 1  ;;  %v364_v55 = vrot.slane %v3651_v15, 1  ;;  %v1161_v13 = vld [vmem:[%s8361_s1 + $0xe70] sm:$0xff]  ;;  %v1263_v45 = vld [vmem:[%s8361_s1 + $0x11a0] sm:$0xff] }
  0xab   :  { %v4866_v43 = vsel %vm75_vm0, %v342_v24, %v343_v30  ;;  %2196 = vmatpush.msra.mxu1 %v1273_v38  ;;  %2156 = vmatpush.msra.mxu0 %v1239_v56  ;;  %v1199_v24 = vld [vmem:[%s8361_s1 + $0xfa0] sm:$0xff]  ;;  %v4947_v34 = vsel %vm75_vm0, %v360_v21, %v361_v7  ;;  %v4968_v42 = vsel %vm75_vm0, %v351_v28, %v352_v2  ;;  %v3647_v38 = vld [vmem:[%s8362_s0 + $0x1b0] sm:$0xfe] }
  0xac   :  { %1776 = vmatmul.f32.gmra.mxu2 %v4794_v18  ;;  %v4824_v27 = vpop.f32.mrf.mxu2  ;;  %v4863_v23 = vpop.f32.mrf.mxu1  ;;  %2118 = vmatpush.msra.mxu3 %v1201_v16  ;;  %v1235_v30 = vld [vmem:[%s8361_s1 + $0x10c0] sm:$0xff]  ;;  %8499 = vst [vmem:[#allocation9_spill] sm:$0xff] %v4947_v34  ;;  %v366_v4 = vrot.slane %v3647_v38, 1  ;;  %v5002_v41 = vsel %vm75_vm0, %v363_v54, %v364_v55  ;;  %v1558_v16 = vadd.f32 %v4784_v33, %v4768_v0  ;;  %v1229_v0 = vld [vmem:[%s8361_s1 + $0x1090] sm:$0xff] }
  0xad   :  { %v4835_v17 = vpop.f32.mrf.mxu3  ;;  %v4854_v37 = vpop.f32.mrf.mxu0  ;;  %2077 = vmatpush.msra.mxu2 %v1169_v9  ;;  %2197 = vmatpush.msra.mxu1 %v1271_v32  ;;  %8501 = vst [vmem:[#allocation11_spill] sm:$0xff] %v4968_v42  ;;  %v1163_v56 = vld [vmem:[%s8361_s1 + $0xe80] sm:$0xff]  ;;  %v1157_v36 = vld [vmem:[%s8361_s1 + $0xe50] sm:$0xff] }
  0xae   :  { %1817 = vmatmul.f32.gmra.mxu3 %v4809_v44  ;;  %1855 = vmatmul.f32.gmra.mxu0 %v4812_v59  ;;  %v1195_v32 = vld [vmem:[%s8361_s1 + $0xf80] sm:$0xff]  ;;  %8502 = vst [vmem:[#allocation12_spill] sm:$0xff] %v5002_v41  ;;  %v5016_v21 = vsel %vm75_vm0, %v366_v4, %v367_v8  ;;  %v1189_v38 = vld [vmem:[%s8361_s1 + $0xf50] sm:$0xff] }
  0xaf   :  { %2157 = vmatpush.msra.mxu0 %v1237_v19  ;;  %2078 = vmatpush.msra.mxu2 %v1167_v25  ;;  %8503 = vst [vmem:[#allocation13_spill] sm:$0xff] %v5016_v21  ;;  %v1159_v22 = vld [vmem:[%s8361_s1 + $0xe60] sm:$0xff]  ;;  %v1261_v25 = vld [vmem:[%s8361_s1 + $0x1190] sm:$0xff] }
  0xb0   :  { %1896 = vmatmul.f32.gmra.mxu1 %v4838_v29  ;;  %2119 = vmatpush.msra.mxu3 %v1199_v24  ;;  %v1191_v2 = vld [vmem:[%s8361_s1 + $0xf60] sm:$0xff]  ;;  %v1225_v48 = vld [vmem:[%s8361_s1 + $0x1070] sm:$0xff] }
  0xb1   :  { %2198 = vmatpush.msra.mxu1 %v1269_v3  ;;  %2158 = vmatpush.msra.mxu0 %v1235_v30  ;;  %v1227_v24 = vld [vmem:[%s8361_s1 + $0x1080] sm:$0xff]  ;;  %v1153_v8 = vld [vmem:[%s8361_s1 + $0xe30] sm:$0xff] }
  0xb2   :  { %2079 = vmatpush.msra.mxu2 %v1165_v40  ;;  %2120 = vmatpush.msra.mxu3 %v1197_v50  ;;  %v1259_v15 = vld [vmem:[%s8361_s1 + $0x1180] sm:$0xff] }
  0xb3   :  { %2199 = vmatpush.msra.mxu1 %v1267_v62  ;;  %2159 = vmatpush.msra.mxu0 %v1233_v52  ;;  %v1561_v62 = vadd.f32 %v4863_v23, %v4854_v37  ;;  %v1155_v37 = vld [vmem:[%s8361_s1 + $0xe40] sm:$0xff]  ;;  %v1257_v23 = vld [vmem:[%s8361_s1 + $0x1170] sm:$0xff] }
  0xb4   :  { %1779 = vmatmul.f32.gmra.mxu2 %v4866_v43  ;;  %v4896_v5 = vpop.f32.mrf.mxu2  ;;  %2121 = vmatpush.msra.mxu3 %v1195_v32  ;;  %v1255_v32 = vld [vmem:[%s8361_s1 + $0x1160] sm:$0xff] }
  0xb5   :  { %v4924_v20 = vpop.f32.mrf.mxu3  ;;  %2080 = vmatpush.msra.mxu2 %v1163_v56  ;;  %2200 = vmatpush.msra.mxu1 %v1265_v14  ;;  %v1187_v56 = vld [vmem:[%s8361_s1 + $0xf40] sm:$0xff] }
  0xb6   :  { %1820 = vmatmul.f32.gmra.mxu3 %v4881_v60  ;;  %1858 = vmatmul.f32.gmra.mxu0 %v4884_v61  ;;  %v1223_v14 = vld [vmem:[%s8361_s1 + $0x1060] sm:$0xff] }
  0xb7   :  { %2160 = vmatpush.msra.mxu0 %v1231_v12  ;;  %2081 = vmatpush.msra.mxu2 %v1161_v13 }
  0xb8   :  { %1899 = vmatmul.f32.gmra.mxu1 %v4908_v11  ;;  %2122 = vmatpush.msra.mxu3 %v1193_v47 }
  0xb9   :  { %v4933_v26 = vpop.f32.mrf.mxu0  ;;  %v4944_v31 = vpop.f32.mrf.mxu1  ;;  %2201 = vmatpush.msra.mxu1 %v1263_v45  ;;  %2161 = vmatpush.msra.mxu0 %v1229_v0  ;;  %v1185_v45 = vld [vmem:[%s8361_s1 + $0xf30] sm:$0xff] }
  0xba   :  { %2082 = vmatpush.msra.mxu2 %v1159_v22  ;;  %2123 = vmatpush.msra.mxu3 %v1191_v2  ;;  %v1564_v13 = vadd.f32 %v4944_v31, %v4933_v26  ;;  %v1151_v26 = vld [vmem:[%s8361_s1 + $0xe20] sm:$0xff]  ;;  %v1253_v31 = vld [vmem:[%s8361_s1 + $0x1150] sm:$0xff] }
  0xbb   :  { %2202 = vmatpush.msra.mxu1 %v1261_v25  ;;  %2162 = vmatpush.msra.mxu0 %v1227_v24  ;;  %v3598_v25 = vld [vmem:[%s8362_s0 + $0xc8] sm:$0x1]  ;;  %v1219_v2 = vld [vmem:[%s8361_s1 + $0x1040] sm:$0xff] }
  0xbc   :  { %1782 = vmatmul.f32.gmra.mxu2 %v4936_v63  ;;  %v4956_v39 = vpop.f32.mrf.mxu2  ;;  %2124 = vmatpush.msra.mxu3 %v1189_v38  ;;  %v1251_v38 = vld [vmem:[%s8361_s1 + $0x1140] sm:$0xff] }
  0xbd   :  { %v4991_v1 = vpop.f32.mrf.mxu3  ;;  %2083 = vmatpush.msra.mxu2 %v1157_v36  ;;  %2203 = vmatpush.msra.mxu1 %v1259_v15  ;;  %v3594_v36 = vld [vmem:[%s8362_s0 + $0xa8] sm:$0xfe]  ;;  %v3599_v15 = vld [vmem:[%s8362_s0 + $0xd0] sm:$0x1] }
  0xbe   :  { %1823 = vmatmul.f32.gmra.mxu3 %v4947_v34  ;;  %1861 = vmatmul.f32.gmra.mxu0 %v4950_v35 }
  0xbf   :  { %2163 = vmatpush.msra.mxu0 %v1225_v48  ;;  %2084 = vmatpush.msra.mxu2 %v1155_v37 }
  0xc0   :  { %1902 = vmatmul.f32.gmra.mxu1 %v4968_v42  ;;  %2125 = vmatpush.msra.mxu3 %v1187_v56 }
  0xc1   :  { %2204 = vmatpush.msra.mxu1 %v1257_v23  ;;  %2164 = vmatpush.msra.mxu0 %v1223_v14  ;;  %v1181_v23 = vld [vmem:[%s8361_s1 + $0xf10] sm:$0xff]  ;;  %v159_v14 = vrot.slane %v3594_v36, 1  ;;  %v3600_v36 = vld [vmem:[%s8362_s0 + $0xd8] sm:$0x1] }
  0xc2   :  { %v4993_v9 = vpop.f32.mrf.mxu0  ;;  %2085 = vmatpush.msra.mxu2 %v1153_v8  ;;  %2126 = vmatpush.msra.mxu3 %v1185_v45  ;;  %v160_v8 = vrot.slane %v3599_v15, 1  ;;  %v1247_v15 = vld [vmem:[%s8361_s1 + $0x1120] sm:$0xff] }
  0xc3   :  { %v5013_v19 = vpop.f32.mrf.mxu1  ;;  %2205 = vmatpush.msra.mxu1 %v1255_v32 }
  0xc4   :  { %1925 = vmatmul.f32.vlgmr.msrb.gmra.mxu2 %v4426_v6  ;;  %v1567_v37 = vadd.f32 %v5013_v19, %v4993_v9  ;;  %v1147_v9 = vld [vmem:[%s8361_s1 + $0xe00] sm:$0xff]  ;;  %v1249_v19 = vld [vmem:[%s8361_s1 + $0x1130] sm:$0xff] }
  0xc5   :  { %2086 = vmatpush.msra.mxu2 %v1151_v26  ;;  %2206 = vmatpush.msra.mxu1 %v1253_v31  ;;  %v1179_v26 = vld [vmem:[%s8361_s1 + $0xf00] sm:$0xff] }
  0xc6   :  { %1864 = vmatmul.f32.gmra.mxu0 %v5002_v41  ;;  %1966 = vmatmul.f32.vlgmr.msrb.gmra.mxu3 %v4731_v49  ;;  %v1598_v7 = vpop.f32.mrf.mxu2  ;;  %v1215_v31 = vld [vmem:[%s8361_s1 + $0x1020] sm:$0xff] }
  0xc7   :  { %v1599_v33 = vadd.f32 %v1598_v7, %v1558_v16  ;;  %v1221_v16 = vld [vmem:[%s8361_s1 + $0x1050] sm:$0xff]  ;;  %2207 = vmatpush.msra.mxu1 %v1251_v38 }
  0xc8   :  { %1905 = vmatmul.f32.gmra.mxu1 %v5016_v21  ;;  %2165 = vmatpush.msra.mxu0 %v1221_v16  ;;  %v3603_v16 = vld [vmem:[%s8362_s0 + $0x1e0] sm:$0xfe] }
  0xc9   :  { %v1639_v3 = vpop.f32.mrf.mxu3  ;;  %2208 = vmatpush.msra.mxu1 %v1249_v19 }
  0xca   :  { %v5033_v28 = vadd.f32 %v1639_v3, %v1599_v33  ;;  %v3593_v33 = vld [vmem:[%s8362_s0 + $0xa0] sm:$0xfe]  ;;  %2166 = vmatpush.msra.mxu0 %v1219_v2  ;;  %v3595_v2 = vld [vmem:[%s8362_s0 + $0xb0] sm:$0xfe] }
  0xcb   :  { %v5041_v30 = vpop.f32.mrf.mxu0  ;;  %v1183_v3 = vld [vmem:[%s8361_s1 + $0xf20] sm:$0xff]  ;;  %2209 = vmatpush.msra.mxu1 %v1247_v15 }
  0xcc   :  { %1928 = vmatmul.f32.gmra.mxu2 %v4490_v46  ;;  %2127 = vmatpush.msra.mxu3 %v1183_v3  ;;  %v3609_v3 = vld [vmem:[%s8362_s0 + $0x210] sm:$0x1]  ;;  %v1211_v15 = vld [vmem:[%s8361_s1 + $0x1000] sm:$0xff] }
  0xcd   :  { %v5050_v40 = vpop.f32.mrf.mxu1 }
  0xce   :  { %1969 = vmatmul.f32.gmra.mxu3 %v4794_v18  ;;  %2007 = vmatmul.f32.vlgmr.msrb.gmra.mxu0 %v4743_v53 }
  0xcf   :  { %v1601_v50 = vpop.f32.mrf.mxu2  ;;  %2128 = vmatpush.msra.mxu3 %v1181_v23  ;;  %v1570_v23 = vadd.f32 %v4757_v58, %v4755_v57  ;;  %v162_v57 = vrot.slane %v3595_v2, 1  ;;  %v163_v58 = vrot.slane %v3600_v36, 1  ;;  %v3658_v36 = vld [vmem:[%s8362_s0 + $0x118] sm:$0x1] }
  0xd0   :  { %v1602_v52 = vadd.f32 %v1601_v50, %v1561_v62  ;;  %2048 = vmatmul.f32.vlgmr.msrb.gmra.mxu1 %v4812_v59  ;;  %v1149_v62 = vld [vmem:[%s8361_s1 + $0xe10] sm:$0xff]  ;;  %v156_v50 = vrot.slane %v3593_v33, 1  ;;  %v5173_v33 = vsel %vm75_vm0, %v159_v14, %v160_v8 }
  0xd1   :  { %v1642_v54 = vpop.f32.mrf.mxu3  ;;  %2087 = vmatpush.msra.mxu2 %v1149_v62  ;;  %8505 = vst [vmem:[#allocation15_spill] sm:$0xff] %v5173_v33  ;;  %2129 = vmatpush.msra.mxu3 %v1179_v26  ;;  %v1305_v62 = vld [vmem:[%s8361_s1 + $0x12f0] sm:$0xff] }
  0xd2   :  { %v5069_v55 = vadd.f32 %v1642_v54, %v1602_v52  ;;  %v157_v52 = vrot.slane %v3598_v25, 1  ;;  %v1217_v54 = vld [vmem:[%s8361_s1 + $0x1030] sm:$0xff]  ;;  %v3604_v25 = vld [vmem:[%s8362_s0 + $0x1e8] sm:$0xfe] }
  0xd3   :  { %v5077_v4 = vpop.f32.mrf.mxu0  ;;  %2167 = vmatpush.msra.mxu0 %v1217_v54  ;;  %2088 = vmatpush.msra.mxu2 %v1147_v9  ;;  %v3601_v54 = vld [vmem:[%s8362_s0 + $0xe0] sm:$0x1]  ;;  %v1337_v14 = vld [vmem:[%s8361_s1 + $0x13f0] sm:$0xff]  ;;  %v175_v9 = vrot.slane %v3609_v3, 1 }
  0xd4   :  { %1931 = vmatmul.f32.gmra.mxu2 %v4554_v51  ;;  %v5154_v45 = vsel %vm75_vm0, %v156_v50, %v157_v52  ;;  %v171_v50 = vrot.slane %v3603_v16, 1  ;;  %2278 = vmatpush.msrb.mxu3 %v1337_v14  ;;  %v1303_v16 = vld [vmem:[%s8361_s1 + $0x12e0] sm:$0xff]  ;;  %v3653_v3 = vld [vmem:[%s8362_s0 + $0xf0] sm:$0xfe]  ;;  %v3610_v14 = vld [vmem:[%s8362_s0 + $0x218] sm:$0x1] }
  0xd5   :  { %v5086_v12 = vpop.f32.mrf.mxu1  ;;  %8504 = vst [vmem:[#allocation14_spill] sm:$0xff] %v5154_v45  ;;  %2168 = vmatpush.msra.mxu0 %v1215_v31  ;;  %2237 = vmatpush.msrb.mxu2 %v1305_v62  ;;  %v1335_v62 = vld [vmem:[%s8361_s1 + $0x13e0] sm:$0xff] }
  0xd6   :  { %1972 = vmatmul.f32.gmra.mxu3 %v4866_v43  ;;  %2010 = vmatmul.f32.gmra.mxu0 %v4809_v44 }
  0xd7   :  { %v1604_v7 = vpop.f32.mrf.mxu2  ;;  %2238 = vmatpush.msrb.mxu2 %v1303_v16  ;;  %2279 = vmatpush.msrb.mxu3 %v1335_v62  ;;  %v1573_v16 = vadd.f32 %v4835_v17, %v4824_v27  ;;  %v178_v17 = vrot.slane %v3610_v14, 1 }
  0xd8   :  { %v1605_v47 = vadd.f32 %v1604_v7, %v1564_v13  ;;  %2051 = vmatmul.f32.gmra.mxu1 %v4884_v61 }
  0xd9   :  { %v1645_v0 = vpop.f32.mrf.mxu3 }
  0xda   :  { %v5108_v22 = vadd.f32 %v1645_v0, %v1605_v47  ;;  %v3608_v47 = vld [vmem:[%s8362_s0 + $0x208] sm:$0x1] }
  0xdb   :  { %v5119_v24 = vpop.f32.mrf.mxu0  ;;  %v172_v52 = vrot.slane %v3608_v47, 1 }
  0xdc   :  { %1934 = vmatmul.f32.gmra.mxu2 %v4608_v10 }
  0xdd   :  { %v5134_v48 = vpop.f32.mrf.mxu1  ;;  %v5220_v26 = vsel %vm75_vm0, %v171_v50, %v172_v52 }
  0xde   :  { %1975 = vmatmul.f32.gmra.mxu3 %v4936_v63  ;;  %2013 = vmatmul.f32.gmra.mxu0 %v4881_v60  ;;  %8506 = vst [vmem:[#allocation16_spill] sm:$0xff] %v5220_v26  ;;  %v1295_v60 = vld [vmem:[%s8361_s1 + $0x12a0] sm:$0xff]  ;;  %v1397_v63 = vld [vmem:[%s8361_s1 + $0x15d0] sm:$0xff] }
  0xdf   :  { %v1607_v56 = vpop.f32.mrf.mxu2 }
  0xe0   :  { %v1608_v32 = vadd.f32 %v1607_v56, %v1567_v37  ;;  %2054 = vmatmul.f32.gmra.mxu1 %v4950_v35  ;;  %v3596_v37 = vld [vmem:[%s8362_s0 + $0xb8] sm:$0xfe]  ;;  %v1213_v56 = vld [vmem:[%s8361_s1 + $0x1010] sm:$0xff] }
  0xe1   :  { %v1648_v13 = vpop.f32.mrf.mxu3  ;;  %2169 = vmatpush.msra.mxu0 %v1213_v56  ;;  %v165_v31 = vrot.slane %v3596_v37, 1  ;;  %v5242_v37 = vsel %vm75_vm0, %v162_v57, %v163_v58  ;;  %v3605_v56 = vld [vmem:[%s8362_s0 + $0x1f0] sm:$0xfe]  ;;  %v419_v58 = vrot.slane %v3653_v3, 1 }
  0xe2   :  { %v5159_v7 = vadd.f32 %v1648_v13, %v1608_v32  ;;  %v174_v32 = vrot.slane %v3604_v25, 1  ;;  %v1245_v13 = vld [vmem:[%s8361_s1 + $0x1110] sm:$0xff]  ;;  %v166_v25 = vrot.slane %v3601_v54, 1  ;;  %8508 = vst [vmem:[#allocation18_spill] sm:$0xff] %v5242_v37  ;;  %v3659_v54 = vld [vmem:[%s8362_s0 + $0x120] sm:$0x1] }
  0xe3   :  { %v5170_v0 = vpop.f32.mrf.mxu0  ;;  %2210 = vmatpush.msra.mxu1 %v1245_v13  ;;  %2170 = vmatpush.msra.mxu0 %v1211_v15  ;;  %v3606_v13 = vld [vmem:[%s8362_s0 + $0x1f8] sm:$0xfe]  ;;  %v423_v15 = vrot.slane %v3659_v54, 1  ;;  %v177_v27 = vrot.slane %v3605_v56, 1  ;;  %v3663_v56 = vld [vmem:[%s8362_s0 + $0x230] sm:$0xfe] }
  0xe4   :  { %1937 = vmatmul.f32.gmra.mxu2 %v5154_v45  ;;  %v5239_v52 = vsel %vm75_vm0, %v174_v32, %v175_v9  ;;  %v1301_v32 = vld [vmem:[%s8361_s1 + $0x12d0] sm:$0xff]  ;;  %v5266_v57 = vsel %vm75_vm0, %v165_v31, %v166_v25 }
  0xe5   :  { %v5194_v38 = vpop.f32.mrf.mxu1  ;;  %8507 = vst [vmem:[#allocation17_spill] sm:$0xff] %v5239_v52  ;;  %2239 = vmatpush.msrb.mxu2 %v1301_v32  ;;  %v1333_v31 = vld [vmem:[%s8361_s1 + $0x13d0] sm:$0xff] }
  0xe6   :  { %1978 = vmatmul.f32.gmra.mxu3 %v5173_v33  ;;  %2016 = vmatmul.f32.gmra.mxu0 %v4947_v34  ;;  %8509 = vst [vmem:[#allocation19_spill] sm:$0xff] %v5266_v57  ;;  %v1369_v25 = vld [vmem:[%s8361_s1 + $0x14f0] sm:$0xff] }
  0xe7   :  { %v1610_v8 = vpop.f32.mrf.mxu2  ;;  %2280 = vmatpush.msrb.mxu3 %v1333_v31  ;;  %2319 = vmatpush.msrb.mxu0 %v1369_v25  ;;  %v1401_v32 = vld [vmem:[%s8361_s1 + $0x15f0] sm:$0xff]  ;;  %v1331_v31 = vld [vmem:[%s8361_s1 + $0x13c0] sm:$0xff] }
  0xe8   :  { %v1611_v19 = vadd.f32 %v1610_v8, %v1570_v23  ;;  %2057 = vmatmul.f32.gmra.mxu1 %v5002_v41  ;;  %v3654_v23 = vld [vmem:[%s8362_s0 + $0xf8] sm:$0xfe]  ;;  %v1243_v8 = vld [vmem:[%s8361_s1 + $0x1100] sm:$0xff] }
  0xe9   :  { %v1651_v47 = vpop.f32.mrf.mxu3  ;;  %2211 = vmatpush.msra.mxu1 %v1243_v8  ;;  %v1299_v8 = vld [vmem:[%s8361_s1 + $0x12c0] sm:$0xff]  ;;  %2281 = vmatpush.msrb.mxu3 %v1331_v31  ;;  %v3656_v31 = vld [vmem:[%s8362_s0 + $0x108] sm:$0xfe] }
  0xea   :  { %v5225_v2 = vadd.f32 %v1651_v47, %v1611_v19  ;;  %v420_v19 = vrot.slane %v3658_v36, 1  ;;  %v3611_v47 = vld [vmem:[%s8362_s0 + $0x220] sm:$0x1]  ;;  %v422_v36 = vrot.slane %v3654_v23, 1  ;;  %v180_v23 = vrot.slane %v3606_v13, 1  ;;  %2240 = vmatpush.msrb.mxu2 %v1299_v8 }
  0xeb   :  { %v5236_v50 = vpop.f32.mrf.mxu0  ;;  %v181_v54 = vrot.slane %v3611_v47, 1  ;;  %2360 = vmatpush.msrb.mxu1 %v1401_v32  ;;  %v3664_v47 = vld [vmem:[%s8362_s0 + $0x238] sm:$0xfe]  ;;  %v3669_v25 = vld [vmem:[%s8362_s0 + $0x260] sm:$0x1]  ;;  %v434_v8 = vrot.slane %v3663_v56, 1 }
  0xec   :  { %1940 = vmatmul.f32.gmra.mxu2 %v5220_v26  ;;  %v5292_v34 = vsel %vm75_vm0, %v419_v58, %v420_v19  ;;  %v1367_v58 = vld [vmem:[%s8361_s1 + $0x14e0] sm:$0xff]  ;;  %v5311_v13 = vsel %vm75_vm0, %v422_v36, %v423_v15  ;;  %v3660_v36 = vld [vmem:[%s8362_s0 + $0x128] sm:$0x1]  ;;  %v1297_v15 = vld [vmem:[%s8361_s1 + $0x12b0] sm:$0xff] }
  0xed   :  { %v5263_v9 = vpop.f32.mrf.mxu1  ;;  %8510 = vst [vmem:[#allocation20_spill] sm:$0xff] %v5292_v34  ;;  %2320 = vmatpush.msrb.mxu0 %v1367_v58  ;;  %2241 = vmatpush.msrb.mxu2 %v1297_v15  ;;  %v1576_v58 = vadd.f32 %v4924_v20, %v4896_v5  ;;  %v1365_v56 = vld [vmem:[%s8361_s1 + $0x14d0] sm:$0xff]  ;;  %v437_v15 = vrot.slane %v3664_v47, 1  ;;  %v426_v20 = vrot.slane %v3660_v36, 1  ;;  %v428_v47 = vrot.slane %v3656_v31, 1  ;;  %v1327_v36 = vld [vmem:[%s8361_s1 + $0x13a0] sm:$0xff] }
  0xee   :  { %1981 = vmatmul.f32.gmra.mxu3 %v5239_v52  ;;  %2019 = vmatmul.f32.gmra.mxu0 %v5242_v37  ;;  %8511 = vst [vmem:[#allocation21_spill] sm:$0xff] %v5311_v13 }
  0xef   :  { %v1613_v3 = vpop.f32.mrf.mxu2  ;;  %2321 = vmatpush.msrb.mxu0 %v1365_v56  ;;  %2242 = vmatpush.msrb.mxu2 %v1295_v60  ;;  %v3670_v60 = vld [vmem:[%s8362_s0 + $0x268] sm:$0x1] }
  0xf0   :  { %v1614_v62 = vadd.f32 %v1613_v3, %v1573_v16  ;;  %2060 = vmatmul.f32.gmra.mxu1 %v5266_v57  ;;  %v3668_v16 = vld [vmem:[%s8362_s0 + $0x258] sm:$0x1]  ;;  %v3655_v3 = vld [vmem:[%s8362_s0 + $0x100] sm:$0xfe] }
  0xf1   :  { %v1654_v41 = vpop.f32.mrf.mxu3  ;;  %v435_v32 = vrot.slane %v3668_v16, 1  ;;  %v425_v5 = vrot.slane %v3655_v3, 1 }
  0xf2   :  { %v5297_v14 = vadd.f32 %v1654_v41, %v1614_v62  ;;  %v5314_v41 = vsel %vm75_vm0, %v177_v27, %v178_v17  ;;  %v1399_v27 = vld [vmem:[%s8361_s1 + $0x15e0] sm:$0xff]  ;;  %v5338_v62 = vsel %vm75_vm0, %v180_v23, %v181_v54  ;;  %v3661_v23 = vld [vmem:[%s8362_s0 + $0x130] sm:$0x1] }
  0xf3   :  { %v5308_v19 = vpop.f32.mrf.mxu0  ;;  %8512 = vst [vmem:[#allocation22_spill] sm:$0xff] %v5314_v41  ;;  %2361 = vmatpush.msrb.mxu1 %v1399_v27  ;;  %v1329_v54 = vld [vmem:[%s8361_s1 + $0x13b0] sm:$0xff]  ;;  %v438_v27 = vrot.slane %v3669_v25, 1  ;;  %v5364_v61 = vsel %vm75_vm0, %v434_v8, %v435_v32  ;;  %v429_v25 = vrot.slane %v3661_v23, 1  ;;  %v5380_v8 = vsel %vm75_vm0, %v425_v5, %v426_v20  ;;  %v3666_v23 = vld [vmem:[%s8362_s0 + $0x248] sm:$0xfe] }
  0xf4   :  { %1943 = vmatmul.f32.gmra.mxu2 %v5292_v34  ;;  %8513 = vst [vmem:[#allocation23_spill] sm:$0xff] %v5338_v62  ;;  %2282 = vmatpush.msrb.mxu3 %v1329_v54  ;;  %v1361_v5 = vld [vmem:[%s8361_s1 + $0x14b0] sm:$0xff] }
  0xf5   :  { %v5335_v17 = vpop.f32.mrf.mxu1  ;;  %8514 = vst [vmem:[#allocation24_spill] sm:$0xff] %v5364_v61  ;;  %2362 = vmatpush.msrb.mxu1 %v1397_v63  ;;  %v5377_v56 = vsel %vm75_vm0, %v437_v15, %v438_v27  ;;  %v1293_v63 = vld [vmem:[%s8361_s1 + $0x1290] sm:$0xff]  ;;  %v5398_v31 = vsel %vm75_vm0, %v428_v47, %v429_v25  ;;  %v441_v25 = vrot.slane %v3670_v60, 1 }
  0xf6   :  { %1984 = vmatmul.f32.gmra.mxu3 %v5311_v13  ;;  %2022 = vmatmul.f32.gmra.mxu0 %v5314_v41  ;;  %8515 = vst [vmem:[#allocation25_spill] sm:$0xff] %v5377_v56  ;;  %v3671_v15 = vld [vmem:[%s8362_s0 + $0x270] sm:$0x1] }
  0xf7   :  { %v1616_v16 = vpop.f32.mrf.mxu2  ;;  %8516 = vst [vmem:[#allocation26_spill] sm:$0xff] %v5380_v8  ;;  %2283 = vmatpush.msrb.mxu3 %v1327_v36  ;;  %2243 = vmatpush.msrb.mxu2 %v1293_v63  ;;  %v1325_v27 = vld [vmem:[%s8361_s1 + $0x1390] sm:$0xff]  ;;  %v443_v63 = vrot.slane %v3666_v23, 1 }
  0xf8   :  { %v1617_v35 = vadd.f32 %v1616_v16, %v1576_v58  ;;  %2063 = vmatmul.f32.gmra.mxu1 %v5338_v62  ;;  %v1363_v58 = vld [vmem:[%s8361_s1 + $0x14c0] sm:$0xff]  ;;  %8517 = vst [vmem:[#allocation27_spill] sm:$0xff] %v5398_v31  ;;  %v1579_v16 = vadd.f32 %v4991_v1, %v4956_v39  ;;  %v1393_v36 = vld [vmem:[%s8361_s1 + $0x15b0] sm:$0xff] }
  0xf9   :  { %v1657_v10 = vpop.f32.mrf.mxu3  ;;  %2322 = vmatpush.msrb.mxu0 %v1363_v58  ;;  %2284 = vmatpush.msrb.mxu3 %v1325_v27  ;;  %v1291_v1 = vld [vmem:[%s8361_s1 + $0x1280] sm:$0xff] }
  0xfa   :  { %v5366_v3 = vadd.f32 %v1657_v10, %v1617_v35  ;;  %v3665_v10 = vld [vmem:[%s8362_s0 + $0x240] sm:$0xfe]  ;;  %2244 = vmatpush.msrb.mxu2 %v1291_v1 }
  0xfb   :  { %v5374_v54 = vpop.f32.mrf.mxu0  ;;  %v1395_v35 = vld [vmem:[%s8361_s1 + $0x15c0] sm:$0xff]  ;;  %v440_v47 = vrot.slane %v3665_v10, 1  ;;  %2323 = vmatpush.msrb.mxu0 %v1361_v5  ;;  %v1681_v10 = vadd.f32 %v5041_v30, %v5033_v28  ;;  %v1289_v28 = vld [vmem:[%s8361_s1 + $0x1270] sm:$0xff] }
  0xfc   :  { %1946 = vmatmul.f32.gmra.mxu2 %v5364_v61  ;;  %2363 = vmatpush.msrb.mxu1 %v1395_v35  ;;  %v444_v35 = vrot.slane %v3671_v15, 1  ;;  %v1359_v27 = vld [vmem:[%s8361_s1 + $0x14a0] sm:$0xff] }
  0xfd   :  { %v5395_v32 = vpop.f32.mrf.mxu1  ;;  %v5436_v23 = vsel %vm75_vm0, %v440_v47, %v441_v25  ;;  %2324 = vmatpush.msrb.mxu0 %v1359_v27  ;;  %v1391_v30 = vld [vmem:[%s8361_s1 + $0x15a0] sm:$0xff]  ;;  %2245 = vmatpush.msrb.mxu2 %v1289_v28  ;;  %v1722_v47 = vadd.f32 %v5050_v40, %v1681_v10  ;;  %v1321_v25 = vld [vmem:[%s8361_s1 + $0x1370] sm:$0xff] }
  0xfe   :  { %1987 = vmatmul.f32.gmra.mxu3 %v5377_v56  ;;  %2025 = vmatmul.f32.gmra.mxu0 %v5380_v8  ;;  %8518 = vst [vmem:[#allocation28_spill] sm:$0xff] %v5436_v23  ;;  %v1287_v40 = vld [vmem:[%s8361_s1 + $0x1260] sm:$0xff] }
  0xff   :  { %v1619_v20 = vpop.f32.mrf.mxu2  ;;  %2364 = vmatpush.msrb.mxu1 %v1393_v36  ;;  %2246 = vmatpush.msrb.mxu2 %v1287_v40  ;;  %v1355_v27 = vld [vmem:[%s8361_s1 + $0x1480] sm:$0xff]  ;;  %v1385_v40 = vld [vmem:[%s8361_s1 + $0x1570] sm:$0xff] }
 0x100   :  { %v1620_v39 = vadd.f32 %v1619_v20, %v1579_v16  ;;  %2066 = vmatmul.f32.gmra.mxu1 %v5398_v31  ;;  %v1323_v16 = vld [vmem:[%s8361_s1 + $0x1380] sm:$0xff]  ;;  %v5448_v20 = vsel %vm75_vm0, %v443_v63, %v444_v35  ;;  %v1684_v35 = vadd.f32 %v5077_v4, %v5069_v55  ;;  %v1285_v55 = vld [vmem:[%s8361_s1 + $0x1250] sm:$0xff] }
 0x101   :  { %v1660_v58 = vpop.f32.mrf.mxu3  ;;  %2285 = vmatpush.msrb.mxu3 %v1323_v16  ;;  %8519 = vst [vmem:[#allocation29_spill] sm:$0xff] %v5448_v20  ;;  %2365 = vmatpush.msrb.mxu1 %v1391_v30  ;;  %v1319_v16 = vld [vmem:[%s8361_s1 + $0x1360] sm:$0xff] }
 0x102   :  { %v5425_v60 = vadd.f32 %v1660_v58, %v1620_v39  ;;  %v1357_v39 = vld [vmem:[%s8361_s1 + $0x1490] sm:$0xff]  ;;  %v1387_v4 = vld [vmem:[%s8361_s1 + $0x1580] sm:$0xff]  ;;  %2247 = vmatpush.msrb.mxu2 %v1285_v55 }
 0x103   :  { %v5433_v5 = vpop.f32.mrf.mxu0  ;;  %2286 = vmatpush.msrb.mxu3 %v1321_v25  ;;  %2325 = vmatpush.msrb.mxu0 %v1357_v39  ;;  %v1389_v58 = vld [vmem:[%s8361_s1 + $0x1590] sm:$0xff] }
 0x104   :  { %2089 = vmatmul.f32.vlgmr.msra.gmra.mxu2 %v4838_v29  ;;  %2366 = vmatpush.msrb.mxu1 %v1389_v58  ;;  %v1317_v25 = vld [vmem:[%s8361_s1 + $0x1350] sm:$0xff] }
 0x105   :  { %v5445_v15 = vpop.f32.mrf.mxu1  ;;  %2287 = vmatpush.msrb.mxu3 %v1319_v16  ;;  %2326 = vmatpush.msrb.mxu0 %v1355_v27  ;;  %v1353_v39 = vld [vmem:[%s8361_s1 + $0x1470] sm:$0xff]  ;;  %v1315_v16 = vld [vmem:[%s8361_s1 + $0x1340] sm:$0xff] }
 0x106   :  { %2028 = vmatmul.f32.gmra.mxu0 %v5436_v23  ;;  %2130 = vmatmul.f32.vlgmr.msra.gmra.mxu3 %v5154_v45  ;;  %v1351_v27 = vld [vmem:[%s8361_s1 + $0x1460] sm:$0xff]  ;;  %v726_v45 = vld [vmem:[%s8361_s1 + $0xd8] sm:$0xff] }
 0x107   :  { %v1762_v1 = vpop.f32.mrf.mxu2  ;;  %2367 = vmatpush.msrb.mxu1 %v1387_v4  ;;  %2288 = vmatpush.msrb.mxu3 %v1317_v25  ;;  %v1313_v25 = vld [vmem:[%s8361_s1 + $0x1330] sm:$0xff] }
 0x108   :  { %v1763_v36 = vadd.f32 %v1762_v1, %v1722_v47  ;;  %2069 = vmatmul.f32.gmra.mxu1 %v5448_v20  ;;  %v1725_v47 = vadd.f32 %v5086_v12, %v1684_v35  ;;  %2327 = vmatpush.msrb.mxu0 %v1353_v39  ;;  %v1283_v12 = vld [vmem:[%s8361_s1 + $0x1240] sm:$0xff]  ;;  %v1349_v39 = vld [vmem:[%s8361_s1 + $0x1450] sm:$0xff] }
 0x109   :  { %v1803_v63 = vpop.f32.mrf.mxu3  ;;  %2248 = vmatpush.msrb.mxu2 %v1283_v12  ;;  %2368 = vmatpush.msrb.mxu1 %v1385_v40  ;;  %v1381_v12 = vld [vmem:[%s8361_s1 + $0x1550] sm:$0xff] }
 0x10a   :  { %v5468_v10 = vadd.f32 %v1803_v63, %v1763_v36  ;;  %v1687_v63 = vadd.f32 %v5119_v24, %v5108_v22  ;;  %2289 = vmatpush.msrb.mxu3 %v1315_v16  ;;  %2328 = vmatpush.msrb.mxu0 %v1351_v27  ;;  %v1281_v22 = vld [vmem:[%s8361_s1 + $0x1230] sm:$0xff]  ;;  %v1383_v24 = vld [vmem:[%s8361_s1 + $0x1560] sm:$0xff]  ;;  %v3602_v27 = vld [vmem:[%s8362_s0 + $0xe8] sm:$0x1] }
 0x10b   :  { %v5476_v28 = vpop.f32.mrf.mxu0  ;;  %2249 = vmatpush.msrb.mxu2 %v1281_v22  ;;  %2369 = vmatpush.msrb.mxu1 %v1383_v24  ;;  %v1311_v22 = vld [vmem:[%s8361_s1 + $0x1320] sm:$0xff] }
 0x10c   :  { %2092 = vmatmul.f32.gmra.mxu2 %v4908_v11  ;;  %2290 = vmatpush.msrb.mxu3 %v1313_v25  ;;  %v1347_v24 = vld [vmem:[%s8361_s1 + $0x1440] sm:$0xff]  ;;  %v1277_v25 = vld [vmem:[%s8361_s1 + $0x1210] sm:$0xff] }
 0x10d   :  { %v5485_v30 = vpop.f32.mrf.mxu1  ;;  %2329 = vmatpush.msrb.mxu0 %v1349_v39  ;;  %2370 = vmatpush.msrb.mxu1 %v1381_v12  ;;  %v1379_v39 = vld [vmem:[%s8361_s1 + $0x1540] sm:$0xff] }
 0x10e   :  { %2133 = vmatmul.f32.gmra.mxu3 %v5220_v26  ;;  %2171 = vmatmul.f32.vlgmr.msra.gmra.mxu0 %v5173_v33  ;;  %v1423_v11 = vld [vmem:[%s8361_s1 + $0x16a0] sm:$0xff] }
 0x10f   :  { %v1765_v1 = vpop.f32.mrf.mxu2  ;;  %2291 = vmatpush.msrb.mxu3 %v1311_v22  ;;  %2330 = vmatpush.msrb.mxu0 %v1347_v24  ;;  %v1345_v22 = vld [vmem:[%s8361_s1 + $0x1430] sm:$0xff] }
 0x110   :  { %v1766_v36 = vadd.f32 %v1765_v1, %v1725_v47  ;;  %2212 = vmatmul.f32.vlgmr.msra.gmra.mxu1 %v5242_v37  ;;  %v1728_v47 = vadd.f32 %v5134_v48, %v1687_v63  ;;  %v1279_v48 = vld [vmem:[%s8361_s1 + $0x1220] sm:$0xff]  ;;  %v1690_v63 = vadd.f32 %v5170_v0, %v5159_v7  ;;  %v201_v0 = vld [vmem:[%s8362_s0 + $0x28] sm:$0x3]  ;;  %v730_v37 = vld [vmem:[%s8361_s1 + $0xf8] sm:$0xff] }
 0x111   :  { %v1806_v58 = vpop.f32.mrf.mxu3  ;;  %2250 = vmatpush.msrb.mxu2 %v1279_v48  ;;  %v196_v7 = vld [vmem:[%s8362_s0] sm:$0xfc]  ;;  %v169_v48 = vrot.slane %v3602_v27, 1  ;;  %2371 = vmatpush.msrb.mxu1 %v1379_v39 }
 0x112   :  { %v5505_v35 = vadd.f32 %v1806_v58, %v1766_v36  ;;  %v3597_v58 = vld [vmem:[%s8362_s0 + $0xc0] sm:$0xfe]  ;;  %v1731_v12 = vadd.f32 %v5194_v38, %v1690_v63  ;;  %2331 = vmatpush.msrb.mxu0 %v1345_v22  ;;  %v1377_v63 = vld [vmem:[%s8361_s1 + $0x1530] sm:$0xff] }
 0x113   :  { %v5513_v55 = vpop.f32.mrf.mxu0  ;;  %2251 = vmatpush.msrb.mxu2 %v1277_v25  ;;  %v1275_v38 = vld [vmem:[%s8361_s1 + $0x1200] sm:$0xff]  ;;  %2372 = vmatpush.msrb.mxu1 %v1377_v63 }
 0x114   :  { %2095 = vmatmul.f32.gmra.mxu2 %v4968_v42 }
 0x115   :  { %v5522_v4 = vpop.f32.mrf.mxu1  ;;  %2252 = vmatpush.msrb.mxu2 %v1275_v38  ;;  %v1433_v38 = vld [vmem:[%s8361_s1 + $0x16f0] sm:$0xff] }
 0x116   :  { %2136 = vmatmul.f32.gmra.mxu3 %v5292_v34  ;;  %2174 = vmatmul.f32.gmra.mxu0 %v5239_v52  ;;  %v1431_v52 = vld [vmem:[%s8361_s1 + $0x16e0] sm:$0xff] }
 0x117   :  { %v1768_v1 = vpop.f32.mrf.mxu2  ;;  %2401 = vmatpush.msra.mxu2 %v1433_v38 }
 0x118   :  { %v1769_v36 = vadd.f32 %v1768_v1, %v1728_v47  ;;  %2215 = vmatmul.f32.gmra.mxu1 %v5314_v41  ;;  %v1373_v41 = vld [vmem:[%s8361_s1 + $0x1510] sm:$0xff] }
 0x119   :  { %v1809_v40 = vpop.f32.mrf.mxu3  ;;  %2402 = vmatpush.msra.mxu2 %v1431_v52 }
 0x11a   :  { %v5545_v16 = vadd.f32 %v1809_v40, %v1769_v36  ;;  %v168_v36 = vrot.slane %v3597_v58, 1  ;;  %v1309_v40 = vld [vmem:[%s8361_s1 + $0x1310] sm:$0xff]  ;;  %v238_v58 = vrot.slane %v201_v0, 2  ;;  %v1693_v0 = vadd.f32 %v5236_v50, %v5225_v2  ;;  %v206_v2 = vld [vmem:[%s8362_s0 + $0x140] sm:$0xfc] }
 0x11b   :  { %v5556_v47 = vpop.f32.mrf.mxu0  ;;  %2292 = vmatpush.msrb.mxu3 %v1309_v40  ;;  %v3612_v40 = vld [vmem:[%s8362_s0 + $0x228] sm:$0x1]  ;;  %v252_v38 = vrot.slane %v206_v2, 2 }
 0x11c   :  { %2098 = vmatmul.f32.gmra.mxu2 %v5016_v21  ;;  %v237_v21 = vrot.slane %v196_v7, 2  ;;  %v5590_v39 = vsel %vm75_vm0, %v168_v36, %v169_v48  ;;  %v3607_v7 = vld [vmem:[%s8362_s0 + $0x200] sm:$0xfe]  ;;  %v211_v50 = vld [vmem:[%s8362_s0 + $0x168] sm:$0x3] }
 0x11d   :  { %v5571_v1 = vpop.f32.mrf.mxu1  ;;  %8520 = vst [vmem:[#allocation30_spill] sm:$0xff] %v5590_v39  ;;  %v1307_v36 = vld [vmem:[%s8361_s1 + $0x1300] sm:$0xff] }
 0x11e   :  { %2139 = vmatmul.f32.gmra.mxu3 %v5364_v61  ;;  %2177 = vmatmul.f32.gmra.mxu0 %v5311_v13  ;;  %v1343_v48 = vld [vmem:[%s8361_s1 + $0x1420] sm:$0xff]  ;;  %v203_v13 = vld [vmem:[%s8362_s0 + $0x38] sm:$0x3]  ;;  %v253_v61 = vrot.slane %v211_v50, 2 }
 0x11f   :  { %v1771_v24 = vpop.f32.mrf.mxu2  ;;  %2293 = vmatpush.msrb.mxu3 %v1307_v36  ;;  %2332 = vmatpush.msrb.mxu0 %v1343_v48  ;;  %v198_v36 = vld [vmem:[%s8362_s0 + $0x10] sm:$0xfc]  ;;  %v1734_v48 = vadd.f32 %v5263_v9, %v1693_v0  ;;  %v244_v50 = vrot.slane %v203_v13, 2  ;;  %v1463_v13 = vld [vmem:[%s8361_s1 + $0x17e0] sm:$0xff] }
 0x120   :  { %v1772_v27 = vadd.f32 %v1771_v24, %v1731_v12  ;;  %2218 = vmatmul.f32.gmra.mxu1 %v5380_v8  ;;  %v5611_v24 = vsel %vm236_vm1, %v237_v21, %v238_v58  ;;  %v202_v21 = vld [vmem:[%s8362_s0 + $0x30] sm:$0x3]  ;;  %v1375_v58 = vld [vmem:[%s8361_s1 + $0x1520] sm:$0xff]  ;;  %v184_v8 = vrot.slane %v3612_v40, 1  ;;  %v243_v2 = vrot.slane %v198_v36, 2 }
 0x121   :  { %v1812_v25 = vpop.f32.mrf.mxu3  ;;  %8521 = vst [vmem:[#allocation31_spill] sm:$0xff] %v5611_v24  ;;  %2373 = vmatpush.msrb.mxu1 %v1375_v58  ;;  %v1465_v40 = vld [vmem:[%s8361_s1 + $0x17f0] sm:$0xff]  ;;  %v241_v0 = vrot.slane %v202_v21, 2  ;;  %v1696_v21 = vadd.f32 %v5308_v19, %v5297_v14  ;;  %v5678_v52 = vsel %vm236_vm1, %v252_v38, %v253_v61  ;;  %v3678_v19 = vld [vmem:[%s8362_s0 + $0x78] sm:$0x3] }
 0x122   :  { %v5597_v12 = vadd.f32 %v1812_v25, %v1772_v27  ;;  %v197_v27 = vld [vmem:[%s8362_s0 + $0x8] sm:$0xfc]  ;;  %v183_v25 = vrot.slane %v3607_v7, 1  ;;  %v1341_v7 = vld [vmem:[%s8361_s1 + $0x1410] sm:$0xff]  ;;  %2442 = vmatpush.msra.mxu3 %v1465_v40  ;;  %8523 = vst [vmem:[#allocation33_spill] sm:$0xff] %v5678_v52 }
 0x123   :  { %v5608_v22 = vpop.f32.mrf.mxu0  ;;  %v240_v9 = vrot.slane %v197_v27, 2  ;;  %2333 = vmatpush.msrb.mxu0 %v1341_v7  ;;  %v3657_v27 = vld [vmem:[%s8362_s0 + $0x110] sm:$0xfe]  ;;  %2374 = vmatpush.msrb.mxu1 %v1373_v41  ;;  %v3662_v7 = vld [vmem:[%s8362_s0 + $0x138] sm:$0x1] }
 0x124   :  { %2101 = vmatmul.f32.gmra.mxu2 %v5590_v39  ;;  %v5657_v42 = vsel %vm75_vm0, %v183_v25, %v184_v8  ;;  %v1339_v8 = vld [vmem:[%s8361_s1 + $0x1400] sm:$0xff]  ;;  %v3673_v14 = vld [vmem:[%s8362_s0 + $0x50] sm:$0xfc]  ;;  %v207_v41 = vld [vmem:[%s8362_s0 + $0x148] sm:$0xfc]  ;;  %2443 = vmatpush.msra.mxu3 %v1463_v13  ;;  %v431_v38 = vrot.slane %v3657_v27, 1 }
 0x125   :  { %v5632_v63 = vpop.f32.mrf.mxu1  ;;  %8522 = vst [vmem:[#allocation32_spill] sm:$0xff] %v5657_v42  ;;  %2334 = vmatpush.msrb.mxu0 %v1339_v8  ;;  %v212_v61 = vld [vmem:[%s8362_s0 + $0x170] sm:$0x3]  ;;  %v1737_v8 = vadd.f32 %v5335_v17, %v1696_v21  ;;  %v213_v13 = vld [vmem:[%s8362_s0 + $0x178] sm:$0x3]  ;;  %v255_v17 = vrot.slane %v207_v41, 2 }
 0x126   :  { %2142 = vmatmul.f32.gmra.mxu3 %v5611_v24  ;;  %2180 = vmatmul.f32.gmra.mxu0 %v5377_v56  ;;  %v1429_v36 = vld [vmem:[%s8361_s1 + $0x16d0] sm:$0xff]  ;;  %v256_v21 = vrot.slane %v212_v61, 2  ;;  %v1699_v61 = vadd.f32 %v5374_v54, %v5366_v3  ;;  %v3688_v54 = vld [vmem:[%s8362_s0 + $0x1b8] sm:$0x3] }
 0x127   :  { %v1774_v58 = vpop.f32.mrf.mxu2  ;;  %2403 = vmatpush.msra.mxu2 %v1429_v36  ;;  %v3667_v41 = vld [vmem:[%s8362_s0 + $0x250] sm:$0xfe] }
 0x128   :  { %v1775_v56 = vadd.f32 %v1774_v58, %v1734_v48  ;;  %2221 = vmatmul.f32.gmra.mxu1 %v5436_v23  ;;  %v5705_v58 = vsel %vm236_vm1, %v243_v2, %v244_v50  ;;  %v1461_v2 = vld [vmem:[%s8361_s1 + $0x17d0] sm:$0xff]  ;;  %v1427_v23 = vld [vmem:[%s8361_s1 + $0x16c0] sm:$0xff] }
 0x129   :  { %v1815_v34 = vpop.f32.mrf.mxu3  ;;  %8525 = vst [vmem:[#allocation35_spill] sm:$0xff] %v5705_v58  ;;  %v1497_v50 = vld [vmem:[%s8361_s1 + $0x18f0] sm:$0xff]  ;;  %2444 = vmatpush.msra.mxu3 %v1461_v2  ;;  %2404 = vmatpush.msra.mxu2 %v1427_v23  ;;  %v3672_v2 = vld [vmem:[%s8362_s0 + $0x278] sm:$0x1]  ;;  %v3674_v23 = vld [vmem:[%s8362_s0 + $0x58] sm:$0xfc] }
 0x12a   :  { %v5664_v48 = vadd.f32 %v1815_v34, %v1775_v56  ;;  %v5681_v34 = vsel %vm236_vm1, %v240_v9, %v241_v0  ;;  %v1371_v56 = vld [vmem:[%s8361_s1 + $0x1500] sm:$0xff]  ;;  %v432_v9 = vrot.slane %v3662_v7, 1  ;;  %v208_v0 = vld [vmem:[%s8362_s0 + $0x150] sm:$0xfc]  ;;  %v499_v7 = vrot.slane %v3673_v14, 2  ;;  %2483 = vmatpush.msra.mxu0 %v1497_v50 }
 0x12b   :  { %v5675_v25 = vpop.f32.mrf.mxu0  ;;  %8524 = vst [vmem:[#allocation34_spill] sm:$0xff] %v5681_v34  ;;  %2375 = vmatpush.msrb.mxu1 %v1371_v56  ;;  %v500_v56 = vrot.slane %v3678_v19, 2  ;;  %v258_v14 = vrot.slane %v208_v0, 2  ;;  %v259_v19 = vrot.slane %v213_v13, 2  ;;  %v3683_v3 = vld [vmem:[%s8362_s0 + $0x190] sm:$0xfc] }
 0x12c   :  { %2104 = vmatmul.f32.gmra.mxu2 %v5657_v42  ;;  %v5730_v26 = vsel %vm75_vm0, %v431_v38, %v432_v9  ;;  %v1459_v38 = vld [vmem:[%s8361_s1 + $0x17c0] sm:$0xff]  ;;  %v1425_v50 = vld [vmem:[%s8361_s1 + $0x16b0] sm:$0xff] }
 0x12d   :  { %v5702_v40 = vpop.f32.mrf.mxu1  ;;  %8526 = vst [vmem:[#allocation36_spill] sm:$0xff] %v5730_v26  ;;  %2524 = vmatpush.msra.mxu1 %v730_v37  ;;  %v1495_v9 = vld [vmem:[%s8361_s1 + $0x18e0] sm:$0xff]  ;;  %v5751_v37 = vsel %vm236_vm1, %v499_v7, %v500_v56  ;;  %2445 = vmatpush.msra.mxu3 %v1459_v38  ;;  %v5778_v56 = vsel %vm236_vm1, %v258_v14, %v259_v19  ;;  %v1457_v14 = vld [vmem:[%s8361_s1 + $0x17b0] sm:$0xff] }
 0x12e   :  { %2145 = vmatmul.f32.gmra.mxu3 %v5678_v52  ;;  %2183 = vmatmul.f32.gmra.mxu0 %v5681_v34  ;;  %8527 = vst [vmem:[#allocation37_spill] sm:$0xff] %v5751_v37  ;;  %v3679_v13 = vld [vmem:[%s8362_s0 + $0x80] sm:$0x3]  ;;  %v1740_v38 = vadd.f32 %v5395_v32, %v1699_v61  ;;  %v1493_v19 = vld [vmem:[%s8361_s1 + $0x18d0] sm:$0xff]  ;;  %v502_v32 = vrot.slane %v3674_v23, 2  ;;  %v1702_v23 = vadd.f32 %v5433_v5, %v5425_v60  ;;  %v724_v5 = vld [vmem:[%s8361_s1 + $0xc8] sm:$0xff] }
 0x12f   :  { %v1777_v27 = vpop.f32.mrf.mxu2  ;;  %2484 = vmatpush.msra.mxu0 %v1495_v9  ;;  %8529 = vst [vmem:[#allocation39_spill] sm:$0xff] %v5778_v56  ;;  %2405 = vmatpush.msra.mxu2 %v1425_v50  ;;  %v3680_v9 = vld [vmem:[%s8362_s0 + $0x88] sm:$0x3]  ;;  %v515_v50 = vrot.slane %v3688_v54, 2  ;;  %v503_v61 = vrot.slane %v3679_v13, 2  ;;  %v1421_v60 = vld [vmem:[%s8361_s1 + $0x1690] sm:$0xff] }
 0x130   :  { %v1778_v36 = vadd.f32 %v1777_v27, %v1737_v8  ;;  %2224 = vmatmul.f32.gmra.mxu1 %v5705_v58  ;;  %v728_v27 = vld [vmem:[%s8361_s1 + $0xe8] sm:$0xff]  ;;  %2446 = vmatpush.msra.mxu3 %v1457_v14  ;;  %v506_v54 = vrot.slane %v3680_v9, 2  ;;  %v1491_v14 = vld [vmem:[%s8361_s1 + $0x18c0] sm:$0xff] }
 0x131   :  { %v1818_v33 = vpop.f32.mrf.mxu3  ;;  %2525 = vmatpush.msra.mxu1 %v728_v27  ;;  %2485 = vmatpush.msra.mxu0 %v1493_v19  ;;  %v3685_v9 = vld [vmem:[%s8362_s0 + $0x1a0] sm:$0xfc] }
 0x132   :  { %v5737_v8 = vadd.f32 %v1818_v33, %v1778_v36  ;;  %v5754_v33 = vsel %vm236_vm1, %v255_v17, %v256_v21  ;;  %v446_v17 = vrot.slane %v3667_v41, 1  ;;  %v447_v21 = vrot.slane %v3672_v2, 1  ;;  %v3675_v36 = vld [vmem:[%s8362_s0 + $0x60] sm:$0xfc]  ;;  %2406 = vmatpush.msra.mxu2 %v1423_v11 }
 0x133   :  { %v5748_v0 = vpop.f32.mrf.mxu0  ;;  %8528 = vst [vmem:[#allocation38_spill] sm:$0xff] %v5754_v33  ;;  %v514_v2 = vrot.slane %v3683_v3, 2  ;;  %v505_v3 = vrot.slane %v3675_v36, 2  ;;  %2526 = vmatpush.msra.mxu1 %v726_v45  ;;  %v5821_v11 = vsel %vm236_vm1, %v502_v32, %v503_v61  ;;  %2486 = vmatpush.msra.mxu0 %v1491_v14  ;;  %v3689_v45 = vld [vmem:[%s8362_s0 + $0x1c0] sm:$0x3]  ;;  %v1489_v32 = vld [vmem:[%s8361_s1 + $0x18b0] sm:$0xff] }
 0x134   :  { %2107 = vmatmul.f32.gmra.mxu2 %v5730_v26  ;;  %v5803_v44 = vsel %vm75_vm0, %v446_v17, %v447_v21  ;;  %8532 = vst [vmem:[#allocation42_spill] sm:$0xff] %v5821_v11  ;;  %v520_v14 = vrot.slane %v3685_v9, 2 }
 0x135   :  { %v5775_v7 = vpop.f32.mrf.mxu1  ;;  %8530 = vst [vmem:[#allocation40_spill] sm:$0xff] %v5803_v44  ;;  %v5818_v17 = vsel %vm236_vm1, %v514_v2, %v515_v50  ;;  %v5839_v36 = vsel %vm236_vm1, %v505_v3, %v506_v54  ;;  %2407 = vmatpush.msra.mxu2 %v1421_v60  ;;  %2527 = vmatpush.msra.mxu1 %v724_v5  ;;  %v3690_v2 = vld [vmem:[%s8362_s0 + $0x1c8] sm:$0x3]  ;;  %v1453_v50 = vld [vmem:[%s8361_s1 + $0x1790] sm:$0xff]  ;;  %v518_v3 = vrot.slane %v3689_v45, 2  ;;  %v1419_v54 = vld [vmem:[%s8361_s1 + $0x1680] sm:$0xff] }
 0x136   :  { %2148 = vmatmul.f32.gmra.mxu3 %v5751_v37  ;;  %2186 = vmatmul.f32.gmra.mxu0 %v5754_v33  ;;  %8531 = vst [vmem:[#allocation41_spill] sm:$0xff] %v5818_v17  ;;  %v521_v60 = vrot.slane %v3690_v2, 2  ;;  %v1451_v5 = vld [vmem:[%s8361_s1 + $0x1780] sm:$0xff] }
 0x137   :  { %v1780_v41 = vpop.f32.mrf.mxu2  ;;  %8533 = vst [vmem:[#allocation43_spill] sm:$0xff] %v5839_v36  ;;  %2487 = vmatpush.msra.mxu0 %v1489_v32  ;;  %2408 = vmatpush.msra.mxu2 %v1419_v54 }
 0x138   :  { %v1781_v27 = vadd.f32 %v1780_v41, %v1740_v38  ;;  %2227 = vmatmul.f32.gmra.mxu1 %v5778_v56  ;;  %v1455_v38 = vld [vmem:[%s8361_s1 + $0x17a0] sm:$0xff]  ;;  %v1743_v41 = vadd.f32 %v5445_v15, %v1702_v23  ;;  %v722_v23 = vld [vmem:[%s8361_s1 + $0xb8] sm:$0xff]  ;;  %v5888_v32 = vsel %vm236_vm1, %v520_v14, %v521_v60  ;;  %v1848_v14 = vadd.f32 %v5513_v55, %v5505_v35  ;;  %v1413_v35 = vld [vmem:[%s8361_s1 + $0x1650] sm:$0xff] }
 0x139   :  { %v1821_v29 = vpop.f32.mrf.mxu3  ;;  %2447 = vmatpush.msra.mxu3 %v1455_v38  ;;  %2528 = vmatpush.msra.mxu1 %v722_v23  ;;  %8535 = vst [vmem:[#allocation45_spill] sm:$0xff] %v5888_v32  ;;  %v718_v23 = vld [vmem:[%s8361_s1 + $0x98] sm:$0xff]  ;;  %v716_v55 = vld [vmem:[%s8361_s1 + $0x88] sm:$0xff] }
 0x13a   :  { %v5807_v13 = vadd.f32 %v1821_v29, %v1781_v27  ;;  %v3684_v29 = vld [vmem:[%s8362_s0 + $0x198] sm:$0xfc] }
 0x13b   :  { %v5815_v19 = vpop.f32.mrf.mxu0  ;;  %v517_v27 = vrot.slane %v3684_v29, 2  ;;  %2448 = vmatpush.msra.mxu3 %v1453_v50  ;;  %v1845_v29 = vadd.f32 %v5476_v28, %v5468_v10  ;;  %v1417_v10 = vld [vmem:[%s8361_s1 + $0x1670] sm:$0xff]  ;;  %v720_v28 = vld [vmem:[%s8361_s1 + $0xa8] sm:$0xff] }
 0x13c   :  { %2110 = vmatmul.f32.gmra.mxu2 %v5803_v44  ;;  %2529 = vmatpush.msra.mxu1 %v720_v28  ;;  %v1889_v28 = vadd.f32 %v5522_v4, %v1848_v14  ;;  %v1411_v4 = vld [vmem:[%s8361_s1 + $0x1640] sm:$0xff] }
 0x13d   :  { %v5836_v21 = vpop.f32.mrf.mxu1  ;;  %v5876_v9 = vsel %vm236_vm1, %v517_v27, %v518_v3  ;;  %2449 = vmatpush.msra.mxu3 %v1451_v5  ;;  %2409 = vmatpush.msra.mxu2 %v1417_v10  ;;  %v1449_v27 = vld [vmem:[%s8361_s1 + $0x1770] sm:$0xff]  ;;  %v1483_v5 = vld [vmem:[%s8361_s1 + $0x1880] sm:$0xff] }
 0x13e   :  { %2151 = vmatmul.f32.gmra.mxu3 %v5818_v17  ;;  %2189 = vmatmul.f32.gmra.mxu0 %v5821_v11  ;;  %8534 = vst [vmem:[#allocation44_spill] sm:$0xff] %v5876_v9  ;;  %v1485_v3 = vld [vmem:[%s8361_s1 + $0x1890] sm:$0xff]  ;;  %v1443_v14 = vld [vmem:[%s8361_s1 + $0x1740] sm:$0xff] }
 0x13f   :  { %v1783_v61 = vpop.f32.mrf.mxu2  ;;  %2450 = vmatpush.msra.mxu3 %v1449_v27  ;;  %2530 = vmatpush.msra.mxu1 %v718_v23  ;;  %v1481_v27 = vld [vmem:[%s8361_s1 + $0x1870] sm:$0xff]  ;;  %v1851_v23 = vadd.f32 %v5556_v47, %v5545_v16  ;;  %v712_v47 = vld [vmem:[%s8361_s1 + $0x68] sm:$0xff] }
 0x140   :  { %v1784_v15 = vadd.f32 %v1783_v61, %v1743_v41  ;;  %2230 = vmatmul.f32.gmra.mxu1 %v5839_v36  ;;  %v1487_v41 = vld [vmem:[%s8361_s1 + $0x18a0] sm:$0xff]  ;;  %v1886_v61 = vadd.f32 %v5485_v30, %v1845_v29  ;;  %v1409_v16 = vld [vmem:[%s8361_s1 + $0x1630] sm:$0xff] }
 0x141   :  { %v1824_v38 = vpop.f32.mrf.mxu3  ;;  %2488 = vmatpush.msra.mxu0 %v1487_v41  ;;  %v1415_v30 = vld [vmem:[%s8361_s1 + $0x1660] sm:$0xff]  ;;  %2531 = vmatpush.msra.mxu1 %v716_v55  ;;  %v1892_v55 = vadd.f32 %v5571_v1, %v1851_v23 }
 0x142   :  { %v5865_v45 = vadd.f32 %v1824_v38, %v1784_v15  ;;  %2410 = vmatpush.msra.mxu2 %v1415_v30  ;;  %v1447_v29 = vld [vmem:[%s8361_s1 + $0x1760] sm:$0xff] }
 0x143   :  { %v5873_v50 = vpop.f32.mrf.mxu0  ;;  %2489 = vmatpush.msra.mxu0 %v1485_v3  ;;  %2451 = vmatpush.msra.mxu3 %v1447_v29  ;;  %v1479_v29 = vld [vmem:[%s8361_s1 + $0x1860] sm:$0xff] }
 0x144   :  { %2253 = vmatmul.f32.vlgmr.msrb.gmra.mxu2 %v5266_v57  ;;  %v1407_v1 = vld [vmem:[%s8361_s1 + $0x1620] sm:$0xff]  ;;  %v1000_v57 = vld [vmem:[%s8361_s1 + $0x968] sm:$0xff] }
 0x145   :  { %v5885_v2 = vpop.f32.mrf.mxu1  ;;  %2490 = vmatpush.msra.mxu0 %v1483_v5  ;;  %2411 = vmatpush.msra.mxu2 %v1413_v35 }
 0x146   :  { %2192 = vmatmul.f32.gmra.mxu0 %v5876_v9  ;;  %2294 = vmatmul.f32.vlgmr.msrb.gmra.mxu3 %v5590_v39 }
 0x147   :  { %v1926_v15 = vpop.f32.mrf.mxu2  ;;  %2491 = vmatpush.msra.mxu0 %v1481_v27  ;;  %2412 = vmatpush.msra.mxu2 %v1411_v4 }
 0x148   :  { %v1927_v54 = vadd.f32 %v1926_v15, %v1886_v61  ;;  %2233 = vmatmul.f32.gmra.mxu1 %v5888_v32  ;;  %v1445_v61 = vld [vmem:[%s8361_s1 + $0x1750] sm:$0xff] }
 0x149   :  { %v1967_v38 = vpop.f32.mrf.mxu3  ;;  %2452 = vmatpush.msra.mxu3 %v1445_v61  ;;  %2492 = vmatpush.msra.mxu0 %v1479_v29  ;;  %v1477_v61 = vld [vmem:[%s8361_s1 + $0x1850] sm:$0xff]  ;;  %v1439_v29 = vld [vmem:[%s8361_s1 + $0x1720] sm:$0xff] }
 0x14a   :  { %v5908_v60 = vadd.f32 %v1967_v38, %v1927_v54  ;;  %v714_v54 = vld [vmem:[%s8361_s1 + $0x78] sm:$0xff]  ;;  %2413 = vmatpush.msra.mxu2 %v1409_v16  ;;  %v1475_v16 = vld [vmem:[%s8361_s1 + $0x1840] sm:$0xff] }
 0x14b   :  { %v5916_v41 = vpop.f32.mrf.mxu0  ;;  %2532 = vmatpush.msra.mxu1 %v714_v54  ;;  %2453 = vmatpush.msra.mxu3 %v1443_v14  ;;  %v199_v54 = vld [vmem:[%s8362_s0 + $0x18] sm:$0xfc]  ;;  %v204_v14 = vld [vmem:[%s8362_s0 + $0x40] sm:$0x3] }
 0x14c   :  { %2256 = vmatmul.f32.gmra.mxu2 %v5338_v62  ;;  %2493 = vmatpush.msra.mxu0 %v1477_v61 }
 0x14d   :  { %v5925_v10 = vpop.f32.mrf.mxu1  ;;  %2533 = vmatpush.msra.mxu1 %v712_v47  ;;  %2414 = vmatpush.msra.mxu2 %v1407_v1 }
 0x14e   :  { %2297 = vmatmul.f32.gmra.mxu3 %v5657_v42  ;;  %2335 = vmatmul.f32.vlgmr.msrb.gmra.mxu0 %v5611_v24 }
 0x14f   :  { %v1929_v3 = vpop.f32.mrf.mxu2  ;;  %2494 = vmatpush.msra.mxu0 %v1475_v16 }
 0x150   :  { %v1930_v15 = vadd.f32 %v1929_v3, %v1889_v28  ;;  %2376 = vmatmul.f32.vlgmr.msrb.gmra.mxu1 %v5681_v34  ;;  %v1441_v28 = vld [vmem:[%s8361_s1 + $0x1730] sm:$0xff] }
 0x151   :  { %v1970_v30 = vpop.f32.mrf.mxu3  ;;  %2454 = vmatpush.msra.mxu3 %v1441_v28  ;;  %v708_v28 = vld [vmem:[%s8361_s1 + $0x48] sm:$0xff] }
 0x152   :  { %v5945_v38 = vadd.f32 %v1970_v30, %v1930_v15  ;;  %v710_v15 = vld [vmem:[%s8361_s1 + $0x58] sm:$0xff]  ;;  %v1854_v30 = vadd.f32 %v5608_v22, %v5597_v12  ;;  %v200_v12 = vld [vmem:[%s8362_s0 + $0x20] sm:$0xfc]  ;;  %v205_v22 = vld [vmem:[%s8362_s0 + $0x48] sm:$0x3] }
 0x153   :  { %v5953_v5 = vpop.f32.mrf.mxu0  ;;  %2534 = vmatpush.msra.mxu1 %v710_v15  ;;  %2455 = vmatpush.msra.mxu3 %v1439_v29  ;;  %v1437_v15 = vld [vmem:[%s8361_s1 + $0x1710] sm:$0xff]  ;;  %v249_v16 = vrot.slane %v200_v12, 2  ;;  %v209_v12 = vld [vmem:[%s8362_s0 + $0x158] sm:$0xfc] }
 0x154   :  { %2259 = vmatmul.f32.gmra.mxu2 %v5398_v31  ;;  %v1895_v1 = vadd.f32 %v5632_v63, %v1854_v30  ;;  %v1403_v63 = vld [vmem:[%s8361_s1 + $0x1600] sm:$0xff]  ;;  %v706_v30 = vld [vmem:[%s8361_s1 + $0x38] sm:$0xff] }
 0x155   :  { %v5962_v35 = vpop.f32.mrf.mxu1  ;;  %2535 = vmatpush.msra.mxu1 %v708_v28  ;;  %2456 = vmatpush.msra.mxu3 %v1437_v15  ;;  %v214_v15 = vld [vmem:[%s8362_s0 + $0x180] sm:$0x3] }
 0x156   :  { %2300 = vmatmul.f32.gmra.mxu3 %v5730_v26  ;;  %2338 = vmatmul.f32.gmra.mxu0 %v5678_v52 }
 0x157   :  { %v1932_v27 = vpop.f32.mrf.mxu2  ;;  %2536 = vmatpush.msra.mxu1 %v706_v30 }
 0x158   :  { %v1933_v3 = vadd.f32 %v1932_v27, %v1892_v55  ;;  %2379 = vmatmul.f32.gmra.mxu1 %v5754_v33  ;;  %v1405_v55 = vld [vmem:[%s8361_s1 + $0x1610] sm:$0xff]  ;;  %v246_v27 = vrot.slane %v199_v54, 2  ;;  %v250_v54 = vrot.slane %v205_v22, 2  ;;  %v1857_v22 = vadd.f32 %v5675_v25, %v5664_v48  ;;  %v210_v48 = vld [vmem:[%s8362_s0 + $0x160] sm:$0xfc]  ;;  %v760_v33 = vld [vmem:[%s8361_s1 + $0x1e8] sm:$0xff] }
 0x159   :  { %v1973_v4 = vpop.f32.mrf.mxu3  ;;  %2415 = vmatpush.msra.mxu2 %v1405_v55  ;;  %v215_v25 = vld [vmem:[%s8362_s0 + $0x188] sm:$0x3] }
 0x15a   :  { %v5985_v23 = vadd.f32 %v1973_v4, %v1933_v3  ;;  %v247_v3 = vrot.slane %v204_v14, 2  ;;  %v1473_v4 = vld [vmem:[%s8361_s1 + $0x1830] sm:$0xff] }
 0x15b   :  { %v5996_v47 = vpop.f32.mrf.mxu0  ;;  %2495 = vmatpush.msra.mxu0 %v1473_v4  ;;  %2416 = vmatpush.msra.mxu2 %v1403_v63  ;;  %v762_v63 = vld [vmem:[%s8361_s1 + $0x1f8] sm:$0xff] }
 0x15c   :  { %2262 = vmatmul.f32.gmra.mxu2 %v5448_v20  ;;  %v6030_v28 = vsel %vm236_vm1, %v246_v27, %v247_v3  ;;  %v1435_v27 = vld [vmem:[%s8361_s1 + $0x1700] sm:$0xff]  ;;  %v702_v20 = vld [vmem:[%s8361_s1 + $0x18] sm:$0xff] }
 0x15d   :  { %v6011_v61 = vpop.f32.mrf.mxu1  ;;  %8536 = vst [vmem:[#allocation46_spill] sm:$0xff] %v6030_v28  ;;  %v1471_v3 = vld [vmem:[%s8361_s1 + $0x1820] sm:$0xff]  ;;  %2457 = vmatpush.msra.mxu3 %v1435_v27  ;;  %v3694_v27 = vld [vmem:[%s8362_s0 + $0xa8] sm:$0xfc]  ;;  %2565 = vmatpush.msrb.mxu2 %v762_v63  ;;  %v264_v63 = vrot.slane %v210_v48, 2 }
 0x15e   :  { %2303 = vmatmul.f32.gmra.mxu3 %v5803_v44  ;;  %2341 = vmatmul.f32.gmra.mxu0 %v5751_v37  ;;  %v3699_v37 = vld [vmem:[%s8362_s0 + $0xd0] sm:$0x3]  ;;  %v265_v44 = vrot.slane %v215_v25, 2  ;;  %v582_v48 = vrot.slane %v3694_v27, 2  ;;  %v758_v27 = vld [vmem:[%s8361_s1 + $0x1d8] sm:$0xff] }
 0x15f   :  { %v1935_v29 = vpop.f32.mrf.mxu2  ;;  %2496 = vmatpush.msra.mxu0 %v1471_v3  ;;  %v1898_v3 = vadd.f32 %v5702_v40, %v1857_v22  ;;  %v583_v25 = vrot.slane %v3699_v37, 2  ;;  %2566 = vmatpush.msrb.mxu2 %v760_v33  ;;  %v792_v37 = vld [vmem:[%s8361_s1 + $0x2e8] sm:$0xff]  ;;  %v3703_v33 = vld [vmem:[%s8362_s0 + $0x1e0] sm:$0xfc] }
 0x160   :  { %v1936_v14 = vadd.f32 %v1935_v29, %v1895_v1  ;;  %2382 = vmatmul.f32.gmra.mxu1 %v5821_v11  ;;  %v6051_v29 = vsel %vm236_vm1, %v249_v16, %v250_v54  ;;  %v3698_v16 = vld [vmem:[%s8362_s0 + $0xc8] sm:$0x3]  ;;  %v262_v11 = vrot.slane %v214_v15, 2  ;;  %v794_v15 = vld [vmem:[%s8361_s1 + $0x2f8] sm:$0xff] }
 0x161   :  { %v1976_v55 = vpop.f32.mrf.mxu3  ;;  %8537 = vst [vmem:[#allocation47_spill] sm:$0xff] %v6051_v29  ;;  %v704_v54 = vld [vmem:[%s8361_s1 + $0x28] sm:$0xff]  ;;  %v580_v22 = vrot.slane %v3698_v16, 2  ;;  %2606 = vmatpush.msrb.mxu3 %v794_v15  ;;  %v1860_v16 = vadd.f32 %v5748_v0, %v5737_v8  ;;  %v3677_v8 = vld [vmem:[%s8362_s0 + $0x70] sm:$0xfc]  ;;  %2567 = vmatpush.msrb.mxu2 %v758_v27 }
 0x162   :  { %v6037_v1 = vadd.f32 %v1976_v55, %v1936_v14  ;;  %v3693_v14 = vld [vmem:[%s8362_s0 + $0xa0] sm:$0xfc]  ;;  %v261_v55 = vrot.slane %v209_v12, 2  ;;  %2537 = vmatpush.msra.mxu1 %v704_v54  ;;  %v1469_v12 = vld [vmem:[%s8361_s1 + $0x1810] sm:$0xff]  ;;  %v3682_v0 = vld [vmem:[%s8362_s0 + $0x98] sm:$0x3] }
 0x163   :  { %v6048_v4 = vpop.f32.mrf.mxu0  ;;  %v579_v40 = vrot.slane %v3693_v14, 2  ;;  %2497 = vmatpush.msra.mxu0 %v1469_v12  ;;  %v3676_v14 = vld [vmem:[%s8362_s0 + $0x68] sm:$0xfc]  ;;  %v3681_v12 = vld [vmem:[%s8362_s0 + $0x90] sm:$0x3]  ;;  %2607 = vmatpush.msrb.mxu3 %v792_v37 }
 0x164   :  { %2265 = vmatmul.f32.gmra.mxu2 %v6030_v28  ;;  %v6097_v26 = vsel %vm236_vm1, %v261_v55, %v262_v11  ;;  %2538 = vmatpush.msra.mxu1 %v702_v20  ;;  %v1467_v11 = vld [vmem:[%s8361_s1 + $0x1800] sm:$0xff]  ;;  %v6118_v20 = vsel %vm236_vm1, %v264_v63, %v265_v44  ;;  %v3708_v44 = vld [vmem:[%s8362_s0 + $0x208] sm:$0x3]  ;;  %v508_v63 = vrot.slane %v3676_v14, 2  ;;  %v3709_v37 = vld [vmem:[%s8362_s0 + $0x210] sm:$0x3] }
 0x165   :  { %v6072_v30 = vpop.f32.mrf.mxu1  ;;  %8538 = vst [vmem:[#allocation48_spill] sm:$0xff] %v6097_v26  ;;  %2498 = vmatpush.msra.mxu0 %v1467_v11  ;;  %v1901_v11 = vadd.f32 %v5775_v7, %v1860_v16  ;;  %v594_v7 = vrot.slane %v3703_v33, 2  ;;  %v595_v16 = vrot.slane %v3708_v44, 2  ;;  %v3686_v33 = vld [vmem:[%s8362_s0 + $0x1a8] sm:$0xfc]  ;;  %v1863_v44 = vadd.f32 %v5815_v19, %v5807_v13 }
 0x166   :  { %2306 = vmatmul.f32.gmra.mxu3 %v6051_v29  ;;  %2344 = vmatmul.f32.gmra.mxu0 %v5818_v17  ;;  %8539 = vst [vmem:[#allocation49_spill] sm:$0xff] %v6118_v20  ;;  %v3687_v13 = vld [vmem:[%s8362_s0 + $0x1b0] sm:$0xfc]  ;;  %v3692_v19 = vld [vmem:[%s8362_s0 + $0x1d8] sm:$0x3] }
 0x167   :  { %v1938_v54 = vpop.f32.mrf.mxu2 }
 0x168   :  { %v1939_v17 = vadd.f32 %v1938_v54, %v1898_v3  ;;  %2385 = vmatmul.f32.gmra.mxu1 %v5876_v9  ;;  %v6145_v54 = vsel %vm236_vm1, %v582_v48, %v583_v25  ;;  %v790_v48 = vld [vmem:[%s8361_s1 + $0x2d8] sm:$0xff] }
 0x169   :  { %v1979_v52 = vpop.f32.mrf.mxu3  ;;  %8541 = vst [vmem:[#allocation51_spill] sm:$0xff] %v6145_v54  ;;  %v826_v25 = vld [vmem:[%s8361_s1 + $0x3f8] sm:$0xff]  ;;  %2608 = vmatpush.msrb.mxu3 %v790_v48  ;;  %v3691_v48 = vld [vmem:[%s8362_s0 + $0x1d0] sm:$0x3] }
 0x16a   :  { %v6104_v3 = vadd.f32 %v1979_v52, %v1939_v17  ;;  %v6121_v52 = vsel %vm236_vm1, %v579_v40, %v580_v22  ;;  %v700_v17 = vld [vmem:[%s8361_s1 + $0x8] sm:$0xff]  ;;  %v509_v40 = vrot.slane %v3681_v12, 2  ;;  %v511_v12 = vrot.slane %v3677_v8, 2  ;;  %2647 = vmatpush.msrb.mxu0 %v826_v25  ;;  %v858_v9 = vld [vmem:[%s8361_s1 + $0x4f8] sm:$0xff] }
 0x16b   :  { %v6115_v55 = vpop.f32.mrf.mxu0  ;;  %8540 = vst [vmem:[#allocation50_spill] sm:$0xff] %v6121_v52  ;;  %v3704_v22 = vld [vmem:[%s8362_s0 + $0x1e8] sm:$0xfc]  ;;  %2539 = vmatpush.msra.mxu1 %v700_v17  ;;  %v512_v17 = vrot.slane %v3682_v0, 2  ;;  %v598_v0 = vrot.slane %v3709_v37, 2  ;;  %v754_v25 = vld [vmem:[%s8361_s1 + $0x1b8] sm:$0xff] }
 0x16c   :  { %2268 = vmatmul.f32.gmra.mxu2 %v6097_v26  ;;  %v6170_v34 = vsel %vm236_vm1, %v508_v63, %v509_v40  ;;  %v597_v8 = vrot.slane %v3704_v22, 2  ;;  %v788_v63 = vld [vmem:[%s8361_s1 + $0x2c8] sm:$0xff]  ;;  %v3718_v37 = vld [vmem:[%s8362_s0 + $0x118] sm:$0x3] }
 0x16d   :  { %v6142_v15 = vpop.f32.mrf.mxu1  ;;  %8542 = vst [vmem:[#allocation52_spill] sm:$0xff] %v6170_v34  ;;  %2688 = vmatpush.msrb.mxu1 %v858_v9  ;;  %v824_v40 = vld [vmem:[%s8361_s1 + $0x3e8] sm:$0xff]  ;;  %v6191_v9 = vsel %vm236_vm1, %v511_v12, %v512_v17  ;;  %2609 = vmatpush.msrb.mxu3 %v788_v63  ;;  %v1904_v63 = vadd.f32 %v5836_v21, %v1863_v44  ;;  %v660_v44 = vrot.slane %v3718_v37, 2 }
 0x16e   :  { %2309 = vmatmul.f32.gmra.mxu3 %v6118_v20  ;;  %2347 = vmatmul.f32.gmra.mxu0 %v6121_v52  ;;  %v756_v52 = vld [vmem:[%s8361_s1 + $0x1c8] sm:$0xff]  ;;  %8543 = vst [vmem:[#allocation53_spill] sm:$0xff] %v6191_v9  ;;  %v6218_v17 = vsel %vm236_vm1, %v597_v8, %v598_v0  ;;  %v786_v8 = vld [vmem:[%s8361_s1 + $0x2b8] sm:$0xff] }
 0x16f   :  { %v1941_v14 = vpop.f32.mrf.mxu2  ;;  %2568 = vmatpush.msrb.mxu2 %v756_v52  ;;  %v3713_v52 = vld [vmem:[%s8362_s0 + $0xf0] sm:$0xfc]  ;;  %2648 = vmatpush.msrb.mxu0 %v824_v40  ;;  %8545 = vst [vmem:[#allocation55_spill] sm:$0xff] %v6218_v17  ;;  %v3719_v40 = vld [vmem:[%s8362_s0 + $0x120] sm:$0x3]  ;;  %v822_v0 = vld [vmem:[%s8361_s1 + $0x3d8] sm:$0xff] }
 0x170   :  { %v1942_v27 = vadd.f32 %v1941_v14, %v1901_v11  ;;  %2388 = vmatmul.f32.gmra.mxu1 %v6145_v54  ;;  %v856_v14 = vld [vmem:[%s8361_s1 + $0x4e8] sm:$0xff]  ;;  %v659_v21 = vrot.slane %v3713_v52, 2  ;;  %2610 = vmatpush.msrb.mxu3 %v786_v8  ;;  %v1866_v52 = vadd.f32 %v5873_v50, %v5865_v45  ;;  %v3728_v45 = vld [vmem:[%s8362_s0 + $0x258] sm:$0x3] }
 0x171   :  { %v1982_v31 = vpop.f32.mrf.mxu3  ;;  %2569 = vmatpush.msrb.mxu2 %v754_v25  ;;  %2689 = vmatpush.msrb.mxu1 %v856_v14  ;;  %v527_v25 = vrot.slane %v3692_v19, 2  ;;  %v752_v54 = vld [vmem:[%s8361_s1 + $0x1a8] sm:$0xff]  ;;  %v663_v19 = vrot.slane %v3719_v40, 2  ;;  %v750_v50 = vld [vmem:[%s8361_s1 + $0x198] sm:$0xff] }
 0x172   :  { %v6177_v11 = vadd.f32 %v1982_v31, %v1942_v27  ;;  %v6194_v31 = vsel %vm236_vm1, %v594_v7, %v595_v16  ;;  %v523_v7 = vrot.slane %v3686_v33, 2  ;;  %v524_v16 = vrot.slane %v3691_v48, 2  ;;  %v3714_v27 = vld [vmem:[%s8362_s0 + $0xf8] sm:$0xfc]  ;;  %2649 = vmatpush.msrb.mxu0 %v822_v0  ;;  %v820_v8 = vld [vmem:[%s8361_s1 + $0x3c8] sm:$0xff] }
 0x173   :  { %v6188_v22 = vpop.f32.mrf.mxu0  ;;  %8544 = vst [vmem:[#allocation54_spill] sm:$0xff] %v6194_v31  ;;  %v526_v48 = vrot.slane %v3687_v13, 2  ;;  %v662_v13 = vrot.slane %v3714_v27, 2  ;;  %2570 = vmatpush.msrb.mxu2 %v752_v54  ;;  %v6261_v54 = vsel %vm236_vm1, %v659_v21, %v660_v44  ;;  %v3724_v40 = vld [vmem:[%s8362_s0 + $0x238] sm:$0xfc] }
 0x174   :  { %2271 = vmatmul.f32.gmra.mxu2 %v6170_v34  ;;  %v6243_v42 = vsel %vm236_vm1, %v523_v7, %v524_v16  ;;  %8548 = vst [vmem:[#allocation58_spill] sm:$0xff] %v6261_v54  ;;  %2650 = vmatpush.msrb.mxu0 %v820_v8  ;;  %v818_v21 = vld [vmem:[%s8361_s1 + $0x3b8] sm:$0xff]  ;;  %v677_v8 = vrot.slane %v3724_v40, 2 }
 0x175   :  { %v6215_v12 = vpop.f32.mrf.mxu1  ;;  %8546 = vst [vmem:[#allocation56_spill] sm:$0xff] %v6243_v42  ;;  %v6258_v7 = vsel %vm236_vm1, %v526_v48, %v527_v25  ;;  %v6279_v27 = vsel %vm236_vm1, %v662_v13, %v663_v19  ;;  %2571 = vmatpush.msrb.mxu2 %v750_v50  ;;  %v3729_v48 = vld [vmem:[%s8362_s0 + $0x260] sm:$0x3]  ;;  %v782_v25 = vld [vmem:[%s8361_s1 + $0x298] sm:$0xff]  ;;  %v675_v13 = vrot.slane %v3728_v45, 2  ;;  %v748_v19 = vld [vmem:[%s8361_s1 + $0x188] sm:$0xff] }
 0x176   :  { %2312 = vmatmul.f32.gmra.mxu3 %v6191_v9  ;;  %2350 = vmatmul.f32.gmra.mxu0 %v6194_v31  ;;  %v854_v31 = vld [vmem:[%s8361_s1 + $0x4d8] sm:$0xff]  ;;  %8547 = vst [vmem:[#allocation57_spill] sm:$0xff] %v6258_v7  ;;  %v678_v50 = vrot.slane %v3729_v48, 2 }
 0x177   :  { %v1944_v33 = vpop.f32.mrf.mxu2  ;;  %2690 = vmatpush.msrb.mxu1 %v854_v31  ;;  %v852_v31 = vld [vmem:[%s8361_s1 + $0x4c8] sm:$0xff]  ;;  %8549 = vst [vmem:[#allocation59_spill] sm:$0xff] %v6279_v27  ;;  %2651 = vmatpush.msrb.mxu0 %v818_v21 }
 0x178   :  { %v1945_v14 = vadd.f32 %v1944_v33, %v1904_v63  ;;  %2391 = vmatmul.f32.gmra.mxu1 %v6218_v17  ;;  %v784_v63 = vld [vmem:[%s8361_s1 + $0x2a8] sm:$0xff]  ;;  %v1907_v33 = vadd.f32 %v5885_v2, %v1866_v52  ;;  %v850_v52 = vld [vmem:[%s8361_s1 + $0x4b8] sm:$0xff]  ;;  %2572 = vmatpush.msrb.mxu2 %v748_v19  ;;  %v6328_v21 = vsel %vm236_vm1, %v677_v8, %v678_v50 }
 0x179   :  { %v1985_v24 = vpop.f32.mrf.mxu3  ;;  %2611 = vmatpush.msrb.mxu3 %v784_v63  ;;  %2691 = vmatpush.msrb.mxu1 %v852_v31  ;;  %v780_v31 = vld [vmem:[%s8361_s1 + $0x288] sm:$0xff]  ;;  %8551 = vst [vmem:[#allocation61_spill] sm:$0xff] %v6328_v21  ;;  %v2012_v8 = vadd.f32 %v5953_v5, %v5945_v38  ;;  %v742_v38 = vld [vmem:[%s8361_s1 + $0x158] sm:$0xff] }
 0x17a   :  { %v6247_v37 = vadd.f32 %v1985_v24, %v1945_v14  ;;  %v3723_v24 = vld [vmem:[%s8362_s0 + $0x230] sm:$0xfc]  ;;  %v844_v5 = vld [vmem:[%s8361_s1 + $0x488] sm:$0xff] }
 0x17b   :  { %v6255_v0 = vpop.f32.mrf.mxu0  ;;  %v674_v14 = vrot.slane %v3723_v24, 2  ;;  %2612 = vmatpush.msrb.mxu3 %v782_v25  ;;  %2692 = vmatpush.msrb.mxu1 %v850_v52  ;;  %v2009_v24 = vadd.f32 %v5916_v41, %v5908_v60  ;;  %v746_v60 = vld [vmem:[%s8361_s1 + $0x178] sm:$0xff]  ;;  %v848_v41 = vld [vmem:[%s8361_s1 + $0x4a8] sm:$0xff] }
 0x17c   :  { %2274 = vmatmul.f32.gmra.mxu2 %v6243_v42  ;;  %v846_v52 = vld [vmem:[%s8361_s1 + $0x498] sm:$0xff] }
 0x17d   :  { %v6276_v16 = vpop.f32.mrf.mxu1  ;;  %v6316_v40 = vsel %vm236_vm1, %v674_v14, %v675_v13  ;;  %2613 = vmatpush.msrb.mxu3 %v780_v31  ;;  %2573 = vmatpush.msrb.mxu2 %v746_v60  ;;  %v778_v14 = vld [vmem:[%s8361_s1 + $0x278] sm:$0xff]  ;;  %v812_v31 = vld [vmem:[%s8361_s1 + $0x388] sm:$0xff] }
 0x17e   :  { %2315 = vmatmul.f32.gmra.mxu3 %v6258_v7  ;;  %2353 = vmatmul.f32.gmra.mxu0 %v6261_v54  ;;  %8550 = vst [vmem:[#allocation60_spill] sm:$0xff] %v6316_v40  ;;  %v814_v13 = vld [vmem:[%s8361_s1 + $0x398] sm:$0xff]  ;;  %v1008_v54 = vld [vmem:[%s8361_s1 + $0x9a8] sm:$0xff] }
 0x17f   :  { %v1947_v44 = vpop.f32.mrf.mxu2  ;;  %2693 = vmatpush.msrb.mxu1 %v848_v41  ;;  %2614 = vmatpush.msrb.mxu3 %v778_v14  ;;  %v2053_v41 = vadd.f32 %v5962_v35, %v2012_v8  ;;  %v810_v14 = vld [vmem:[%s8361_s1 + $0x378] sm:$0xff]  ;;  %v3765_v35 = vld [vmem:[%s8362_s0] sm:$0xff] }
 0x180   :  { %v1948_v2 = vadd.f32 %v1947_v44, %v1907_v33  ;;  %2394 = vmatmul.f32.gmra.mxu1 %v6279_v27  ;;  %v816_v33 = vld [vmem:[%s8361_s1 + $0x3a8] sm:$0xff]  ;;  %v2050_v44 = vadd.f32 %v5925_v10, %v2009_v24  ;;  %v922_v27 = vld [vmem:[%s8361_s1 + $0x6f8] sm:$0xff] }
 0x181   :  { %v1988_v63 = vpop.f32.mrf.mxu3  ;;  %2652 = vmatpush.msrb.mxu0 %v816_v33  ;;  %v744_v10 = vld [vmem:[%s8361_s1 + $0x168] sm:$0xff]  ;;  %2694 = vmatpush.msrb.mxu1 %v846_v52 }
 0x182   :  { %v6305_v45 = vadd.f32 %v1988_v63, %v1948_v2  ;;  %2574 = vmatpush.msrb.mxu2 %v744_v10  ;;  %v776_v24 = vld [vmem:[%s8361_s1 + $0x268] sm:$0xff]  ;;  %v842_v10 = vld [vmem:[%s8361_s1 + $0x478] sm:$0xff] }
 0x183   :  { %v6313_v25 = vpop.f32.mrf.mxu0  ;;  %2653 = vmatpush.msrb.mxu0 %v814_v13  ;;  %2615 = vmatpush.msrb.mxu3 %v776_v24  ;;  %v772_v24 = vld [vmem:[%s8361_s1 + $0x248] sm:$0xff] }
 0x184   :  { %2417 = vmatmul.f32.vlgmr.msra.gmra.mxu2 %v5705_v58  ;;  %2695 = vmatpush.msrb.mxu1 %v844_v5  ;;  %v1036_v58 = vld [vmem:[%s8361_s1 + $0xa88] sm:$0xff] }
 0x185   :  { %v6325_v48 = vpop.f32.mrf.mxu1  ;;  %2654 = vmatpush.msrb.mxu0 %v812_v31  ;;  %2575 = vmatpush.msrb.mxu2 %v742_v38  ;;  %v808_v31 = vld [vmem:[%s8361_s1 + $0x368] sm:$0xff] }
 0x186   :  { %2356 = vmatmul.f32.gmra.mxu0 %v6316_v40  ;;  %2458 = vmatmul.f32.vlgmr.msra.gmra.mxu3 %v6030_v28  ;;  %v1004_v28 = vld [vmem:[%s8361_s1 + $0x988] sm:$0xff] }
 0x187   :  { %v2090_v2 = vpop.f32.mrf.mxu2  ;;  %2655 = vmatpush.msrb.mxu0 %v810_v14  ;;  %2696 = vmatpush.msrb.mxu1 %v842_v10  ;;  %v806_v14 = vld [vmem:[%s8361_s1 + $0x358] sm:$0xff] }
 0x188   :  { %v2091_v19 = vadd.f32 %v2090_v2, %v2050_v44  ;;  %2397 = vmatmul.f32.gmra.mxu1 %v6328_v21  ;;  %v774_v44 = vld [vmem:[%s8361_s1 + $0x258] sm:$0xff] }
 0x189   :  { %v2131_v63 = vpop.f32.mrf.mxu3  ;;  %2616 = vmatpush.msrb.mxu3 %v774_v44  ;;  %2656 = vmatpush.msrb.mxu0 %v808_v31  ;;  %v770_v44 = vld [vmem:[%s8361_s1 + $0x238] sm:$0xff] }
 0x18a   :  { %v6348_v50 = vadd.f32 %v2131_v63, %v2091_v19  ;;  %v740_v19 = vld [vmem:[%s8361_s1 + $0x148] sm:$0xff]  ;;  %v2015_v63 = vadd.f32 %v5996_v47, %v5985_v23  ;;  %v738_v23 = vld [vmem:[%s8361_s1 + $0x138] sm:$0xff] }
 0x18b   :  { %v6356_v33 = vpop.f32.mrf.mxu0  ;;  %2576 = vmatpush.msrb.mxu2 %v740_v19  ;;  %2617 = vmatpush.msrb.mxu3 %v772_v24  ;;  %v840_v47 = vld [vmem:[%s8361_s1 + $0x468] sm:$0xff]  ;;  %v838_v19 = vld [vmem:[%s8361_s1 + $0x458] sm:$0xff] }
 0x18c   :  { %2420 = vmatmul.f32.gmra.mxu2 %v5778_v56  ;;  %2697 = vmatpush.msrb.mxu1 %v840_v47  ;;  %v3700_v31 = vld [vmem:[%s8362_s0 + $0xd8] sm:$0x3]  ;;  %v804_v47 = vld [vmem:[%s8361_s1 + $0x348] sm:$0xff]  ;;  %v7128_v56 = vld [vmem:[%s8362_s0 + $0x110] sm:$0xff] }
 0x18d   :  { %v6365_v60 = vpop.f32.mrf.mxu1  ;;  %2577 = vmatpush.msrb.mxu2 %v738_v23  ;;  %2618 = vmatpush.msrb.mxu3 %v770_v44  ;;  %v768_v23 = vld [vmem:[%s8361_s1 + $0x228] sm:$0xff]  ;;  %v734_v44 = vld [vmem:[%s8361_s1 + $0x118] sm:$0xff]  ;;  %8565 = vst [vmem:[#allocation75_spill] sm:$0xff] %v7128_v56 }
 0x18e   :  { %2461 = vmatmul.f32.gmra.mxu3 %v6097_v26  ;;  %2499 = vmatmul.f32.vlgmr.msra.gmra.mxu0 %v6051_v29  ;;  %v1074_v26 = vld [vmem:[%s8361_s1 + $0xbb8] sm:$0xff] }
 0x18f   :  { %v2093_v13 = vpop.f32.mrf.mxu2  ;;  %2657 = vmatpush.msrb.mxu0 %v806_v14  ;;  %2698 = vmatpush.msrb.mxu1 %v838_v19  ;;  %v836_v14 = vld [vmem:[%s8361_s1 + $0x448] sm:$0xff]  ;;  %v766_v19 = vld [vmem:[%s8361_s1 + $0x218] sm:$0xff] }
 0x190   :  { %v2094_v2 = vadd.f32 %v2093_v13, %v2053_v41  ;;  %2540 = vmatmul.f32.vlgmr.msra.gmra.mxu1 %v3765_v35  ;;  %v2056_v41 = vadd.f32 %v6011_v61, %v2015_v63  ;;  %v3766_v61 = vld [vmem:[%s8362_s0 + $0x140] sm:$0xff]  ;;  %v736_v35 = vld [vmem:[%s8361_s1 + $0x128] sm:$0xff]  ;;  %v2018_v63 = vadd.f32 %v6048_v4, %v6037_v1  ;;  %v3696_v1 = vld [vmem:[%s8362_s0 + $0xb8] sm:$0xfc]  ;;  %2619 = vmatpush.msrb.mxu3 %v768_v23 }
 0x191   :  { %v2134_v52 = vpop.f32.mrf.mxu3  ;;  %2578 = vmatpush.msrb.mxu2 %v736_v35  ;;  %2658 = vmatpush.msrb.mxu0 %v804_v47  ;;  %v3701_v4 = vld [vmem:[%s8362_s0 + $0xe0] sm:$0x3]  ;;  %v588_v47 = vrot.slane %v3696_v1, 2 }
 0x192   :  { %v6387_v8 = vadd.f32 %v2134_v52, %v2094_v2  ;;  %v3695_v52 = vld [vmem:[%s8362_s0 + $0xb0] sm:$0xfc]  ;;  %2699 = vmatpush.msrb.mxu1 %v836_v14  ;;  %v2059_v35 = vadd.f32 %v6072_v30, %v2018_v63  ;;  %2620 = vmatpush.msrb.mxu3 %v766_v19  ;;  %v732_v63 = vld [vmem:[%s8361_s1 + $0x108] sm:$0xff] }
 0x193   :  { %v6395_v38 = vpop.f32.mrf.mxu0  ;;  %2579 = vmatpush.msrb.mxu2 %v734_v44  ;;  %v3767_v30 = vld [vmem:[%s8362_s0 + $0x50] sm:$0xff]  ;;  %v834_v44 = vld [vmem:[%s8361_s1 + $0x438] sm:$0xff] }
 0x194   :  { %2423 = vmatmul.f32.gmra.mxu2 %v5839_v36  ;;  %2700 = vmatpush.msrb.mxu1 %v834_v44  ;;  %v1038_v36 = vld [vmem:[%s8361_s1 + $0xa98] sm:$0xff] }
 0x195   :  { %v6404_v5 = vpop.f32.mrf.mxu1  ;;  %2580 = vmatpush.msrb.mxu2 %v732_v63  ;;  %v890_v63 = vld [vmem:[%s8361_s1 + $0x5f8] sm:$0xff] }
 0x196   :  { %2464 = vmatmul.f32.gmra.mxu3 %v6170_v34  ;;  %2502 = vmatmul.f32.gmra.mxu0 %v6118_v20  ;;  %v7094_v20 = vld [vmem:[%s8362_s0 + $0x238] sm:$0xff]  ;;  %v1108_v34 = vld [vmem:[%s8361_s1 + $0xcc8] sm:$0xff] }
 0x197   :  { %v2096_v13 = vpop.f32.mrf.mxu2  ;;  %2729 = vmatpush.msra.mxu2 %v890_v63  ;;  %v830_v63 = vld [vmem:[%s8361_s1 + $0x418] sm:$0xff] }
 0x198   :  { %v2097_v2 = vadd.f32 %v2096_v13, %v2056_v41  ;;  %2543 = vmatmul.f32.gmra.mxu1 %v3766_v61  ;;  %v586_v61 = vrot.slane %v3700_v31, 2 }
 0x199   :  { %v2137_v10 = vpop.f32.mrf.mxu3 }
 0x19a   :  { %v6429_v24 = vadd.f32 %v2137_v10, %v2097_v2  ;;  %v585_v2 = vrot.slane %v3695_v52, 2  ;;  %v802_v10 = vld [vmem:[%s8361_s1 + $0x338] sm:$0xff]  ;;  %v589_v52 = vrot.slane %v3701_v4, 2  ;;  %v3705_v4 = vld [vmem:[%s8362_s0 + $0x1f0] sm:$0xfc] }
 0x19b   :  { %v6440_v41 = vpop.f32.mrf.mxu0  ;;  %2659 = vmatpush.msrb.mxu0 %v802_v10  ;;  %v3710_v10 = vld [vmem:[%s8362_s0 + $0x218] sm:$0x3] }
 0x19c   :  { %2426 = vmatmul.f32.gmra.mxu2 %v5888_v32  ;;  %v6476_v1 = vsel %vm236_vm1, %v585_v2, %v586_v61  ;;  %v764_v2 = vld [vmem:[%s8361_s1 + $0x208] sm:$0xff]  ;;  %v601_v21 = vrot.slane %v3710_v10, 2 }
 0x19d   :  { %v6455_v13 = vpop.f32.mrf.mxu1  ;;  %8552 = vst [vmem:[#allocation62_spill] sm:$0xff] %v6476_v1  ;;  %v800_v61 = vld [vmem:[%s8361_s1 + $0x328] sm:$0xff]  ;;  %2621 = vmatpush.msrb.mxu3 %v764_v2 }
 0x19e   :  { %2467 = vmatmul.f32.gmra.mxu3 %v6243_v42  ;;  %2505 = vmatmul.f32.gmra.mxu0 %v6191_v9  ;;  %v1110_v9 = vld [vmem:[%s8361_s1 + $0xcd8] sm:$0xff] }
 0x19f   :  { %v2099_v23 = vpop.f32.mrf.mxu2  ;;  %2660 = vmatpush.msrb.mxu0 %v800_v61  ;;  %v798_v61 = vld [vmem:[%s8361_s1 + $0x318] sm:$0xff]  ;;  %2770 = vmatpush.msra.mxu3 %v922_v27  ;;  %v2024_v27 = vadd.f32 %v6188_v22, %v6177_v11  ;;  %v3716_v22 = vld [vmem:[%s8362_s0 + $0x108] sm:$0xfc] }
 0x1a0   :  { %v2100_v31 = vadd.f32 %v2099_v23, %v2059_v35  ;;  %2546 = vmatmul.f32.gmra.mxu1 %v3767_v30  ;;  %v2021_v35 = vadd.f32 %v6115_v55, %v6104_v3  ;;  %v6497_v30 = vsel %vm236_vm1, %v588_v47, %v589_v52  ;;  %v3706_v3 = vld [vmem:[%s8362_s0 + $0x1f8] sm:$0xfc]  ;;  %v3711_v55 = vld [vmem:[%s8362_s0 + $0x220] sm:$0x3]  ;;  %v3702_v47 = vld [vmem:[%s8362_s0 + $0xe8] sm:$0x3] }
 0x1a1   :  { %v2140_v14 = vpop.f32.mrf.mxu3  ;;  %8553 = vst [vmem:[#allocation63_spill] sm:$0xff] %v6497_v30  ;;  %v832_v52 = vld [vmem:[%s8361_s1 + $0x428] sm:$0xff]  ;;  %2661 = vmatpush.msrb.mxu0 %v798_v61  ;;  %v3721_v61 = vld [vmem:[%s8362_s0 + $0x130] sm:$0x3]  ;;  %v668_v40 = vrot.slane %v3716_v22, 2  ;;  %v986_v22 = vld [vmem:[%s8361_s1 + $0x8f8] sm:$0xff] }
 0x1a2   :  { %v6483_v19 = vadd.f32 %v2140_v14, %v2100_v31  ;;  %v3697_v31 = vld [vmem:[%s8362_s0 + $0xc0] sm:$0xfc]  ;;  %v600_v14 = vrot.slane %v3705_v4, 2  ;;  %2701 = vmatpush.msrb.mxu1 %v832_v52  ;;  %v2062_v2 = vadd.f32 %v6142_v15, %v2021_v35  ;;  %v604_v4 = vrot.slane %v3711_v55, 2  ;;  %v3768_v35 = vld [vmem:[%s8362_s0 + $0x190] sm:$0xff] }
 0x1a3   :  { %v6494_v23 = vpop.f32.mrf.mxu0  ;;  %v591_v10 = vrot.slane %v3697_v31, 2  ;;  %v592_v52 = vrot.slane %v3702_v47, 2  ;;  %v3720_v47 = vld [vmem:[%s8362_s0 + $0x128] sm:$0x3] }
 0x1a4   :  { %2429 = vmatmul.f32.gmra.mxu2 %v6476_v1  ;;  %v603_v1 = vrot.slane %v3706_v3, 2  ;;  %v6539_v55 = vsel %vm236_vm1, %v600_v14, %v601_v21  ;;  %2702 = vmatpush.msrb.mxu1 %v830_v63  ;;  %v796_v21 = vld [vmem:[%s8361_s1 + $0x308] sm:$0xff]  ;;  %v666_v63 = vrot.slane %v3720_v47, 2 }
 0x1a5   :  { %v6518_v44 = vpop.f32.mrf.mxu1  ;;  %8554 = vst [vmem:[#allocation64_spill] sm:$0xff] %v6539_v55  ;;  %v920_v14 = vld [vmem:[%s8361_s1 + $0x6e8] sm:$0xff]  ;;  %v6563_v11 = vsel %vm236_vm1, %v591_v10, %v592_v52  ;;  %2662 = vmatpush.msrb.mxu0 %v796_v21  ;;  %v886_v10 = vld [vmem:[%s8361_s1 + $0x5d8] sm:$0xff] }
 0x1a6   :  { %2470 = vmatmul.f32.gmra.mxu3 %v6497_v30  ;;  %2508 = vmatmul.f32.gmra.mxu0 %v6258_v7  ;;  %v888_v30 = vld [vmem:[%s8361_s1 + $0x5e8] sm:$0xff]  ;;  %8556 = vst [vmem:[#allocation66_spill] sm:$0xff] %v6563_v11  ;;  %v918_v21 = vld [vmem:[%s8361_s1 + $0x6d8] sm:$0xff] }
 0x1a7   :  { %v2102_v17 = vpop.f32.mrf.mxu2  ;;  %2730 = vmatpush.msra.mxu2 %v888_v30  ;;  %v6560_v30 = vsel %vm236_vm1, %v603_v1, %v604_v4  ;;  %2771 = vmatpush.msra.mxu3 %v920_v14  ;;  %v3712_v1 = vld [vmem:[%s8362_s0 + $0x228] sm:$0x3]  ;;  %v954_v14 = vld [vmem:[%s8361_s1 + $0x7f8] sm:$0xff] }
 0x1a8   :  { %v2103_v15 = vadd.f32 %v2102_v17, %v2062_v2  ;;  %2549 = vmatmul.f32.gmra.mxu1 %v3768_v35  ;;  %v3715_v17 = vld [vmem:[%s8362_s0 + $0x100] sm:$0xfc]  ;;  %8555 = vst [vmem:[#allocation65_spill] sm:$0xff] %v6560_v30  ;;  %v828_v4 = vld [vmem:[%s8361_s1 + $0x408] sm:$0xff]  ;;  %2811 = vmatpush.msra.mxu0 %v954_v14 }
 0x1a9   :  { %v2143_v3 = vpop.f32.mrf.mxu3  ;;  %v665_v35 = vrot.slane %v3715_v17, 2  ;;  %2703 = vmatpush.msrb.mxu1 %v828_v4  ;;  %2731 = vmatpush.msra.mxu2 %v886_v10  ;;  %v669_v17 = vrot.slane %v3721_v61, 2  ;;  %v607_v4 = vrot.slane %v3712_v1, 2  ;;  %v884_v10 = vld [vmem:[%s8361_s1 + $0x5c8] sm:$0xff]  ;;  %v2027_v1 = vadd.f32 %v6255_v0, %v6247_v37 }
 0x1aa   :  { %v6546_v31 = vadd.f32 %v2143_v3, %v2103_v15  ;;  %v3707_v15 = vld [vmem:[%s8362_s0 + $0x200] sm:$0xfc]  ;;  %v2065_v3 = vadd.f32 %v6215_v12, %v2024_v27  ;;  %2772 = vmatpush.msra.mxu3 %v918_v21  ;;  %v3730_v21 = vld [vmem:[%s8362_s0 + $0x268] sm:$0x3]  ;;  %v3726_v0 = vld [vmem:[%s8362_s0 + $0x248] sm:$0xfc] }
 0x1ab   :  { %v6557_v2 = vpop.f32.mrf.mxu0  ;;  %v606_v47 = vrot.slane %v3707_v15, 2  ;;  %v6598_v27 = vld [vmem:[%s8362_s0 + $0xa0] sm:$0xff]  ;;  %v6608_v15 = vsel %vm236_vm1, %v665_v35, %v666_v63  ;;  %2732 = vmatpush.msra.mxu2 %v884_v10  ;;  %2852 = vmatpush.msra.mxu1 %v986_v22  ;;  %v916_v35 = vld [vmem:[%s8361_s1 + $0x6c8] sm:$0xff]  ;;  %v6629_v10 = vsel %vm236_vm1, %v668_v40, %v669_v17  ;;  %v3717_v22 = vld [vmem:[%s8362_s0 + $0x110] sm:$0xfc]  ;;  %v683_v7 = vrot.slane %v3726_v0, 2 }
 0x1ac   :  { %2432 = vmatmul.f32.gmra.mxu2 %v6539_v55  ;;  %8557 = vst [vmem:[#allocation67_spill] sm:$0xff] %v6608_v15  ;;  %v952_v63 = vld [vmem:[%s8361_s1 + $0x7e8] sm:$0xff]  ;;  %2773 = vmatpush.msra.mxu3 %v916_v35  ;;  %v3722_v40 = vld [vmem:[%s8362_s0 + $0x138] sm:$0x3]  ;;  %v2068_v35 = vadd.f32 %v6276_v16, %v2027_v1  ;;  %v6667_v1 = vld [vmem:[%s8362_s0 + $0x1e0] sm:$0xff] }
 0x1ad   :  { %v6584_v52 = vpop.f32.mrf.mxu1  ;;  %8558 = vst [vmem:[#allocation68_spill] sm:$0xff] %v6629_v10  ;;  %v6632_v37 = vsel %vm236_vm1, %v606_v47, %v607_v4  ;;  %2812 = vmatpush.msra.mxu0 %v952_v63  ;;  %v882_v17 = vld [vmem:[%s8361_s1 + $0x5b8] sm:$0xff]  ;;  %v984_v47 = vld [vmem:[%s8361_s1 + $0x8e8] sm:$0xff] }
 0x1ae   :  { %2473 = vmatmul.f32.gmra.mxu3 %v6560_v30  ;;  %2511 = vmatmul.f32.gmra.mxu0 %v6563_v11  ;;  %8559 = vst [vmem:[#allocation69_spill] sm:$0xff] %v6632_v37  ;;  %v681_v30 = vrot.slane %v3730_v21, 2  ;;  %v914_v63 = vld [vmem:[%s8361_s1 + $0x6b8] sm:$0xff]  ;;  %v671_v21 = vrot.slane %v3717_v22, 2 }
 0x1af   :  { %v2105_v55 = vpop.f32.mrf.mxu2  ;;  %2733 = vmatpush.msra.mxu2 %v882_v17  ;;  %2853 = vmatpush.msra.mxu1 %v984_v47  ;;  %v672_v17 = vrot.slane %v3722_v40, 2  ;;  %v880_v47 = vld [vmem:[%s8361_s1 + $0x5a8] sm:$0xff]  ;;  %v982_v0 = vld [vmem:[%s8361_s1 + $0x8d8] sm:$0xff] }
 0x1b0   :  { %v2106_v12 = vadd.f32 %v2105_v55, %v2065_v3  ;;  %2552 = vmatmul.f32.gmra.mxu1 %v6598_v27  ;;  %v3725_v55 = vld [vmem:[%s8362_s0 + $0x240] sm:$0xfc]  ;;  %2774 = vmatpush.msra.mxu3 %v914_v63  ;;  %v912_v40 = vld [vmem:[%s8361_s1 + $0x6a8] sm:$0xff] }
 0x1b1   :  { %v2146_v61 = vpop.f32.mrf.mxu3  ;;  %2734 = vmatpush.msra.mxu2 %v880_v47  ;;  %2854 = vmatpush.msra.mxu1 %v982_v0  ;;  %v946_v47 = vld [vmem:[%s8361_s1 + $0x7b8] sm:$0xff] }
 0x1b2   :  { %v6615_v3 = vadd.f32 %v2146_v61, %v2106_v12  ;;  %v3731_v12 = vld [vmem:[%s8362_s0 + $0x270] sm:$0x3]  ;;  %v680_v61 = vrot.slane %v3725_v55, 2  ;;  %2775 = vmatpush.msra.mxu3 %v912_v40 }
 0x1b3   :  { %v6626_v14 = vpop.f32.mrf.mxu0  ;;  %v684_v55 = vrot.slane %v3731_v12, 2 }
 0x1b4   :  { %2435 = vmatmul.f32.gmra.mxu2 %v6608_v15  ;;  %v950_v15 = vld [vmem:[%s8361_s1 + $0x7d8] sm:$0xff]  ;;  %v6677_v22 = vsel %vm236_vm1, %v680_v61, %v681_v30  ;;  %v6695_v61 = vsel %vm236_vm1, %v671_v21, %v672_v17 }
 0x1b5   :  { %v6653_v4 = vpop.f32.mrf.mxu1  ;;  %2813 = vmatpush.msra.mxu0 %v950_v15  ;;  %8560 = vst [vmem:[#allocation70_spill] sm:$0xff] %v6677_v22  ;;  %v6692_v30 = vsel %vm236_vm1, %v683_v7, %v684_v55  ;;  %v878_v7 = vld [vmem:[%s8361_s1 + $0x598] sm:$0xff]  ;;  %v980_v55 = vld [vmem:[%s8361_s1 + $0x8c8] sm:$0xff] }
 0x1b6   :  { %2476 = vmatmul.f32.gmra.mxu3 %v6629_v10  ;;  %2514 = vmatmul.f32.gmra.mxu0 %v6632_v37  ;;  %8561 = vst [vmem:[#allocation71_spill] sm:$0xff] %v6692_v30  ;;  %v7072_v37 = vld [vmem:[%s8362_s0 + $0x200] sm:$0xff] }
 0x1b7   :  { %v2108_v11 = vpop.f32.mrf.mxu2  ;;  %8562 = vst [vmem:[#allocation72_spill] sm:$0xff] %v6695_v61  ;;  %2735 = vmatpush.msra.mxu2 %v878_v7  ;;  %2855 = vmatpush.msra.mxu1 %v980_v55  ;;  %v978_v7 = vld [vmem:[%s8361_s1 + $0x8b8] sm:$0xff] }
 0x1b8   :  { %v2109_v16 = vadd.f32 %v2108_v11, %v2068_v35  ;;  %2555 = vmatmul.f32.gmra.mxu1 %v6667_v1  ;;  %v2030_v11 = vadd.f32 %v6313_v25, %v6305_v45  ;;  %v948_v35 = vld [vmem:[%s8361_s1 + $0x7c8] sm:$0xff]  ;;  %v3727_v45 = vld [vmem:[%s8362_s0 + $0x250] sm:$0xfc]  ;;  %v3732_v25 = vld [vmem:[%s8362_s0 + $0x278] sm:$0x3]  ;;  %8564 = vst [vmem:[#allocation74_spill] sm:$0xff] %v7072_v37 }
 0x1b9   :  { %v2149_v12 = vpop.f32.mrf.mxu3  ;;  %2814 = vmatpush.msra.mxu0 %v948_v35  ;;  %v687_v40 = vrot.slane %v3732_v25, 2  ;;  %2856 = vmatpush.msra.mxu1 %v978_v7  ;;  %v2173_v25 = vadd.f32 %v6356_v33, %v6348_v50  ;;  %v3772_v50 = vld [vmem:[%s8362_s0 + $0x8] sm:$0xff]  ;;  %v874_v33 = vld [vmem:[%s8361_s1 + $0x578] sm:$0xff] }
 0x1ba   :  { %v6681_v15 = vadd.f32 %v2149_v12, %v2109_v16  ;;  %v2071_v17 = vadd.f32 %v6325_v48, %v2030_v11  ;;  %v910_v16 = vld [vmem:[%s8361_s1 + $0x698] sm:$0xff]  ;;  %v686_v12 = vrot.slane %v3727_v45, 2  ;;  %v6724_v48 = vld [vmem:[%s8362_s0 + $0xf0] sm:$0xff]  ;;  %v876_v11 = vld [vmem:[%s8361_s1 + $0x588] sm:$0xff] }
 0x1bb   :  { %v6689_v63 = vpop.f32.mrf.mxu0  ;;  %2776 = vmatpush.msra.mxu3 %v910_v16  ;;  %2815 = vmatpush.msra.mxu0 %v946_v47  ;;  %v944_v16 = vld [vmem:[%s8361_s1 + $0x7a8] sm:$0xff]  ;;  %v906_v7 = vld [vmem:[%s8361_s1 + $0x678] sm:$0xff] }
 0x1bc   :  { %2438 = vmatmul.f32.gmra.mxu2 %v6677_v22  ;;  %v7038_v22 = vld [vmem:[%s8362_s0 + $0xf8] sm:$0xff] }
 0x1bd   :  { %v6710_v21 = vpop.f32.mrf.mxu1  ;;  %2736 = vmatpush.msra.mxu2 %v876_v11  ;;  %2816 = vmatpush.msra.mxu0 %v944_v16 }
 0x1be   :  { %2479 = vmatmul.f32.gmra.mxu3 %v6692_v30  ;;  %2517 = vmatmul.f32.gmra.mxu0 %v6695_v61  ;;  %v1012_v30 = vld [vmem:[%s8361_s1 + $0x9c8] sm:$0xff]  ;;  %v1114_v61 = vld [vmem:[%s8361_s1 + $0xcf8] sm:$0xff] }
 0x1bf   :  { %v2111_v0 = vpop.f32.mrf.mxu2  ;;  %2737 = vmatpush.msra.mxu2 %v874_v33 }
 0x1c0   :  { %v2112_v35 = vadd.f32 %v2111_v0, %v2071_v17  ;;  %2558 = vmatmul.f32.gmra.mxu1 %v6724_v48  ;;  %v908_v17 = vld [vmem:[%s8361_s1 + $0x688] sm:$0xff]  ;;  %v6746_v0 = vsel %vm236_vm1, %v686_v12, %v687_v40  ;;  %v2214_v12 = vadd.f32 %v6365_v60, %v2173_v25  ;;  %v3773_v40 = vld [vmem:[%s8362_s0 + $0x10] sm:$0xff] }
 0x1c1   :  { %v2152_v45 = vpop.f32.mrf.mxu3  ;;  %8563 = vst [vmem:[#allocation73_spill] sm:$0xff] %v6746_v0  ;;  %2777 = vmatpush.msra.mxu3 %v908_v17  ;;  %v6773_v60 = vld [vmem:[%s8362_s0 + $0x230] sm:$0xff]  ;;  %v872_v25 = vld [vmem:[%s8361_s1 + $0x568] sm:$0xff] }
 0x1c2   :  { %v6735_v55 = vadd.f32 %v2152_v45, %v2112_v35  ;;  %v976_v35 = vld [vmem:[%s8361_s1 + $0x8a8] sm:$0xff]  ;;  %v942_v45 = vld [vmem:[%s8361_s1 + $0x798] sm:$0xff]  ;;  %2738 = vmatpush.msra.mxu2 %v872_v25 }
 0x1c3   :  { %v6743_v47 = vpop.f32.mrf.mxu0  ;;  %2857 = vmatpush.msra.mxu1 %v976_v35  ;;  %2778 = vmatpush.msra.mxu3 %v906_v7  ;;  %v2176_v35 = vadd.f32 %v6395_v38, %v6387_v8  ;;  %v940_v7 = vld [vmem:[%s8361_s1 + $0x788] sm:$0xff]  ;;  %v870_v8 = vld [vmem:[%s8361_s1 + $0x558] sm:$0xff] }
 0x1c4   :  { %2581 = vmatmul.f32.vlgmr.msrb.gmra.mxu2 %v3772_v50  ;;  %2817 = vmatpush.msra.mxu0 %v942_v45  ;;  %v974_v50 = vld [vmem:[%s8361_s1 + $0x898] sm:$0xff]  ;;  %v972_v38 = vld [vmem:[%s8361_s1 + $0x888] sm:$0xff] }
 0x1c5   :  { %v6757_v11 = vpop.f32.mrf.mxu1  ;;  %2858 = vmatpush.msra.mxu1 %v974_v50  ;;  %2739 = vmatpush.msra.mxu2 %v870_v8  ;;  %v2217_v25 = vadd.f32 %v6404_v5, %v2176_v35  ;;  %v3776_v50 = vld [vmem:[%s8362_s0 + $0x150] sm:$0xff]  ;;  %v3778_v35 = vld [vmem:[%s8362_s0 + $0x20] sm:$0xff]  ;;  %v868_v8 = vld [vmem:[%s8361_s1 + $0x548] sm:$0xff] }
 0x1c6   :  { %2520 = vmatmul.f32.gmra.mxu0 %v6746_v0  ;;  %2622 = vmatmul.f32.vlgmr.msrb.gmra.mxu3 %v3773_v40  ;;  %v904_v40 = vld [vmem:[%s8361_s1 + $0x668] sm:$0xff] }
 0x1c7   :  { %v2254_v17 = vpop.f32.mrf.mxu2  ;;  %2779 = vmatpush.msra.mxu3 %v904_v40  ;;  %2818 = vmatpush.msra.mxu0 %v940_v7  ;;  %v902_v40 = vld [vmem:[%s8361_s1 + $0x658] sm:$0xff] }
 0x1c8   :  { %v2255_v16 = vadd.f32 %v2254_v17, %v2214_v12  ;;  %2561 = vmatmul.f32.gmra.mxu1 %v6773_v60  ;;  %v3775_v17 = vld [vmem:[%s8362_s0 + $0x148] sm:$0xff]  ;;  %v938_v7 = vld [vmem:[%s8361_s1 + $0x778] sm:$0xff]  ;;  %2740 = vmatpush.msra.mxu2 %v868_v8 }
 0x1c9   :  { %v2295_v33 = vpop.f32.mrf.mxu3  ;;  %2859 = vmatpush.msra.mxu1 %v972_v38  ;;  %2780 = vmatpush.msra.mxu3 %v902_v40  ;;  %v970_v38 = vld [vmem:[%s8361_s1 + $0x878] sm:$0xff]  ;;  %v900_v40 = vld [vmem:[%s8361_s1 + $0x648] sm:$0xff] }
 0x1ca   :  { %v6784_v12 = vadd.f32 %v2295_v33, %v2255_v16  ;;  %v3777_v33 = vld [vmem:[%s8362_s0 + $0x18] sm:$0xff]  ;;  %2819 = vmatpush.msra.mxu0 %v938_v7  ;;  %v936_v7 = vld [vmem:[%s8361_s1 + $0x768] sm:$0xff] }
 0x1cb   :  { %v6792_v45 = vpop.f32.mrf.mxu0  ;;  %2860 = vmatpush.msra.mxu1 %v970_v38  ;;  %2781 = vmatpush.msra.mxu3 %v900_v40  ;;  %v3780_v38 = vld [vmem:[%s8362_s0 + $0x60] sm:$0xff]  ;;  %v898_v40 = vld [vmem:[%s8361_s1 + $0x638] sm:$0xff] }
 0x1cc   :  { %2584 = vmatmul.f32.gmra.mxu2 %v3775_v17  ;;  %2820 = vmatpush.msra.mxu0 %v936_v7  ;;  %v934_v7 = vld [vmem:[%s8361_s1 + $0x758] sm:$0xff] }
 0x1cd   :  { %v6803_v16 = vpop.f32.mrf.mxu1  ;;  %2782 = vmatpush.msra.mxu3 %v898_v40  ;;  %v896_v40 = vld [vmem:[%s8361_s1 + $0x628] sm:$0xff] }
 0x1ce   :  { %2625 = vmatmul.f32.gmra.mxu3 %v3776_v50  ;;  %2663 = vmatmul.f32.vlgmr.msrb.gmra.mxu0 %v3777_v33  ;;  %v2179_v33 = vadd.f32 %v6440_v41, %v6429_v24  ;;  %v866_v24 = vld [vmem:[%s8361_s1 + $0x538] sm:$0xff]  ;;  %v968_v41 = vld [vmem:[%s8361_s1 + $0x868] sm:$0xff] }
 0x1cf   :  { %v2257_v17 = vpop.f32.mrf.mxu2  ;;  %2741 = vmatpush.msra.mxu2 %v866_v24  ;;  %2861 = vmatpush.msra.mxu1 %v968_v41  ;;  %v864_v24 = vld [vmem:[%s8361_s1 + $0x528] sm:$0xff]  ;;  %v966_v41 = vld [vmem:[%s8361_s1 + $0x858] sm:$0xff] }
 0x1d0   :  { %v2258_v5 = vadd.f32 %v2257_v17, %v2217_v25  ;;  %2704 = vmatmul.f32.vlgmr.msrb.gmra.mxu1 %v3778_v35  ;;  %v3779_v35 = vld [vmem:[%s8362_s0 + $0x58] sm:$0xff]  ;;  %v2220_v8 = vadd.f32 %v6455_v13, %v2179_v33  ;;  %2821 = vmatpush.msra.mxu0 %v934_v7  ;;  %v3782_v33 = vld [vmem:[%s8362_s0 + $0x160] sm:$0xff]  ;;  %v932_v7 = vld [vmem:[%s8361_s1 + $0x748] sm:$0xff] }
 0x1d1   :  { %v2298_v50 = vpop.f32.mrf.mxu3  ;;  %2742 = vmatpush.msra.mxu2 %v864_v24  ;;  %2862 = vmatpush.msra.mxu1 %v966_v41  ;;  %v3784_v41 = vld [vmem:[%s8362_s0 + $0x1a0] sm:$0xff] }
 0x1d2   :  { %v6829_v25 = vadd.f32 %v2298_v50, %v2258_v5  ;;  %v3781_v50 = vld [vmem:[%s8362_s0 + $0x158] sm:$0xff]  ;;  %2783 = vmatpush.msra.mxu3 %v896_v40  ;;  %2822 = vmatpush.msra.mxu0 %v932_v7 }
 0x1d3   :  { %v6837_v17 = vpop.f32.mrf.mxu0  ;;  %v894_v40 = vld [vmem:[%s8361_s1 + $0x618] sm:$0xff] }
 0x1d4   :  { %2587 = vmatmul.f32.gmra.mxu2 %v3779_v35  ;;  %v930_v7 = vld [vmem:[%s8361_s1 + $0x738] sm:$0xff]  ;;  %2784 = vmatpush.msra.mxu3 %v894_v40  ;;  %v892_v40 = vld [vmem:[%s8361_s1 + $0x608] sm:$0xff] }
 0x1d5   :  { %v6848_v5 = vpop.f32.mrf.mxu1  ;;  %2823 = vmatpush.msra.mxu0 %v930_v7  ;;  %v928_v7 = vld [vmem:[%s8361_s1 + $0x728] sm:$0xff] }
 0x1d6   :  { %2628 = vmatmul.f32.gmra.mxu3 %v3780_v38  ;;  %2666 = vmatmul.f32.gmra.mxu0 %v3781_v50  ;;  %v2182_v50 = vadd.f32 %v6494_v23, %v6483_v19  ;;  %v862_v19 = vld [vmem:[%s8361_s1 + $0x518] sm:$0xff]  ;;  %v964_v23 = vld [vmem:[%s8361_s1 + $0x848] sm:$0xff] }
 0x1d7   :  { %v2260_v35 = vpop.f32.mrf.mxu2  ;;  %2743 = vmatpush.msra.mxu2 %v862_v19  ;;  %2863 = vmatpush.msra.mxu1 %v964_v23  ;;  %v860_v19 = vld [vmem:[%s8361_s1 + $0x508] sm:$0xff]  ;;  %v962_v23 = vld [vmem:[%s8361_s1 + $0x838] sm:$0xff] }
 0x1d8   :  { %v2261_v13 = vadd.f32 %v2260_v35, %v2220_v8  ;;  %2707 = vmatmul.f32.gmra.mxu1 %v3782_v33  ;;  %v3783_v33 = vld [vmem:[%s8362_s0 + $0x198] sm:$0xff]  ;;  %v2223_v24 = vadd.f32 %v6518_v44, %v2182_v50  ;;  %v3786_v50 = vld [vmem:[%s8362_s0 + $0x70] sm:$0xff]  ;;  %2785 = vmatpush.msra.mxu3 %v892_v40 }
 0x1d9   :  { %v2301_v38 = vpop.f32.mrf.mxu3  ;;  %2744 = vmatpush.msra.mxu2 %v860_v19  ;;  %2864 = vmatpush.msra.mxu1 %v962_v23  ;;  %v6947_v23 = vld [vmem:[%s8362_s0 + $0xb0] sm:$0xff]  ;;  %v926_v40 = vld [vmem:[%s8361_s1 + $0x718] sm:$0xff] }
 0x1da   :  { %v6874_v8 = vadd.f32 %v2301_v38, %v2261_v13  ;;  %v3785_v38 = vld [vmem:[%s8362_s0 + $0x68] sm:$0xff]  ;;  %2824 = vmatpush.msra.mxu0 %v928_v7 }
 0x1db   :  { %v6882_v35 = vpop.f32.mrf.mxu0 }
 0x1dc   :  { %2590 = vmatmul.f32.gmra.mxu2 %v3783_v33  ;;  %2825 = vmatpush.msra.mxu0 %v926_v40  ;;  %v2188_v40 = vadd.f32 %v6626_v14, %v6615_v3  ;;  %v956_v3 = vld [vmem:[%s8361_s1 + $0x808] sm:$0xff]  ;;  %v1014_v14 = vld [vmem:[%s8361_s1 + $0x9d8] sm:$0xff] }
 0x1dd   :  { %v6893_v13 = vpop.f32.mrf.mxu1 }
 0x1de   :  { %2631 = vmatmul.f32.gmra.mxu3 %v3784_v41  ;;  %2669 = vmatmul.f32.gmra.mxu0 %v3785_v38  ;;  %v2185_v38 = vadd.f32 %v6557_v2, %v6546_v31  ;;  %v960_v31 = vld [vmem:[%s8361_s1 + $0x828] sm:$0xff]  ;;  %v1018_v2 = vld [vmem:[%s8361_s1 + $0x9f8] sm:$0xff] }
 0x1df   :  { %v2263_v33 = vpop.f32.mrf.mxu2  ;;  %2865 = vmatpush.msra.mxu1 %v960_v31  ;;  %2893 = vmatpush.msrb.mxu2 %v1018_v2  ;;  %v3790_v31 = vld [vmem:[%s8362_s0 + $0x1b0] sm:$0xff]  ;;  %v958_v2 = vld [vmem:[%s8361_s1 + $0x818] sm:$0xff] }
 0x1e0   :  { %v2264_v44 = vadd.f32 %v2263_v33, %v2223_v24  ;;  %2710 = vmatmul.f32.gmra.mxu1 %v3786_v50  ;;  %v6932_v50 = vld [vmem:[%s8362_s0 + $0xa8] sm:$0xff]  ;;  %v2226_v19 = vadd.f32 %v6584_v52, %v2185_v38  ;;  %v1050_v52 = vld [vmem:[%s8361_s1 + $0xaf8] sm:$0xff] }
 0x1e1   :  { %v2304_v41 = vpop.f32.mrf.mxu3  ;;  %2934 = vmatpush.msrb.mxu3 %v1050_v52  ;;  %2866 = vmatpush.msra.mxu1 %v958_v2  ;;  %v924_v52 = vld [vmem:[%s8361_s1 + $0x708] sm:$0xff] }
 0x1e2   :  { %v6919_v24 = vadd.f32 %v2304_v41, %v2264_v44  ;;  %v3789_v41 = vld [vmem:[%s8362_s0 + $0x1a8] sm:$0xff]  ;;  %2826 = vmatpush.msra.mxu0 %v924_v52  ;;  %v7004_v52 = vld [vmem:[%s8362_s0 + $0xb8] sm:$0xff] }
 0x1e3   :  { %v6927_v33 = vpop.f32.mrf.mxu0  ;;  %v6983_v2 = vld [vmem:[%s8362_s0 + $0x1e8] sm:$0xff]  ;;  %2867 = vmatpush.msra.mxu1 %v956_v3 }
 0x1e4   :  { %2593 = vmatmul.f32.gmra.mxu2 %v6932_v50 }
 0x1e5   :  { %v6941_v44 = vpop.f32.mrf.mxu1  ;;  %3016 = vmatpush.msrb.mxu1 %v1114_v61 }
 0x1e6   :  { %2634 = vmatmul.f32.gmra.mxu3 %v6947_v23  ;;  %2672 = vmatmul.f32.gmra.mxu0 %v3789_v41  ;;  %v1016_v41 = vld [vmem:[%s8361_s1 + $0x9e8] sm:$0xff] }
 0x1e7   :  { %v2266_v38 = vpop.f32.mrf.mxu2  ;;  %2894 = vmatpush.msrb.mxu2 %v1016_v41  ;;  %v6998_v41 = vld [vmem:[%s8362_s0 + $0x1f0] sm:$0xff] }
 0x1e8   :  { %v2267_v7 = vadd.f32 %v2266_v38, %v2226_v19  ;;  %2713 = vmatmul.f32.gmra.mxu1 %v3790_v31  ;;  %v1048_v38 = vld [vmem:[%s8361_s1 + $0xae8] sm:$0xff] }
 0x1e9   :  { %v2307_v0 = vpop.f32.mrf.mxu3  ;;  %2935 = vmatpush.msrb.mxu3 %v1048_v38  ;;  %2895 = vmatpush.msrb.mxu2 %v1014_v14  ;;  %v1046_v38 = vld [vmem:[%s8361_s1 + $0xad8] sm:$0xff]  ;;  %v7016_v14 = vld [vmem:[%s8362_s0 + $0xc0] sm:$0xff] }
 0x1ea   :  { %v6970_v19 = vadd.f32 %v2307_v0, %v2267_v7  ;;  %v2229_v7 = vadd.f32 %v6653_v4, %v2188_v40  ;;  %v1082_v4 = vld [vmem:[%s8361_s1 + $0xbf8] sm:$0xff] }
 0x1eb   :  { %v6978_v31 = vpop.f32.mrf.mxu0  ;;  %2936 = vmatpush.msrb.mxu3 %v1046_v38  ;;  %2975 = vmatpush.msrb.mxu0 %v1082_v4  ;;  %v1080_v4 = vld [vmem:[%s8361_s1 + $0xbe8] sm:$0xff] }
 0x1ec   :  { %2596 = vmatmul.f32.gmra.mxu2 %v6983_v2 }
 0x1ed   :  { %v6992_v0 = vpop.f32.mrf.mxu1  ;;  %2896 = vmatpush.msrb.mxu2 %v1012_v30  ;;  %2976 = vmatpush.msrb.mxu0 %v1080_v4  ;;  %v1112_v30 = vld [vmem:[%s8361_s1 + $0xce8] sm:$0xff]  ;;  %v1042_v4 = vld [vmem:[%s8361_s1 + $0xab8] sm:$0xff] }
 0x1ee   :  { %2637 = vmatmul.f32.gmra.mxu3 %v6998_v41  ;;  %2675 = vmatmul.f32.gmra.mxu0 %v7004_v52 }
 0x1ef   :  { %v2269_v40 = vpop.f32.mrf.mxu2  ;;  %3017 = vmatpush.msrb.mxu1 %v1112_v30 }
 0x1f0   :  { %v2270_v3 = vadd.f32 %v2269_v40, %v2229_v7  ;;  %2716 = vmatmul.f32.gmra.mxu1 %v7016_v14  ;;  %v1044_v7 = vld [vmem:[%s8361_s1 + $0xac8] sm:$0xff] }
 0x1f1   :  { %v2310_v10 = vpop.f32.mrf.mxu3  ;;  %2937 = vmatpush.msrb.mxu3 %v1044_v7  ;;  %v7058_v7 = vld [vmem:[%s8362_s0 + $0x1f8] sm:$0xff]  ;;  %3018 = vmatpush.msrb.mxu1 %v1110_v9 }
 0x1f2   :  { %v7025_v38 = vadd.f32 %v2310_v10, %v2270_v3  ;;  %v1010_v10 = vld [vmem:[%s8361_s1 + $0x9b8] sm:$0xff]  ;;  %v7052_v3 = vld [vmem:[%s8362_s0 + $0x100] sm:$0xff] }
 0x1f3   :  { %v7033_v40 = vpop.f32.mrf.mxu0  ;;  %2897 = vmatpush.msrb.mxu2 %v1010_v10  ;;  %v1078_v10 = vld [vmem:[%s8361_s1 + $0xbd8] sm:$0xff]  ;;  %2938 = vmatpush.msrb.mxu3 %v1042_v4  ;;  %v1040_v4 = vld [vmem:[%s8361_s1 + $0xaa8] sm:$0xff] }
 0x1f4   :  { %2599 = vmatmul.f32.gmra.mxu2 %v7038_v22  ;;  %2977 = vmatpush.msrb.mxu0 %v1078_v10  ;;  %v1076_v10 = vld [vmem:[%s8361_s1 + $0xbc8] sm:$0xff] }
 0x1f5   :  { %v7047_v61 = vpop.f32.mrf.mxu1  ;;  %2898 = vmatpush.msrb.mxu2 %v1008_v54  ;;  %2939 = vmatpush.msrb.mxu3 %v1040_v4  ;;  %v7102_v54 = vld [vmem:[%s8362_s0 + $0x240] sm:$0xff]  ;;  %v7108_v4 = vld [vmem:[%s8362_s0 + $0x108] sm:$0xff] }
 0x1f6   :  { %2640 = vmatmul.f32.gmra.mxu3 %v7052_v3  ;;  %2678 = vmatmul.f32.gmra.mxu0 %v7058_v7 }
 0x1f7   :  { %v7067_v30 = vpop.f32.mrf.mxu2  ;;  %2978 = vmatpush.msrb.mxu0 %v1076_v10  ;;  %v1006_v10 = vld [vmem:[%s8361_s1 + $0x998] sm:$0xff]  ;;  %3019 = vmatpush.msrb.mxu1 %v1108_v34 }
 0x1f8   :  { %2719 = vmatmul.f32.gmra.mxu1 %v7072_v37  ;;  %2899 = vmatpush.msrb.mxu2 %v1006_v10  ;;  %v1106_v34 = vld [vmem:[%s8361_s1 + $0xcb8] sm:$0xff] }
 0x1f9   :  { %v7081_v42 = vpop.f32.mrf.mxu3  ;;  %2940 = vmatpush.msrb.mxu3 %v1038_v36  ;;  %2979 = vmatpush.msrb.mxu0 %v1074_v26  ;;  %v1072_v36 = vld [vmem:[%s8361_s1 + $0xba8] sm:$0xff]  ;;  %v998_v37 = vld [vmem:[%s8361_s1 + $0x958] sm:$0xff] }
 0x1fa   :  { %2900 = vmatpush.msrb.mxu2 %v1004_v28  ;;  %3020 = vmatpush.msrb.mxu1 %v1106_v34  ;;  %v7153_v26 = vld [vmem:[%s8362_s0 + $0x248] sm:$0xff]  ;;  %v1002_v28 = vld [vmem:[%s8361_s1 + $0x978] sm:$0xff] }
 0x1fb   :  { %v7089_v32 = vpop.f32.mrf.mxu0  ;;  %2941 = vmatpush.msrb.mxu3 %v1036_v58  ;;  %2980 = vmatpush.msrb.mxu0 %v1072_v36  ;;  %v1104_v58 = vld [vmem:[%s8361_s1 + $0xca8] sm:$0xff]  ;;  %v1070_v36 = vld [vmem:[%s8361_s1 + $0xb98] sm:$0xff] }
 0x1fc   :  { %2602 = vmatmul.f32.gmra.mxu2 %v7094_v20  ;;  %3021 = vmatpush.msrb.mxu1 %v1104_v58 }
 0x1fd   :  { %v7097_v9 = vpop.f32.mrf.mxu1  ;;  %2901 = vmatpush.msrb.mxu2 %v1002_v28  ;;  %v1102_v28 = vld [vmem:[%s8361_s1 + $0xc98] sm:$0xff]  ;;  %2981 = vmatpush.msrb.mxu0 %v1070_v36 }
 0x1fe   :  { %2643 = vmatmul.f32.gmra.mxu3 %v7102_v54  ;;  %2681 = vmatmul.f32.gmra.mxu0 %v7108_v4 }
 0x1ff   :  { %v7120_v29 = vpop.f32.mrf.mxu2  ;;  %2902 = vmatpush.msrb.mxu2 %v1000_v57  ;;  %3022 = vmatpush.msrb.mxu1 %v1102_v28  ;;  %v1100_v57 = vld [vmem:[%s8361_s1 + $0xc88] sm:$0xff]  ;;  %v2337_v28 = vadd.f32 %v6792_v45, %v6784_v12  ;;  %v1098_v12 = vld [vmem:[%s8361_s1 + $0xc78] sm:$0xff] }
 0x200   :  { %2722 = vmatmul.f32.gmra.mxu1 %v7128_v56  ;;  %v1032_v56 = vld [vmem:[%s8361_s1 + $0xa68] sm:$0xff] }
 0x201   :  { %v7137_v10 = vpop.f32.mrf.mxu3  ;;  %2903 = vmatpush.msrb.mxu2 %v998_v37  ;;  %3023 = vmatpush.msrb.mxu1 %v1100_v57  ;;  %v996_v37 = vld [vmem:[%s8361_s1 + $0x948] sm:$0xff] }
 0x202   :  { %v1064_v57 = vld [vmem:[%s8361_s1 + $0xb68] sm:$0xff] }
 0x203   :  { %v7145_v62 = vpop.f32.mrf.mxu0  ;;  %2904 = vmatpush.msrb.mxu2 %v996_v37  ;;  %3024 = vmatpush.msrb.mxu1 %v1098_v12 }
 0x204   :  { %2745 = vmatmul.f32.vlgmr.msra.gmra.mxu2 %v6598_v27  ;;  %v1034_v27 = vld [vmem:[%s8361_s1 + $0xa78] sm:$0xff] }
 0x205   :  { %v7148_v39 = vpop.f32.mrf.mxu1  ;;  %2942 = vmatpush.msrb.mxu3 %v1034_v27  ;;  %v1068_v27 = vld [vmem:[%s8361_s1 + $0xb88] sm:$0xff] }
 0x206   :  { %2684 = vmatmul.f32.gmra.mxu0 %v7153_v26  ;;  %2786 = vmatmul.f32.vlgmr.msra.gmra.mxu3 %v6932_v50  ;;  %v7172_v50 = vld [vmem:[%s8362_s0 + $0x250] sm:$0xff] }
 0x207   :  { %v2418_v34 = vpop.f32.mrf.mxu2  ;;  %8566 = vst [vmem:[#allocation76_spill] sm:$0xff] %v7172_v50  ;;  %2943 = vmatpush.msrb.mxu3 %v1032_v56  ;;  %2982 = vmatpush.msrb.mxu0 %v1068_v27  ;;  %v1030_v56 = vld [vmem:[%s8361_s1 + $0xa58] sm:$0xff] }
 0x208   :  { %2725 = vmatmul.f32.gmra.mxu1 %v7172_v50 }
 0x209   :  { %v2459_v58 = vpop.f32.mrf.mxu3  ;;  %2944 = vmatpush.msrb.mxu3 %v1030_v56 }
 0x20b   :  { %v2500_v50 = vpop.f32.mrf.mxu0 }
 0x20c   :  { %2748 = vmatmul.f32.gmra.mxu2 %v6667_v1  ;;  %v1066_v1 = vld [vmem:[%s8361_s1 + $0xb78] sm:$0xff] }
 0x20d   :  { %v7194_v36 = vpop.f32.mrf.mxu1  ;;  %2983 = vmatpush.msrb.mxu0 %v1066_v1 }
 0x20e   :  { %2789 = vmatmul.f32.gmra.mxu3 %v6983_v2  ;;  %2827 = vmatmul.f32.vlgmr.msra.gmra.mxu0 %v6947_v23  ;;  %v2378_v23 = vadd.f32 %v6803_v16, %v2337_v28  ;;  %v2343_v2 = vadd.f32 %v6882_v35, %v6874_v8  ;;  %v994_v16 = vld [vmem:[%s8361_s1 + $0x938] sm:$0xff]  ;;  %v1096_v8 = vld [vmem:[%s8361_s1 + $0xc68] sm:$0xff]  ;;  %v2340_v28 = vadd.f32 %v6837_v17, %v6829_v25 }
 0x20f   :  { %v2421_v27 = vpop.f32.mrf.mxu2  ;;  %2984 = vmatpush.msrb.mxu0 %v1064_v57  ;;  %2905 = vmatpush.msrb.mxu2 %v994_v16  ;;  %v1094_v25 = vld [vmem:[%s8361_s1 + $0xc58] sm:$0xff] }
 0x210   :  { %2868 = vmatmul.f32.vlgmr.msra.gmra.mxu1 %v7004_v52  ;;  %v1028_v52 = vld [vmem:[%s8361_s1 + $0xa48] sm:$0xff]  ;;  %v2419_v1 = vadd.f32 %v2418_v34, %v2378_v23  ;;  %v2384_v37 = vadd.f32 %v6893_v13, %v2343_v2  ;;  %v1062_v34 = vld [vmem:[%s8361_s1 + $0xb58] sm:$0xff]  ;;  %v2381_v13 = vadd.f32 %v6848_v5, %v2340_v28 }
 0x211   :  { %v2462_v45 = vpop.f32.mrf.mxu3  ;;  %2945 = vmatpush.msrb.mxu3 %v1028_v52  ;;  %3025 = vmatpush.msrb.mxu1 %v1096_v8  ;;  %v1060_v2 = vld [vmem:[%s8361_s1 + $0xb48] sm:$0xff] }
 0x212   :  { %2985 = vmatpush.msrb.mxu0 %v1062_v34  ;;  %v2460_v23 = vadd.f32 %v2459_v58, %v2419_v1  ;;  %v2422_v16 = vadd.f32 %v2421_v27, %v2381_v13 }
 0x213   :  { %v2503_v56 = vpop.f32.mrf.mxu0  ;;  %3026 = vmatpush.msrb.mxu1 %v1094_v25  ;;  %v1056_v25 = vld [vmem:[%s8361_s1 + $0xb28] sm:$0xff] }
 0x214   :  { %2751 = vmatmul.f32.gmra.mxu2 %v6724_v48  ;;  %v1026_v48 = vld [vmem:[%s8361_s1 + $0xa38] sm:$0xff]  ;;  %2986 = vmatpush.msrb.mxu0 %v1060_v2  ;;  %v7258_v1 = vadd.f32 %v2500_v50, %v2460_v23 }
 0x215   :  { %v7229_v35 = vpop.f32.mrf.mxu1  ;;  %2946 = vmatpush.msrb.mxu3 %v1026_v48 }
 0x216   :  { %2792 = vmatmul.f32.gmra.mxu3 %v7038_v22  ;;  %2830 = vmatmul.f32.gmra.mxu0 %v6998_v41  ;;  %v992_v22 = vld [vmem:[%s8361_s1 + $0x928] sm:$0xff]  ;;  %v2346_v41 = vadd.f32 %v6927_v33, %v6919_v24 }
 0x217   :  { %v2424_v12 = vpop.f32.mrf.mxu2  ;;  %2906 = vmatpush.msrb.mxu2 %v992_v22 }
 0x218   :  { %v2425_v52 = vadd.f32 %v2424_v12, %v2384_v37  ;;  %2871 = vmatmul.f32.gmra.mxu1 %v7058_v7  ;;  %v1024_v7 = vld [vmem:[%s8361_s1 + $0xa28] sm:$0xff]  ;;  %v2387_v24 = vadd.f32 %v6941_v44, %v2346_v41  ;;  %v2463_v37 = vadd.f32 %v2462_v45, %v2422_v16  ;;  %v1022_v44 = vld [vmem:[%s8361_s1 + $0xa18] sm:$0xff] }
 0x219   :  { %v2465_v17 = vpop.f32.mrf.mxu3  ;;  %2947 = vmatpush.msrb.mxu3 %v1024_v7  ;;  %v1020_v12 = vld [vmem:[%s8361_s1 + $0xa08] sm:$0xff] }
 0x21a   :  { %v2466_v58 = vadd.f32 %v2465_v17, %v2425_v52  ;;  %v7282_v45 = vadd.f32 %v2503_v56, %v2463_v37  ;;  %v1090_v56 = vld [vmem:[%s8361_s1 + $0xc38] sm:$0xff]  ;;  %v1088_v41 = vld [vmem:[%s8361_s1 + $0xc28] sm:$0xff] }
 0x21b   :  { %v2506_v57 = vpop.f32.mrf.mxu0  ;;  %2948 = vmatpush.msrb.mxu3 %v1022_v44  ;;  %v1142_v37 = vld [vmem:[%s8361_s1 + $0xdd8] sm:$0xff] }
 0x21c   :  { %v7260_v8 = vadd.f32 %v2506_v57, %v2466_v58  ;;  %2754 = vmatmul.f32.gmra.mxu2 %v6773_v60  ;;  %v990_v60 = vld [vmem:[%s8361_s1 + $0x918] sm:$0xff]  ;;  %v2349_v57 = vadd.f32 %v6978_v31, %v6970_v19  ;;  %v1084_v19 = vld [vmem:[%s8361_s1 + $0xc08] sm:$0xff] }
 0x21d   :  { %v7263_v5 = vpop.f32.mrf.mxu1  ;;  %2907 = vmatpush.msrb.mxu2 %v990_v60  ;;  %2949 = vmatpush.msrb.mxu3 %v1020_v12  ;;  %v1054_v58 = vld [vmem:[%s8361_s1 + $0xb18] sm:$0xff] }
 0x21e   :  { %v3549_v33 = vmax.f32 %v7258_v1, %v7260_v8  ;;  %2795 = vmatmul.f32.gmra.mxu3 %v7094_v20  ;;  %2833 = vmatmul.f32.gmra.mxu0 %v7052_v3  ;;  %v988_v20 = vld [vmem:[%s8361_s1 + $0x908] sm:$0xff]  ;;  %v1210_v60 = vld [vmem:[%s8361_s1 + $0xff8] sm:$0xff] }
 0x21f   :  { %v2427_v28 = vpop.f32.mrf.mxu2  ;;  %2908 = vmatpush.msrb.mxu2 %v988_v20  ;;  %v1164_v1 = vld [vmem:[%s8361_s1 + $0xe88] sm:$0xff] }
 0x220   :  { %v2428_v50 = vadd.f32 %v2427_v28, %v2387_v24  ;;  %2874 = vmatmul.f32.gmra.mxu1 %v7108_v4  ;;  %v2191_v4 = vadd.f32 %v6689_v63, %v6681_v15  ;;  %v1092_v15 = vld [vmem:[%s8361_s1 + $0xc48] sm:$0xff]  ;;  %v1058_v63 = vld [vmem:[%s8361_s1 + $0xb38] sm:$0xff] }
 0x221   :  { %v2468_v27 = vpop.f32.mrf.mxu3  ;;  %3027 = vmatpush.msrb.mxu1 %v1092_v15  ;;  %2987 = vmatpush.msrb.mxu0 %v1058_v63  ;;  %v1144_v24 = vld [vmem:[%s8361_s1 + $0xde8] sm:$0xff]  ;;  %v2352_v63 = vadd.f32 %v7033_v40, %v7025_v38  ;;  %v1206_v38 = vld [vmem:[%s8361_s1 + $0xfd8] sm:$0xff] }
 0x222   :  { %v2469_v48 = vadd.f32 %v2468_v27, %v2428_v50  ;;  %v1174_v50 = vld [vmem:[%s8361_s1 + $0xed8] sm:$0xff]  ;;  %v1200_v8 = vld [vmem:[%s8361_s1 + $0xfa8] sm:$0xff] }
 0x223   :  { %v2509_v3 = vpop.f32.mrf.mxu0  ;;  %3028 = vmatpush.msrb.mxu1 %v1090_v56  ;;  %2988 = vmatpush.msrb.mxu0 %v1056_v25  ;;  %v8567_v25 = vld [vmem:[#allocation3_spill] sm:$0xff] }
 0x224   :  { %v7284_v34 = vadd.f32 %v2509_v3, %v2469_v48  ;;  %2757 = vmatmul.f32.gmra.mxu2 %v4426_v6  ;;  %v2390_v48 = vadd.f32 %v6992_v0, %v2349_v57  ;;  %v1140_v3 = vld [vmem:[%s8361_s1 + $0xdc8] sm:$0xff] }
 0x225   :  { %v7290_v23 = vpop.f32.mrf.mxu1  ;;  %3029 = vmatpush.msrb.mxu1 %v1088_v41  ;;  %2989 = vmatpush.msrb.mxu0 %v1054_v58  ;;  %v8568_v41 = vld [vmem:[#allocation6_spill] sm:$0xff]  ;;  %v1136_v58 = vld [vmem:[%s8361_s1 + $0xda8] sm:$0xff] }
 0x226   :  { %v3551_v52 = vmax.f32 %v7282_v45, %v7284_v34  ;;  %2798 = vmatmul.f32.gmra.mxu3 %v4731_v49  ;;  %2836 = vmatmul.f32.gmra.mxu0 %v7102_v54  ;;  %v2232_v54 = vadd.f32 %v6710_v21, %v2191_v4  ;;  %v2194_v21 = vadd.f32 %v6743_v47, %v6735_v55  ;;  %v1146_v55 = vld [vmem:[%s8361_s1 + $0xdf8] sm:$0xff]  ;;  %v1172_v4 = vld [vmem:[%s8361_s1 + $0xec8] sm:$0xff] }
 0x227   :  { %v2430_v22 = vpop.f32.mrf.mxu2  ;;  %v1178_v47 = vld [vmem:[%s8361_s1 + $0xef8] sm:$0xff]  ;;  %3057 = vmatpush.msra.mxu2 %v1146_v55  ;;  %v1204_v55 = vld [vmem:[%s8361_s1 + $0xfc8] sm:$0xff] }
 0x228   :  { %2877 = vmatmul.f32.gmra.mxu1 %v7153_v26  ;;  %v2273_v13 = vadd.f32 %v7067_v30, %v2232_v54  ;;  %v1086_v30 = vld [vmem:[%s8361_s1 + $0xc18] sm:$0xff]  ;;  %v1052_v26 = vld [vmem:[%s8361_s1 + $0xb08] sm:$0xff]  ;;  %3098 = vmatpush.msra.mxu3 %v1178_v47  ;;  %v2235_v31 = vadd.f32 %v6757_v11, %v2194_v21  ;;  %v2431_v15 = vadd.f32 %v2430_v22, %v2390_v48 }
 0x229   :  { %v7310_v17 = vpop.f32.mrf.mxu3  ;;  %3030 = vmatpush.msrb.mxu1 %v1086_v30  ;;  %2990 = vmatpush.msrb.mxu0 %v1052_v26  ;;  %v1242_v11 = vld [vmem:[%s8361_s1 + $0x10f8] sm:$0xff]  ;;  %v1240_v54 = vld [vmem:[%s8361_s1 + $0x10e8] sm:$0xff]  ;;  %v2393_v26 = vadd.f32 %v7047_v61, %v2352_v63 }
 0x22a   :  { %v2314_v16 = vadd.f32 %v7081_v42, %v2273_v13  ;;  %v1176_v42 = vld [vmem:[%s8361_s1 + $0xee8] sm:$0xff]  ;;  %3058 = vmatpush.msra.mxu2 %v1144_v24  ;;  %v2276_v20 = vadd.f32 %v7120_v29, %v2235_v31  ;;  %v1138_v29 = vld [vmem:[%s8361_s1 + $0xdb8] sm:$0xff]  ;;  %v7424_v24 = vld [vmem:[%s8363_s2] sm:$0x3] }
 0x22b   :  { %v7319_v7 = vpop.f32.mrf.mxu0  ;;  %3099 = vmatpush.msra.mxu3 %v1176_v42  ;;  %3031 = vmatpush.msrb.mxu1 %v1084_v19  ;;  %v1170_v13 = vld [vmem:[%s8361_s1 + $0xeb8] sm:$0xff]  ;;  %v8569_v19 = vld [vmem:[#allocation2_spill] sm:$0xff]  ;;  %v1196_v45 = vld [vmem:[%s8361_s1 + $0xf88] sm:$0xff] }
 0x22c   :  { %2760 = vmatmul.f32.gmra.mxu2 %v4490_v46  ;;  %v2355_v44 = vadd.f32 %v7089_v32, %v2314_v16  ;;  %3139 = vmatpush.msra.mxu0 %v1210_v60  ;;  %v1208_v32 = vld [vmem:[%s8361_s1 + $0xfe8] sm:$0xff]  ;;  %v2317_v22 = vadd.f32 %v7137_v10, %v2276_v20  ;;  %v1238_v21 = vld [vmem:[%s8361_s1 + $0x10d8] sm:$0xff] }
 0x22d   :  { %v7330_v2 = vpop.f32.mrf.mxu1  ;;  %3059 = vmatpush.msra.mxu2 %v1142_v37  ;;  %3100 = vmatpush.msra.mxu3 %v1174_v50  ;;  %v1168_v16 = vld [vmem:[%s8361_s1 + $0xea8] sm:$0xff]  ;;  %v1134_v31 = vld [vmem:[%s8361_s1 + $0xd98] sm:$0xff] }
 0x22e   :  { %2801 = vmatmul.f32.gmra.mxu3 %v4794_v18  ;;  %2839 = vmatmul.f32.gmra.mxu0 %v4743_v53  ;;  %v2396_v56 = vadd.f32 %v7097_v9, %v2355_v44  ;;  %v2472_v9 = vadd.f32 %v7310_v17, %v2431_v15  ;;  %v2358_v57 = vadd.f32 %v7145_v62, %v2317_v22  ;;  %v1236_v37 = vld [vmem:[%s8361_s1 + $0x10c8] sm:$0xff]  ;;  %v8571_v48 = vld [vmem:[#allocation5_spill] sm:$0xff] }
 0x22f   :  { %v7346_v28 = vpop.f32.mrf.mxu2  ;;  %3180 = vmatpush.msra.mxu1 %v1242_v11  ;;  %3060 = vmatpush.msra.mxu2 %v1140_v3  ;;  %v8570_v11 = vld [vmem:[#allocation8_spill] sm:$0xff]  ;;  %v1166_v44 = vld [vmem:[%s8361_s1 + $0xe98] sm:$0xff] }
 0x230   :  { %2880 = vmatmul.f32.gmra.mxu1 %v4812_v59  ;;  %3101 = vmatpush.msra.mxu3 %v1172_v4  ;;  %v2513_v62 = vadd.f32 %v7319_v7, %v2472_v9  ;;  %v2434_v61 = vadd.f32 %v7346_v28, %v2393_v26  ;;  %v2399_v7 = vadd.f32 %v7148_v39, %v2358_v57  ;;  %v3563_v28 = vperm.slane %v7424_v24, 0  ;;  %v1202_v20 = vld [vmem:[%s8361_s1 + $0xfb8] sm:$0xff]  ;;  %v1232_v9 = vld [vmem:[%s8361_s1 + $0x10a8] sm:$0xff] }
 0x231   :  { %v7365_v27 = vpop.f32.mrf.mxu3  ;;  %3140 = vmatpush.msra.mxu0 %v1208_v32  ;;  %3061 = vmatpush.msra.mxu2 %v1138_v29  ;;  %v8572_v32 = vld [vmem:[#allocation10_spill] sm:$0xff]  ;;  %v1132_v29 = vld [vmem:[%s8361_s1 + $0xd88] sm:$0xff]  ;;  %v1234_v63 = vld [vmem:[%s8361_s1 + $0x10b8] sm:$0xff] }
 0x232   :  { %3102 = vmatpush.msra.mxu3 %v1170_v13  ;;  %3181 = vmatpush.msra.mxu1 %v1240_v54  ;;  %v2475_v39 = vadd.f32 %v7365_v27, %v2434_v61  ;;  %v1126_v61 = vld [vmem:[%s8361_s1 + $0xd58] sm:$0xff] }
 0x233   :  { %v7379_v12 = vpop.f32.mrf.mxu0  ;;  %3141 = vmatpush.msra.mxu0 %v1206_v38  ;;  %3062 = vmatpush.msra.mxu2 %v1136_v58  ;;  %v8573_v58 = vld [vmem:[#allocation9_spill] sm:$0xff] }
 0x234   :  { %2763 = vmatmul.f32.gmra.mxu2 %v4554_v51  ;;  %3182 = vmatpush.msra.mxu1 %v1238_v21  ;;  %v2516_v54 = vadd.f32 %v7379_v12, %v2475_v39  ;;  %v1198_v21 = vld [vmem:[%s8361_s1 + $0xf98] sm:$0xff]  ;;  %v8576_v39 = vld [vmem:[#allocation75_spill] sm:$0xff] }
 0x235   :  { %v7388_v0 = vpop.f32.mrf.mxu1  ;;  %3103 = vmatpush.msra.mxu3 %v1168_v16  ;;  %3142 = vmatpush.msra.mxu0 %v1204_v55  ;;  %v1230_v16 = vld [vmem:[%s8361_s1 + $0x1098] sm:$0xff] }
 0x236   :  { %2804 = vmatmul.f32.gmra.mxu3 %v4866_v43  ;;  %2842 = vmatmul.f32.gmra.mxu0 %v8567_v25 }
 0x237   :  { %v2436_v40 = vpop.f32.mrf.mxu2  ;;  %3063 = vmatpush.msra.mxu2 %v1134_v31  ;;  %3183 = vmatpush.msra.mxu1 %v1236_v37  ;;  %v1158_v37 = vld [vmem:[%s8361_s1 + $0xe58] sm:$0xff] }
 0x238   :  { %v2437_v10 = vadd.f32 %v2436_v40, %v2396_v56  ;;  %2883 = vmatmul.f32.gmra.mxu1 %v8568_v41  ;;  %3104 = vmatpush.msra.mxu3 %v1166_v44  ;;  %v1130_v40 = vld [vmem:[%s8361_s1 + $0xd78] sm:$0xff] }
 0x239   :  { %v2477_v30 = vpop.f32.mrf.mxu3  ;;  %3143 = vmatpush.msra.mxu0 %v1202_v20  ;;  %3064 = vmatpush.msra.mxu2 %v1132_v29 }
 0x23a   :  { %v2478_v17 = vadd.f32 %v2477_v30, %v2437_v10  ;;  %3184 = vmatpush.msra.mxu1 %v1234_v63  ;;  %3105 = vmatpush.msra.mxu3 %v1164_v1  ;;  %v1154_v63 = vld [vmem:[%s8361_s1 + $0xe38] sm:$0xff] }
 0x23b   :  { %v2518_v47 = vpop.f32.mrf.mxu0  ;;  %3144 = vmatpush.msra.mxu0 %v1200_v8  ;;  %3065 = vmatpush.msra.mxu2 %v1130_v40 }
 0x23c   :  { %v2519_v42 = vadd.f32 %v2518_v47, %v2478_v17  ;;  %2766 = vmatmul.f32.gmra.mxu2 %v8569_v19  ;;  %3185 = vmatpush.msra.mxu1 %v1232_v9  ;;  %v8574_v17 = vld [vmem:[#allocation12_spill] sm:$0xff]  ;;  %v1150_v9 = vld [vmem:[%s8361_s1 + $0xe18] sm:$0xff] }
 0x23d   :  { %v7435_v50 = vpop.f32.mrf.mxu1  ;;  %3145 = vmatpush.msra.mxu0 %v1198_v21 }
 0x23e   :  { %v3553_v60 = vmax.f32 %v2513_v62, %v2519_v42  ;;  %2807 = vmatmul.f32.gmra.mxu3 %v8570_v11  ;;  %2845 = vmatmul.f32.gmra.mxu0 %v8571_v48  ;;  %v8575_v62 = vld [vmem:[#allocation74_spill] sm:$0xff]  ;;  %v1228_v42 = vld [vmem:[%s8361_s1 + $0x1088] sm:$0xff] }
 0x23f   :  { %v2439_v3 = vpop.f32.mrf.mxu2  ;;  %3186 = vmatpush.msra.mxu1 %v1230_v16  ;;  %3146 = vmatpush.msra.mxu0 %v1196_v45  ;;  %v1216_v16 = vld [vmem:[%s8361_s1 + $0x1028] sm:$0xff]  ;;  %v1182_v45 = vld [vmem:[%s8361_s1 + $0xf18] sm:$0xff] }
 0x240   :  { %v3557_v4 = vmax.f32 %v3549_v33, %v3553_v60  ;;  %v2440_v15 = vadd.f32 %v2439_v3, %v2399_v7  ;;  %2886 = vmatmul.f32.gmra.mxu1 %v8572_v32  ;;  %v1194_v7 = vld [vmem:[%s8361_s1 + $0xf78] sm:$0xff]  ;;  %v1156_v3 = vld [vmem:[%s8361_s1 + $0xe48] sm:$0xff] }
 0x241   :  { %v2480_v56 = vpop.f32.mrf.mxu3  ;;  %3187 = vmatpush.msra.mxu1 %v1228_v42  ;;  %3147 = vmatpush.msra.mxu0 %v1194_v7  ;;  %v1214_v42 = vld [vmem:[%s8361_s1 + $0x1018] sm:$0xff] }
 0x242   :  { %v3567_v22 = vadd.f32 %v3563_v28, %v3557_v4  ;;  %v2481_v27 = vadd.f32 %v2480_v56, %v2440_v15  ;;  %v1122_v4 = vld [vmem:[%s8361_s1 + $0xd38] sm:$0xff]  ;;  %v1224_v15 = vld [vmem:[%s8361_s1 + $0x1068] sm:$0xff] }
 0x243   :  { %v2521_v33 = vpop.f32.mrf.mxu0  ;;  %v1190_v56 = vld [vmem:[%s8361_s1 + $0xf58] sm:$0xff] }
 0x244   :  { %v3571_v13 = vmax.f32 %v3567_v22, 0.0  ;;  %v2522_v38 = vadd.f32 %v2521_v33, %v2481_v27  ;;  %2909 = vmatmul.f32.vlgmr.msrb.gmra.mxu2 %v7016_v14  ;;  %v1162_v14 = vld [vmem:[%s8361_s1 + $0xe78] sm:$0xff]  ;;  %v1152_v33 = vld [vmem:[%s8361_s1 + $0xe28] sm:$0xff] }
 0x245   :  { %v7472_v10 = vpop.f32.mrf.mxu1  ;;  %3106 = vmatpush.msra.mxu3 %v1162_v14 }
 0x246   :  { %3575 = vst [vmem:[%s8364_s3] sm:$0xff] %v3571_v13  ;;  %v3555_v12 = vmax.f32 %v2516_v54, %v2522_v38  ;;  %2848 = vmatmul.f32.gmra.mxu0 %v8573_v58  ;;  %2950 = vmatmul.f32.vlgmr.msrb.gmra.mxu3 %v4426_v6  ;;  %v1128_v6 = vld [vmem:[%s8361_s1 + $0xd68] sm:$0xff]  ;;  %v8577_v54 = vld [vmem:[#allocation76_spill] sm:$0xff]  ;;  %v1118_v13 = vld [vmem:[%s8361_s1 + $0xd18] sm:$0xff] }
 0x247   :  { %v2582_v30 = vpop.f32.mrf.mxu2  ;;  %3066 = vmatpush.msra.mxu2 %v1128_v6  ;;  %v1220_v38 = vld [vmem:[%s8361_s1 + $0x1048] sm:$0xff]  ;;  %v8578_v6 = vld [vmem:[#allocation4_spill] sm:$0xff] }
 0x248   :  { %v3559_v26 = vmax.f32 %v3551_v52, %v3555_v12  ;;  %v2583_v57 = vadd.f32 %v2582_v30, %v7194_v36  ;;  %2889 = vmatmul.f32.gmra.mxu1 %v8574_v17  ;;  %v1160_v36 = vld [vmem:[%s8361_s1 + $0xe68] sm:$0xff]  ;;  %v1186_v12 = vld [vmem:[%s8361_s1 + $0xf38] sm:$0xff] }
 0x249   :  { %v2623_v55 = vpop.f32.mrf.mxu3  ;;  %3107 = vmatpush.msra.mxu3 %v1160_v36  ;;  %3067 = vmatpush.msra.mxu2 %v1126_v61  ;;  %v8579_v36 = vld [vmem:[#allocation14_spill] sm:$0xff] }
 0x24a   :  { %v3569_v47 = vadd.f32 %v3563_v28, %v3559_v26  ;;  %v7496_v24 = vadd.f32 %v2623_v55, %v2583_v57  ;;  %v1148_v57 = vld [vmem:[%s8361_s1 + $0xe08] sm:$0xff]  ;;  %v1274_v55 = vld [vmem:[%s8361_s1 + $0x11f8] sm:$0xff] }
 0x24b   :  { %v7504_v34 = vpop.f32.mrf.mxu0  ;;  %3108 = vmatpush.msra.mxu3 %v1158_v37 }
 0x24c   :  { %v3573_v52 = vmax.f32 %v3569_v47, 0.0  ;;  %2912 = vmatmul.f32.gmra.mxu2 %v8575_v62 }
 0x24d   :  { %v7513_v31 = vpop.f32.mrf.mxu1  ;;  %3109 = vmatpush.msra.mxu3 %v1156_v3  ;;  %v8581_v3 = vld [vmem:[#allocation16_spill] sm:$0xff] }
 0x24e   :  { %3577 = vst [vmem:[%s8364_s3 + $0x10] sm:$0xff] %v3573_v52  ;;  %2953 = vmatmul.f32.gmra.mxu3 %v4490_v46  ;;  %2991 = vmatmul.f32.vlgmr.msrb.gmra.mxu0 %v4731_v49  ;;  %v1124_v46 = vld [vmem:[%s8361_s1 + $0xd48] sm:$0xff]  ;;  %v1226_v49 = vld [vmem:[%s8361_s1 + $0x1078] sm:$0xff] }
 0x24f   :  { %v2585_v60 = vpop.f32.mrf.mxu2  ;;  %3068 = vmatpush.msra.mxu2 %v1124_v46  ;;  %3188 = vmatpush.msra.mxu1 %v1226_v49  ;;  %v1306_v52 = vld [vmem:[%s8361_s1 + $0x12f8] sm:$0xff]  ;;  %v1212_v46 = vld [vmem:[%s8361_s1 + $0x1008] sm:$0xff] }
 0x250   :  { %v2586_v28 = vadd.f32 %v2585_v60, %v7229_v35  ;;  %3032 = vmatmul.f32.vlgmr.msrb.gmra.mxu1 %v4743_v53  ;;  %v1192_v53 = vld [vmem:[%s8361_s1 + $0xf68] sm:$0xff]  ;;  %3110 = vmatpush.msra.mxu3 %v1154_v63  ;;  %v1270_v49 = vld [vmem:[%s8361_s1 + $0x11d8] sm:$0xff] }
 0x251   :  { %v2626_v44 = vpop.f32.mrf.mxu3  ;;  %3148 = vmatpush.msra.mxu0 %v1192_v53  ;;  %3069 = vmatpush.msra.mxu2 %v1122_v4  ;;  %v1180_v60 = vld [vmem:[%s8361_s1 + $0xf08] sm:$0xff]  ;;  %v1338_v4 = vld [vmem:[%s8361_s1 + $0x13f8] sm:$0xff] }
 0x252   :  { %v7534_v20 = vadd.f32 %v2626_v44, %v2586_v28  ;;  %3189 = vmatpush.msra.mxu1 %v1224_v15  ;;  %3111 = vmatpush.msra.mxu3 %v1152_v33  ;;  %v8580_v28 = vld [vmem:[#allocation7_spill] sm:$0xff] }
 0x253   :  { %v7542_v35 = vpop.f32.mrf.mxu0  ;;  %3149 = vmatpush.msra.mxu0 %v1190_v56  ;;  %v8582_v53 = vld [vmem:[#allocation15_spill] sm:$0xff]  ;;  %v8583_v56 = vld [vmem:[#allocation18_spill] sm:$0xff] }
 0x254   :  { %2915 = vmatmul.f32.gmra.mxu2 %v8576_v39  ;;  %3112 = vmatpush.msra.mxu3 %v1150_v9  ;;  %v1302_v39 = vld [vmem:[%s8361_s1 + $0x12d8] sm:$0xff]  ;;  %v8585_v9 = vld [vmem:[#allocation20_spill] sm:$0xff] }
 0x255   :  { %v7551_v29 = vpop.f32.mrf.mxu1 }
 0x256   :  { %2956 = vmatmul.f32.gmra.mxu3 %v4554_v51  ;;  %2994 = vmatmul.f32.gmra.mxu0 %v4794_v18  ;;  %v1120_v51 = vld [vmem:[%s8361_s1 + $0xd28] sm:$0xff]  ;;  %v1222_v18 = vld [vmem:[%s8361_s1 + $0x1058] sm:$0xff] }
 0x257   :  { %v2588_v22 = vpop.f32.mrf.mxu2  ;;  %3070 = vmatpush.msra.mxu2 %v1120_v51  ;;  %3190 = vmatpush.msra.mxu1 %v1222_v18 }
 0x258   :  { %v2589_v27 = vadd.f32 %v2588_v22, %v7263_v5  ;;  %3035 = vmatmul.f32.gmra.mxu1 %v8567_v25  ;;  %v1188_v5 = vld [vmem:[%s8361_s1 + $0xf48] sm:$0xff]  ;;  %3113 = vmatpush.msra.mxu3 %v1148_v57 }
 0x259   :  { %v2629_v1 = vpop.f32.mrf.mxu3  ;;  %3150 = vmatpush.msra.mxu0 %v1188_v5  ;;  %3071 = vmatpush.msra.mxu2 %v1118_v13  ;;  %v1268_v22 = vld [vmem:[%s8361_s1 + $0x11c8] sm:$0xff] }
 0x25a   :  { %v7569_v8 = vadd.f32 %v2629_v1, %v2589_v27  ;;  %3191 = vmatpush.msra.mxu1 %v1220_v38  ;;  %3262 = vmatpush.msrb.mxu3 %v1306_v52  ;;  %v1370_v27 = vld [vmem:[%s8361_s1 + $0x14f8] sm:$0xff]  ;;  %v1300_v1 = vld [vmem:[%s8361_s1 + $0x12c8] sm:$0xff] }
 0x25b   :  { %v7577_v25 = vpop.f32.mrf.mxu0  ;;  %3151 = vmatpush.msra.mxu0 %v1186_v12  ;;  %v8584_v5 = vld [vmem:[#allocation11_spill] sm:$0xff]  ;;  %v8586_v12 = vld [vmem:[#allocation17_spill] sm:$0xff] }
 0x25c   :  { %2918 = vmatmul.f32.gmra.mxu2 %v8577_v54  ;;  %v1266_v54 = vld [vmem:[%s8361_s1 + $0x11b8] sm:$0xff]  ;;  %v1368_v13 = vld [vmem:[%s8361_s1 + $0x14e8] sm:$0xff] }
 0x25d   :  { %v7586_v40 = vpop.f32.mrf.mxu1  ;;  %v1264_v57 = vld [vmem:[%s8361_s1 + $0x11a8] sm:$0xff] }
 0x25e   :  { %2959 = vmatmul.f32.gmra.mxu3 %v8569_v19  ;;  %2997 = vmatmul.f32.gmra.mxu0 %v4866_v43  ;;  %v1116_v19 = vld [vmem:[%s8361_s1 + $0xd08] sm:$0xff]  ;;  %v1218_v43 = vld [vmem:[%s8361_s1 + $0x1038] sm:$0xff] }
 0x25f   :  { %v2591_v14 = vpop.f32.mrf.mxu2  ;;  %3072 = vmatpush.msra.mxu2 %v1116_v19  ;;  %3192 = vmatpush.msra.mxu1 %v1218_v43 }
 0x260   :  { %v2592_v21 = vadd.f32 %v2591_v14, %v7290_v23  ;;  %3038 = vmatmul.f32.gmra.mxu1 %v8571_v48  ;;  %v1184_v23 = vld [vmem:[%s8361_s1 + $0xf28] sm:$0xff]  ;;  %v1298_v14 = vld [vmem:[%s8361_s1 + $0x12b8] sm:$0xff] }
 0x261   :  { %v2632_v30 = vpop.f32.mrf.mxu3  ;;  %3152 = vmatpush.msra.mxu0 %v1184_v23  ;;  %3193 = vmatpush.msra.mxu1 %v1216_v16  ;;  %v1366_v23 = vld [vmem:[%s8361_s1 + $0x14d8] sm:$0xff] }
 0x262   :  { %v7604_v26 = vadd.f32 %v2632_v30, %v2592_v21  ;;  %3221 = vmatpush.msrb.mxu2 %v1274_v55  ;;  %v1334_v21 = vld [vmem:[%s8361_s1 + $0x13d8] sm:$0xff]  ;;  %v8587_v30 = vld [vmem:[#allocation22_spill] sm:$0xff] }
 0x263   :  { %v7612_v48 = vpop.f32.mrf.mxu0  ;;  %3153 = vmatpush.msra.mxu0 %v1182_v45  ;;  %3194 = vmatpush.msra.mxu1 %v1214_v42  ;;  %v1296_v45 = vld [vmem:[%s8361_s1 + $0x12a8] sm:$0xff] }
 0x264   :  { %2921 = vmatmul.f32.gmra.mxu2 %v8578_v6  ;;  %v1364_v42 = vld [vmem:[%s8361_s1 + $0x14c8] sm:$0xff] }
 0x265   :  { %v7621_v47 = vpop.f32.mrf.mxu1  ;;  %3154 = vmatpush.msra.mxu0 %v1180_v60  ;;  %3195 = vmatpush.msra.mxu1 %v1212_v46  ;;  %v8590_v60 = vld [vmem:[#allocation21_spill] sm:$0xff] }
 0x266   :  { %2962 = vmatmul.f32.gmra.mxu3 %v8579_v36  ;;  %3000 = vmatmul.f32.gmra.mxu0 %v8570_v11  ;;  %v1272_v11 = vld [vmem:[%s8361_s1 + $0x11e8] sm:$0xff]  ;;  %v1330_v46 = vld [vmem:[%s8361_s1 + $0x13b8] sm:$0xff] }
 0x267   :  { %v2594_v62 = vpop.f32.mrf.mxu2  ;;  %3222 = vmatpush.msrb.mxu2 %v1272_v11  ;;  %3303 = vmatpush.msrb.mxu0 %v1338_v4  ;;  %v8591_v4 = vld [vmem:[#allocation26_spill] sm:$0xff] }
 0x268   :  { %v2595_v61 = vadd.f32 %v2594_v62, %v7330_v2  ;;  %3041 = vmatmul.f32.gmra.mxu1 %v8573_v58  ;;  %v1304_v2 = vld [vmem:[%s8361_s1 + $0x12e8] sm:$0xff]  ;;  %v8588_v62 = vld [vmem:[#allocation13_spill] sm:$0xff] }
 0x269   :  { %v2635_v37 = vpop.f32.mrf.mxu3  ;;  %3263 = vmatpush.msrb.mxu3 %v1304_v2  ;;  %3223 = vmatpush.msrb.mxu2 %v1270_v49  ;;  %v1294_v2 = vld [vmem:[%s8361_s1 + $0x1298] sm:$0xff] }
 0x26a   :  { %v7639_v7 = vadd.f32 %v2635_v37, %v2595_v61  ;;  %3344 = vmatpush.msrb.mxu1 %v1370_v27  ;;  %v1262_v61 = vld [vmem:[%s8361_s1 + $0x1198] sm:$0xff]  ;;  %v8589_v37 = vld [vmem:[#allocation24_spill] sm:$0xff]  ;;  %v2665_v27 = vadd.f32 %v7504_v34, %v7496_v24  ;;  %v1360_v34 = vld [vmem:[%s8361_s1 + $0x14a8] sm:$0xff] }
 0x26b   :  { %v7647_v58 = vpop.f32.mrf.mxu0  ;;  %3264 = vmatpush.msrb.mxu3 %v1302_v39  ;;  %3224 = vmatpush.msrb.mxu2 %v1268_v22  ;;  %v1258_v24 = vld [vmem:[%s8361_s1 + $0x1178] sm:$0xff] }
 0x26c   :  { %2924 = vmatmul.f32.gmra.mxu2 %v8580_v28  ;;  %3345 = vmatpush.msrb.mxu1 %v1368_v13  ;;  %v2706_v13 = vadd.f32 %v7513_v31, %v2665_v27  ;;  %v1256_v31 = vld [vmem:[%s8361_s1 + $0x1168] sm:$0xff] }
 0x26d   :  { %v7656_v44 = vpop.f32.mrf.mxu1  ;;  %3265 = vmatpush.msrb.mxu3 %v1300_v1  ;;  %3225 = vmatpush.msrb.mxu2 %v1266_v54  ;;  %v1328_v1 = vld [vmem:[%s8361_s1 + $0x13a8] sm:$0xff] }
 0x26e   :  { %2965 = vmatmul.f32.gmra.mxu3 %v8581_v3  ;;  %3003 = vmatmul.f32.gmra.mxu0 %v8582_v53  ;;  %v1320_v27 = vld [vmem:[%s8361_s1 + $0x1368] sm:$0xff] }
 0x26f   :  { %v2597_v15 = vpop.f32.mrf.mxu2  ;;  %3266 = vmatpush.msrb.mxu3 %v1298_v14  ;;  %3226 = vmatpush.msrb.mxu2 %v1264_v57  ;;  %v8592_v14 = vld [vmem:[#allocation25_spill] sm:$0xff]  ;;  %v8593_v57 = vld [vmem:[#allocation28_spill] sm:$0xff] }
 0x270   :  { %v2598_v63 = vadd.f32 %v2597_v15, %v7388_v0  ;;  %3044 = vmatmul.f32.gmra.mxu1 %v8583_v56  ;;  %v1336_v0 = vld [vmem:[%s8361_s1 + $0x13e8] sm:$0xff] }
 0x271   :  { %v2638_v51 = vpop.f32.mrf.mxu3  ;;  %3304 = vmatpush.msrb.mxu0 %v1336_v0  ;;  %3346 = vmatpush.msrb.mxu1 %v1366_v23  ;;  %v1260_v15 = vld [vmem:[%s8361_s1 + $0x1188] sm:$0xff] }
 0x272   :  { %v7674_v18 = vadd.f32 %v2638_v51, %v2598_v63  ;;  %3267 = vmatpush.msrb.mxu3 %v1296_v45  ;;  %3227 = vmatpush.msrb.mxu2 %v1262_v61  ;;  %v1362_v63 = vld [vmem:[%s8361_s1 + $0x14b8] sm:$0xff]  ;;  %v1324_v61 = vld [vmem:[%s8361_s1 + $0x1388] sm:$0xff] }
 0x273   :  { %v7682_v33 = vpop.f32.mrf.mxu0  ;;  %3305 = vmatpush.msrb.mxu0 %v1334_v21  ;;  %3347 = vmatpush.msrb.mxu1 %v1364_v42  ;;  %v1326_v21 = vld [vmem:[%s8361_s1 + $0x1398] sm:$0xff] }
 0x274   :  { %2927 = vmatmul.f32.gmra.mxu2 %v8584_v5  ;;  %3268 = vmatpush.msrb.mxu3 %v1294_v2 }
 0x275   :  { %v7691_v38 = vpop.f32.mrf.mxu1  ;;  %3228 = vmatpush.msrb.mxu2 %v1260_v15  ;;  %3348 = vmatpush.msrb.mxu1 %v1362_v63  ;;  %v2671_v63 = vadd.f32 %v7577_v25, %v7569_v8  ;;  %v1250_v8 = vld [vmem:[%s8361_s1 + $0x1138] sm:$0xff]  ;;  %v1352_v25 = vld [vmem:[%s8361_s1 + $0x1468] sm:$0xff] }
 0x276   :  { %2968 = vmatmul.f32.gmra.mxu3 %v8585_v9  ;;  %3006 = vmatmul.f32.gmra.mxu0 %v8586_v12 }
 0x277   :  { %v2600_v19 = vpop.f32.mrf.mxu2  ;;  %3229 = vmatpush.msrb.mxu2 %v1258_v24  ;;  %3349 = vmatpush.msrb.mxu1 %v1360_v34  ;;  %v2712_v24 = vadd.f32 %v7586_v40, %v2671_v63  ;;  %v1318_v34 = vld [vmem:[%s8361_s1 + $0x1358] sm:$0xff]  ;;  %v1248_v40 = vld [vmem:[%s8361_s1 + $0x1128] sm:$0xff] }
 0x278   :  { %v2601_v43 = vadd.f32 %v2600_v19, %v7435_v50  ;;  %3047 = vmatmul.f32.gmra.mxu1 %v8587_v30  ;;  %v1332_v50 = vld [vmem:[%s8361_s1 + $0x13c8] sm:$0xff] }
 0x279   :  { %v2641_v16 = vpop.f32.mrf.mxu3  ;;  %3306 = vmatpush.msrb.mxu0 %v1332_v50  ;;  %3230 = vmatpush.msrb.mxu2 %v1256_v31  ;;  %v1288_v50 = vld [vmem:[%s8361_s1 + $0x1268] sm:$0xff] }
 0x27a   :  { %v7709_v55 = vadd.f32 %v2641_v16, %v2601_v43  ;;  %v2668_v16 = vadd.f32 %v7542_v35, %v7534_v20  ;;  %v1254_v20 = vld [vmem:[%s8361_s1 + $0x1158] sm:$0xff]  ;;  %v1356_v35 = vld [vmem:[%s8361_s1 + $0x1488] sm:$0xff] }
 0x27b   :  { %v7717_v52 = vpop.f32.mrf.mxu0  ;;  %3307 = vmatpush.msrb.mxu0 %v1330_v46  ;;  %3231 = vmatpush.msrb.mxu2 %v1254_v20  ;;  %v2677_v20 = vadd.f32 %v7647_v58, %v7639_v7  ;;  %v1344_v7 = vld [vmem:[%s8361_s1 + $0x1428] sm:$0xff]  ;;  %v1402_v58 = vld [vmem:[%s8361_s1 + $0x15f8] sm:$0xff] }
 0x27c   :  { %2930 = vmatmul.f32.gmra.mxu2 %v8588_v62  ;;  %v2709_v46 = vadd.f32 %v7551_v29, %v2668_v16  ;;  %v1252_v29 = vld [vmem:[%s8361_s1 + $0x1148] sm:$0xff]  ;;  %v1314_v16 = vld [vmem:[%s8361_s1 + $0x1338] sm:$0xff] }
 0x27d   :  { %v7726_v11 = vpop.f32.mrf.mxu1  ;;  %3308 = vmatpush.msrb.mxu0 %v1328_v1  ;;  %3232 = vmatpush.msrb.mxu2 %v1252_v29  ;;  %v8595_v29 = vld [vmem:[#allocation30_spill] sm:$0xff] }
 0x27e   :  { %2971 = vmatmul.f32.gmra.mxu3 %v8589_v37  ;;  %3009 = vmatmul.f32.gmra.mxu0 %v8590_v60 }
 0x27f   :  { %v2603_v49 = vpop.f32.mrf.mxu2  ;;  %3309 = vmatpush.msrb.mxu0 %v1326_v21  ;;  %3233 = vmatpush.msrb.mxu2 %v1250_v8  ;;  %v2674_v21 = vadd.f32 %v7612_v48, %v7604_v26  ;;  %v1246_v26 = vld [vmem:[%s8361_s1 + $0x1118] sm:$0xff]  ;;  %v1348_v48 = vld [vmem:[%s8361_s1 + $0x1448] sm:$0xff]  ;;  %v2680_v8 = vadd.f32 %v7682_v33, %v7674_v18 }
 0x280   :  { %v2604_v39 = vadd.f32 %v2603_v49, %v7472_v10  ;;  %3050 = vmatmul.f32.gmra.mxu1 %v8591_v4  ;;  %v1292_v10 = vld [vmem:[%s8361_s1 + $0x1288] sm:$0xff]  ;;  %v1322_v49 = vld [vmem:[%s8361_s1 + $0x1378] sm:$0xff] }
 0x281   :  { %v2644_v22 = vpop.f32.mrf.mxu3  ;;  %3269 = vmatpush.msrb.mxu3 %v1292_v10  ;;  %3310 = vmatpush.msrb.mxu0 %v1324_v61  ;;  %v1340_v18 = vld [vmem:[%s8361_s1 + $0x1408] sm:$0xff]  ;;  %v1398_v33 = vld [vmem:[%s8361_s1 + $0x15d8] sm:$0xff] }
 0x282   :  { %v7746_v51 = vadd.f32 %v2644_v22, %v2604_v39  ;;  %3234 = vmatpush.msrb.mxu2 %v1248_v40  ;;  %v8597_v40 = vld [vmem:[#allocation32_spill] sm:$0xff] }
 0x283   :  { %v7754_v0 = vpop.f32.mrf.mxu0  ;;  %3311 = vmatpush.msrb.mxu0 %v1322_v49  ;;  %v8594_v49 = vld [vmem:[#allocation19_spill] sm:$0xff] }
 0x284   :  { %3073 = vmatmul.f32.vlgmr.msra.gmra.mxu2 %v4812_v59  ;;  %v1290_v59 = vld [vmem:[%s8361_s1 + $0x1278] sm:$0xff] }
 0x285   :  { %v7763_v54 = vpop.f32.mrf.mxu1  ;;  %3270 = vmatpush.msrb.mxu3 %v1290_v59  ;;  %3312 = vmatpush.msrb.mxu0 %v1320_v27 }
 0x286   :  { %3012 = vmatmul.f32.gmra.mxu0 %v8592_v14  ;;  %3114 = vmatmul.f32.vlgmr.msra.gmra.mxu3 %v8578_v6  ;;  %v1358_v6 = vld [vmem:[%s8361_s1 + $0x1498] sm:$0xff] }
 0x287   :  { %v2746_v19 = vpop.f32.mrf.mxu2  ;;  %3350 = vmatpush.msrb.mxu1 %v1358_v6  ;;  %3271 = vmatpush.msrb.mxu3 %v1288_v50 }
 0x288   :  { %v2747_v43 = vadd.f32 %v2746_v19, %v2706_v13  ;;  %3053 = vmatmul.f32.gmra.mxu1 %v8593_v57  ;;  %3313 = vmatpush.msrb.mxu0 %v1318_v34  ;;  %v8596_v34 = vld [vmem:[#allocation23_spill] sm:$0xff] }
 0x289   :  { %v2787_v23 = vpop.f32.mrf.mxu3  ;;  %3351 = vmatpush.msrb.mxu1 %v1356_v35  ;;  %3235 = vmatpush.msrb.mxu2 %v1246_v26  ;;  %v8599_v26 = vld [vmem:[#allocation34_spill] sm:$0xff] }
 0x28a   :  { %v7783_v45 = vadd.f32 %v2787_v23, %v2747_v43  ;;  %v1316_v43 = vld [vmem:[%s8361_s1 + $0x1348] sm:$0xff]  ;;  %v2715_v23 = vadd.f32 %v7621_v47, %v2674_v21  ;;  %v1466_v21 = vld [vmem:[%s8361_s1 + $0x17f8] sm:$0xff] }
 0x28b   :  { %v7791_v42 = vpop.f32.mrf.mxu0  ;;  %3314 = vmatpush.msrb.mxu0 %v1316_v43  ;;  %v1244_v47 = vld [vmem:[%s8361_s1 + $0x1108] sm:$0xff] }
 0x28c   :  { %3076 = vmatmul.f32.gmra.mxu2 %v8568_v41  ;;  %v1286_v41 = vld [vmem:[%s8361_s1 + $0x1258] sm:$0xff] }
 0x28d   :  { %v7800_v2 = vpop.f32.mrf.mxu1  ;;  %3272 = vmatpush.msrb.mxu3 %v1286_v41  ;;  %3315 = vmatpush.msrb.mxu0 %v1314_v16 }
 0x28e   :  { %3117 = vmatmul.f32.gmra.mxu3 %v8580_v28  ;;  %3155 = vmatmul.f32.vlgmr.msra.gmra.mxu0 %v8579_v36  ;;  %v1354_v36 = vld [vmem:[%s8361_s1 + $0x1478] sm:$0xff] }
 0x28f   :  { %v2749_v39 = vpop.f32.mrf.mxu2  ;;  %3352 = vmatpush.msrb.mxu1 %v1354_v36  ;;  %3236 = vmatpush.msrb.mxu2 %v1244_v47  ;;  %v1310_v36 = vld [vmem:[%s8361_s1 + $0x1318] sm:$0xff] }
 0x290   :  { %v2750_v15 = vadd.f32 %v2749_v39, %v2709_v46  ;;  %3196 = vmatmul.f32.vlgmr.msra.gmra.mxu1 %v8582_v53  ;;  %v1284_v53 = vld [vmem:[%s8361_s1 + $0x1248] sm:$0xff] }
 0x291   :  { %v2790_v28 = vpop.f32.mrf.mxu3  ;;  %3273 = vmatpush.msrb.mxu3 %v1284_v53  ;;  %3353 = vmatpush.msrb.mxu1 %v1352_v25  ;;  %v1312_v46 = vld [vmem:[%s8361_s1 + $0x1328] sm:$0xff] }
 0x292   :  { %v7820_v22 = vadd.f32 %v2790_v28, %v2750_v15  ;;  %3316 = vmatpush.msrb.mxu0 %v1312_v46  ;;  %3385 = vmatpush.msra.mxu2 %v1402_v58  ;;  %v2718_v15 = vadd.f32 %v7656_v44, %v2677_v20  ;;  %v1434_v28 = vld [vmem:[%s8361_s1 + $0x16f8] sm:$0xff] }
 0x293   :  { %v7828_v10 = vpop.f32.mrf.mxu0  ;;  %v1342_v44 = vld [vmem:[%s8361_s1 + $0x1418] sm:$0xff] }
 0x294   :  { %3079 = vmatmul.f32.gmra.mxu2 %v8572_v32  ;;  %v1282_v32 = vld [vmem:[%s8361_s1 + $0x1238] sm:$0xff]  ;;  %3317 = vmatpush.msrb.mxu0 %v1310_v36 }
 0x295   :  { %v7837_v1 = vpop.f32.mrf.mxu1  ;;  %3274 = vmatpush.msrb.mxu3 %v1282_v32  ;;  %v8602_v46 = vld [vmem:[#allocation33_spill] sm:$0xff] }
 0x296   :  { %3120 = vmatmul.f32.gmra.mxu3 %v8584_v5  ;;  %3158 = vmatmul.f32.gmra.mxu0 %v8581_v3  ;;  %v1350_v3 = vld [vmem:[%s8361_s1 + $0x1458] sm:$0xff] }
 0x297   :  { %v2752_v13 = vpop.f32.mrf.mxu2  ;;  %3354 = vmatpush.msrb.mxu1 %v1350_v3  ;;  %v8598_v3 = vld [vmem:[#allocation31_spill] sm:$0xff]  ;;  %v1462_v58 = vld [vmem:[%s8361_s1 + $0x17d8] sm:$0xff] }
 0x298   :  { %v2753_v59 = vadd.f32 %v2752_v13, %v2712_v24  ;;  %3199 = vmatmul.f32.gmra.mxu1 %v8586_v12  ;;  %v1280_v12 = vld [vmem:[%s8361_s1 + $0x1228] sm:$0xff] }
 0x299   :  { %v2793_v5 = vpop.f32.mrf.mxu3  ;;  %3275 = vmatpush.msrb.mxu3 %v1280_v12  ;;  %3355 = vmatpush.msrb.mxu1 %v1348_v48  ;;  %v1432_v24 = vld [vmem:[%s8361_s1 + $0x16e8] sm:$0xff]  ;;  %v1498_v48 = vld [vmem:[%s8361_s1 + $0x18f8] sm:$0xff] }
 0x29a   :  { %v7857_v19 = vadd.f32 %v2793_v5, %v2753_v59  ;;  %v2721_v59 = vadd.f32 %v7691_v38, %v2680_v8  ;;  %v1430_v5 = vld [vmem:[%s8361_s1 + $0x16d8] sm:$0xff]  ;;  %v1396_v38 = vld [vmem:[%s8361_s1 + $0x15c8] sm:$0xff] }
 0x29b   :  { %v7865_v31 = vpop.f32.mrf.mxu0  ;;  %v1460_v8 = vld [vmem:[%s8361_s1 + $0x17c8] sm:$0xff] }
 0x29c   :  { %3082 = vmatmul.f32.gmra.mxu2 %v8574_v17  ;;  %v1278_v17 = vld [vmem:[%s8361_s1 + $0x1218] sm:$0xff] }
 0x29d   :  { %v7874_v6 = vpop.f32.mrf.mxu1  ;;  %3276 = vmatpush.msrb.mxu3 %v1278_v17  ;;  %v2683_v17 = vadd.f32 %v7717_v52, %v7709_v55  ;;  %v1394_v55 = vld [vmem:[%s8361_s1 + $0x15b8] sm:$0xff]  ;;  %v1496_v52 = vld [vmem:[%s8361_s1 + $0x18e8] sm:$0xff] }
 0x29e   :  { %3123 = vmatmul.f32.gmra.mxu3 %v8588_v62  ;;  %3161 = vmatmul.f32.gmra.mxu0 %v8585_v9  ;;  %v1346_v9 = vld [vmem:[%s8361_s1 + $0x1438] sm:$0xff] }
 0x29f   :  { %v2755_v50 = vpop.f32.mrf.mxu2  ;;  %3356 = vmatpush.msrb.mxu1 %v1346_v9  ;;  %v8600_v9 = vld [vmem:[#allocation27_spill] sm:$0xff]  ;;  %v2724_v20 = vadd.f32 %v7726_v11, %v2683_v17 }
 0x2a0   :  { %v2756_v61 = vadd.f32 %v2755_v50, %v2715_v23  ;;  %3202 = vmatmul.f32.gmra.mxu1 %v8590_v60  ;;  %v1276_v60 = vld [vmem:[%s8361_s1 + $0x1208] sm:$0xff] }
 0x2a1   :  { %v2796_v62 = vpop.f32.mrf.mxu3  ;;  %3277 = vmatpush.msrb.mxu3 %v1276_v60  ;;  %3357 = vmatpush.msrb.mxu1 %v1344_v7  ;;  %v1428_v50 = vld [vmem:[%s8361_s1 + $0x16c8] sm:$0xff]  ;;  %v8601_v60 = vld [vmem:[#allocation36_spill] sm:$0xff]  ;;  %v1426_v7 = vld [vmem:[%s8361_s1 + $0x16b8] sm:$0xff] }
 0x2a2   :  { %v7894_v35 = vadd.f32 %v2796_v62, %v2756_v61  ;;  %v1464_v61 = vld [vmem:[%s8361_s1 + $0x17e8] sm:$0xff] }
 0x2a3   :  { %v7902_v41 = vpop.f32.mrf.mxu0  ;;  %3426 = vmatpush.msra.mxu3 %v1434_v28  ;;  %3358 = vmatpush.msrb.mxu1 %v1342_v44  ;;  %v8603_v28 = vld [vmem:[#allocation38_spill] sm:$0xff]  ;;  %v1392_v11 = vld [vmem:[%s8361_s1 + $0x15a8] sm:$0xff]  ;;  %v2686_v44 = vadd.f32 %v7754_v0, %v7746_v51  ;;  %v1390_v51 = vld [vmem:[%s8361_s1 + $0x1598] sm:$0xff] }
 0x2a4   :  { %3085 = vmatmul.f32.gmra.mxu2 %v8594_v49  ;;  %v1492_v0 = vld [vmem:[%s8361_s1 + $0x18c8] sm:$0xff] }
 0x2a5   :  { %v7911_v39 = vpop.f32.mrf.mxu1  ;;  %3427 = vmatpush.msra.mxu3 %v1432_v24  ;;  %3359 = vmatpush.msrb.mxu1 %v1340_v18  ;;  %v8604_v24 = vld [vmem:[#allocation29_spill] sm:$0xff] }
 0x2a6   :  { %3126 = vmatmul.f32.gmra.mxu3 %v8595_v29  ;;  %3164 = vmatmul.f32.gmra.mxu0 %v8589_v37  ;;  %v1400_v37 = vld [vmem:[%s8361_s1 + $0x15e8] sm:$0xff] }
 0x2a7   :  { %v2758_v63 = vpop.f32.mrf.mxu2  ;;  %3386 = vmatpush.msra.mxu2 %v1400_v37  ;;  %3428 = vmatpush.msra.mxu3 %v1430_v5  ;;  %v8606_v5 = vld [vmem:[#allocation37_spill] sm:$0xff] }
 0x2a8   :  { %v2759_v53 = vadd.f32 %v2758_v63, %v2718_v15  ;;  %3205 = vmatmul.f32.gmra.mxu1 %v8592_v14  ;;  %v1308_v14 = vld [vmem:[%s8361_s1 + $0x1308] sm:$0xff]  ;;  %v1494_v63 = vld [vmem:[%s8361_s1 + $0x18d8] sm:$0xff] }
 0x2a9   :  { %v2799_v27 = vpop.f32.mrf.mxu3  ;;  %3318 = vmatpush.msrb.mxu0 %v1308_v14  ;;  %3387 = vmatpush.msra.mxu2 %v1398_v33  ;;  %v2727_v33 = vadd.f32 %v7763_v54, %v2686_v44  ;;  %v1388_v54 = vld [vmem:[%s8361_s1 + $0x1588] sm:$0xff] }
 0x2aa   :  { %v7931_v25 = vadd.f32 %v2799_v27, %v2759_v53  ;;  %3508 = vmatpush.msra.mxu1 %v1498_v48  ;;  %3429 = vmatpush.msra.mxu3 %v1428_v50  ;;  %v1424_v27 = vld [vmem:[%s8361_s1 + $0x16a8] sm:$0xff]  ;;  %v8607_v48 = vld [vmem:[#allocation42_spill] sm:$0xff]  ;;  %v2829_v50 = vadd.f32 %v7791_v42, %v7783_v45  ;;  %v1386_v45 = vld [vmem:[%s8361_s1 + $0x1578] sm:$0xff] }
 0x2ab   :  { %v7939_v32 = vpop.f32.mrf.mxu0  ;;  %3467 = vmatpush.msra.mxu0 %v1466_v21  ;;  %3388 = vmatpush.msra.mxu2 %v1396_v38  ;;  %v1422_v21 = vld [vmem:[%s8361_s1 + $0x1698] sm:$0xff]  ;;  %v1488_v42 = vld [vmem:[%s8361_s1 + $0x18a8] sm:$0xff] }
 0x2ac   :  { %3088 = vmatmul.f32.gmra.mxu2 %v8596_v34  ;;  %3509 = vmatpush.msra.mxu1 %v1496_v52  ;;  %v1456_v52 = vld [vmem:[%s8361_s1 + $0x17a8] sm:$0xff] }
 0x2ad   :  { %v7948_v13 = vpop.f32.mrf.mxu1  ;;  %3468 = vmatpush.msra.mxu0 %v1464_v61  ;;  %3389 = vmatpush.msra.mxu2 %v1394_v55  ;;  %v1420_v55 = vld [vmem:[%s8361_s1 + $0x1688] sm:$0xff] }
 0x2ae   :  { %3129 = vmatmul.f32.gmra.mxu3 %v8597_v40  ;;  %3167 = vmatmul.f32.gmra.mxu0 %v8598_v3 }
 0x2af   :  { %v2761_v12 = vpop.f32.mrf.mxu2  ;;  %3430 = vmatpush.msra.mxu3 %v1426_v7  ;;  %3469 = vmatpush.msra.mxu0 %v1462_v58  ;;  %v2870_v58 = vadd.f32 %v7800_v2, %v2829_v50  ;;  %v1384_v2 = vld [vmem:[%s8361_s1 + $0x1568] sm:$0xff] }
 0x2b0   :  { %v2762_v43 = vadd.f32 %v2761_v12, %v2721_v59  ;;  %3208 = vmatmul.f32.gmra.mxu1 %v8599_v26  ;;  %3390 = vmatpush.msra.mxu2 %v1392_v11  ;;  %v8605_v59 = vld [vmem:[#allocation40_spill] sm:$0xff]  ;;  %v1458_v12 = vld [vmem:[%s8361_s1 + $0x17b8] sm:$0xff]  ;;  %v1448_v50 = vld [vmem:[%s8361_s1 + $0x1768] sm:$0xff] }
 0x2b1   :  { %v2802_v23 = vpop.f32.mrf.mxu3  ;;  %3510 = vmatpush.msra.mxu1 %v1494_v63  ;;  %3431 = vmatpush.msra.mxu3 %v1424_v27  ;;  %v2832_v27 = vadd.f32 %v7828_v10, %v7820_v22  ;;  %v1382_v22 = vld [vmem:[%s8361_s1 + $0x1558] sm:$0xff]  ;;  %v1484_v10 = vld [vmem:[%s8361_s1 + $0x1888] sm:$0xff] }
 0x2b2   :  { %v7968_v16 = vadd.f32 %v2802_v23, %v2762_v43  ;;  %3470 = vmatpush.msra.mxu0 %v1460_v8  ;;  %3391 = vmatpush.msra.mxu2 %v1390_v51  ;;  %v1490_v23 = vld [vmem:[%s8361_s1 + $0x18b8] sm:$0xff]  ;;  %v1416_v51 = vld [vmem:[%s8361_s1 + $0x1668] sm:$0xff] }
 0x2b3   :  { %v7976_v47 = vpop.f32.mrf.mxu0  ;;  %3511 = vmatpush.msra.mxu1 %v1492_v0  ;;  %3432 = vmatpush.msra.mxu3 %v1422_v21  ;;  %v1452_v0 = vld [vmem:[%s8361_s1 + $0x1788] sm:$0xff] }
 0x2b4   :  { %3091 = vmatmul.f32.gmra.mxu2 %v8600_v9  ;;  %3471 = vmatpush.msra.mxu0 %v1458_v12  ;;  %v2873_v12 = vadd.f32 %v7837_v1, %v2832_v27  ;;  %v1380_v1 = vld [vmem:[%s8361_s1 + $0x1548] sm:$0xff]  ;;  %v1442_v27 = vld [vmem:[%s8361_s1 + $0x1738] sm:$0xff] }
 0x2b5   :  { %v7985_v62 = vpop.f32.mrf.mxu1  ;;  %3392 = vmatpush.msra.mxu2 %v1388_v54  ;;  %3512 = vmatpush.msra.mxu1 %v1490_v23  ;;  %v2835_v23 = vadd.f32 %v7865_v31, %v7857_v19  ;;  %v1378_v19 = vld [vmem:[%s8361_s1 + $0x1538] sm:$0xff]  ;;  %v1480_v31 = vld [vmem:[%s8361_s1 + $0x1868] sm:$0xff] }
 0x2b6   :  { %3132 = vmatmul.f32.gmra.mxu3 %v8601_v60  ;;  %3170 = vmatmul.f32.gmra.mxu0 %v8602_v46 }
 0x2b7   :  { %v2764_v15 = vpop.f32.mrf.mxu2  ;;  %3433 = vmatpush.msra.mxu3 %v1420_v55  ;;  %3472 = vmatpush.msra.mxu0 %v1456_v52 }
 0x2b8   :  { %v2765_v36 = vadd.f32 %v2764_v15, %v2724_v20  ;;  %3211 = vmatmul.f32.gmra.mxu1 %v8603_v28  ;;  %3393 = vmatpush.msra.mxu2 %v1386_v45  ;;  %v8608_v15 = vld [vmem:[#allocation41_spill] sm:$0xff]  ;;  %v2876_v45 = vadd.f32 %v7874_v6, %v2835_v23  ;;  %v1376_v6 = vld [vmem:[%s8361_s1 + $0x1528] sm:$0xff] }
 0x2b9   :  { %v2805_v53 = vpop.f32.mrf.mxu3  ;;  %3513 = vmatpush.msra.mxu1 %v1488_v42  ;;  %v1446_v42 = vld [vmem:[%s8361_s1 + $0x1758] sm:$0xff] }
 0x2ba   :  { %v8005_v37 = vadd.f32 %v2805_v53, %v2765_v36  ;;  %v1454_v36 = vld [vmem:[%s8361_s1 + $0x1798] sm:$0xff]  ;;  %v8609_v53 = vld [vmem:[#allocation44_spill] sm:$0xff]  ;;  %3394 = vmatpush.msra.mxu2 %v1384_v2 }
 0x2bb   :  { %v8013_v14 = vpop.f32.mrf.mxu0  ;;  %3473 = vmatpush.msra.mxu0 %v1454_v36  ;;  %v2838_v36 = vadd.f32 %v7902_v41, %v7894_v35  ;;  %v1374_v35 = vld [vmem:[%s8361_s1 + $0x1518] sm:$0xff]  ;;  %v1476_v41 = vld [vmem:[%s8361_s1 + $0x1848] sm:$0xff] }
 0x2bc   :  { %3094 = vmatmul.f32.gmra.mxu2 %v8604_v24  ;;  %v1470_v23 = vld [vmem:[%s8361_s1 + $0x1818] sm:$0xff] }
 0x2bd   :  { %v8022_v18 = vpop.f32.mrf.mxu1  ;;  %3474 = vmatpush.msra.mxu0 %v1452_v0  ;;  %3395 = vmatpush.msra.mxu2 %v1382_v22  ;;  %v2841_v22 = vadd.f32 %v7939_v32, %v7931_v25  ;;  %v1472_v25 = vld [vmem:[%s8361_s1 + $0x1828] sm:$0xff] }
 0x2be   :  { %3135 = vmatmul.f32.gmra.mxu3 %v8605_v59  ;;  %3173 = vmatmul.f32.gmra.mxu0 %v8606_v5 }
 0x2bf   :  { %v2767_v43 = vpop.f32.mrf.mxu2  ;;  %3396 = vmatpush.msra.mxu2 %v1380_v1  ;;  %v1438_v1 = vld [vmem:[%s8361_s1 + $0x1718] sm:$0xff] }
 0x2c0   :  { %v2768_v38 = vadd.f32 %v2767_v43, %v2727_v33  ;;  %3214 = vmatmul.f32.gmra.mxu1 %v8607_v48  ;;  %v1450_v43 = vld [vmem:[%s8361_s1 + $0x1778] sm:$0xff] }
 0x2c1   :  { %v2808_v17 = vpop.f32.mrf.mxu3  ;;  %3475 = vmatpush.msra.mxu0 %v1450_v43  ;;  %3397 = vmatpush.msra.mxu2 %v1378_v19  ;;  %v8610_v43 = vld [vmem:[#allocation35_spill] sm:$0xff] }
 0x2c2   :  { %v8042_v61 = vadd.f32 %v2808_v17, %v2768_v38 }
 0x2c3   :  { %v8050_v20 = vpop.f32.mrf.mxu0  ;;  %3476 = vmatpush.msra.mxu0 %v1448_v50  ;;  %3398 = vmatpush.msra.mxu2 %v1376_v6 }
 0x2c4   :  { %3237 = vmatmul.f32.vlgmr.msrb.gmra.mxu2 %v8583_v56  ;;  %v1418_v56 = vld [vmem:[%s8361_s1 + $0x1678] sm:$0xff] }
 0x2c5   :  { %v8059_v7 = vpop.f32.mrf.mxu1  ;;  %3434 = vmatpush.msra.mxu3 %v1418_v56  ;;  %3477 = vmatpush.msra.mxu0 %v1446_v42 }
 0x2c6   :  { %3176 = vmatmul.f32.gmra.mxu0 %v8608_v15  ;;  %3278 = vmatmul.f32.vlgmr.msrb.gmra.mxu3 %v8594_v49  ;;  %v1486_v49 = vld [vmem:[%s8361_s1 + $0x1898] sm:$0xff] }
 0x2c7   :  { %v2910_v11 = vpop.f32.mrf.mxu2  ;;  %3514 = vmatpush.msra.mxu1 %v1486_v49  ;;  %3435 = vmatpush.msra.mxu3 %v1416_v51 }
 0x2c8   :  { %v2911_v63 = vadd.f32 %v2910_v11, %v2870_v58  ;;  %3217 = vmatmul.f32.gmra.mxu1 %v8609_v53  ;;  %3399 = vmatpush.msra.mxu2 %v1374_v35  ;;  %v8617_v35 = vld [vmem:[#allocation52_spill] sm:$0xff] }
 0x2c9   :  { %v2951_v44 = vpop.f32.mrf.mxu3  ;;  %3515 = vmatpush.msra.mxu1 %v1484_v10 }
 0x2ca   :  { %v8079_v8 = vadd.f32 %v2951_v44, %v2911_v63  ;;  %v1444_v63 = vld [vmem:[%s8361_s1 + $0x1748] sm:$0xff]  ;;  %v2879_v44 = vadd.f32 %v7911_v39, %v2838_v36 }
 0x2cb   :  { %v8087_v33 = vpop.f32.mrf.mxu0  ;;  %3478 = vmatpush.msra.mxu0 %v1444_v63  ;;  %v1372_v39 = vld [vmem:[%s8361_s1 + $0x1508] sm:$0xff] }
 0x2cc   :  { %3240 = vmatmul.f32.gmra.mxu2 %v8587_v30  ;;  %v1414_v30 = vld [vmem:[%s8361_s1 + $0x1658] sm:$0xff] }
 0x2cd   :  { %v8096_v21 = vpop.f32.mrf.mxu1  ;;  %3436 = vmatpush.msra.mxu3 %v1414_v30  ;;  %3479 = vmatpush.msra.mxu0 %v1442_v27  ;;  %v8619_v27 = vld [vmem:[#allocation54_spill] sm:$0xff] }
 0x2ce   :  { %3281 = vmatmul.f32.gmra.mxu3 %v8596_v34  ;;  %3319 = vmatmul.f32.vlgmr.msrb.gmra.mxu0 %v8595_v29  ;;  %v1482_v29 = vld [vmem:[%s8361_s1 + $0x1878] sm:$0xff] }
 0x2cf   :  { %v2913_v38 = vpop.f32.mrf.mxu2  ;;  %3516 = vmatpush.msra.mxu1 %v1482_v29  ;;  %3400 = vmatpush.msra.mxu2 %v1372_v39  ;;  %v8620_v39 = vld [vmem:[#allocation45_spill] sm:$0xff] }
 0x2d0   :  { %v2914_v54 = vadd.f32 %v2913_v38, %v2873_v12  ;;  %3360 = vmatmul.f32.vlgmr.msrb.gmra.mxu1 %v8598_v3  ;;  %v1412_v3 = vld [vmem:[%s8361_s1 + $0x1648] sm:$0xff]  ;;  %v2882_v38 = vadd.f32 %v7948_v13, %v2841_v22  ;;  %v2844_v13 = vadd.f32 %v7976_v47, %v7968_v16  ;;  %v8613_v47 = vld [vmem:[#allocation48_spill] sm:$0xff]  ;;  %v8622_v22 = vld [vmem:[#allocation53_spill] sm:$0xff] }
 0x2d1   :  { %v2954_v34 = vpop.f32.mrf.mxu3  ;;  %3437 = vmatpush.msra.mxu3 %v1412_v3  ;;  %3517 = vmatpush.msra.mxu1 %v1480_v31  ;;  %v1440_v12 = vld [vmem:[%s8361_s1 + $0x1728] sm:$0xff] }
 0x2d2   :  { %v8116_v17 = vadd.f32 %v2954_v34, %v2914_v54  ;;  %3480 = vmatpush.msra.mxu0 %v1440_v12  ;;  %v8611_v54 = vld [vmem:[#allocation46_spill] sm:$0xff]  ;;  %v8612_v31 = vld [vmem:[#allocation39_spill] sm:$0xff]  ;;  %v2885_v16 = vadd.f32 %v7985_v62, %v2844_v13  ;;  %v8625_v13 = vld [vmem:[#allocation60_spill] sm:$0xff] }
 0x2d3   :  { %v8124_v55 = vpop.f32.mrf.mxu0 }
 0x2d4   :  { %3243 = vmatmul.f32.gmra.mxu2 %v8591_v4  ;;  %v1410_v4 = vld [vmem:[%s8361_s1 + $0x1638] sm:$0xff]  ;;  %3481 = vmatpush.msra.mxu0 %v1438_v1 }
 0x2d5   :  { %v8133_v52 = vpop.f32.mrf.mxu1  ;;  %3438 = vmatpush.msra.mxu3 %v1410_v4  ;;  %v8614_v4 = vld [vmem:[#allocation47_spill] sm:$0xff] }
 0x2d6   :  { %3284 = vmatmul.f32.gmra.mxu3 %v8600_v9  ;;  %3322 = vmatmul.f32.gmra.mxu0 %v8597_v40  ;;  %v1478_v40 = vld [vmem:[%s8361_s1 + $0x1858] sm:$0xff] }
 0x2d7   :  { %v2916_v58 = vpop.f32.mrf.mxu2  ;;  %3518 = vmatpush.msra.mxu1 %v1478_v40  ;;  %v2847_v40 = vadd.f32 %v8013_v14, %v8005_v37  ;;  %v2850_v37 = vadd.f32 %v8050_v20, %v8042_v61  ;;  %v2993_v61 = vadd.f32 %v8087_v33, %v8079_v8  ;;  %v2996_v8 = vadd.f32 %v8124_v55, %v8116_v17 }
 0x2d8   :  { %v2917_v56 = vadd.f32 %v2916_v58, %v2876_v45  ;;  %3363 = vmatmul.f32.gmra.mxu1 %v8602_v46  ;;  %v1408_v46 = vld [vmem:[%s8361_s1 + $0x1628] sm:$0xff] }
 0x2d9   :  { %v2957_v9 = vpop.f32.mrf.mxu3  ;;  %3439 = vmatpush.msra.mxu3 %v1408_v46  ;;  %3519 = vmatpush.msra.mxu1 %v1476_v41  ;;  %v8616_v46 = vld [vmem:[#allocation43_spill] sm:$0xff]  ;;  %v2888_v62 = vadd.f32 %v8022_v18, %v2847_v40  ;;  %v8618_v41 = vld [vmem:[#allocation49_spill] sm:$0xff]  ;;  %v2891_v18 = vadd.f32 %v8059_v7, %v2850_v37  ;;  %v3034_v7 = vadd.f32 %v8096_v21, %v2993_v61 }
 0x2da   :  { %v8153_v11 = vadd.f32 %v2957_v9, %v2917_v56  ;;  %v8615_v56 = vld [vmem:[#allocation50_spill] sm:$0xff]  ;;  %v3037_v21 = vadd.f32 %v8133_v52, %v2996_v8  ;;  %v8626_v37 = vld [vmem:[#allocation51_spill] sm:$0xff] }
 0x2db   :  { %v8161_v2 = vpop.f32.mrf.mxu0  ;;  %v8628_v61 = vld [vmem:[#allocation55_spill] sm:$0xff] }
 0x2dc   :  { %3246 = vmatmul.f32.gmra.mxu2 %v8593_v57  ;;  %v1406_v57 = vld [vmem:[%s8361_s1 + $0x1618] sm:$0xff]  ;;  %v2999_v17 = vadd.f32 %v8161_v2, %v8153_v11 }
 0x2dd   :  { %v8170_v49 = vpop.f32.mrf.mxu1  ;;  %3440 = vmatpush.msra.mxu3 %v1406_v57 }
 0x2de   :  { %3287 = vmatmul.f32.gmra.mxu3 %v8604_v24  ;;  %3325 = vmatmul.f32.gmra.mxu0 %v8601_v60  ;;  %v1474_v60 = vld [vmem:[%s8361_s1 + $0x1838] sm:$0xff]  ;;  %v3040_v40 = vadd.f32 %v8170_v49, %v2999_v17 }
 0x2df   :  { %v2919_v51 = vpop.f32.mrf.mxu2  ;;  %3520 = vmatpush.msra.mxu1 %v1474_v60 }
 0x2e0   :  { %v2920_v0 = vadd.f32 %v2919_v51, %v2879_v44  ;;  %3366 = vmatmul.f32.gmra.mxu1 %v8606_v5  ;;  %v1404_v5 = vld [vmem:[%s8361_s1 + $0x1608] sm:$0xff] }
 0x2e1   :  { %v2960_v24 = vpop.f32.mrf.mxu3  ;;  %3441 = vmatpush.msra.mxu3 %v1404_v5  ;;  %3521 = vmatpush.msra.mxu1 %v1472_v25  ;;  %v8623_v25 = vld [vmem:[#allocation58_spill] sm:$0xff] }
 0x2e2   :  { %v8190_v10 = vadd.f32 %v2960_v24, %v2920_v0  ;;  %v8621_v24 = vld [vmem:[#allocation56_spill] sm:$0xff] }
 0x2e3   :  { %v8198_v30 = vpop.f32.mrf.mxu0  ;;  %3522 = vmatpush.msra.mxu1 %v1470_v23 }
 0x2e4   :  { %3249 = vmatmul.f32.gmra.mxu2 %v8610_v43  ;;  %v3002_v11 = vadd.f32 %v8198_v30, %v8190_v10 }
 0x2e5   :  { %v8204_v32 = vpop.f32.mrf.mxu1 }
 0x2e6   :  { %3290 = vmatmul.f32.gmra.mxu3 %v8611_v54  ;;  %3328 = vmatmul.f32.gmra.mxu0 %v8605_v59  ;;  %v1436_v59 = vld [vmem:[%s8361_s1 + $0x1708] sm:$0xff] }
 0x2e7   :  { %v2922_v29 = vpop.f32.mrf.mxu2  ;;  %3482 = vmatpush.msra.mxu0 %v1436_v59 }
 0x2e8   :  { %v2923_v34 = vadd.f32 %v2922_v29, %v2882_v38  ;;  %3369 = vmatmul.f32.gmra.mxu1 %v8608_v15  ;;  %v1468_v15 = vld [vmem:[%s8361_s1 + $0x1808] sm:$0xff] }
 0x2e9   :  { %v2963_v3 = vpop.f32.mrf.mxu3  ;;  %3523 = vmatpush.msra.mxu1 %v1468_v15 }
 0x2ea   :  { %v8218_v50 = vadd.f32 %v2963_v3, %v2923_v34  ;;  %v8624_v34 = vld [vmem:[#allocation57_spill] sm:$0xff] }
 0x2eb   :  { %v8223_v19 = vpop.f32.mrf.mxu0 }
 0x2ec   :  { %3252 = vmatmul.f32.gmra.mxu2 %v8612_v31  ;;  %v3005_v10 = vadd.f32 %v8223_v19, %v8218_v50 }
 0x2ed   :  { %v8229_v45 = vpop.f32.mrf.mxu1 }
 0x2ee   :  { %3293 = vmatmul.f32.gmra.mxu3 %v8613_v47  ;;  %3331 = vmatmul.f32.gmra.mxu0 %v8614_v4 }
 0x2ef   :  { %v2925_v42 = vpop.f32.mrf.mxu2 }
 0x2f0   :  { %v2926_v58 = vadd.f32 %v2925_v42, %v2885_v16  ;;  %3372 = vmatmul.f32.gmra.mxu1 %v8615_v56 }
 0x2f1   :  { %v2966_v6 = vpop.f32.mrf.mxu3 }
 0x2f2   :  { %v8237_v9 = vadd.f32 %v2966_v6, %v2926_v58 }
 0x2f3   :  { %v8239_v36 = vpop.f32.mrf.mxu0 }
 0x2f4   :  { %3255 = vmatmul.f32.gmra.mxu2 %v8616_v46  ;;  %v3008_v50 = vadd.f32 %v8239_v36, %v8237_v9 }
 0x2f5   :  { %v8242_v63 = vpop.f32.mrf.mxu1 }
 0x2f6   :  { %3296 = vmatmul.f32.gmra.mxu3 %v8617_v35  ;;  %3334 = vmatmul.f32.gmra.mxu0 %v8618_v41 }
 0x2f7   :  { %v2928_v44 = vpop.f32.mrf.mxu2 }
 0x2f8   :  { %v2929_v57 = vadd.f32 %v2928_v44, %v2888_v62  ;;  %3375 = vmatmul.f32.gmra.mxu1 %v8619_v27 }
 0x2f9   :  { %v2969_v51 = vpop.f32.mrf.mxu3 }
 0x2fa   :  { %v8250_v14 = vadd.f32 %v2969_v51, %v2929_v57  ;;  %v3043_v57 = vadd.f32 %v8204_v32, %v3002_v11  ;;  %v8638_v11 = vld [vmem:[#allocation68_spill] sm:$0xff] }
 0x2fb   :  { %v8252_v0 = vpop.f32.mrf.mxu0 }
 0x2fc   :  { %3258 = vmatmul.f32.gmra.mxu2 %v8620_v39  ;;  %v3011_v9 = vadd.f32 %v8252_v0, %v8250_v14 }
 0x2fd   :  { %v8255_v60 = vpop.f32.mrf.mxu1 }
 0x2fe   :  { %3299 = vmatmul.f32.gmra.mxu3 %v8621_v24  ;;  %3337 = vmatmul.f32.gmra.mxu0 %v8622_v22 }
 0x2ff   :  { %v2931_v5 = vpop.f32.mrf.mxu2 }
 0x300   :  { %v2932_v12 = vadd.f32 %v2931_v5, %v2891_v18  ;;  %3378 = vmatmul.f32.gmra.mxu1 %v8623_v25  ;;  %v3046_v18 = vadd.f32 %v8229_v45, %v3005_v10 }
 0x301   :  { %v2972_v38 = vpop.f32.mrf.mxu3 }
 0x302   :  { %v8263_v20 = vadd.f32 %v2972_v38, %v2932_v12 }
 0x303   :  { %v8265_v1 = vpop.f32.mrf.mxu0 }
 0x304   :  { %3401 = vmatmul.f32.vlgmr.msra.gmra.mxu2 %v8599_v26  ;;  %v3014_v14 = vadd.f32 %v8265_v1, %v8263_v20 }
 0x305   :  { %v8268_v29 = vpop.f32.mrf.mxu1 }
 0x306   :  { %3340 = vmatmul.f32.gmra.mxu0 %v8624_v34  ;;  %3442 = vmatmul.f32.vlgmr.msra.gmra.mxu3 %v8610_v43 }
 0x307   :  { %v3074_v23 = vpop.f32.mrf.mxu2 }
 0x308   :  { %v3075_v3 = vadd.f32 %v3074_v23, %v3034_v7  ;;  %3381 = vmatmul.f32.gmra.mxu1 %v8625_v13  ;;  %v3049_v7 = vadd.f32 %v8242_v63, %v3008_v50 }
 0x309   :  { %v3115_v59 = vpop.f32.mrf.mxu3 }
 0x30a   :  { %v3116_v33 = vadd.f32 %v3115_v59, %v3075_v3  ;;  %v8629_v3 = vld [vmem:[#allocation64_spill] sm:$0xff]  ;;  %v8631_v59 = vld [vmem:[#allocation66_spill] sm:$0xff] }
 0x30b   :  { %v3156_v15 = vpop.f32.mrf.mxu0 }
 0x30c   :  { %v3157_v16 = vadd.f32 %v3156_v15, %v3116_v33  ;;  %3404 = vmatmul.f32.gmra.mxu2 %v8603_v28 }
 0x30d   :  { %v3197_v26 = vpop.f32.mrf.mxu1 }
 0x30e   :  { %v8278_v42 = vadd.f32 %v3197_v26, %v3157_v16  ;;  %3445 = vmatmul.f32.gmra.mxu3 %v8612_v31  ;;  %3483 = vmatmul.f32.vlgmr.msra.gmra.mxu0 %v8611_v54  ;;  %v8632_v16 = vld [vmem:[#allocation59_spill] sm:$0xff]  ;;  %v3052_v26 = vadd.f32 %v8255_v60, %v3011_v9 }
 0x30f   :  { %v3077_v43 = vpop.f32.mrf.mxu2 }
 0x310   :  { %v3078_v58 = vadd.f32 %v3077_v43, %v3037_v21  ;;  %3524 = vmatmul.f32.vlgmr.msra.gmra.mxu1 %v8614_v4  ;;  %v8633_v43 = vld [vmem:[#allocation67_spill] sm:$0xff] }
 0x311   :  { %v3118_v56 = vpop.f32.mrf.mxu3 }
 0x312   :  { %v3119_v55 = vadd.f32 %v3118_v56, %v3078_v58  ;;  %v8634_v58 = vld [vmem:[#allocation65_spill] sm:$0xff] }
 0x313   :  { %v3159_v6 = vpop.f32.mrf.mxu0 }
 0x314   :  { %v3160_v28 = vadd.f32 %v3159_v6, %v3119_v55  ;;  %3407 = vmatmul.f32.gmra.mxu2 %v8607_v48  ;;  %v8635_v55 = vld [vmem:[#allocation69_spill] sm:$0xff] }
 0x315   :  { %v3200_v52 = vpop.f32.mrf.mxu1 }
 0x316   :  { %v8287_v62 = vadd.f32 %v3200_v52, %v3160_v28  ;;  %3448 = vmatmul.f32.gmra.mxu3 %v8616_v46  ;;  %3486 = vmatmul.f32.gmra.mxu0 %v8613_v47 }
 0x317   :  { %v3080_v54 = vpop.f32.mrf.mxu2 }
 0x318   :  { %v3081_v31 = vadd.f32 %v3080_v54, %v3040_v40  ;;  %3527 = vmatmul.f32.gmra.mxu1 %v8618_v41  ;;  %v8636_v40 = vld [vmem:[#allocation61_spill] sm:$0xff]  ;;  %v3055_v54 = vadd.f32 %v8268_v29, %v3014_v14 }
 0x319   :  { %v3121_v4 = vpop.f32.mrf.mxu3 }
 0x31a   :  { %v3122_v2 = vadd.f32 %v3121_v4, %v3081_v31  ;;  %v8637_v4 = vld [vmem:[#allocation70_spill] sm:$0xff] }
 0x31b   :  { %v3162_v44 = vpop.f32.mrf.mxu0 }
 0x31c   :  { %v3163_v48 = vadd.f32 %v3162_v44, %v3122_v2  ;;  %3410 = vmatmul.f32.gmra.mxu2 %v8609_v53 }
 0x31d   :  { %v3203_v49 = vpop.f32.mrf.mxu1 }
 0x31e   :  { %v8296_v27 = vadd.f32 %v3203_v49, %v3163_v48  ;;  %3451 = vmatmul.f32.gmra.mxu3 %v8620_v39  ;;  %3489 = vmatmul.f32.gmra.mxu0 %v8617_v35  ;;  %v8627_v39 = vld [vmem:[#allocation62_spill] sm:$0xff]  ;;  %v8639_v48 = vld [vmem:[#allocation72_spill] sm:$0xff] }
 0x31f   :  { %v3083_v47 = vpop.f32.mrf.mxu2 }
 0x320   :  { %v3084_v46 = vadd.f32 %v3083_v47, %v3043_v57  ;;  %3530 = vmatmul.f32.gmra.mxu1 %v8622_v22 }
 0x321   :  { %v3124_v41 = vpop.f32.mrf.mxu3 }
 0x322   :  { %v3125_v30 = vadd.f32 %v3124_v41, %v3084_v46  ;;  %v8640_v41 = vld [vmem:[#allocation71_spill] sm:$0xff] }
 0x323   :  { %v3165_v51 = vpop.f32.mrf.mxu0 }
 0x324   :  { %v3166_v53 = vadd.f32 %v3165_v51, %v3125_v30  ;;  %3413 = vmatmul.f32.gmra.mxu2 %v8626_v37  ;;  %v8641_v30 = vld [vmem:[#allocation73_spill] sm:$0xff] }
 0x325   :  { %v3206_v32 = vpop.f32.mrf.mxu1 }
 0x326   :  { %v8305_v5 = vadd.f32 %v3206_v32, %v3166_v53  ;;  %3454 = vmatmul.f32.gmra.mxu3 %v8627_v39  ;;  %3492 = vmatmul.f32.gmra.mxu0 %v8621_v24  ;;  %v8630_v24 = vld [vmem:[#allocation63_spill] sm:$0xff] }
 0x327   :  { %v3086_v35 = vpop.f32.mrf.mxu2 }
 0x328   :  { %v3087_v22 = vadd.f32 %v3086_v35, %v3046_v18  ;;  %3533 = vmatmul.f32.gmra.mxu1 %v8624_v34 }
 0x329   :  { %v3127_v12 = vpop.f32.mrf.mxu3 }
 0x32a   :  { %v3128_v19 = vadd.f32 %v3127_v12, %v3087_v22 }
 0x32b   :  { %v3168_v25 = vpop.f32.mrf.mxu0 }
 0x32c   :  { %v3169_v38 = vadd.f32 %v3168_v25, %v3128_v19  ;;  %3416 = vmatmul.f32.gmra.mxu2 %v8628_v61 }
 0x32d   :  { %v3209_v45 = vpop.f32.mrf.mxu1 }
 0x32e   :  { %v8314_v23 = vadd.f32 %v3209_v45, %v3169_v38  ;;  %3457 = vmatmul.f32.gmra.mxu3 %v8629_v3  ;;  %3495 = vmatmul.f32.gmra.mxu0 %v8630_v24 }
 0x32f   :  { %v3089_v13 = vpop.f32.mrf.mxu2 }
 0x330   :  { %v3090_v34 = vadd.f32 %v3089_v13, %v3049_v7  ;;  %3536 = vmatmul.f32.gmra.mxu1 %v8631_v59 }
 0x331   :  { %v3130_v8 = vpop.f32.mrf.mxu3 }
 0x332   :  { %v3131_v36 = vadd.f32 %v3130_v8, %v3090_v34 }
 0x333   :  { %v3171_v33 = vpop.f32.mrf.mxu0 }
 0x334   :  { %v3172_v15 = vadd.f32 %v3171_v33, %v3131_v36  ;;  %3419 = vmatmul.f32.gmra.mxu2 %v8632_v16 }
 0x335   :  { %v3212_v63 = vpop.f32.mrf.mxu1 }
 0x336   :  { %v8323_v21 = vadd.f32 %v3212_v63, %v3172_v15  ;;  %3460 = vmatmul.f32.gmra.mxu3 %v8633_v43  ;;  %3498 = vmatmul.f32.gmra.mxu0 %v8634_v58 }
 0x337   :  { %v3092_v56 = vpop.f32.mrf.mxu2 }
 0x338   :  { %v3093_v17 = vadd.f32 %v3092_v56, %v3052_v26  ;;  %3539 = vmatmul.f32.gmra.mxu1 %v8635_v55 }
 0x339   :  { %v3133_v6 = vpop.f32.mrf.mxu3 }
 0x33a   :  { %v3134_v0 = vadd.f32 %v3133_v6, %v3093_v17 }
 0x33b   :  { %v3174_v28 = vpop.f32.mrf.mxu0 }
 0x33c   :  { %v3175_v52 = vadd.f32 %v3174_v28, %v3134_v0  ;;  %3422 = vmatmul.f32.gmra.mxu2 %v8636_v40 }
 0x33d   :  { %v3215_v60 = vpop.f32.mrf.mxu1 }
 0x33e   :  { %v8332_v31 = vadd.f32 %v3215_v60, %v3175_v52  ;;  %3463 = vmatmul.f32.gmra.mxu3 %v8637_v4  ;;  %3501 = vmatmul.f32.gmra.mxu0 %v8638_v11 }
 0x33f   :  { %v3095_v2 = vpop.f32.mrf.mxu2 }
 0x340   :  { %v3096_v44 = vadd.f32 %v3095_v2, %v3055_v54  ;;  %3542 = vmatmul.f32.gmra.mxu1 %v8639_v48 }
 0x341   :  { %v3136_v49 = vpop.f32.mrf.mxu3 }
 0x342   :  { %v3137_v20 = vadd.f32 %v3136_v49, %v3096_v44 }
 0x343   :  { %v3177_v1 = vpop.f32.mrf.mxu0 }
 0x344   :  { %v3178_v57 = vadd.f32 %v3177_v1, %v3137_v20 }
 0x345   :  { %v3218_v47 = vpop.f32.mrf.mxu1 }
 0x346   :  { %v8337_v46 = vadd.f32 %v3218_v47, %v3178_v57  ;;  %3504 = vmatmul.f32.gmra.mxu0 %v8640_v41 }
 0x347   :  { %v3238_v29 = vpop.f32.mrf.mxu2 }
 0x348   :  { %v3239_v10 = vadd.f32 %v3238_v29, %v8278_v42  ;;  %3545 = vmatmul.f32.gmra.mxu1 %v8641_v30 }
 0x349   :  { %v3279_v51 = vpop.f32.mrf.mxu3 }
 0x34a   :  { %v3280_v53 = vadd.f32 %v3279_v51, %v3239_v10 }
 0x34b   :  { %v3320_v37 = vpop.f32.mrf.mxu0 }
 0x34c   :  { %v3321_v32 = vadd.f32 %v3320_v37, %v3280_v53 }
 0x34d   :  { %v3361_v18 = vpop.f32.mrf.mxu1 }
 0x34e   :  { %v3362_v39 = vadd.f32 %v3361_v18, %v3321_v32 }
 0x34f   :  { %v3241_v35 = vpop.f32.mrf.mxu2 }
 0x350   :  { %v3242_v22 = vadd.f32 %v3241_v35, %v8287_v62 }
 0x351   :  { %v3282_v12 = vpop.f32.mrf.mxu3 }
 0x352   :  { %v3283_v50 = vadd.f32 %v3282_v12, %v3242_v22 }
 0x353   :  { %v3323_v19 = vpop.f32.mrf.mxu0 }
 0x354   :  { %v3324_v25 = vadd.f32 %v3323_v19, %v3283_v50 }
 0x355   :  { %v3364_v38 = vpop.f32.mrf.mxu1 }
 0x356   :  { %v3365_v61 = vadd.f32 %v3364_v38, %v3324_v25 }
 0x357   :  { %v3244_v45 = vpop.f32.mrf.mxu2 }
 0x358   :  { %v3245_v42 = vadd.f32 %v3244_v45, %v8296_v27 }
 0x359   :  { %v3285_v7 = vpop.f32.mrf.mxu3 }
 0x35a   :  { %v3286_v3 = vadd.f32 %v3285_v7, %v3245_v42 }
 0x35b   :  { %v3326_v24 = vpop.f32.mrf.mxu0 }
 0x35c   :  { %v3327_v13 = vadd.f32 %v3326_v24, %v3286_v3 }
 0x35d   :  { %v3367_v34 = vpop.f32.mrf.mxu1 }
 0x35e   :  { %v3368_v59 = vadd.f32 %v3367_v34, %v3327_v13 }
 0x35f   :  { %v3247_v8 = vpop.f32.mrf.mxu2 }
 0x360   :  { %v3248_v9 = vadd.f32 %v3247_v8, %v8305_v5 }
 0x361   :  { %v3288_v36 = vpop.f32.mrf.mxu3 }
 0x362   :  { %v3289_v62 = vadd.f32 %v3288_v36, %v3248_v9 }
 0x363   :  { %v3329_v33 = vpop.f32.mrf.mxu0 }
 0x364   :  { %v3330_v15 = vadd.f32 %v3329_v33, %v3289_v62 }
 0x365   :  { %v3370_v16 = vpop.f32.mrf.mxu1 }
 0x366   :  { %v3371_v63 = vadd.f32 %v3370_v16, %v3330_v15 }
 0x367   :  { %v3250_v26 = vpop.f32.mrf.mxu2 }
 0x368   :  { %v3251_v43 = vadd.f32 %v3250_v26, %v8314_v23 }
 0x369   :  { %v3291_v58 = vpop.f32.mrf.mxu3 }
 0x36a   :  { %v3292_v27 = vadd.f32 %v3291_v58, %v3251_v43 }
 0x36b   :  { %v3332_v56 = vpop.f32.mrf.mxu0 }
 0x36c   :  { %v3333_v17 = vadd.f32 %v3332_v56, %v3292_v27 }
 0x36d   :  { %v3373_v55 = vpop.f32.mrf.mxu1 }
 0x36e   :  { %v3374_v6 = vadd.f32 %v3373_v55, %v3333_v17 }
 0x36f   :  { %v3253_v14 = vpop.f32.mrf.mxu2 }
 0x370   :  { %v3254_v0 = vadd.f32 %v3253_v14, %v8323_v21 }
 0x371   :  { %v3294_v28 = vpop.f32.mrf.mxu3 }
 0x372   :  { %v3295_v5 = vadd.f32 %v3294_v28, %v3254_v0 }
 0x373   :  { %v3335_v52 = vpop.f32.mrf.mxu0 }
 0x374   :  { %v3336_v40 = vadd.f32 %v3335_v52, %v3295_v5 }
 0x375   :  { %v3376_v60 = vpop.f32.mrf.mxu1 }
 0x376   :  { %v8347_v54 = vadd.f32 %v3376_v60, %v3336_v40 }
 0x377   :  { %v3256_v4 = vpop.f32.mrf.mxu2 }
 0x378   :  { %v3257_v16 = vadd.f32 %v3256_v4, %v8332_v31 }
 0x379   :  { %v3297_v11 = vpop.f32.mrf.mxu3 }
 0x37a   :  { %v3298_v58 = vadd.f32 %v3297_v11, %v3257_v16 }
 0x37b   :  { %v3338_v2 = vpop.f32.mrf.mxu0 }
 0x37c   :  { %v3339_v17 = vadd.f32 %v3338_v2, %v3298_v58 }
 0x37d   :  { %v3379_v23 = vpop.f32.mrf.mxu1 }
 0x37e   :  { %v3380_v28 = vadd.f32 %v3379_v23, %v3339_v17  ;;  %v3805_v23 = vld [vmem:[%s8363_s2] sm:$0x3] }
 0x37f   :  { %v3259_v44 = vpop.f32.mrf.mxu2 }
 0x381   :  { %v3300_v48 = vpop.f32.mrf.mxu3 }
 0x383   :  { %v3341_v49 = vpop.f32.mrf.mxu0 }
 0x385   :  { %v3382_v20 = vpop.f32.mrf.mxu1 }
 0x387   :  { %v3402_v1 = vpop.f32.mrf.mxu2 }
 0x388   :  { %v3403_v10 = vadd.f32 %v3402_v1, %v3362_v39 }
 0x389   :  { %v3443_v57 = vpop.f32.mrf.mxu3 }
 0x38a   :  { %v3444_v53 = vadd.f32 %v3443_v57, %v3403_v10 }
 0x38b   :  { %v3484_v47 = vpop.f32.mrf.mxu0 }
 0x38c   :  { %v3485_v35 = vadd.f32 %v3484_v47, %v3444_v53 }
 0x38d   :  { %v3525_v41 = vpop.f32.mrf.mxu1 }
 0x38e   :  { %v3526_v38 = vadd.f32 %v3525_v41, %v3485_v35 }
 0x38f   :  { %v3405_v21 = vpop.f32.mrf.mxu2 }
 0x390   :  { %v3406_v22 = vadd.f32 %v3405_v21, %v3365_v61 }
 0x391   :  { %v3446_v29 = vpop.f32.mrf.mxu3 }
 0x392   :  { %v3447_v45 = vadd.f32 %v3446_v29, %v3406_v22 }
 0x393   :  { %v3487_v30 = vpop.f32.mrf.mxu0 }
 0x394   :  { %v3488_v39 = vadd.f32 %v3487_v30, %v3447_v45 }
 0x395   :  { %v3528_v51 = vpop.f32.mrf.mxu1 }
 0x397   :  { %v3408_v37 = vpop.f32.mrf.mxu2 }
 0x398   :  { %v3409_v32 = vadd.f32 %v3408_v37, %v3368_v59  ;;  %v3529_v59 = vadd.f32 %v3528_v51, %v3488_v39 }
 0x399   :  { %v3449_v18 = vpop.f32.mrf.mxu3 }
 0x39a   :  { %v3450_v12 = vadd.f32 %v3449_v18, %v3409_v32 }
 0x39b   :  { %v3490_v50 = vpop.f32.mrf.mxu0 }
 0x39c   :  { %v3491_v19 = vadd.f32 %v3490_v50, %v3450_v12 }
 0x39d   :  { %v3531_v25 = vpop.f32.mrf.mxu1 }
 0x39e   :  { %v3532_v42 = vadd.f32 %v3531_v25, %v3491_v19 }
 0x39f   :  { %v3411_v7 = vpop.f32.mrf.mxu2 }
 0x3a0   :  { %v3550_v3 = vmax.f32 %v3526_v38, %v3532_v42  ;;  %v3412_v24 = vadd.f32 %v3411_v7, %v3371_v63  ;;  %v3260_v63 = vadd.f32 %v3259_v44, %v8337_v46 }
 0x3a1   :  { %v3452_v13 = vpop.f32.mrf.mxu3 }
 0x3a2   :  { %v3453_v34 = vadd.f32 %v3452_v13, %v3412_v24  ;;  %v3301_v5 = vadd.f32 %v3300_v48, %v3260_v63  ;;  %v3564_v48 = vperm.slane %v3805_v23, 1 }
 0x3a3   :  { %v3493_v8 = vpop.f32.mrf.mxu0 }
 0x3a4   :  { %v3494_v9 = vadd.f32 %v3493_v8, %v3453_v34  ;;  %v3342_v57 = vadd.f32 %v3341_v49, %v3301_v5 }
 0x3a5   :  { %v3534_v36 = vpop.f32.mrf.mxu1 }
 0x3a6   :  { %v3535_v62 = vadd.f32 %v3534_v36, %v3494_v9  ;;  %v3383_v2 = vadd.f32 %v3382_v20, %v3342_v57 }
 0x3a7   :  { %v3414_v33 = vpop.f32.mrf.mxu2 }
 0x3a8   :  { %v3552_v61 = vmax.f32 %v3529_v59, %v3535_v62  ;;  %v3415_v55 = vadd.f32 %v3414_v33, %v3374_v6 }
 0x3a9   :  { %v3455_v15 = vpop.f32.mrf.mxu3 }
 0x3aa   :  { %v3456_v52 = vadd.f32 %v3455_v15, %v3415_v55 }
 0x3ab   :  { %v3496_v26 = vpop.f32.mrf.mxu0 }
 0x3ac   :  { %v3497_v47 = vadd.f32 %v3496_v26, %v3456_v52 }
 0x3ad   :  { %v3537_v43 = vpop.f32.mrf.mxu1 }
 0x3ae   :  { %v3538_v29 = vadd.f32 %v3537_v43, %v3497_v47 }
 0x3af   :  { %v3417_v27 = vpop.f32.mrf.mxu2 }
 0x3b0   :  { %v3418_v31 = vadd.f32 %v3417_v27, %v8347_v54 }
 0x3b1   :  { %v3458_v56 = vpop.f32.mrf.mxu3 }
 0x3b2   :  { %v3459_v46 = vadd.f32 %v3458_v56, %v3418_v31 }
 0x3b3   :  { %v3499_v14 = vpop.f32.mrf.mxu0 }
 0x3b4   :  { %v3500_v51 = vadd.f32 %v3499_v14, %v3459_v46 }
 0x3b5   :  { %v3540_v0 = vpop.f32.mrf.mxu1 }
 0x3b6   :  { %v3541_v20 = vadd.f32 %v3540_v0, %v3500_v51 }
 0x3b7   :  { %v3420_v40 = vpop.f32.mrf.mxu2 }
 0x3b8   :  { %v3421_v60 = vadd.f32 %v3420_v40, %v3380_v28 }
 0x3b9   :  { %v3461_v1 = vpop.f32.mrf.mxu3 }
 0x3ba   :  { %v3462_v4 = vadd.f32 %v3461_v1, %v3421_v60 }
 0x3bb   :  { %v3502_v11 = vpop.f32.mrf.mxu0 }
 0x3bc   :  { %v3503_v41 = vadd.f32 %v3502_v11, %v3462_v4 }
 0x3bd   :  { %v3543_v21 = vpop.f32.mrf.mxu1 }
 0x3be   :  { %v3544_v6 = vadd.f32 %v3543_v21, %v3503_v41 }
 0x3bf   :  { %v3423_v44 = vpop.f32.mrf.mxu2 }
 0x3c0   :  { %v3554_v10 = vmax.f32 %v3538_v29, %v3544_v6  ;;  %v3424_v30 = vadd.f32 %v3423_v44, %v3383_v2 }
 0x3c1   :  { %v3464_v49 = vpop.f32.mrf.mxu3 }
 0x3c2   :  { %v3558_v53 = vmax.f32 %v3550_v3, %v3554_v10  ;;  %v3465_v54 = vadd.f32 %v3464_v49, %v3424_v30 }
 0x3c3   :  { %v3505_v37 = vpop.f32.mrf.mxu0 }
 0x3c4   :  { %v3568_v32 = vadd.f32 %v3564_v48, %v3558_v53  ;;  %v3506_v18 = vadd.f32 %v3505_v37, %v3465_v54 }
 0x3c5   :  { %v3546_v35 = vpop.f32.mrf.mxu1 }
 0x3c6   :  { %v3572_v22 = vmax.f32 %v3568_v32, 0.0  ;;  %v3547_v12 = vadd.f32 %v3546_v35, %v3506_v18 }
 0x3c8   :  { %3576 = vst [vmem:[%s8364_s3 + $0x8] sm:$0xff] %v3572_v22  ;;  %v3556_v50 = vmax.f32 %v3541_v20, %v3547_v12 }
 0x3ca   :  { %v3560_v19 = vmax.f32 %v3552_v61, %v3556_v50 }
 0x3cc   :  { %v3570_v25 = vadd.f32 %v3564_v48, %v3560_v19 }
 0x3ce   :  { %v3574_v38 = vmax.f32 %v3570_v25, 0.0 }
 0x3d0   :  { %3578 = vst [vmem:[%s8364_s3 + $0x18] sm:$0xff] %v3574_v38 }

// kernel: cnn_forward.5
= control target key start
LH: loop header
LB: loop body
LE: loop exit
PB: predicated region body
PF: predicated region fallthrough
CT: control target
= control target key end

     0   :  { %vm227_vm0 = vcmask 261120   ;;  %s1151_s1 = inlined_call_operand.vmem [shape: f32[1568,128], index: 1, kind: input, shape index: {}]   ;;  %s1152_s0 = inlined_call_operand.vmem [shape: f32[8,1568], index: 0, kind: input, shape index: {}]   ;;  %s1153_s2 = inlined_call_operand.vmem [shape: f32[1,128], index: 2, kind: input, shape index: {}]   ;;  %s1154_s3 = inlined_call_operand.vmem [shape: f32[8,128], index: 3, kind: output, shape index: {}]  }
   0x1   :  { %v42_v0 = vld [vmem:[%s1151_s1 + $0x78] sm:$0xff]  ;;  %v41_v2 = vld [vmem:[%s1151_s1 + $0x70] sm:$0xff]  ;;  %v40_v6 = vld [vmem:[%s1151_s1 + $0x68] sm:$0xff] }
   0x2   :  { %v74_v1 = vld [vmem:[%s1151_s1 + $0x178] sm:$0xff]  ;;  %231 = vmatpush.msra.mxu0 %v42_v0  ;;  %v73_v4 = vld [vmem:[%s1151_s1 + $0x170] sm:$0xff]  ;;  %v72_v8 = vld [vmem:[%s1151_s1 + $0x168] sm:$0xff] }
   0x3   :  { %271 = vmatpush.msra.mxu2 %v74_v1  ;;  %v58_v3 = vld [vmem:[%s1151_s1 + $0xf8] sm:$0xff]  ;;  %v57_v7 = vld [vmem:[%s1151_s1 + $0xf0] sm:$0xff]  ;;  %v56_v10 = vld [vmem:[%s1151_s1 + $0xe8] sm:$0xff] }
   0x4   :  { %v90_v5 = vld [vmem:[%s1151_s1 + $0x1f8] sm:$0xff]  ;;  %251 = vmatpush.msra.mxu1 %v58_v3  ;;  %232 = vmatpush.msra.mxu0 %v41_v2  ;;  %v89_v9 = vld [vmem:[%s1151_s1 + $0x1f0] sm:$0xff]  ;;  %v39_v11 = vld [vmem:[%s1151_s1 + $0x60] sm:$0xff] }
   0x5   :  { %291 = vmatpush.msra.mxu3 %v90_v5  ;;  %272 = vmatpush.msra.mxu2 %v73_v4  ;;  %v71_v12 = vld [vmem:[%s1151_s1 + $0x160] sm:$0xff]  ;;  %v88_v13 = vld [vmem:[%s1151_s1 + $0x1e8] sm:$0xff]  ;;  %v38_v16 = vld [vmem:[%s1151_s1 + $0x58] sm:$0xff] }
   0x6   :  { %252 = vmatpush.msra.mxu1 %v57_v7  ;;  %233 = vmatpush.msra.mxu0 %v40_v6  ;;  %v55_v14 = vld [vmem:[%s1151_s1 + $0xe0] sm:$0xff]  ;;  %v70_v17 = vld [vmem:[%s1151_s1 + $0x158] sm:$0xff]  ;;  %v37_v20 = vld [vmem:[%s1151_s1 + $0x50] sm:$0xff] }
   0x7   :  { %292 = vmatpush.msra.mxu3 %v89_v9  ;;  %273 = vmatpush.msra.mxu2 %v72_v8  ;;  %v87_v15 = vld [vmem:[%s1151_s1 + $0x1e0] sm:$0xff]  ;;  %v54_v18 = vld [vmem:[%s1151_s1 + $0xd8] sm:$0xff]  ;;  %v69_v21 = vld [vmem:[%s1151_s1 + $0x150] sm:$0xff] }
   0x8   :  { %253 = vmatpush.msra.mxu1 %v56_v10  ;;  %234 = vmatpush.msra.mxu0 %v39_v11  ;;  %v86_v19 = vld [vmem:[%s1151_s1 + $0x1d8] sm:$0xff]  ;;  %v53_v22 = vld [vmem:[%s1151_s1 + $0xd0] sm:$0xff]  ;;  %v36_v24 = vld [vmem:[%s1151_s1 + $0x48] sm:$0xff] }
   0x9   :  { %293 = vmatpush.msra.mxu3 %v88_v13  ;;  %274 = vmatpush.msra.mxu2 %v71_v12  ;;  %v85_v23 = vld [vmem:[%s1151_s1 + $0x1d0] sm:$0xff]  ;;  %v68_v25 = vld [vmem:[%s1151_s1 + $0x148] sm:$0xff]  ;;  %v35_v28 = vld [vmem:[%s1151_s1 + $0x40] sm:$0xff] }
   0xa   :  { %254 = vmatpush.msra.mxu1 %v55_v14  ;;  %235 = vmatpush.msra.mxu0 %v38_v16  ;;  %v52_v26 = vld [vmem:[%s1151_s1 + $0xc8] sm:$0xff]  ;;  %v67_v29 = vld [vmem:[%s1151_s1 + $0x140] sm:$0xff]  ;;  %v34_v32 = vld [vmem:[%s1151_s1 + $0x38] sm:$0xff] }
   0xb   :  { %294 = vmatpush.msra.mxu3 %v87_v15  ;;  %275 = vmatpush.msra.mxu2 %v70_v17  ;;  %v84_v27 = vld [vmem:[%s1151_s1 + $0x1c8] sm:$0xff]  ;;  %v51_v30 = vld [vmem:[%s1151_s1 + $0xc0] sm:$0xff]  ;;  %v66_v33 = vld [vmem:[%s1151_s1 + $0x138] sm:$0xff] }
   0xc   :  { %255 = vmatpush.msra.mxu1 %v54_v18  ;;  %236 = vmatpush.msra.mxu0 %v37_v20  ;;  %v83_v31 = vld [vmem:[%s1151_s1 + $0x1c0] sm:$0xff]  ;;  %v50_v34 = vld [vmem:[%s1151_s1 + $0xb8] sm:$0xff]  ;;  %v33_v36 = vld [vmem:[%s1151_s1 + $0x30] sm:$0xff] }
   0xd   :  { %295 = vmatpush.msra.mxu3 %v86_v19  ;;  %276 = vmatpush.msra.mxu2 %v69_v21  ;;  %v82_v35 = vld [vmem:[%s1151_s1 + $0x1b8] sm:$0xff]  ;;  %v65_v37 = vld [vmem:[%s1151_s1 + $0x130] sm:$0xff]  ;;  %v32_v40 = vld [vmem:[%s1151_s1 + $0x28] sm:$0xff] }
   0xe   :  { %256 = vmatpush.msra.mxu1 %v53_v22  ;;  %237 = vmatpush.msra.mxu0 %v36_v24  ;;  %v49_v38 = vld [vmem:[%s1151_s1 + $0xb0] sm:$0xff]  ;;  %v64_v41 = vld [vmem:[%s1151_s1 + $0x128] sm:$0xff]  ;;  %v31_v44 = vld [vmem:[%s1151_s1 + $0x20] sm:$0xff] }
   0xf   :  { %296 = vmatpush.msra.mxu3 %v85_v23  ;;  %277 = vmatpush.msra.mxu2 %v68_v25  ;;  %v81_v39 = vld [vmem:[%s1151_s1 + $0x1b0] sm:$0xff]  ;;  %v48_v42 = vld [vmem:[%s1151_s1 + $0xa8] sm:$0xff]  ;;  %v63_v45 = vld [vmem:[%s1151_s1 + $0x120] sm:$0xff] }
  0x10   :  { %257 = vmatpush.msra.mxu1 %v52_v26  ;;  %238 = vmatpush.msra.mxu0 %v35_v28  ;;  %v80_v43 = vld [vmem:[%s1151_s1 + $0x1a8] sm:$0xff]  ;;  %v47_v46 = vld [vmem:[%s1151_s1 + $0xa0] sm:$0xff]  ;;  %v30_v48 = vld [vmem:[%s1151_s1 + $0x18] sm:$0xff] }
  0x11   :  { %297 = vmatpush.msra.mxu3 %v84_v27  ;;  %278 = vmatpush.msra.mxu2 %v67_v29  ;;  %v79_v47 = vld [vmem:[%s1151_s1 + $0x1a0] sm:$0xff]  ;;  %v62_v49 = vld [vmem:[%s1151_s1 + $0x118] sm:$0xff]  ;;  %v29_v52 = vld [vmem:[%s1151_s1 + $0x10] sm:$0xff] }
  0x12   :  { %258 = vmatpush.msra.mxu1 %v51_v30  ;;  %239 = vmatpush.msra.mxu0 %v34_v32  ;;  %v46_v50 = vld [vmem:[%s1151_s1 + $0x98] sm:$0xff]  ;;  %v61_v53 = vld [vmem:[%s1151_s1 + $0x110] sm:$0xff]  ;;  %v28_v56 = vld [vmem:[%s1151_s1 + $0x8] sm:$0xff] }
  0x13   :  { %298 = vmatpush.msra.mxu3 %v83_v31  ;;  %279 = vmatpush.msra.mxu2 %v66_v33  ;;  %v78_v51 = vld [vmem:[%s1151_s1 + $0x198] sm:$0xff]  ;;  %v45_v54 = vld [vmem:[%s1151_s1 + $0x90] sm:$0xff]  ;;  %v60_v57 = vld [vmem:[%s1151_s1 + $0x108] sm:$0xff] }
  0x14   :  { %259 = vmatpush.msra.mxu1 %v50_v34  ;;  %240 = vmatpush.msra.mxu0 %v33_v36  ;;  %v77_v55 = vld [vmem:[%s1151_s1 + $0x190] sm:$0xff]  ;;  %v44_v58 = vld [vmem:[%s1151_s1 + $0x88] sm:$0xff]  ;;  %v27_v60 = vld [vmem:[%s1151_s1] sm:$0xff] }
  0x15   :  { %299 = vmatpush.msra.mxu3 %v82_v35  ;;  %280 = vmatpush.msra.mxu2 %v65_v37  ;;  %v76_v59 = vld [vmem:[%s1151_s1 + $0x188] sm:$0xff]  ;;  %v59_v61 = vld [vmem:[%s1151_s1 + $0x100] sm:$0xff]  ;;  %v106_v62 = vld [vmem:[%s1151_s1 + $0x278] sm:$0xff] }
  0x16   :  { %260 = vmatpush.msra.mxu1 %v49_v38  ;;  %241 = vmatpush.msra.mxu0 %v32_v40  ;;  %v138_v63 = vld [vmem:[%s1151_s1 + $0x378] sm:$0xff]  ;;  %v43_v0 = vld [vmem:[%s1151_s1 + $0x80] sm:$0xff]  ;;  %v105_v2 = vld [vmem:[%s1151_s1 + $0x270] sm:$0xff] }
  0x17   :  { %300 = vmatpush.msra.mxu3 %v81_v39  ;;  %281 = vmatpush.msra.mxu2 %v64_v41  ;;  %v75_v1 = vld [vmem:[%s1151_s1 + $0x180] sm:$0xff]  ;;  %v122_v3 = vld [vmem:[%s1151_s1 + $0x2f8] sm:$0xff]  ;;  %v137_v4 = vld [vmem:[%s1151_s1 + $0x370] sm:$0xff] }
  0x18   :  { %261 = vmatpush.msra.mxu1 %v48_v42  ;;  %242 = vmatpush.msra.mxu0 %v31_v44  ;;  %v154_v5 = vld [vmem:[%s1151_s1 + $0x3f8] sm:$0xff]  ;;  %v104_v6 = vld [vmem:[%s1151_s1 + $0x268] sm:$0xff]  ;;  %v121_v7 = vld [vmem:[%s1151_s1 + $0x2f0] sm:$0xff] }
  0x19   :  { %301 = vmatpush.msra.mxu3 %v80_v43  ;;  %282 = vmatpush.msra.mxu2 %v63_v45  ;;  %v136_v8 = vld [vmem:[%s1151_s1 + $0x368] sm:$0xff]  ;;  %v153_v9 = vld [vmem:[%s1151_s1 + $0x3f0] sm:$0xff]  ;;  %v103_v10 = vld [vmem:[%s1151_s1 + $0x260] sm:$0xff] }
  0x1a   :  { %262 = vmatpush.msra.mxu1 %v47_v46  ;;  %243 = vmatpush.msra.mxu0 %v30_v48  ;;  %v120_v11 = vld [vmem:[%s1151_s1 + $0x2e8] sm:$0xff]  ;;  %v135_v12 = vld [vmem:[%s1151_s1 + $0x360] sm:$0xff]  ;;  %v102_v14 = vld [vmem:[%s1151_s1 + $0x258] sm:$0xff] }
  0x1b   :  { %302 = vmatpush.msra.mxu3 %v79_v47  ;;  %283 = vmatpush.msra.mxu2 %v62_v49  ;;  %v152_v13 = vld [vmem:[%s1151_s1 + $0x3e8] sm:$0xff]  ;;  %v119_v15 = vld [vmem:[%s1151_s1 + $0x2e0] sm:$0xff]  ;;  %v134_v16 = vld [vmem:[%s1151_s1 + $0x358] sm:$0xff] }
  0x1c   :  { %263 = vmatpush.msra.mxu1 %v46_v50  ;;  %244 = vmatpush.msra.mxu0 %v29_v52  ;;  %v151_v17 = vld [vmem:[%s1151_s1 + $0x3e0] sm:$0xff]  ;;  %v101_v18 = vld [vmem:[%s1151_s1 + $0x250] sm:$0xff]  ;;  %v118_v19 = vld [vmem:[%s1151_s1 + $0x2d8] sm:$0xff] }
  0x1d   :  { %303 = vmatpush.msra.mxu3 %v78_v51  ;;  %284 = vmatpush.msra.mxu2 %v61_v53  ;;  %v133_v20 = vld [vmem:[%s1151_s1 + $0x350] sm:$0xff]  ;;  %v150_v21 = vld [vmem:[%s1151_s1 + $0x3d8] sm:$0xff]  ;;  %v100_v22 = vld [vmem:[%s1151_s1 + $0x248] sm:$0xff] }
  0x1e   :  { %264 = vmatpush.msra.mxu1 %v45_v54  ;;  %245 = vmatpush.msra.mxu0 %v28_v56  ;;  %v117_v23 = vld [vmem:[%s1151_s1 + $0x2d0] sm:$0xff]  ;;  %v132_v24 = vld [vmem:[%s1151_s1 + $0x348] sm:$0xff]  ;;  %v99_v26 = vld [vmem:[%s1151_s1 + $0x240] sm:$0xff] }
  0x1f   :  { %304 = vmatpush.msra.mxu3 %v77_v55  ;;  %285 = vmatpush.msra.mxu2 %v60_v57  ;;  %v149_v25 = vld [vmem:[%s1151_s1 + $0x3d0] sm:$0xff]  ;;  %v116_v27 = vld [vmem:[%s1151_s1 + $0x2c8] sm:$0xff]  ;;  %v131_v28 = vld [vmem:[%s1151_s1 + $0x340] sm:$0xff] }
  0x20   :  { %265 = vmatpush.msra.mxu1 %v44_v58  ;;  %246 = vmatpush.msra.mxu0 %v27_v60  ;;  %v148_v29 = vld [vmem:[%s1151_s1 + $0x3c8] sm:$0xff]  ;;  %v98_v30 = vld [vmem:[%s1151_s1 + $0x238] sm:$0xff]  ;;  %v115_v31 = vld [vmem:[%s1151_s1 + $0x2c0] sm:$0xff] }
  0x21   :  { %305 = vmatpush.msra.mxu3 %v76_v59  ;;  %286 = vmatpush.msra.mxu2 %v59_v61  ;;  %v130_v32 = vld [vmem:[%s1151_s1 + $0x338] sm:$0xff]  ;;  %v147_v33 = vld [vmem:[%s1151_s1 + $0x3c0] sm:$0xff]  ;;  %v97_v34 = vld [vmem:[%s1151_s1 + $0x230] sm:$0xff] }
  0x22   :  { %311 = vmatpush.msrb.mxu0 %v106_v62  ;;  %266 = vmatpush.msra.mxu1 %v43_v0  ;;  %v114_v35 = vld [vmem:[%s1151_s1 + $0x2b8] sm:$0xff]  ;;  %v129_v36 = vld [vmem:[%s1151_s1 + $0x330] sm:$0xff]  ;;  %v96_v38 = vld [vmem:[%s1151_s1 + $0x228] sm:$0xff] }
  0x23   :  { %351 = vmatpush.msrb.mxu2 %v138_v63  ;;  %306 = vmatpush.msra.mxu3 %v75_v1  ;;  %v146_v37 = vld [vmem:[%s1151_s1 + $0x3b8] sm:$0xff]  ;;  %v113_v39 = vld [vmem:[%s1151_s1 + $0x2b0] sm:$0xff]  ;;  %v128_v40 = vld [vmem:[%s1151_s1 + $0x328] sm:$0xff] }
  0x24   :  { %312 = vmatpush.msrb.mxu0 %v105_v2  ;;  %331 = vmatpush.msrb.mxu1 %v122_v3  ;;  %v145_v41 = vld [vmem:[%s1151_s1 + $0x3b0] sm:$0xff]  ;;  %v95_v42 = vld [vmem:[%s1151_s1 + $0x220] sm:$0xff]  ;;  %v112_v43 = vld [vmem:[%s1151_s1 + $0x2a8] sm:$0xff] }
  0x25   :  { %352 = vmatpush.msrb.mxu2 %v137_v4  ;;  %371 = vmatpush.msrb.mxu3 %v154_v5  ;;  %v127_v44 = vld [vmem:[%s1151_s1 + $0x320] sm:$0xff]  ;;  %v144_v45 = vld [vmem:[%s1151_s1 + $0x3a8] sm:$0xff]  ;;  %v94_v46 = vld [vmem:[%s1151_s1 + $0x218] sm:$0xff] }
  0x26   :  { %313 = vmatpush.msrb.mxu0 %v104_v6  ;;  %332 = vmatpush.msrb.mxu1 %v121_v7  ;;  %v111_v47 = vld [vmem:[%s1151_s1 + $0x2a0] sm:$0xff]  ;;  %v126_v48 = vld [vmem:[%s1151_s1 + $0x318] sm:$0xff]  ;;  %v93_v50 = vld [vmem:[%s1151_s1 + $0x210] sm:$0xff] }
  0x27   :  { %353 = vmatpush.msrb.mxu2 %v136_v8  ;;  %372 = vmatpush.msrb.mxu3 %v153_v9  ;;  %v143_v49 = vld [vmem:[%s1151_s1 + $0x3a0] sm:$0xff]  ;;  %v110_v51 = vld [vmem:[%s1151_s1 + $0x298] sm:$0xff]  ;;  %v125_v52 = vld [vmem:[%s1151_s1 + $0x310] sm:$0xff] }
  0x28   :  { %314 = vmatpush.msrb.mxu0 %v103_v10  ;;  %333 = vmatpush.msrb.mxu1 %v120_v11  ;;  %v142_v53 = vld [vmem:[%s1151_s1 + $0x398] sm:$0xff]  ;;  %v92_v54 = vld [vmem:[%s1151_s1 + $0x208] sm:$0xff]  ;;  %v109_v55 = vld [vmem:[%s1151_s1 + $0x290] sm:$0xff] }
  0x29   :  { %354 = vmatpush.msrb.mxu2 %v135_v12  ;;  %373 = vmatpush.msrb.mxu3 %v152_v13  ;;  %v124_v56 = vld [vmem:[%s1151_s1 + $0x308] sm:$0xff]  ;;  %v141_v57 = vld [vmem:[%s1151_s1 + $0x390] sm:$0xff]  ;;  %v91_v58 = vld [vmem:[%s1151_s1 + $0x200] sm:$0xff] }
  0x2a   :  { %315 = vmatpush.msrb.mxu0 %v102_v14  ;;  %334 = vmatpush.msrb.mxu1 %v119_v15  ;;  %v108_v59 = vld [vmem:[%s1151_s1 + $0x288] sm:$0xff]  ;;  %v123_v60 = vld [vmem:[%s1151_s1 + $0x300] sm:$0xff]  ;;  %v16_v63 = vld [vmem:[%s1152_s0 + $0x10] sm:$0xff] }
  0x2b   :  { %355 = vmatpush.msrb.mxu2 %v134_v16  ;;  %374 = vmatpush.msrb.mxu3 %v151_v17  ;;  %v140_v61 = vld [vmem:[%s1151_s1 + $0x388] sm:$0xff]  ;;  %v14_v62 = vld [vmem:[%s1152_s0] sm:$0xff]  ;;  %v170_v0 = vld [vmem:[%s1151_s1 + $0x478] sm:$0xff] }
  0x2c   :  { %316 = vmatpush.msrb.mxu0 %v101_v18  ;;  %335 = vmatpush.msrb.mxu1 %v118_v19  ;;  %v202_v1 = vld [vmem:[%s1151_s1 + $0x578] sm:$0xff]  ;;  %v107_v2 = vld [vmem:[%s1151_s1 + $0x280] sm:$0xff]  ;;  %v15_v4 = vld [vmem:[%s1152_s0 + $0x8] sm:$0xff] }
  0x2d   :  { %356 = vmatpush.msrb.mxu2 %v133_v20  ;;  %375 = vmatpush.msrb.mxu3 %v150_v21  ;;  %v139_v3 = vld [vmem:[%s1151_s1 + $0x380] sm:$0xff]  ;;  %v17_v5 = vld [vmem:[%s1152_s0 + $0x18] sm:$0xff]  ;;  %v169_v6 = vld [vmem:[%s1151_s1 + $0x470] sm:$0xff] }
  0x2e   :  { %317 = vmatpush.msrb.mxu0 %v100_v22  ;;  %336 = vmatpush.msrb.mxu1 %v117_v23  ;;  %v186_v7 = vld [vmem:[%s1151_s1 + $0x4f8] sm:$0xff]  ;;  %v201_v8 = vld [vmem:[%s1151_s1 + $0x570] sm:$0xff]  ;;  %v168_v10 = vld [vmem:[%s1151_s1 + $0x468] sm:$0xff] }
  0x2f   :  { %357 = vmatpush.msrb.mxu2 %v132_v24  ;;  %376 = vmatpush.msrb.mxu3 %v149_v25  ;;  %v218_v9 = vld [vmem:[%s1151_s1 + $0x5f8] sm:$0xff]  ;;  %v185_v11 = vld [vmem:[%s1151_s1 + $0x4f0] sm:$0xff]  ;;  %v200_v12 = vld [vmem:[%s1151_s1 + $0x568] sm:$0xff] }
  0x30   :  { %318 = vmatpush.msrb.mxu0 %v99_v26  ;;  %337 = vmatpush.msrb.mxu1 %v116_v27  ;;  %v217_v13 = vld [vmem:[%s1151_s1 + $0x5f0] sm:$0xff]  ;;  %v167_v14 = vld [vmem:[%s1151_s1 + $0x460] sm:$0xff]  ;;  %v184_v15 = vld [vmem:[%s1151_s1 + $0x4e8] sm:$0xff] }
  0x31   :  { %358 = vmatpush.msrb.mxu2 %v131_v28  ;;  %377 = vmatpush.msrb.mxu3 %v148_v29  ;;  %v199_v16 = vld [vmem:[%s1151_s1 + $0x560] sm:$0xff]  ;;  %v216_v17 = vld [vmem:[%s1151_s1 + $0x5e8] sm:$0xff]  ;;  %v20_v18 = vld [vmem:[%s1152_s0 + $0x30] sm:$0xff] }
  0x32   :  { %319 = vmatpush.msrb.mxu0 %v98_v30  ;;  %338 = vmatpush.msrb.mxu1 %v115_v31  ;;  %v166_v19 = vld [vmem:[%s1151_s1 + $0x458] sm:$0xff]  ;;  %v183_v20 = vld [vmem:[%s1151_s1 + $0x4e0] sm:$0xff]  ;;  %v165_v25 = vld [vmem:[%s1151_s1 + $0x450] sm:$0xff] }
  0x33   :  { %359 = vmatpush.msrb.mxu2 %v130_v32  ;;  %378 = vmatpush.msrb.mxu3 %v147_v33  ;;  %v198_v21 = vld [vmem:[%s1151_s1 + $0x558] sm:$0xff]  ;;  %v215_v22 = vld [vmem:[%s1151_s1 + $0x5e0] sm:$0xff]  ;;  %v197_v27 = vld [vmem:[%s1151_s1 + $0x550] sm:$0xff] }
  0x34   :  { %320 = vmatpush.msrb.mxu0 %v97_v34  ;;  %339 = vmatpush.msrb.mxu1 %v114_v35  ;;  %v18_v23 = vld [vmem:[%s1152_s0 + $0x20] sm:$0xff]  ;;  %v21_v24 = vld [vmem:[%s1152_s0 + $0x38] sm:$0xff]  ;;  %v19_v29 = vld [vmem:[%s1152_s0 + $0x28] sm:$0xff] }
  0x35   :  { %360 = vmatpush.msrb.mxu2 %v129_v36  ;;  %379 = vmatpush.msrb.mxu3 %v146_v37  ;;  %v182_v26 = vld [vmem:[%s1151_s1 + $0x4d8] sm:$0xff]  ;;  %v164_v30 = vld [vmem:[%s1151_s1 + $0x448] sm:$0xff]  ;;  %v181_v31 = vld [vmem:[%s1151_s1 + $0x4d0] sm:$0xff] }
  0x36   :  { %321 = vmatpush.msrb.mxu0 %v96_v38  ;;  %340 = vmatpush.msrb.mxu1 %v113_v39  ;;  %v214_v28 = vld [vmem:[%s1151_s1 + $0x5d8] sm:$0xff]  ;;  %v196_v32 = vld [vmem:[%s1151_s1 + $0x548] sm:$0xff]  ;;  %v213_v33 = vld [vmem:[%s1151_s1 + $0x5d0] sm:$0xff] }
  0x37   :  { %361 = vmatpush.msrb.mxu2 %v128_v40  ;;  %380 = vmatpush.msrb.mxu3 %v145_v41  ;;  %v163_v34 = vld [vmem:[%s1151_s1 + $0x440] sm:$0xff]  ;;  %v180_v35 = vld [vmem:[%s1151_s1 + $0x4c8] sm:$0xff]  ;;  %v162_v38 = vld [vmem:[%s1151_s1 + $0x438] sm:$0xff] }
  0x38   :  { %322 = vmatpush.msrb.mxu0 %v95_v42  ;;  %341 = vmatpush.msrb.mxu1 %v112_v43  ;;  %v195_v36 = vld [vmem:[%s1151_s1 + $0x540] sm:$0xff]  ;;  %v212_v37 = vld [vmem:[%s1151_s1 + $0x5c8] sm:$0xff]  ;;  %v194_v40 = vld [vmem:[%s1151_s1 + $0x538] sm:$0xff] }
  0x39   :  { %362 = vmatpush.msrb.mxu2 %v127_v44  ;;  %381 = vmatpush.msrb.mxu3 %v144_v45  ;;  %v179_v39 = vld [vmem:[%s1151_s1 + $0x4c0] sm:$0xff]  ;;  %v161_v42 = vld [vmem:[%s1151_s1 + $0x430] sm:$0xff]  ;;  %v178_v43 = vld [vmem:[%s1151_s1 + $0x4b8] sm:$0xff] }
  0x3a   :  { %323 = vmatpush.msrb.mxu0 %v94_v46  ;;  %342 = vmatpush.msrb.mxu1 %v111_v47  ;;  %v211_v41 = vld [vmem:[%s1151_s1 + $0x5c0] sm:$0xff]  ;;  %v193_v44 = vld [vmem:[%s1151_s1 + $0x530] sm:$0xff]  ;;  %v210_v45 = vld [vmem:[%s1151_s1 + $0x5b8] sm:$0xff] }
  0x3b   :  { %363 = vmatpush.msrb.mxu2 %v126_v48  ;;  %382 = vmatpush.msrb.mxu3 %v143_v49  ;;  %v160_v46 = vld [vmem:[%s1151_s1 + $0x428] sm:$0xff]  ;;  %v177_v47 = vld [vmem:[%s1151_s1 + $0x4b0] sm:$0xff] }
  0x3c   :  { %324 = vmatpush.msrb.mxu0 %v93_v50  ;;  %343 = vmatpush.msrb.mxu1 %v110_v51  ;;  %v192_v48 = vld [vmem:[%s1151_s1 + $0x528] sm:$0xff]  ;;  %v209_v49 = vld [vmem:[%s1151_s1 + $0x5b0] sm:$0xff]  ;;  %v159_v50 = vld [vmem:[%s1151_s1 + $0x420] sm:$0xff] }
  0x3d   :  { %364 = vmatpush.msrb.mxu2 %v125_v52  ;;  %383 = vmatpush.msrb.mxu3 %v142_v53  ;;  %v176_v51 = vld [vmem:[%s1151_s1 + $0x4a8] sm:$0xff]  ;;  %v191_v52 = vld [vmem:[%s1151_s1 + $0x520] sm:$0xff] }
  0x3e   :  { %325 = vmatpush.msrb.mxu0 %v92_v54  ;;  %344 = vmatpush.msrb.mxu1 %v109_v55  ;;  %v208_v53 = vld [vmem:[%s1151_s1 + $0x5a8] sm:$0xff]  ;;  %v158_v54 = vld [vmem:[%s1151_s1 + $0x418] sm:$0xff]  ;;  %v175_v55 = vld [vmem:[%s1151_s1 + $0x4a0] sm:$0xff] }
  0x3f   :  { %365 = vmatpush.msrb.mxu2 %v124_v56  ;;  %384 = vmatpush.msrb.mxu3 %v141_v57  ;;  %v190_v56 = vld [vmem:[%s1151_s1 + $0x518] sm:$0xff]  ;;  %v207_v57 = vld [vmem:[%s1151_s1 + $0x5a0] sm:$0xff] }
  0x40   :  { %326 = vmatpush.msrb.mxu0 %v91_v58  ;;  %345 = vmatpush.msrb.mxu1 %v108_v59  ;;  %v157_v58 = vld [vmem:[%s1151_s1 + $0x410] sm:$0xff]  ;;  %v174_v59 = vld [vmem:[%s1151_s1 + $0x498] sm:$0xff] }
  0x41   :  { %366 = vmatpush.msrb.mxu2 %v123_v60  ;;  %385 = vmatpush.msrb.mxu3 %v140_v61  ;;  %v189_v60 = vld [vmem:[%s1151_s1 + $0x510] sm:$0xff]  ;;  %v206_v61 = vld [vmem:[%s1151_s1 + $0x598] sm:$0xff] }
  0x42   :  { %247 = vmatmul.f32.vlgmr.msra.gmra.mxu0 %v14_v62  ;;  %287 = vmatmul.f32.vlgmr.msra.gmra.mxu2 %v16_v63  ;;  %v156_v62 = vld [vmem:[%s1151_s1 + $0x408] sm:$0xff]  ;;  %v173_v63 = vld [vmem:[%s1151_s1 + $0x490] sm:$0xff] }
  0x43   :  { %391 = vmatpush.msra.mxu0 %v170_v0  ;;  %431 = vmatpush.msra.mxu2 %v202_v1  ;;  %v188_v0 = vld [vmem:[%s1151_s1 + $0x508] sm:$0xff]  ;;  %v205_v1 = vld [vmem:[%s1151_s1 + $0x590] sm:$0xff] }
  0x44   :  { %346 = vmatpush.msrb.mxu1 %v107_v2  ;;  %386 = vmatpush.msrb.mxu3 %v139_v3  ;;  %v155_v2 = vld [vmem:[%s1151_s1 + $0x400] sm:$0xff]  ;;  %v172_v3 = vld [vmem:[%s1151_s1 + $0x488] sm:$0xff] }
  0x45   :  { %267 = vmatmul.f32.vlgmr.msra.gmra.mxu1 %v15_v4  ;;  %307 = vmatmul.f32.vlgmr.msra.gmra.mxu3 %v17_v5  ;;  %v187_v4 = vld [vmem:[%s1151_s1 + $0x500] sm:$0xff]  ;;  %v204_v5 = vld [vmem:[%s1151_s1 + $0x588] sm:$0xff] }
  0x46   :  { %392 = vmatpush.msra.mxu0 %v169_v6  ;;  %411 = vmatpush.msra.mxu1 %v186_v7  ;;  %v22_v6 = vld [vmem:[%s1152_s0 + $0x40] sm:$0xff]  ;;  %v24_v7 = vld [vmem:[%s1152_s0 + $0x50] sm:$0xff] }
  0x47   :  { %432 = vmatpush.msra.mxu2 %v201_v8  ;;  %451 = vmatpush.msra.mxu3 %v218_v9  ;;  %v171_v8 = vld [vmem:[%s1151_s1 + $0x480] sm:$0xff] }
  0x48   :  { %393 = vmatpush.msra.mxu0 %v168_v10  ;;  %412 = vmatpush.msra.mxu1 %v185_v11  ;;  %v203_v9 = vld [vmem:[%s1151_s1 + $0x580] sm:$0xff]  ;;  %v23_v10 = vld [vmem:[%s1152_s0 + $0x48] sm:$0xff]  ;;  %v25_v11 = vld [vmem:[%s1152_s0 + $0x58] sm:$0xff] }
  0x49   :  { %433 = vmatpush.msra.mxu2 %v200_v12  ;;  %452 = vmatpush.msra.mxu3 %v217_v13  ;;  %v222_v12 = vld [vmem:[%s1151_s1 + $0x618] sm:$0xff]  ;;  %v221_v13 = vld [vmem:[%s1151_s1 + $0x610] sm:$0xff] }
  0x4a   :  { %394 = vmatpush.msra.mxu0 %v167_v14  ;;  %413 = vmatpush.msra.mxu1 %v184_v15  ;;  %v220_v14 = vld [vmem:[%s1151_s1 + $0x608] sm:$0xff]  ;;  %v219_v15 = vld [vmem:[%s1151_s1 + $0x600] sm:$0xff] }
  0x4b   :  { %434 = vmatpush.msra.mxu2 %v199_v16  ;;  %453 = vmatpush.msra.mxu3 %v216_v17  ;;  %v26_v16 = vld [vmem:[%s1152_s0 + $0x60] sm:$0xff] }
  0x4c   :  { %367 = vmatmul.f32.vlgmr.msrb.gmra.mxu2 %v20_v18  ;;  %395 = vmatpush.msra.mxu0 %v166_v19  ;;  %v497_v17 = vld [vmem:[%s1153_s2] ss:$0 sm:$0xff] }
  0x4d   :  { %414 = vmatpush.msra.mxu1 %v183_v20  ;;  %435 = vmatpush.msra.mxu2 %v198_v21 }
  0x4e   :  { %454 = vmatpush.msra.mxu3 %v215_v22  ;;  %327 = vmatmul.f32.vlgmr.msrb.gmra.mxu0 %v18_v23 }
  0x4f   :  { %387 = vmatmul.f32.vlgmr.msrb.gmra.mxu3 %v21_v24  ;;  %396 = vmatpush.msra.mxu0 %v165_v25 }
  0x50   :  { %415 = vmatpush.msra.mxu1 %v182_v26  ;;  %436 = vmatpush.msra.mxu2 %v197_v27 }
  0x51   :  { %455 = vmatpush.msra.mxu3 %v214_v28  ;;  %347 = vmatmul.f32.vlgmr.msrb.gmra.mxu1 %v19_v29 }
  0x52   :  { %397 = vmatpush.msra.mxu0 %v164_v30  ;;  %416 = vmatpush.msra.mxu1 %v181_v31 }
  0x53   :  { %437 = vmatpush.msra.mxu2 %v196_v32  ;;  %456 = vmatpush.msra.mxu3 %v213_v33 }
  0x54   :  { %398 = vmatpush.msra.mxu0 %v163_v34  ;;  %417 = vmatpush.msra.mxu1 %v180_v35 }
  0x55   :  { %438 = vmatpush.msra.mxu2 %v195_v36  ;;  %457 = vmatpush.msra.mxu3 %v212_v37 }
  0x56   :  { %399 = vmatpush.msra.mxu0 %v162_v38  ;;  %418 = vmatpush.msra.mxu1 %v179_v39 }
  0x57   :  { %439 = vmatpush.msra.mxu2 %v194_v40  ;;  %458 = vmatpush.msra.mxu3 %v211_v41 }
  0x58   :  { %400 = vmatpush.msra.mxu0 %v161_v42  ;;  %419 = vmatpush.msra.mxu1 %v178_v43 }
  0x59   :  { %440 = vmatpush.msra.mxu2 %v193_v44  ;;  %459 = vmatpush.msra.mxu3 %v210_v45 }
  0x5a   :  { %401 = vmatpush.msra.mxu0 %v160_v46  ;;  %420 = vmatpush.msra.mxu1 %v177_v47 }
  0x5b   :  { %441 = vmatpush.msra.mxu2 %v192_v48  ;;  %460 = vmatpush.msra.mxu3 %v209_v49 }
  0x5c   :  { %402 = vmatpush.msra.mxu0 %v159_v50  ;;  %421 = vmatpush.msra.mxu1 %v176_v51 }
  0x5d   :  { %442 = vmatpush.msra.mxu2 %v191_v52  ;;  %461 = vmatpush.msra.mxu3 %v208_v53 }
  0x5e   :  { %403 = vmatpush.msra.mxu0 %v158_v54  ;;  %422 = vmatpush.msra.mxu1 %v175_v55 }
  0x5f   :  { %443 = vmatpush.msra.mxu2 %v190_v56  ;;  %462 = vmatpush.msra.mxu3 %v207_v57 }
  0x60   :  { %404 = vmatpush.msra.mxu0 %v157_v58  ;;  %423 = vmatpush.msra.mxu1 %v174_v59 }
  0x61   :  { %444 = vmatpush.msra.mxu2 %v189_v60  ;;  %463 = vmatpush.msra.mxu3 %v206_v61 }
  0x62   :  { %405 = vmatpush.msra.mxu0 %v156_v62  ;;  %424 = vmatpush.msra.mxu1 %v173_v63 }
  0x63   :  { %445 = vmatpush.msra.mxu2 %v188_v0  ;;  %464 = vmatpush.msra.mxu3 %v205_v1 }
  0x64   :  { %406 = vmatpush.msra.mxu0 %v155_v2  ;;  %425 = vmatpush.msra.mxu1 %v172_v3 }
  0x65   :  { %446 = vmatpush.msra.mxu2 %v187_v4  ;;  %465 = vmatpush.msra.mxu3 %v204_v5 }
  0x66   :  { %407 = vmatmul.f32.vlgmr.msra.gmra.mxu0 %v22_v6  ;;  %447 = vmatmul.f32.vlgmr.msra.gmra.mxu2 %v24_v7 }
  0x67   :  { %426 = vmatpush.msra.mxu1 %v171_v8  ;;  %466 = vmatpush.msra.mxu3 %v203_v9 }
  0x68   :  { %427 = vmatmul.f32.vlgmr.msra.gmra.mxu1 %v23_v10  ;;  %467 = vmatmul.f32.vlgmr.msra.gmra.mxu3 %v25_v11 }
  0x69   :  { %483 = vmatpush.msrb.mxu0 %v222_v12 }
  0x6b   :  { %484 = vmatpush.msrb.mxu0 %v221_v13 }
  0x6d   :  { %485 = vmatpush.msrb.mxu0 %v220_v14 }
  0x6f   :  { %486 = vmatpush.msrb.mxu0 %v219_v15 }
  0x70   :  { %496 = vmatmul.msk.f32.vlgmr.msrb.gmra.mxu0 %vm227_vm0, %v26_v16 }
  0xbf   :  { %v248_v18 = vpop.f32.mrf.mxu0 }
  0xc0   :  { %v249_v19 = vadd.f32 %v497_v17, %v248_v18 }
  0xc2   :  { %v268_v20 = vpop.f32.mrf.mxu1 }
  0xc3   :  { %v269_v21 = vadd.f32 %v268_v20, %v249_v19 }
  0xc5   :  { %v288_v22 = vpop.f32.mrf.mxu2 }
  0xc6   :  { %v289_v23 = vadd.f32 %v288_v22, %v269_v21 }
  0xc8   :  { %v308_v24 = vpop.f32.mrf.mxu3 }
  0xc9   :  { %v309_v25 = vadd.f32 %v308_v24, %v289_v23 }
  0xcb   :  { %v328_v26 = vpop.f32.mrf.mxu0 }
  0xcc   :  { %v329_v27 = vadd.f32 %v328_v26, %v309_v25 }
  0xce   :  { %v348_v28 = vpop.f32.mrf.mxu1 }
  0xcf   :  { %v349_v29 = vadd.f32 %v348_v28, %v329_v27  ;;  %v368_v30 = vpop.f32.mrf.mxu2 }
  0xd1   :  { %v369_v31 = vadd.f32 %v368_v30, %v349_v29 }
  0xd2   :  { %v388_v32 = vpop.f32.mrf.mxu3 }
  0xd3   :  { %v389_v33 = vadd.f32 %v388_v32, %v369_v31 }
  0xe3   :  { %v408_v34 = vpop.f32.mrf.mxu0 }
  0xe4   :  { %v409_v35 = vadd.f32 %v408_v34, %v389_v33 }
  0xe5   :  { %v428_v36 = vpop.f32.mrf.mxu1 }
  0xe6   :  { %v429_v37 = vadd.f32 %v428_v36, %v409_v35 }
  0xe9   :  { %v448_v38 = vpop.f32.mrf.mxu2 }
  0xea   :  { %v449_v39 = vadd.f32 %v448_v38, %v429_v37 }
  0xeb   :  { %v468_v40 = vpop.f32.mrf.mxu3 }
  0xec   :  { %v469_v41 = vadd.f32 %v468_v40, %v449_v39 }
  0xed   :  { %v488_v42 = vpop.f32.mrf.mxu0 }
  0xee   :  { %v489_v43 = vadd.f32 %v488_v42, %v469_v41 }
  0xf0   :  { %491 = vst [vmem:[%s1154_s3] sm:$0xff] %v489_v43 }

</bundles_post_ra>
